<compile_context>
chip_gen: v7x
topology: tpu7x:2x2x1
jax: 0.10.0
libtpu: 0.0.40
codegen_flags: <defaults>
</compile_context>

<pallas_src>
import functools
import math

import jax
import jax.numpy as jnp
from jax.experimental import pallas as pl
from jax.experimental.pallas import tpu as pltpu

TEMPORAL_BATCH_SIZE = 8
POOL_SCALE = 8


# ----------------------------------------------------------------------------
# Pallas kernel: one-shot matmul with fused per-channel bias (folded BN) + ReLU
# ----------------------------------------------------------------------------
def _fused_mm_kernel(a_ref, w_ref, b_ref, o_ref, *, apply_relu):
    acc = jnp.dot(a_ref[...], w_ref[...], preferred_element_type=jnp.float32)
    y = acc + b_ref[...]                       # f32 epilogue (v5e-safe)
    if apply_relu:
        y = jnp.maximum(y, 0.0)
    o_ref[...] = y.astype(o_ref.dtype)


def _pick_tm(m):
    """Row tile: multiple of 16 (bf16 sublane pack), balanced across blocks,
    >=2 blocks when possible (megacore / v7x second TC), capped at 256."""
    if m <= 32:
        return max(16, ((m + 15) // 16) * 16)
    blocks = max(2, (m + 255) // 256)
    tm = (((m + blocks - 1) // blocks) + 15) // 16 * 16
    return min(256, tm)


def fused_matmul_bias(a, w, bias, apply_relu=True, out_dtype=jnp.bfloat16):
    """relu((a @ w) + bias) — bf16 operands, f32 accumulate/epilogue."""
    M, K = a.shape
    K2, N = w.shape
    assert K == K2 and bias.shape == (1, N)
    tm = _pick_tm(M)
    grid_m = -(-M // tm)

    return pl.pallas_call(
        functools.partial(_fused_mm_kernel, apply_relu=apply_relu),
        out_shape=jax.ShapeDtypeStruct((M, N), out_dtype),
        grid_spec=pltpu.PrefetchScalarGridSpec(
            num_scalar_prefetch=0,
            grid=(grid_m,),
            in_specs=[
                pl.BlockSpec((tm, K), lambda i: (i, 0)),   # patch rows tile
                pl.BlockSpec((K, N), lambda i: (0, 0)),    # whole weight (resident)
                pl.BlockSpec((1, N), lambda i: (0, 0)),    # folded BN bias (f32)
            ],
            out_specs=pl.BlockSpec((tm, N), lambda i: (i, 0)),
        ),
        compiler_params=pltpu.CompilerParams(
            dimension_semantics=("parallel",)),
    )(a, w, bias)


# ----------------------------------------------------------------------------
# im2col glue (data movement only; the matmul hot path runs in the kernel)
# ----------------------------------------------------------------------------
def _im2col2d(x, kh, kw, stride, pad):
    # x: (N, H, W, C) bf16 -> (N*Ho*Wo, kh*kw*C), tap-major (dy, dx, C)
    if pad:
        x = jnp.pad(x, ((0, 0), (pad, pad), (pad, pad), (0, 0)))
    N, Hp, Wp, C = x.shape
    Ho = (Hp - kh) // stride + 1
    Wo = (Wp - kw) // stride + 1
    cols = []
    for dy in range(kh):
        for dx in range(kw):
            cols.append(x[:, dy:dy + stride * Ho:stride,
                          dx:dx + stride * Wo:stride, :])
    patches = jnp.concatenate(cols, axis=-1)
    return patches.reshape(N * Ho * Wo, kh * kw * C), (N, Ho, Wo)


def _im2col3d(x, k, pad):
    # x: (N, T, H, W, C) bf16, stride 1 -> (N*T*H*W, k^3*C), tap-major (dt,dy,dx,C)
    x = jnp.pad(x, ((0, 0), (pad, pad), (pad, pad), (pad, pad), (0, 0)))
    N, Tp, Hp, Wp, C = x.shape
    To, Ho, Wo = Tp - k + 1, Hp - k + 1, Wp - k + 1
    cols = []
    for dt in range(k):
        for dy in range(k):
            for dx in range(k):
                cols.append(x[:, dt:dt + To, dy:dy + Ho, dx:dx + Wo, :])
    patches = jnp.concatenate(cols, axis=-1)
    return patches.reshape(N * To * Ho * Wo, k * k * k * C), (N, To, Ho, Wo)


def conv2d_bn_relu(x, layer, stride, pad):
    # x: NHWC bf16 ; layer["w"]: pre-packed, BN-scale-folded (9*Cin, Cout) bf16
    patches, (N, Ho, Wo) = _im2col2d(x, 3, 3, stride, pad)
    cout = layer["w"].shape[1]
    out = fused_matmul_bias(patches, layer["w"], layer["b"])
    return out.reshape(N, Ho, Wo, cout)


def conv3d_bn_relu(x, layer):
    # x: (N, T, H, W, C) bf16 ; layer["w"]: pre-packed, folded (27*Cin, Cout) bf16
    patches, (N, To, Ho, Wo) = _im2col3d(x, 3, pad=1)
    cout = layer["w"].shape[1]
    out = fused_matmul_bias(patches, layer["w"], layer["b"])
    return out.reshape(N, To, Ho, Wo, cout)


def maxpool3d_2(x):
    # nn.MaxPool3d(2, stride=2) with floor of odd dims; channel-last bf16.
    N, T, H, W, C = x.shape
    To, Ho, Wo = T // 2, H // 2, W // 2
    x = x[:, :To * 2, :Ho * 2, :Wo * 2, :]
    x = x.reshape(N, To, 2, Ho, 2, Wo, 2, C)
    return x.max(axis=(2, 4, 6))


# ----------------------------------------------------------------------------
# Parameters: deterministic synthetic init, pre-packed / BN-folded for the kernel
# ----------------------------------------------------------------------------
def _kaiming(key, shape):
    fan_in = math.prod(shape[1:])
    return (2.0 / fan_in) ** 0.5 * jax.random.normal(key, shape, jnp.float32)


def _bn_fold(key, c, eps):
    kg, kb = jax.random.split(key)
    gamma = 1.0 + 0.1 * jax.random.normal(kg, (c,), jnp.float32)
    beta = 0.1 * jax.random.normal(kb, (c,), jnp.float32)
    mean = jnp.zeros((c,), jnp.float32)      # running stats (eval-mode BN)
    var = jnp.ones((c,), jnp.float32)
    s = gamma / jnp.sqrt(var + eps)
    return s, beta - mean * s


def _prep_conv2d(key, cout, cin, eps=1e-3):
    # BasicConv2d: Conv2d(bias=False) + BatchNorm2d(eps=1e-3) + ReLU
    kw_, kbn = jax.random.split(key)
    w = _kaiming(kw_, (cout, cin, 3, 3))
    s, b = _bn_fold(kbn, cout, eps)
    w2 = jnp.transpose(w, (2, 3, 1, 0)).reshape(9 * cin, cout)  # (dy,dx,Cin)
    w2 = w2 * s.reshape(1, cout)              # fold BN scale into weights (f32)
    return {"w": w2.astype(jnp.bfloat16),
            "b": b.reshape(1, cout).astype(jnp.float32)}


def _prep_conv3d(key, cout, cin, eps=1e-5):
    # Conv3d(kaiming, zero bias) + BatchNorm3d(eps=1e-5) + ReLU
    kw_, kbn = jax.random.split(key)
    w = _kaiming(kw_, (cout, cin, 3, 3, 3))
    conv_bias = jnp.zeros((cout,), jnp.float32)       # Conv3d bias zero-init
    s, b = _bn_fold(kbn, cout, eps)
    eff_b = conv_bias * s + b                          # fold conv bias thru BN
    w2 = jnp.transpose(w, (2, 3, 4, 1, 0)).reshape(27 * cin, cout)
    w2 = w2 * s.reshape(1, cout)              # fold BN scale into weights (f32)
    return {"w": w2.astype(jnp.bfloat16),
            "b": eff_b.reshape(1, cout).astype(jnp.float32)}


def init_params(key):
    ks = jax.random.split(key, 8)
    p = {}
    # PreFeatures: BasicConv2d (conv bias=False, BN eps=1e-3)
    p["c1a"] = _prep_conv2d(ks[0], 32, 3)     # Conv2d_1a_3x3, stride 2
    p["c2a"] = _prep_conv2d(ks[1], 32, 32)    # Conv2d_2a_3x3
    p["c2b"] = _prep_conv2d(ks[2], 64, 32)    # Conv2d_2b_3x3, pad 1
    # 3-D encoder: Conv3d(kaiming, zero bias) + BatchNorm3d(eps=1e-5)
    specs = [(64, 64), (64, 64), (96, 64), (96, 96), (128, 96)]
    for i, (cout, cin) in enumerate(specs, start=1):
        p[f"c3_{i}"] = _prep_conv3d(ks[2 + i], cout, cin)
    return p


# ----------------------------------------------------------------------------
# Full forward pass (mirrors STCAEEncoder.forward)
# ----------------------------------------------------------------------------
def stcae_encoder_forward(inputs, params):
    B, C, T, H, W = inputs.shape
    # (B, C, T, H, W) -> (B*T, C, H, W) -> NHWC bf16
    x = jnp.transpose(inputs, (0, 2, 1, 3, 4)).reshape(B * T, C, H, W)
    x = jnp.transpose(x, (0, 2, 3, 1)).astype(jnp.bfloat16)

    p = params
    # PreFeatures: Conv2d_1a_3x3 (s=2), Conv2d_2a_3x3, Conv2d_2b_3x3 (pad=1)
    x = conv2d_bn_relu(x, p["c1a"], stride=2, pad=0)
    x = conv2d_bn_relu(x, p["c2a"], stride=1, pad=0)
    x = conv2d_bn_relu(x, p["c2b"], stride=1, pad=1)

    # (B*T, H', W', 64) -> (B, T, H', W', 64)  (channel-last NTHWC)
    _, Hp, Wp, Cp = x.shape
    x = x.reshape(B, T, Hp, Wp, Cp)

    # 3-D encoder
    x = conv3d_bn_relu(x, p["c3_1"])
    x = conv3d_bn_relu(x, p["c3_2"])
    x = maxpool3d_2(x)
    x = conv3d_bn_relu(x, p["c3_3"])
    x = conv3d_bn_relu(x, p["c3_4"])
    x = maxpool3d_2(x)
    x = conv3d_bn_relu(x, p["c3_5"])
    x = maxpool3d_2(x)

    # back to PyTorch layout NCDHW: (B, 128, T/8, h, w), f32 on the way out
    return jnp.transpose(x, (0, 4, 1, 2, 3)).astype(jnp.float32)


if __name__ == "__main__":
    key = jax.random.PRNGKey(0)
    k_in, k_par = jax.random.split(key)

    B, H, W = 2, 24, 24                        # H, W % pool_scale == 0
    inputs = jax.random.normal(k_in, (B, 3, TEMPORAL_BATCH_SIZE, H, W),
                               jnp.float32)
    assert inputs.shape[1] == 3
    assert inputs.shape[2] == TEMPORAL_BATCH_SIZE
    assert all(inputs.shape[i] % POOL_SCALE == 0 for i in (3, 4))

    params = init_params(k_par)
    fwd = jax.jit(stcae_encoder_forward)
    codes = jax.block_until_ready(fwd(inputs, params))

    # Expected: (B, 128, T/8, h/8-ish, w/8-ish) => (2, 128, 1, 1, 1) here.
    assert codes.shape == (B, 128, 1, 1, 1), codes.shape
    assert jnp.all(jnp.isfinite(codes))
    print("KERNEL_OK")
</pallas_src>

<mosaic_0001>
module attributes {stable_mosaic.version = 11 : i64} {
  func.func @_fused_mm_kernel(%arg0: i32, %arg1: memref<256x27xbf16, #tpu.memory_space<vmem>>, %arg2: memref<27x32xbf16, #tpu.memory_space<vmem>>, %arg3: memref<1x32xf32, #tpu.memory_space<vmem>>, %arg4: memref<256x32xbf16, #tpu.memory_space<vmem>>) attributes {dimension_semantics = [#tpu.dimension_semantics<parallel>], iteration_bounds = array<i64: 8>, scalar_prefetch = 0 : i64, scratch_operands = 0 : i64, tpu.core_type = #tpu.core_type<tc>, window_params = [{transform_indices = @transform_0, window_bounds = array<i64: 256, 27>}, {pipeline_mode = #tpu.pipeline_mode<synchronous>, transform_indices = @transform_1, window_bounds = array<i64: 27, 32>}, {pipeline_mode = #tpu.pipeline_mode<synchronous>, transform_indices = @transform_2, window_bounds = array<i64: 1, 32>}, {transform_indices = @transform_3, window_bounds = array<i64: 256, 32>}]} {
    %c0 = arith.constant 0 : index
    %c0_0 = arith.constant 0 : index
    %0 = vector.load %arg1[%c0, %c0_0] : memref<256x27xbf16, #tpu.memory_space<vmem>>, vector<256x27xbf16>
    %c0_1 = arith.constant 0 : index
    %c0_2 = arith.constant 0 : index
    %1 = vector.load %arg2[%c0_1, %c0_2] : memref<27x32xbf16, #tpu.memory_space<vmem>>, vector<27x32xbf16>
    %cst = arith.constant dense<0.000000e+00> : vector<256x32xf32>
    %2 = tpu.matmul %0, %1, %cst {dimension_numbers = #tpu.dot_dimension_numbers<[1], [0], [0], [1], [0, 0, 1, 1], [], []>} : vector<256x27xbf16>, vector<27x32xbf16>, vector<256x32xf32> -> vector<256x32xf32>
    %c0_3 = arith.constant 0 : index
    %c0_4 = arith.constant 0 : index
    %3 = vector.load %arg3[%c0_3, %c0_4] : memref<1x32xf32, #tpu.memory_space<vmem>>, vector<1x32xf32>
    %4 = vector.broadcast %3 : vector<1x32xf32> to vector<256x32xf32>
    %5 = arith.addf %2, %4 : vector<256x32xf32>
    %cst_5 = arith.constant 0.000000e+00 : f32
    %6 = vector.broadcast %cst_5 : f32 to vector<256x32xf32>
    %7 = arith.maximumf %5, %6 : vector<256x32xf32>
    %8 = arith.truncf %7 : vector<256x32xf32> to vector<256x32xbf16>
    %c0_6 = arith.constant 0 : index
    %c0_7 = arith.constant 0 : index
    %9 = vector.load %arg4[%c0_6, %c0_7] : memref<256x32xbf16, #tpu.memory_space<vmem>>, vector<256x32xbf16>
    tpu.vector_store %arg4[%c0_6, %c0_7], %8 {strides = array<i32>} : memref<256x32xbf16, #tpu.memory_space<vmem>>, vector<256x32xbf16>,
    return
  }
  func.func @transform_0(%arg0: i32) -> (i32, i32) {
    %c0_i32 = arith.constant 0 : i32
    %c0_i32_0 = arith.constant 0 : i32
    return %arg0, %c0_i32 : i32, i32
  }
  func.func @transform_1(%arg0: i32) -> (i32, i32) {
    %c0_i32 = arith.constant 0 : i32
    %c0_i32_0 = arith.constant 0 : i32
    %c0_i32_1 = arith.constant 0 : i32
    return %c0_i32, %c0_i32_0 : i32, i32
  }
  func.func @transform_2(%arg0: i32) -> (i32, i32) {
    %c0_i32 = arith.constant 0 : i32
    %c0_i32_0 = arith.constant 0 : i32
    %c0_i32_1 = arith.constant 0 : i32
    return %c0_i32, %c0_i32_0 : i32, i32
  }
  func.func @transform_3(%arg0: i32) -> (i32, i32) {
    %c0_i32 = arith.constant 0 : i32
    %c0_i32_0 = arith.constant 0 : i32
    return %arg0, %c0_i32 : i32, i32
  }
}

module attributes {stable_mosaic.version = 11 : i64} {
  func.func @_fused_mm_kernel(%arg0: i32, %arg1: memref<224x288xbf16, #tpu.memory_space<vmem>>, %arg2: memref<288x32xbf16, #tpu.memory_space<vmem>>, %arg3: memref<1x32xf32, #tpu.memory_space<vmem>>, %arg4: memref<224x32xbf16, #tpu.memory_space<vmem>>) attributes {dimension_semantics = [#tpu.dimension_semantics<parallel>], iteration_bounds = array<i64: 6>, scalar_prefetch = 0 : i64, scratch_operands = 0 : i64, tpu.core_type = #tpu.core_type<tc>, window_params = [{transform_indices = @transform_0, window_bounds = array<i64: 224, 288>}, {pipeline_mode = #tpu.pipeline_mode<synchronous>, transform_indices = @transform_1, window_bounds = array<i64: 288, 32>}, {pipeline_mode = #tpu.pipeline_mode<synchronous>, transform_indices = @transform_2, window_bounds = array<i64: 1, 32>}, {transform_indices = @transform_3, window_bounds = array<i64: 224, 32>}]} {
    %c0 = arith.constant 0 : index
    %c0_0 = arith.constant 0 : index
    %0 = vector.load %arg1[%c0, %c0_0] : memref<224x288xbf16, #tpu.memory_space<vmem>>, vector<224x288xbf16>
    %c0_1 = arith.constant 0 : index
    %c0_2 = arith.constant 0 : index
    %1 = vector.load %arg2[%c0_1, %c0_2] : memref<288x32xbf16, #tpu.memory_space<vmem>>, vector<288x32xbf16>
    %cst = arith.constant dense<0.000000e+00> : vector<224x32xf32>
    %2 = tpu.matmul %0, %1, %cst {dimension_numbers = #tpu.dot_dimension_numbers<[1], [0], [0], [1], [0, 0, 1, 1], [], []>} : vector<224x288xbf16>, vector<288x32xbf16>, vector<224x32xf32> -> vector<224x32xf32>
    %c0_3 = arith.constant 0 : index
    %c0_4 = arith.constant 0 : index
    %3 = vector.load %arg3[%c0_3, %c0_4] : memref<1x32xf32, #tpu.memory_space<vmem>>, vector<1x32xf32>
    %4 = vector.broadcast %3 : vector<1x32xf32> to vector<224x32xf32>
    %5 = arith.addf %2, %4 : vector<224x32xf32>
    %cst_5 = arith.constant 0.000000e+00 : f32
    %6 = vector.broadcast %cst_5 : f32 to vector<224x32xf32>
    %7 = arith.maximumf %5, %6 : vector<224x32xf32>
    %8 = arith.truncf %7 : vector<224x32xf32> to vector<224x32xbf16>
    %c0_6 = arith.constant 0 : index
    %c0_7 = arith.constant 0 : index
    %9 = vector.load %arg4[%c0_6, %c0_7] : memref<224x32xbf16, #tpu.memory_space<vmem>>, vector<224x32xbf16>
    tpu.vector_store %arg4[%c0_6, %c0_7], %8 {strides = array<i32>} : memref<224x32xbf16, #tpu.memory_space<vmem>>, vector<224x32xbf16>,
    return
  }
  func.func @transform_0(%arg0: i32) -> (i32, i32) {
    %c0_i32 = arith.constant 0 : i32
    %c0_i32_0 = arith.constant 0 : i32
    return %arg0, %c0_i32 : i32, i32
  }
  func.func @transform_1(%arg0: i32) -> (i32, i32) {
    %c0_i32 = arith.constant 0 : i32
    %c0_i32_0 = arith.constant 0 : i32
    %c0_i32_1 = arith.constant 0 : i32
    return %c0_i32, %c0_i32_0 : i32, i32
  }
  func.func @transform_2(%arg0: i32) -> (i32, i32) {
    %c0_i32 = arith.constant 0 : i32
    %c0_i32_0 = arith.constant 0 : i32
    %c0_i32_1 = arith.constant 0 : i32
    return %c0_i32, %c0_i32_0 : i32, i32
  }
  func.func @transform_3(%arg0: i32) -> (i32, i32) {
    %c0_i32 = arith.constant 0 : i32
    %c0_i32_0 = arith.constant 0 : i32
    return %arg0, %c0_i32 : i32, i32
  }
}

module attributes {stable_mosaic.version = 11 : i64} {
  func.func @_fused_mm_kernel(%arg0: i32, %arg1: memref<224x288xbf16, #tpu.memory_space<vmem>>, %arg2: memref<288x64xbf16, #tpu.memory_space<vmem>>, %arg3: memref<1x64xf32, #tpu.memory_space<vmem>>, %arg4: memref<224x64xbf16, #tpu.memory_space<vmem>>) attributes {dimension_semantics = [#tpu.dimension_semantics<parallel>], iteration_bounds = array<i64: 6>, scalar_prefetch = 0 : i64, scratch_operands = 0 : i64, tpu.core_type = #tpu.core_type<tc>, window_params = [{transform_indices = @transform_0, window_bounds = array<i64: 224, 288>}, {pipeline_mode = #tpu.pipeline_mode<synchronous>, transform_indices = @transform_1, window_bounds = array<i64: 288, 64>}, {pipeline_mode = #tpu.pipeline_mode<synchronous>, transform_indices = @transform_2, window_bounds = array<i64: 1, 64>}, {transform_indices = @transform_3, window_bounds = array<i64: 224, 64>}]} {
    %c0 = arith.constant 0 : index
    %c0_0 = arith.constant 0 : index
    %0 = vector.load %arg1[%c0, %c0_0] : memref<224x288xbf16, #tpu.memory_space<vmem>>, vector<224x288xbf16>
    %c0_1 = arith.constant 0 : index
    %c0_2 = arith.constant 0 : index
    %1 = vector.load %arg2[%c0_1, %c0_2] : memref<288x64xbf16, #tpu.memory_space<vmem>>, vector<288x64xbf16>
    %cst = arith.constant dense<0.000000e+00> : vector<224x64xf32>
    %2 = tpu.matmul %0, %1, %cst {dimension_numbers = #tpu.dot_dimension_numbers<[1], [0], [0], [1], [0, 0, 1, 1], [], []>} : vector<224x288xbf16>, vector<288x64xbf16>, vector<224x64xf32> -> vector<224x64xf32>
    %c0_3 = arith.constant 0 : index
    %c0_4 = arith.constant 0 : index
    %3 = vector.load %arg3[%c0_3, %c0_4] : memref<1x64xf32, #tpu.memory_space<vmem>>, vector<1x64xf32>
    %4 = vector.broadcast %3 : vector<1x64xf32> to vector<224x64xf32>
    %5 = arith.addf %2, %4 : vector<224x64xf32>
    %cst_5 = arith.constant 0.000000e+00 : f32
    %6 = vector.broadcast %cst_5 : f32 to vector<224x64xf32>
    %7 = arith.maximumf %5, %6 : vector<224x64xf32>
    %8 = arith.truncf %7 : vector<224x64xf32> to vector<224x64xbf16>
    %c0_6 = arith.constant 0 : index
    %c0_7 = arith.constant 0 : index
    %9 = vector.load %arg4[%c0_6, %c0_7] : memref<224x64xbf16, #tpu.memory_space<vmem>>, vector<224x64xbf16>
    tpu.vector_store %arg4[%c0_6, %c0_7], %8 {strides = array<i32>} : memref<224x64xbf16, #tpu.memory_space<vmem>>, vector<224x64xbf16>,
    return
  }
  func.func @transform_0(%arg0: i32) -> (i32, i32) {
    %c0_i32 = arith.constant 0 : i32
    %c0_i32_0 = arith.constant 0 : i32
    return %arg0, %c0_i32 : i32, i32
  }
  func.func @transform_1(%arg0: i32) -> (i32, i32) {
    %c0_i32 = arith.constant 0 : i32
    %c0_i32_0 = arith.constant 0 : i32
    %c0_i32_1 = arith.constant 0 : i32
    return %c0_i32, %c0_i32_0 : i32, i32
  }
  func.func @transform_2(%arg0: i32) -> (i32, i32) {
    %c0_i32 = arith.constant 0 : i32
    %c0_i32_0 = arith.constant 0 : i32
    %c0_i32_1 = arith.constant 0 : i32
    return %c0_i32, %c0_i32_0 : i32, i32
  }
  func.func @transform_3(%arg0: i32) -> (i32, i32) {
    %c0_i32 = arith.constant 0 : i32
    %c0_i32_0 = arith.constant 0 : i32
    return %arg0, %c0_i32 : i32, i32
  }
}

module attributes {stable_mosaic.version = 11 : i64} {
  func.func @_fused_mm_kernel(%arg0: i32, %arg1: memref<224x1728xbf16, #tpu.memory_space<vmem>>, %arg2: memref<1728x64xbf16, #tpu.memory_space<vmem>>, %arg3: memref<1x64xf32, #tpu.memory_space<vmem>>, %arg4: memref<224x64xbf16, #tpu.memory_space<vmem>>) attributes {dimension_semantics = [#tpu.dimension_semantics<parallel>], iteration_bounds = array<i64: 6>, scalar_prefetch = 0 : i64, scratch_operands = 0 : i64, tpu.core_type = #tpu.core_type<tc>, window_params = [{transform_indices = @transform_0, window_bounds = array<i64: 224, 1728>}, {pipeline_mode = #tpu.pipeline_mode<synchronous>, transform_indices = @transform_1, window_bounds = array<i64: 1728, 64>}, {pipeline_mode = #tpu.pipeline_mode<synchronous>, transform_indices = @transform_2, window_bounds = array<i64: 1, 64>}, {transform_indices = @transform_3, window_bounds = array<i64: 224, 64>}]} {
    %c0 = arith.constant 0 : index
    %c0_0 = arith.constant 0 : index
    %0 = vector.load %arg1[%c0, %c0_0] : memref<224x1728xbf16, #tpu.memory_space<vmem>>, vector<224x1728xbf16>
    %c0_1 = arith.constant 0 : index
    %c0_2 = arith.constant 0 : index
    %1 = vector.load %arg2[%c0_1, %c0_2] : memref<1728x64xbf16, #tpu.memory_space<vmem>>, vector<1728x64xbf16>
    %cst = arith.constant dense<0.000000e+00> : vector<224x64xf32>
    %2 = tpu.matmul %0, %1, %cst {dimension_numbers = #tpu.dot_dimension_numbers<[1], [0], [0], [1], [0, 0, 1, 1], [], []>} : vector<224x1728xbf16>, vector<1728x64xbf16>, vector<224x64xf32> -> vector<224x64xf32>
    %c0_3 = arith.constant 0 : index
    %c0_4 = arith.constant 0 : index
    %3 = vector.load %arg3[%c0_3, %c0_4] : memref<1x64xf32, #tpu.memory_space<vmem>>, vector<1x64xf32>
    %4 = vector.broadcast %3 : vector<1x64xf32> to vector<224x64xf32>
    %5 = arith.addf %2, %4 : vector<224x64xf32>
    %cst_5 = arith.constant 0.000000e+00 : f32
    %6 = vector.broadcast %cst_5 : f32 to vector<224x64xf32>
    %7 = arith.maximumf %5, %6 : vector<224x64xf32>
    %8 = arith.truncf %7 : vector<224x64xf32> to vector<224x64xbf16>
    %c0_6 = arith.constant 0 : index
    %c0_7 = arith.constant 0 : index
    %9 = vector.load %arg4[%c0_6, %c0_7] : memref<224x64xbf16, #tpu.memory_space<vmem>>, vector<224x64xbf16>
    tpu.vector_store %arg4[%c0_6, %c0_7], %8 {strides = array<i32>} : memref<224x64xbf16, #tpu.memory_space<vmem>>, vector<224x64xbf16>,
    return
  }
  func.func @transform_0(%arg0: i32) -> (i32, i32) {
    %c0_i32 = arith.constant 0 : i32
    %c0_i32_0 = arith.constant 0 : i32
    return %arg0, %c0_i32 : i32, i32
  }
  func.func @transform_1(%arg0: i32) -> (i32, i32) {
    %c0_i32 = arith.constant 0 : i32
    %c0_i32_0 = arith.constant 0 : i32
    %c0_i32_1 = arith.constant 0 : i32
    return %c0_i32, %c0_i32_0 : i32, i32
  }
  func.func @transform_2(%arg0: i32) -> (i32, i32) {
    %c0_i32 = arith.constant 0 : i32
    %c0_i32_0 = arith.constant 0 : i32
    %c0_i32_1 = arith.constant 0 : i32
    return %c0_i32, %c0_i32_0 : i32, i32
  }
  func.func @transform_3(%arg0: i32) -> (i32, i32) {
    %c0_i32 = arith.constant 0 : i32
    %c0_i32_0 = arith.constant 0 : i32
    return %arg0, %c0_i32 : i32, i32
  }
}

module attributes {stable_mosaic.version = 11 : i64} {
  func.func @_fused_mm_kernel(%arg0: i32, %arg1: memref<64x1728xbf16, #tpu.memory_space<vmem>>, %arg2: memref<1728x96xbf16, #tpu.memory_space<vmem>>, %arg3: memref<1x96xf32, #tpu.memory_space<vmem>>, %arg4: memref<64x96xbf16, #tpu.memory_space<vmem>>) attributes {dimension_semantics = [#tpu.dimension_semantics<parallel>], iteration_bounds = array<i64: 2>, scalar_prefetch = 0 : i64, scratch_operands = 0 : i64, tpu.core_type = #tpu.core_type<tc>, window_params = [{transform_indices = @transform_0, window_bounds = array<i64: 64, 1728>}, {pipeline_mode = #tpu.pipeline_mode<synchronous>, transform_indices = @transform_1, window_bounds = array<i64: 1728, 96>}, {pipeline_mode = #tpu.pipeline_mode<synchronous>, transform_indices = @transform_2, window_bounds = array<i64: 1, 96>}, {transform_indices = @transform_3, window_bounds = array<i64: 64, 96>}]} {
    %c0 = arith.constant 0 : index
    %c0_0 = arith.constant 0 : index
    %0 = vector.load %arg1[%c0, %c0_0] : memref<64x1728xbf16, #tpu.memory_space<vmem>>, vector<64x1728xbf16>
    %c0_1 = arith.constant 0 : index
    %c0_2 = arith.constant 0 : index
    %1 = vector.load %arg2[%c0_1, %c0_2] : memref<1728x96xbf16, #tpu.memory_space<vmem>>, vector<1728x96xbf16>
    %cst = arith.constant dense<0.000000e+00> : vector<64x96xf32>
    %2 = tpu.matmul %0, %1, %cst {dimension_numbers = #tpu.dot_dimension_numbers<[1], [0], [0], [1], [0, 0, 1, 1], [], []>} : vector<64x1728xbf16>, vector<1728x96xbf16>, vector<64x96xf32> -> vector<64x96xf32>
    %c0_3 = arith.constant 0 : index
    %c0_4 = arith.constant 0 : index
    %3 = vector.load %arg3[%c0_3, %c0_4] : memref<1x96xf32, #tpu.memory_space<vmem>>, vector<1x96xf32>
    %4 = vector.broadcast %3 : vector<1x96xf32> to vector<64x96xf32>
    %5 = arith.addf %2, %4 : vector<64x96xf32>
    %cst_5 = arith.constant 0.000000e+00 : f32
    %6 = vector.broadcast %cst_5 : f32 to vector<64x96xf32>
    %7 = arith.maximumf %5, %6 : vector<64x96xf32>
    %8 = arith.truncf %7 : vector<64x96xf32> to vector<64x96xbf16>
    %c0_6 = arith.constant 0 : index
    %c0_7 = arith.constant 0 : index
    %9 = vector.load %arg4[%c0_6, %c0_7] : memref<64x96xbf16, #tpu.memory_space<vmem>>, vector<64x96xbf16>
    tpu.vector_store %arg4[%c0_6, %c0_7], %8 {strides = array<i32>} : memref<64x96xbf16, #tpu.memory_space<vmem>>, vector<64x96xbf16>,
    return
  }
  func.func @transform_0(%arg0: i32) -> (i32, i32) {
    %c0_i32 = arith.constant 0 : i32
    %c0_i32_0 = arith.constant 0 : i32
    return %arg0, %c0_i32 : i32, i32
  }
  func.func @transform_1(%arg0: i32) -> (i32, i32) {
    %c0_i32 = arith.constant 0 : i32
    %c0_i32_0 = arith.constant 0 : i32
    %c0_i32_1 = arith.constant 0 : i32
    return %c0_i32, %c0_i32_0 : i32, i32
  }
  func.func @transform_2(%arg0: i32) -> (i32, i32) {
    %c0_i32 = arith.constant 0 : i32
    %c0_i32_0 = arith.constant 0 : i32
    %c0_i32_1 = arith.constant 0 : i32
    return %c0_i32, %c0_i32_0 : i32, i32
  }
  func.func @transform_3(%arg0: i32) -> (i32, i32) {
    %c0_i32 = arith.constant 0 : i32
    %c0_i32_0 = arith.constant 0 : i32
    return %arg0, %c0_i32 : i32, i32
  }
}

module attributes {stable_mosaic.version = 11 : i64} {
  func.func @_fused_mm_kernel(%arg0: i32, %arg1: memref<64x2592xbf16, #tpu.memory_space<vmem>>, %arg2: memref<2592x96xbf16, #tpu.memory_space<vmem>>, %arg3: memref<1x96xf32, #tpu.memory_space<vmem>>, %arg4: memref<64x96xbf16, #tpu.memory_space<vmem>>) attributes {dimension_semantics = [#tpu.dimension_semantics<parallel>], iteration_bounds = array<i64: 2>, scalar_prefetch = 0 : i64, scratch_operands = 0 : i64, tpu.core_type = #tpu.core_type<tc>, window_params = [{transform_indices = @transform_0, window_bounds = array<i64: 64, 2592>}, {pipeline_mode = #tpu.pipeline_mode<synchronous>, transform_indices = @transform_1, window_bounds = array<i64: 2592, 96>}, {pipeline_mode = #tpu.pipeline_mode<synchronous>, transform_indices = @transform_2, window_bounds = array<i64: 1, 96>}, {transform_indices = @transform_3, window_bounds = array<i64: 64, 96>}]} {
    %c0 = arith.constant 0 : index
    %c0_0 = arith.constant 0 : index
    %0 = vector.load %arg1[%c0, %c0_0] : memref<64x2592xbf16, #tpu.memory_space<vmem>>, vector<64x2592xbf16>
    %c0_1 = arith.constant 0 : index
    %c0_2 = arith.constant 0 : index
    %1 = vector.load %arg2[%c0_1, %c0_2] : memref<2592x96xbf16, #tpu.memory_space<vmem>>, vector<2592x96xbf16>
    %cst = arith.constant dense<0.000000e+00> : vector<64x96xf32>
    %2 = tpu.matmul %0, %1, %cst {dimension_numbers = #tpu.dot_dimension_numbers<[1], [0], [0], [1], [0, 0, 1, 1], [], []>} : vector<64x2592xbf16>, vector<2592x96xbf16>, vector<64x96xf32> -> vector<64x96xf32>
    %c0_3 = arith.constant 0 : index
    %c0_4 = arith.constant 0 : index
    %3 = vector.load %arg3[%c0_3, %c0_4] : memref<1x96xf32, #tpu.memory_space<vmem>>, vector<1x96xf32>
    %4 = vector.broadcast %3 : vector<1x96xf32> to vector<64x96xf32>
    %5 = arith.addf %2, %4 : vector<64x96xf32>
    %cst_5 = arith.constant 0.000000e+00 : f32
    %6 = vector.broadcast %cst_5 : f32 to vector<64x96xf32>
    %7 = arith.maximumf %5, %6 : vector<64x96xf32>
    %8 = arith.truncf %7 : vector<64x96xf32> to vector<64x96xbf16>
    %c0_6 = arith.constant 0 : index
    %c0_7 = arith.constant 0 : index
    %9 = vector.load %arg4[%c0_6, %c0_7] : memref<64x96xbf16, #tpu.memory_space<vmem>>, vector<64x96xbf16>
    tpu.vector_store %arg4[%c0_6, %c0_7], %8 {strides = array<i32>} : memref<64x96xbf16, #tpu.memory_space<vmem>>, vector<64x96xbf16>,
    return
  }
  func.func @transform_0(%arg0: i32) -> (i32, i32) {
    %c0_i32 = arith.constant 0 : i32
    %c0_i32_0 = arith.constant 0 : i32
    return %arg0, %c0_i32 : i32, i32
  }
  func.func @transform_1(%arg0: i32) -> (i32, i32) {
    %c0_i32 = arith.constant 0 : i32
    %c0_i32_0 = arith.constant 0 : i32
    %c0_i32_1 = arith.constant 0 : i32
    return %c0_i32, %c0_i32_0 : i32, i32
  }
  func.func @transform_2(%arg0: i32) -> (i32, i32) {
    %c0_i32 = arith.constant 0 : i32
    %c0_i32_0 = arith.constant 0 : i32
    %c0_i32_1 = arith.constant 0 : i32
    return %c0_i32, %c0_i32_0 : i32, i32
  }
  func.func @transform_3(%arg0: i32) -> (i32, i32) {
    %c0_i32 = arith.constant 0 : i32
    %c0_i32_0 = arith.constant 0 : i32
    return %arg0, %c0_i32 : i32, i32
  }
}

module attributes {stable_mosaic.version = 11 : i64} {
  func.func @_fused_mm_kernel(%arg0: i32, %arg1: memref<16x2592xbf16, #tpu.memory_space<vmem>>, %arg2: memref<2592x128xbf16, #tpu.memory_space<vmem>>, %arg3: memref<1x128xf32, #tpu.memory_space<vmem>>, %arg4: memref<16x128xbf16, #tpu.memory_space<vmem>>) attributes {dimension_semantics = [#tpu.dimension_semantics<parallel>], iteration_bounds = array<i64: 1>, scalar_prefetch = 0 : i64, scratch_operands = 0 : i64, tpu.core_type = #tpu.core_type<tc>, window_params = [{transform_indices = @transform_0, window_bounds = array<i64: 16, 2592>}, {pipeline_mode = #tpu.pipeline_mode<synchronous>, transform_indices = @transform_1, window_bounds = array<i64: 2592, 128>}, {pipeline_mode = #tpu.pipeline_mode<synchronous>, transform_indices = @transform_2, window_bounds = array<i64: 1, 128>}, {transform_indices = @transform_3, window_bounds = array<i64: 16, 128>}]} {
    %c0 = arith.constant 0 : index
    %c0_0 = arith.constant 0 : index
    %0 = vector.load %arg1[%c0, %c0_0] : memref<16x2592xbf16, #tpu.memory_space<vmem>>, vector<16x2592xbf16>
    %c0_1 = arith.constant 0 : index
    %c0_2 = arith.constant 0 : index
    %1 = vector.load %arg2[%c0_1, %c0_2] : memref<2592x128xbf16, #tpu.memory_space<vmem>>, vector<2592x128xbf16>
    %cst = arith.constant dense<0.000000e+00> : vector<16x128xf32>
    %2 = tpu.matmul %0, %1, %cst {dimension_numbers = #tpu.dot_dimension_numbers<[1], [0], [0], [1], [0, 0, 1, 1], [], []>} : vector<16x2592xbf16>, vector<2592x128xbf16>, vector<16x128xf32> -> vector<16x128xf32>
    %c0_3 = arith.constant 0 : index
    %c0_4 = arith.constant 0 : index
    %3 = vector.load %arg3[%c0_3, %c0_4] : memref<1x128xf32, #tpu.memory_space<vmem>>, vector<1x128xf32>
    %4 = vector.broadcast %3 : vector<1x128xf32> to vector<16x128xf32>
    %5 = arith.addf %2, %4 : vector<16x128xf32>
    %cst_5 = arith.constant 0.000000e+00 : f32
    %6 = vector.broadcast %cst_5 : f32 to vector<16x128xf32>
    %7 = arith.maximumf %5, %6 : vector<16x128xf32>
    %8 = arith.truncf %7 : vector<16x128xf32> to vector<16x128xbf16>
    %c0_6 = arith.constant 0 : index
    %c0_7 = arith.constant 0 : index
    %9 = vector.load %arg4[%c0_6, %c0_7] : memref<16x128xbf16, #tpu.memory_space<vmem>>, vector<16x128xbf16>
    tpu.vector_store %arg4[%c0_6, %c0_7], %8 {strides = array<i32>} : memref<16x128xbf16, #tpu.memory_space<vmem>>, vector<16x128xbf16>,
    return
  }
  func.func @transform_0(%arg0: i32) -> (i32, i32) {
    %c0_i32 = arith.constant 0 : i32
    %c0_i32_0 = arith.constant 0 : i32
    return %arg0, %c0_i32 : i32, i32
  }
  func.func @transform_1(%arg0: i32) -> (i32, i32) {
    %c0_i32 = arith.constant 0 : i32
    %c0_i32_0 = arith.constant 0 : i32
    %c0_i32_1 = arith.constant 0 : i32
    return %c0_i32, %c0_i32_0 : i32, i32
  }
  func.func @transform_2(%arg0: i32) -> (i32, i32) {
    %c0_i32 = arith.constant 0 : i32
    %c0_i32_0 = arith.constant 0 : i32
    %c0_i32_1 = arith.constant 0 : i32
    return %c0_i32, %c0_i32_0 : i32, i32
  }
  func.func @transform_3(%arg0: i32) -> (i32, i32) {
    %c0_i32 = arith.constant 0 : i32
    %c0_i32_0 = arith.constant 0 : i32
    return %arg0, %c0_i32 : i32, i32
  }
}

</mosaic_0001>

<bundles_post_ra>
// kernel: stcae_encoder_forward.8
= control target key start
LH: loop header
LB: loop body
LE: loop exit
PB: predicated region body
PF: predicated region fallthrough
CT: control target
= control target key end

     0   :  { %s1475_s12 = smov 0   ;;  %s1477_s13 = smov 0   ;;  %s1791_s0 = inlined_call_operand.vmem [shape: bf16[1936,27], index: 0, kind: input, shape index: {}]   ;;  %s1792_s1 = inlined_call_operand.vmem [shape: bf16[27,32], index: 1, kind: input, shape index: {}]   ;;  %s1793_s2 = inlined_call_operand.vmem [shape: f32[1,32], index: 2, kind: input, shape index: {}]   ;;  %s1794_s3 = inlined_call_operand.vmem [shape: bf16[1936,32], index: 3, kind: output, shape index: {}]  }
   0x1   :  { %s1479_s14 = smov 0  }
   0x2 LB: > { %s1488_s15 = sadd.s32 4294967295, %s1420_s14   ;;  %s1490_s16 = sadd.s32 1, %s1420_s14   ;;  %s1420_s14 = sphi %s1479_s14, %s1801_s14   ;;  %s1416_s13 = sphi %s1477_s13, %s1800_s13   ;;  %s1412_s12 = sphi %s1475_s12, %s1799_s12  }
   0x3   : > { %s85_s17 = ssub.s32 %s1420_s14, %s1490_s16  ;;  %s88_s18 = sadd.s32 1, %s1416_s13 }
   0x4   : > { %p86_p0 = scmp.eq.s32.totalorder %s85_s17, 0  ;;  %p98_p1 = scmp.ne.s32.totalorder %s1416_s13, %s1412_s12 }
   0x5   : > { %p99_p2 = scmp.eq.s32.totalorder %s1488_s15, 7  ;;  %p1078_p3 = scmp.ge.s32.totalorder %s1420_s14, 1 }
   0x6   : > { %s1498_s19 = scalar_select %p86_p0, %s1416_s13, %s88_s18  }
   0x7   : > { %p1500_p4 = por %p99_p2, %p98_p1  ;;  %p146_p5 = scmp.lt.s32.totalorder %s1420_s14, 9 }
   0x9   : > { %p147_p6 = pnand %p1078_p3, %p146_p5 }
   0xa   : > { %v1348_v0 = vld [vmem:[%s1792_s1] sm:$0xff] (!%p147_p6)   ;;  %vm376_vm0 = vcmask (!%p147_p6), 1044480   ;;  %v1349_v1 = vld [vmem:[%s1792_s1 + $0x8] sm:$0x3f] (!%p147_p6)   ;;  %vm377_vm1 = vcmask (!%p147_p6), 1045504   ;;  %s1511_s25 = sshll.u32 (!%p147_p6), %s1488_s15, 5 }
   0xb   : > { %150 = sbr.rel (%p147_p6) target bundleno = 341 (0x155), region = 32  ;;  %1219 = vmatprep.subr.bf16.mxu0 (!%p147_p6), %v1348_v0  ;;  %1255 = vmatprep.subr.bf16.mxu1 (!%p147_p6), %v1348_v0  ;;  %v1454_v2 = vmov (!%p147_p6), 65535   ;;  %p178_p7 = scmp.lt.s32.totalorder (!%p147_p6), %s1511_s25, 241  ;;  %vm327_vm2 = vcmask (!%p147_p6), 220160   ;;  %v1556_v22 = vld [vmem:[%s1793_s2] ss:$0 sm:$0xff] (!%p147_p6) }
   0xc   : > { %1220 = vmatpush3.bf16.msra.mxu0 (!%p147_p6), %v1348_v0  ;;  %1257 = vmatpush3.bf16.msra.mxu1 (!%p147_p6), %v1348_v0  ;;  %v378_v3 = vsel (!%p147_p6), %vm376_vm0, 4294967295, %v1454_v2  ;;  %s170_s4 = sand.u32 (!%p147_p6), 1, %s1412_s12   ;;  %vm704_vm3 = vcmask (!%p147_p6), 257024  }
   0xd   : > { %v379_v4 = vsel (!%p147_p6), %vm377_vm1, %v378_v3, 0  ;;  %s1079_s7 = sshll.u32 (!%p147_p6), %s170_s4, 7 }
   0xe   : > { %v381_v5 = vand.u32 (!%p147_p6), %v1349_v1, %v379_v4  ;;  %s1566_s8 = scalar_lea.vmem (!%p147_p6), [#allocation2], %s1079_s7  }
  0x10   : > { %1221 = vmatprep.subr.bf16.mxu0 (!%p147_p6), %v381_v5  ;;  %1256 = vmatprep.subr.bf16.mxu1 (!%p147_p6), %v381_v5 }
  0x11   : > { %1222 = vmatpush3.bf16.msra.mxu0 (!%p147_p6), %v381_v5  ;;  %1258 = vmatpush3.bf16.msra.mxu1 (!%p147_p6), %v381_v5 }
  0x12   : > { %s179_s26 = scalar_select %p178_p7, %s1511_s25, 241 }
  0x13   : > { %s745_s9 = ssub.s32 (%p1500_p4), 242, %s1511_s25  ;;  %s1198_s10 = sshll.u32 (%p1500_p4), %s1488_s15, 7 }
  0x14   : > { %s1081_s27 = sshll.u32 %s179_s26, 2  ;;  %p746_p8 = scmp.lt.s32.totalorder (%p1500_p4), %s745_s9, 32 }
  0x15   : > { %s1518_s30 = scalar_lea.vmem %s1791_s0, %s1081_s27  ;;  %s1663_s14 = scalar_lea.vmem (%p1500_p4), %s1794_s3, %s1198_s10  }
  0x16   : > { %v1350_v6 = vld [vmem:[%s1518_s30] sm:$0xff]   ;;  %v1352_v8 = vld [vmem:[%s1518_s30 + $0x8] sm:$0xff]   ;;  %v1354_v10 = vld [vmem:[%s1518_s30 + $0x10] sm:$0xff]  }
  0x17   : > { %v1351_v7 = vld [vmem:[%s1518_s30 + $0x40] sm:$0xff]   ;;  %1223 = vmatprep.mubr.msk.bf16.mxu0 %vm327_vm2, %v1350_v6  ;;  %v1353_v9 = vld [vmem:[%s1518_s30 + $0x48] sm:$0xff]   ;;  %v1355_v11 = vld [vmem:[%s1518_s30 + $0x50] sm:$0xff]  }
  0x18   : > { %1239 = vmatprep.mubr.msk.bf16.mxu1 %vm327_vm2, %v1351_v7  ;;  %1224 = vmatmul.mubr.msk.bf16.vlgmr.msra.gmra.mrb[0].mxu0 %vm327_vm2, %v1352_v8  ;;  %v1356_v12 = vld [vmem:[%s1518_s30 + $0x18] sm:$0xff]   ;;  %v1358_v14 = vld [vmem:[%s1518_s30 + $0x20] sm:$0xff]   ;;  %v1360_v16 = vld [vmem:[%s1518_s30 + $0x28] sm:$0xff]  }
  0x19   : > { %1240 = vmatmul.mubr.msk.bf16.vlgmr.msra.gmra.mrb[0].mxu1 %vm327_vm2, %v1353_v9  ;;  %1227 = vmatprep.mubr.msk.bf16.mxu0 %vm327_vm2, %v1354_v10  ;;  %v1357_v13 = vld [vmem:[%s1518_s30 + $0x58] sm:$0xff]   ;;  %v1359_v15 = vld [vmem:[%s1518_s30 + $0x60] sm:$0xff]   ;;  %v1361_v17 = vld [vmem:[%s1518_s30 + $0x68] sm:$0xff]  }
  0x1a   : > { %1243 = vmatprep.mubr.msk.bf16.mxu1 %vm327_vm2, %v1355_v11  ;;  %v1362_v18 = vld [vmem:[%s1518_s30 + $0x30] sm:$0xff]   ;;  %v1364_v20 = vld [vmem:[%s1518_s30 + $0x38] sm:$0xff]  }
  0x1b   : > { %v1363_v19 = vld [vmem:[%s1518_s30 + $0x70] sm:$0xff]   ;;  %v1365_v21 = vld [vmem:[%s1518_s30 + $0x78] sm:$0xff]  }
  0x20   : > { %1228 = vmatmul.mubr.msk.bf16.gmra.mrb[4].mxu0 %vm327_vm2, %v1356_v12 }
  0x21   : > { %1244 = vmatmul.mubr.msk.bf16.gmra.mrb[4].mxu1 %vm327_vm2, %v1357_v13  ;;  %1231 = vmatprep.mubr.msk.bf16.mxu0 %vm327_vm2, %v1358_v14 }
  0x22   : > { %1247 = vmatprep.mubr.msk.bf16.mxu1 %vm327_vm2, %v1359_v15 }
  0x28   : > { %1232 = vmatmul.mubr.msk.bf16.gmra.mrb[8].mxu0 %vm327_vm2, %v1360_v16 }
  0x29   : > { %1248 = vmatmul.mubr.msk.bf16.gmra.mrb[8].mxu1 %vm327_vm2, %v1361_v17  ;;  %1235 = vmatprep.mubr.msk.bf16.mxu0 %vm327_vm2, %v1362_v18 }
  0x2a   : > { %1251 = vmatprep.mubr.msk.bf16.mxu1 %vm327_vm2, %v1363_v19 }
  0x30   : > { %1236 = vmatmul.mubr.msk.bf16.gmra.mrb[12].mxu0 %vm327_vm2, %v1364_v20 }
  0x31   : > { %1252 = vmatmul.mubr.msk.bf16.gmra.mrb[12].mxu1 %vm327_vm2, %v1365_v21 }
  0xeb   : > { %v1225_v23 = vpop.f32.mrb[0].mxu0 }
  0xec   : > { %v426_v24 = vadd.f32 %v1225_v23, %v1556_v22  ;;  %v1241_v25 = vpop.f32.mrb[0].mxu1  ;;  %v417_v26 = vpop.f32.mrb[1].mxu0 }
  0xed   : > { %v490_v27 = vadd.f32 %v1241_v25, %v1556_v22  ;;  %v418_v28 = vadd.f32 %v1556_v22, %v417_v26  ;;  %v481_v29 = vpop.f32.mrb[1].mxu1  ;;  %v1226_v30 = vpop.f32.mrb[2].mxu0 }
  0xee   : > { %v546_v31 = vmax.f32 %v426_v24, 0.0  ;;  %v482_v32 = vadd.f32 %v1556_v22, %v481_v29  ;;  %v429_v33 = vadd.f32 %v1226_v30, %v1556_v22  ;;  %v1242_v34 = vpop.f32.mrb[2].mxu1  ;;  %v420_v35 = vpop.f32.mrb[3].mxu0 }
  0xef   : > { %v562_v36 = vmax.f32 %v490_v27, 0.0  ;;  %v544_v37 = vmax.f32 %v418_v28, 0.0  ;;  %v493_v38 = vadd.f32 %v1242_v34, %v1556_v22  ;;  %v421_v39 = vadd.f32 %v1556_v22, %v420_v35  ;;  %v484_v40 = vpop.f32.mrb[3].mxu1 }
  0xf0   : > { %v1168_v41 = vpack.c.bf16 %v546_v31, %v546_v31  ;;  %v560_v42 = vmax.f32 %v482_v32, 0.0  ;;  %v547_v43 = vmax.f32 %v429_v33, 0.0  ;;  %v485_v44 = vadd.f32 %v1556_v22, %v484_v40 }
  0xf1   : > { %v1184_v45 = vpack.c.bf16 %v562_v36, %v562_v36  ;;  %v1166_v46 = vpack.c.bf16 %v544_v37, %v544_v37  ;;  %v563_v47 = vmax.f32 %v493_v38, 0.0  ;;  %v545_v48 = vmax.f32 %v421_v39, 0.0 }
  0xf2   : > { %707 = vst.msk [vmem:[%s1566_s8 + $0x8] sm:$0xf] %vm704_vm3, %v1168_v41  ;;  %v1182_v49 = vpack.c.bf16 %v560_v42, %v560_v42  ;;  %v1169_v50 = vpack.c.bf16 %v547_v43, %v547_v43  ;;  %v561_v51 = vmax.f32 %v485_v44, 0.0 }
  0xf3   : > { %723 = vst.msk [vmem:[%s1566_s8 + $0x48] sm:$0xf] %vm704_vm3, %v1184_v45  ;;  %705 = vst.msk [vmem:[%s1566_s8] sm:$0xf] %vm704_vm3, %v1166_v46  ;;  %v1185_v52 = vpack.c.bf16 %v563_v47, %v563_v47  ;;  %v1167_v53 = vpack.c.bf16 %v545_v48, %v545_v48  ;;  %v1229_v54 = vpop.f32.mrb[4].mxu0 }
  0xf4   : > { %721 = vst.msk [vmem:[%s1566_s8 + $0x40] sm:$0xf] %vm704_vm3, %v1182_v49  ;;  %708 = vst.msk [vmem:[%s1566_s8 + $0xc] sm:$0xf] %vm704_vm3, %v1169_v50  ;;  %v1183_v55 = vpack.c.bf16 %v561_v51, %v561_v51  ;;  %v442_v56 = vadd.f32 %v1229_v54, %v1556_v22  ;;  %v1245_v57 = vpop.f32.mrb[4].mxu1  ;;  %v433_v58 = vpop.f32.mrb[5].mxu0 }
  0xf5   : > { %724 = vst.msk [vmem:[%s1566_s8 + $0x4c] sm:$0xf] %vm704_vm3, %v1185_v52  ;;  %706 = vst.msk [vmem:[%s1566_s8 + $0x4] sm:$0xf] %vm704_vm3, %v1167_v53  ;;  %v506_v59 = vadd.f32 %v1245_v57, %v1556_v22  ;;  %v434_v60 = vadd.f32 %v1556_v22, %v433_v58  ;;  %v497_v61 = vpop.f32.mrb[5].mxu1  ;;  %v1230_v62 = vpop.f32.mrb[6].mxu0 }
  0xf6   : > { %722 = vst.msk [vmem:[%s1566_s8 + $0x44] sm:$0xf] %vm704_vm3, %v1183_v55  ;;  %v550_v63 = vmax.f32 %v442_v56, 0.0  ;;  %v498_v0 = vadd.f32 %v1556_v22, %v497_v61  ;;  %v445_v1 = vadd.f32 %v1230_v62, %v1556_v22  ;;  %v1246_v2 = vpop.f32.mrb[6].mxu1  ;;  %v436_v3 = vpop.f32.mrb[7].mxu0 }
  0xf7   : > { %v566_v4 = vmax.f32 %v506_v59, 0.0  ;;  %v548_v5 = vmax.f32 %v434_v60, 0.0  ;;  %v509_v6 = vadd.f32 %v1246_v2, %v1556_v22  ;;  %v437_v7 = vadd.f32 %v1556_v22, %v436_v3  ;;  %v500_v8 = vpop.f32.mrb[7].mxu1 }
  0xf8   : > { %v1172_v9 = vpack.c.bf16 %v550_v63, %v550_v63  ;;  %v564_v10 = vmax.f32 %v498_v0, 0.0  ;;  %v551_v11 = vmax.f32 %v445_v1, 0.0  ;;  %v501_v12 = vadd.f32 %v1556_v22, %v500_v8 }
  0xf9   : > { %v1188_v13 = vpack.c.bf16 %v566_v4, %v566_v4  ;;  %v1170_v14 = vpack.c.bf16 %v548_v5, %v548_v5  ;;  %v567_v15 = vmax.f32 %v509_v6, 0.0  ;;  %v549_v16 = vmax.f32 %v437_v7, 0.0 }
  0xfa   : > { %711 = vst.msk [vmem:[%s1566_s8 + $0x18] sm:$0xf] %vm704_vm3, %v1172_v9  ;;  %v1186_v17 = vpack.c.bf16 %v564_v10, %v564_v10  ;;  %v1173_v18 = vpack.c.bf16 %v551_v11, %v551_v11  ;;  %v565_v19 = vmax.f32 %v501_v12, 0.0 }
  0xfb   : > { %727 = vst.msk [vmem:[%s1566_s8 + $0x58] sm:$0xf] %vm704_vm3, %v1188_v13  ;;  %709 = vst.msk [vmem:[%s1566_s8 + $0x10] sm:$0xf] %vm704_vm3, %v1170_v14  ;;  %v1189_v20 = vpack.c.bf16 %v567_v15, %v567_v15  ;;  %v1171_v21 = vpack.c.bf16 %v549_v16, %v549_v16  ;;  %v1233_v23 = vpop.f32.mrb[8].mxu0 }
  0xfc   : > { %725 = vst.msk [vmem:[%s1566_s8 + $0x50] sm:$0xf] %vm704_vm3, %v1186_v17  ;;  %712 = vst.msk [vmem:[%s1566_s8 + $0x1c] sm:$0xf] %vm704_vm3, %v1173_v18  ;;  %v1187_v24 = vpack.c.bf16 %v565_v19, %v565_v19  ;;  %v458_v25 = vadd.f32 %v1233_v23, %v1556_v22  ;;  %v1249_v26 = vpop.f32.mrb[8].mxu1  ;;  %v449_v27 = vpop.f32.mrb[9].mxu0 }
  0xfd   : > { %728 = vst.msk [vmem:[%s1566_s8 + $0x5c] sm:$0xf] %vm704_vm3, %v1189_v20  ;;  %710 = vst.msk [vmem:[%s1566_s8 + $0x14] sm:$0xf] %vm704_vm3, %v1171_v21  ;;  %v522_v28 = vadd.f32 %v1249_v26, %v1556_v22  ;;  %v450_v29 = vadd.f32 %v1556_v22, %v449_v27  ;;  %v513_v30 = vpop.f32.mrb[9].mxu1  ;;  %v1234_v31 = vpop.f32.mrb[10].mxu0 }
  0xfe   : > { %726 = vst.msk [vmem:[%s1566_s8 + $0x54] sm:$0xf] %vm704_vm3, %v1187_v24  ;;  %v554_v32 = vmax.f32 %v458_v25, 0.0  ;;  %v514_v33 = vadd.f32 %v1556_v22, %v513_v30  ;;  %v461_v34 = vadd.f32 %v1234_v31, %v1556_v22  ;;  %v1250_v35 = vpop.f32.mrb[10].mxu1  ;;  %v452_v36 = vpop.f32.mrb[11].mxu0 }
  0xff   : > { %v570_v37 = vmax.f32 %v522_v28, 0.0  ;;  %v552_v38 = vmax.f32 %v450_v29, 0.0  ;;  %v525_v39 = vadd.f32 %v1250_v35, %v1556_v22  ;;  %v453_v40 = vadd.f32 %v1556_v22, %v452_v36  ;;  %v516_v41 = vpop.f32.mrb[11].mxu1 }
 0x100   : > { %v1176_v42 = vpack.c.bf16 %v554_v32, %v554_v32  ;;  %v568_v43 = vmax.f32 %v514_v33, 0.0  ;;  %v555_v44 = vmax.f32 %v461_v34, 0.0  ;;  %v517_v45 = vadd.f32 %v1556_v22, %v516_v41 }
 0x101   : > { %v1192_v46 = vpack.c.bf16 %v570_v37, %v570_v37  ;;  %v1174_v47 = vpack.c.bf16 %v552_v38, %v552_v38  ;;  %v571_v48 = vmax.f32 %v525_v39, 0.0  ;;  %v553_v49 = vmax.f32 %v453_v40, 0.0 }
 0x102   : > { %715 = vst.msk [vmem:[%s1566_s8 + $0x28] sm:$0xf] %vm704_vm3, %v1176_v42  ;;  %v1190_v50 = vpack.c.bf16 %v568_v43, %v568_v43  ;;  %v1177_v51 = vpack.c.bf16 %v555_v44, %v555_v44  ;;  %v569_v52 = vmax.f32 %v517_v45, 0.0 }
 0x103   : > { %731 = vst.msk [vmem:[%s1566_s8 + $0x68] sm:$0xf] %vm704_vm3, %v1192_v46  ;;  %713 = vst.msk [vmem:[%s1566_s8 + $0x20] sm:$0xf] %vm704_vm3, %v1174_v47  ;;  %v1193_v53 = vpack.c.bf16 %v571_v48, %v571_v48  ;;  %v1175_v54 = vpack.c.bf16 %v553_v49, %v553_v49  ;;  %v1237_v55 = vpop.f32.mrb[12].mxu0 }
 0x104   : > { %729 = vst.msk [vmem:[%s1566_s8 + $0x60] sm:$0xf] %vm704_vm3, %v1190_v50  ;;  %716 = vst.msk [vmem:[%s1566_s8 + $0x2c] sm:$0xf] %vm704_vm3, %v1177_v51  ;;  %v1191_v56 = vpack.c.bf16 %v569_v52, %v569_v52  ;;  %v474_v57 = vadd.f32 %v1237_v55, %v1556_v22  ;;  %v1253_v58 = vpop.f32.mrb[12].mxu1  ;;  %v465_v59 = vpop.f32.mrb[13].mxu0 }
 0x105   : > { %732 = vst.msk [vmem:[%s1566_s8 + $0x6c] sm:$0xf] %vm704_vm3, %v1193_v53  ;;  %714 = vst.msk [vmem:[%s1566_s8 + $0x24] sm:$0xf] %vm704_vm3, %v1175_v54  ;;  %v538_v60 = vadd.f32 %v1253_v58, %v1556_v22  ;;  %v466_v61 = vadd.f32 %v1556_v22, %v465_v59  ;;  %v529_v62 = vpop.f32.mrb[13].mxu1  ;;  %v1238_v63 = vpop.f32.mrb[14].mxu0 }
 0x106   : > { %730 = vst.msk [vmem:[%s1566_s8 + $0x64] sm:$0xf] %vm704_vm3, %v1191_v56  ;;  %v558_v0 = vmax.f32 %v474_v57, 0.0  ;;  %v530_v1 = vadd.f32 %v1556_v22, %v529_v62  ;;  %v477_v2 = vadd.f32 %v1238_v63, %v1556_v22  ;;  %v1254_v3 = vpop.f32.mrb[14].mxu1  ;;  %v468_v4 = vpop.f32.mrb[15].mxu0 }
 0x107   : > { %v574_v5 = vmax.f32 %v538_v60, 0.0  ;;  %v556_v6 = vmax.f32 %v466_v61, 0.0  ;;  %v541_v7 = vadd.f32 %v1254_v3, %v1556_v22  ;;  %v469_v8 = vadd.f32 %v1556_v22, %v468_v4  ;;  %v532_v9 = vpop.f32.mrb[15].mxu1 }
 0x108   : > { %v1180_v10 = vpack.c.bf16 %v558_v0, %v558_v0  ;;  %v572_v11 = vmax.f32 %v530_v1, 0.0  ;;  %v559_v12 = vmax.f32 %v477_v2, 0.0  ;;  %v533_v13 = vadd.f32 %v1556_v22, %v532_v9  ;;  %743 = sbr.rel (!%p1500_p4) target bundleno = 341 (0x155), region = 36 }
 0x109   : > { %v1196_v14 = vpack.c.bf16 %v574_v5, %v574_v5  ;;  %v1178_v15 = vpack.c.bf16 %v556_v6, %v556_v6  ;;  %v575_v16 = vmax.f32 %v541_v7, 0.0  ;;  %v557_v17 = vmax.f32 %v469_v8, 0.0 }
 0x10a   : > { %719 = vst.msk [vmem:[%s1566_s8 + $0x38] sm:$0xf] %vm704_vm3, %v1180_v10  ;;  %v1194_v18 = vpack.c.bf16 %v572_v11, %v572_v11  ;;  %v1181_v19 = vpack.c.bf16 %v559_v12, %v559_v12  ;;  %v573_v20 = vmax.f32 %v533_v13, 0.0 }
 0x10b   : > { %735 = vst.msk [vmem:[%s1566_s8 + $0x78] sm:$0xf] %vm704_vm3, %v1196_v14  ;;  %717 = vst.msk [vmem:[%s1566_s8 + $0x30] sm:$0xf] %vm704_vm3, %v1178_v15  ;;  %v1197_v21 = vpack.c.bf16 %v575_v16, %v575_v16  ;;  %v1179_v23 = vpack.c.bf16 %v557_v17, %v557_v17 }
 0x10c   : > { %733 = vst.msk [vmem:[%s1566_s8 + $0x70] sm:$0xf] %vm704_vm3, %v1194_v18  ;;  %720 = vst.msk [vmem:[%s1566_s8 + $0x3c] sm:$0xf] %vm704_vm3, %v1181_v19  ;;  %v1195_v22 = vpack.c.bf16 %v573_v20, %v573_v20 }
 0x10d   : > { %736 = vst.msk [vmem:[%s1566_s8 + $0x7c] sm:$0xf] %vm704_vm3, %v1197_v21  ;;  %718 = vst.msk [vmem:[%s1566_s8 + $0x34] sm:$0xf] %vm704_vm3, %v1179_v23 }
 0x10e   : > { %734 = vst.msk [vmem:[%s1566_s8 + $0x74] sm:$0xf] %vm704_vm3, %v1195_v22 }
 0x10f   : > { %s1803_s9 = smov (!%p746_p8, %s745_s9), 32 }
 0x110   : > { %s1151_s17 = sshll.u32 %s1803_s9, 6 }
 0x111   : > { %p1154_p9 = scmp.eq.s32.totalorder %s1151_s17, 0 }
 0x112   : > { %s1669_s18 = sshrl.u32 (!%p1154_p9), %s1803_s9, 5 }
 0x113   : > { %754 = sbr.rel (%p1154_p9) target bundleno = 341 (0x155), region = 40  ;;  %p1155_p10 = scmp.le.s32.totalorder (!%p1154_p9), %s1669_s18, 0 }
 0x11a   : > { %1031 = sbr.rel (%p1155_p10) target bundleno = 320 (0x140), region = 112  ;;  %s1796_s15 = smov (!%p1155_p10), %s1663_s14 }
 0x11b   : > { %s1797_s20 = smov (!%p1155_p10), %s1566_s8  ;;  %s1678_s21 = smov (!%p1155_p10), 0  }
 0x11c   : > { %s1680_s22 = smov (!%p1155_p10), 0  }
 0x121 LB: >> { %v770_v24 = vld [vmem:[%s1428_s20] sm:$0xf]  ;;  %v772_v25 = vld [vmem:[%s1428_s20 + $0x4] sm:$0xf]  ;;  %v774_v26 = vld [vmem:[%s1428_s20 + $0x8] sm:$0xf]  ;;  %s1436_s22 = sphi %s1680_s22, %s764_s22   ;;  %s1432_s21 = sphi %s1678_s21, %s1798_s21   ;;  %s1428_s20 = sphi %s1797_s20, %s839_s20   ;;  %s1424_s15 = sphi %s1796_s15, %s840_s15  }
 0x122   : >> { %771 = vst [vmem:[%s1424_s15] sm:$0xf] %v770_v24  ;;  %773 = vst [vmem:[%s1424_s15 + $0x4] sm:$0xf] %v772_v25  ;;  %v776_v27 = vld [vmem:[%s1428_s20 + $0xc] sm:$0xf]  ;;  %s834_s23 = sadd.s32 1, %s1432_s21 }
 0x123   : >> { %775 = vst [vmem:[%s1424_s15 + $0x8] sm:$0xf] %v774_v26  ;;  %v778_v28 = vld [vmem:[%s1428_s20 + $0x10] sm:$0xf]  ;;  %v780_v29 = vld [vmem:[%s1428_s20 + $0x14] sm:$0xf]  ;;  %p835_p11 = scmp.ge.s32.totalorder %s834_s23, %s1669_s18 }
 0x124   : >> { %777 = vst [vmem:[%s1424_s15 + $0xc] sm:$0xf] %v776_v27  ;;  %779 = vst [vmem:[%s1424_s15 + $0x10] sm:$0xf] %v778_v28  ;;  %v782_v30 = vld [vmem:[%s1428_s20 + $0x18] sm:$0xf] }
 0x125   : >> { %781 = vst [vmem:[%s1424_s15 + $0x14] sm:$0xf] %v780_v29  ;;  %v784_v31 = vld [vmem:[%s1428_s20 + $0x1c] sm:$0xf]  ;;  %v786_v32 = vld [vmem:[%s1428_s20 + $0x20] sm:$0xf] }
 0x126   : >> { %783 = vst [vmem:[%s1424_s15 + $0x18] sm:$0xf] %v782_v30  ;;  %785 = vst [vmem:[%s1424_s15 + $0x1c] sm:$0xf] %v784_v31  ;;  %v788_v33 = vld [vmem:[%s1428_s20 + $0x24] sm:$0xf] }
 0x127   : >> { %787 = vst [vmem:[%s1424_s15 + $0x20] sm:$0xf] %v786_v32  ;;  %v790_v34 = vld [vmem:[%s1428_s20 + $0x28] sm:$0xf]  ;;  %v792_v35 = vld [vmem:[%s1428_s20 + $0x2c] sm:$0xf] }
 0x128   : >> { %789 = vst [vmem:[%s1424_s15 + $0x24] sm:$0xf] %v788_v33  ;;  %791 = vst [vmem:[%s1424_s15 + $0x28] sm:$0xf] %v790_v34  ;;  %v794_v36 = vld [vmem:[%s1428_s20 + $0x30] sm:$0xf] }
 0x129   : >> { %793 = vst [vmem:[%s1424_s15 + $0x2c] sm:$0xf] %v792_v35  ;;  %v796_v37 = vld [vmem:[%s1428_s20 + $0x34] sm:$0xf]  ;;  %v798_v38 = vld [vmem:[%s1428_s20 + $0x38] sm:$0xf] }
 0x12a   : >> { %795 = vst [vmem:[%s1424_s15 + $0x30] sm:$0xf] %v794_v36  ;;  %797 = vst [vmem:[%s1424_s15 + $0x34] sm:$0xf] %v796_v37  ;;  %v800_v39 = vld [vmem:[%s1428_s20 + $0x3c] sm:$0xf] }
 0x12b   : >> { %799 = vst [vmem:[%s1424_s15 + $0x38] sm:$0xf] %v798_v38  ;;  %v802_v40 = vld [vmem:[%s1428_s20 + $0x40] sm:$0xf]  ;;  %v804_v41 = vld [vmem:[%s1428_s20 + $0x44] sm:$0xf] }
 0x12c   : >> { %801 = vst [vmem:[%s1424_s15 + $0x3c] sm:$0xf] %v800_v39  ;;  %803 = vst [vmem:[%s1424_s15 + $0x40] sm:$0xf] %v802_v40  ;;  %v806_v42 = vld [vmem:[%s1428_s20 + $0x48] sm:$0xf] }
 0x12d   : >> { %805 = vst [vmem:[%s1424_s15 + $0x44] sm:$0xf] %v804_v41  ;;  %v808_v43 = vld [vmem:[%s1428_s20 + $0x4c] sm:$0xf]  ;;  %v810_v44 = vld [vmem:[%s1428_s20 + $0x50] sm:$0xf] }
 0x12e   : >> { %807 = vst [vmem:[%s1424_s15 + $0x48] sm:$0xf] %v806_v42  ;;  %809 = vst [vmem:[%s1424_s15 + $0x4c] sm:$0xf] %v808_v43  ;;  %v812_v45 = vld [vmem:[%s1428_s20 + $0x54] sm:$0xf] }
 0x12f   : >> { %811 = vst [vmem:[%s1424_s15 + $0x50] sm:$0xf] %v810_v44  ;;  %v814_v46 = vld [vmem:[%s1428_s20 + $0x58] sm:$0xf]  ;;  %v816_v47 = vld [vmem:[%s1428_s20 + $0x5c] sm:$0xf] }
 0x130   : >> { %813 = vst [vmem:[%s1424_s15 + $0x54] sm:$0xf] %v812_v45  ;;  %815 = vst [vmem:[%s1424_s15 + $0x58] sm:$0xf] %v814_v46  ;;  %v818_v48 = vld [vmem:[%s1428_s20 + $0x60] sm:$0xf] }
 0x131   : >> { %817 = vst [vmem:[%s1424_s15 + $0x5c] sm:$0xf] %v816_v47  ;;  %v820_v49 = vld [vmem:[%s1428_s20 + $0x64] sm:$0xf]  ;;  %v822_v50 = vld [vmem:[%s1428_s20 + $0x68] sm:$0xf] }
 0x132   : >> { %819 = vst [vmem:[%s1424_s15 + $0x60] sm:$0xf] %v818_v48  ;;  %821 = vst [vmem:[%s1424_s15 + $0x64] sm:$0xf] %v820_v49  ;;  %v824_v51 = vld [vmem:[%s1428_s20 + $0x6c] sm:$0xf] }
 0x133   : >> { %823 = vst [vmem:[%s1424_s15 + $0x68] sm:$0xf] %v822_v50  ;;  %v826_v52 = vld [vmem:[%s1428_s20 + $0x70] sm:$0xf]  ;;  %v828_v53 = vld [vmem:[%s1428_s20 + $0x74] sm:$0xf] }
 0x134   : >> { %825 = vst [vmem:[%s1424_s15 + $0x6c] sm:$0xf] %v824_v51  ;;  %827 = vst [vmem:[%s1424_s15 + $0x70] sm:$0xf] %v826_v52  ;;  %v830_v54 = vld [vmem:[%s1428_s20 + $0x78] sm:$0xf] }
 0x135   : >> { %829 = vst [vmem:[%s1424_s15 + $0x74] sm:$0xf] %v828_v53  ;;  %v832_v55 = vld [vmem:[%s1428_s20 + $0x7c] sm:$0xf]  ;;  %831 = vst [vmem:[%s1424_s15 + $0x78] sm:$0xf] %v830_v54 }
 0x136   : >> { %833 = vst [vmem:[%s1424_s15 + $0x7c] sm:$0xf] %v832_v55  ;;  %s1805_s23 = smov (%p835_p11, %s834_s23), 0  ;;  %s764_s22 = sadd.s32 1, %s1436_s22  }
 0x137   : >> { %s1156_s24 = sshll.u32 %s1805_s23, 7  ;;  %p763_p12 = scmp.ge.s32.totalorder %s764_s22, %s1669_s18 }
 0x138   : >> { %s839_s20 = scalar_lea.vmem %s1566_s8, %s1156_s24 [#allocation2]   ;;  %s840_s15 = scalar_lea.vmem %s1663_s14, %s1156_s24  }
 0x139   : >> { %s1798_s21 = smov %s1805_s23  ;;  %766 = sbr.rel (!%p763_p12) target bundleno = 289 (0x121), region = 118 }
 0x140 PF: > { %s1773_s25 = sand.u32 31, %s1803_s9   ;;  %s1199_s26 = sshll.u32 %s1669_s18, 7 }
 0x141   : > { %s845_s27 = scalar_lea.vmem %s1566_s8, %s1199_s26 [#allocation2]   ;;  %s847_s28 = scalar_lea.vmem %s1663_s14, %s1199_s26  }
 0x142   : > { %p1161_p13 = scmp.le.s32.totalorder %s1773_s25, 0 }
 0x143   : > { %s1438_s29 = smov (!%p1161_p13), %s847_s28   ;;  %s1442_s30 = smov (!%p1161_p13), %s845_s27  }
 0x144   : > { %1045 = sbr.rel (%p1161_p13) target bundleno = 341 (0x155), region = 123  ;;  %s1446_s4 = smov (!%p1161_p13), 0  }
 0x145   : > { %s1450_s5 = smov (!%p1161_p13), 0  }
 0x14b LB: >> { %v857_v56 = vld [vmem:[%s1444_s30] sm:$0xf]  ;;  %s859_s6 = sadd.s32 1, %s1448_s4  ;;  %s851_s5 = sadd.s32 1, %s1452_s5   ;;  %s1452_s5 = sphi %s1450_s5, %s851_s5   ;;  %s1448_s4 = sphi %s1446_s4, %s1447_s4   ;;  %s1444_s30 = sphi %s1442_s30, %s864_s30   ;;  %s1440_s29 = sphi %s1438_s29, %s865_s29  }
 0x14c   : >> { %858 = vst [vmem:[%s1440_s29] sm:$0xf] %v857_v56  ;;  %p860_p0 = scmp.ge.s32.totalorder %s859_s6, %s1773_s25  ;;  %p850_p1 = scmp.ge.s32.totalorder %s851_s5, %s1773_s25 }
 0x14e   : >> { %s1807_s6 = smov (%p860_p0, %s859_s6), 0  ;;  %853 = sbr.rel (!%p850_p1) target bundleno = 331 (0x14b), region = 129 }
 0x14f   : >> { %s1162_s7 = sshll.u32 %s1807_s6, 2  ;;  %s1447_s4 = smov %s1807_s6  }
 0x150   : >> { %s864_s30 = scalar_lea.vmem %s845_s27, %s1162_s7 [#allocation2]   ;;  %s865_s29 = scalar_lea.vmem %s847_s28, %s1162_s7  }
 0x155 PF: > { %p10_p2 = scmp.ge.s32.totalorder %s1490_s16, 10   ;;  %s1799_s12 = smov %s1416_s13 }
 0x156   : > { %s1800_s13 = smov %s1498_s19  ;;  %s1801_s14 = smov %s1490_s16 }
 0x157   :  { %12 = sbr.rel (!%p10_p2) target bundleno = 2 (0x2), region = 140 }

// kernel: stcae_encoder_forward.9
= control target key start
LH: loop header
LB: loop body
LE: loop exit
PB: predicated region body
PF: predicated region fallthrough
CT: control target
= control target key end

     0   :  { %s2034_s12 = smov 0   ;;  %s2036_s13 = smov 0   ;;  %s2427_s0 = inlined_call_operand.vmem [shape: bf16[1296,288], index: 0, kind: input, shape index: {}]   ;;  %s2428_s1 = inlined_call_operand.vmem [shape: bf16[288,32], index: 1, kind: input, shape index: {}]   ;;  %s2429_s2 = inlined_call_operand.vmem [shape: f32[1,32], index: 2, kind: input, shape index: {}]   ;;  %s2430_s3 = inlined_call_operand.vmem [shape: bf16[1296,32], index: 3, kind: output, shape index: {}]  }
   0x1   :  { %s2038_s14 = smov 0  }
   0x2 LB: > { %s2047_s15 = sadd.s32 4294967295, %s1980_s14   ;;  %s2049_s16 = sadd.s32 1, %s1980_s14   ;;  %s1980_s14 = sphi %s2038_s14, %s2437_s14   ;;  %s1976_s13 = sphi %s2036_s13, %s2436_s13   ;;  %s1972_s12 = sphi %s2034_s12, %s2435_s12  }
   0x3   : > { %s85_s17 = ssub.s32 %s1980_s14, %s2049_s16  ;;  %s88_s18 = sadd.s32 1, %s1976_s13 }
   0x4   : > { %p86_p0 = scmp.eq.s32.totalorder %s85_s17, 0  ;;  %p98_p1 = scmp.ne.s32.totalorder %s1976_s13, %s1972_s12 }
   0x5   : > { %p99_p2 = scmp.eq.s32.totalorder %s2047_s15, 5  ;;  %p1447_p3 = scmp.ge.s32.totalorder %s1980_s14, 1 }
   0x6   : > { %s2057_s19 = scalar_select %p86_p0, %s1976_s13, %s88_s18  }
   0x7   : > { %p2059_p4 = por %p99_p2, %p98_p1  ;;  %p149_p5 = scmp.lt.s32.totalorder %s1980_s14, 7 }
   0x9   : > { %p150_p6 = pnand %p1447_p3, %p149_p5 }
   0xa   : > { %v1848_v0 = vld [vmem:[%s2428_s1 + $0x40] sm:$0xff] (!%p150_p6)   ;;  %s2067_s23 = smul.u32 (!%p150_p6), 28, %s2047_s15  ;;  %v1850_v2 = vld [vmem:[%s2428_s1 + $0x48] sm:$0xff] (!%p150_p6)   ;;  %v1852_v4 = vld [vmem:[%s2428_s1 + $0x50] sm:$0xff] (!%p150_p6)   ;;  %vm618_vm0 = vcmask (!%p150_p6), 261120   ;;  %s175_s22 = sand.u32 (!%p150_p6), 1, %s1972_s12  }
   0xb   : > { %153 = sbr.rel (%p150_p6) target bundleno = 429 (0x1ad), region = 32  ;;  %v1849_v1 = vld [vmem:[%s2428_s1] sm:$0xff] (!%p150_p6)   ;;  %1593 = vmatprep.subr.bf16.mxu0 (!%p150_p6), %v1848_v0  ;;  %1741 = vmatprep.subr.bf16.mxu1 (!%p150_p6), %v1848_v0  ;;  %v1851_v3 = vld [vmem:[%s2428_s1 + $0x8] sm:$0xff] (!%p150_p6)   ;;  %v1853_v5 = vld [vmem:[%s2428_s1 + $0x10] sm:$0xff] (!%p150_p6)   ;;  %vm1091_vm1 = vcmask (!%p150_p6), 257024  }
   0xc   : > { %p184_p7 = scmp.lt.s32.totalorder (!%p150_p6), %s2067_s23, 161  ;;  %1594 = vmatpush3.bf16.msra.mxu0 (!%p150_p6), %v1849_v1  ;;  %1749 = vmatpush3.bf16.msra.mxu1 (!%p150_p6), %v1849_v1  ;;  %v1854_v6 = vld [vmem:[%s2428_s1 + $0x58] sm:$0xff] (!%p150_p6)   ;;  %v1856_v8 = vld [vmem:[%s2428_s1 + $0x60] sm:$0xff] (!%p150_p6)   ;;  %v1858_v10 = vld [vmem:[%s2428_s1 + $0x68] sm:$0xff] (!%p150_p6)   ;;  %s1757_s26 = smul.u32 (!%p150_p6), 112, %s175_s22 }
   0xd   : > { %1595 = vmatprep.subr.bf16.mxu0 (!%p150_p6), %v1850_v2  ;;  %1742 = vmatprep.subr.bf16.mxu1 (!%p150_p6), %v1850_v2  ;;  %v1855_v7 = vld [vmem:[%s2428_s1 + $0x18] sm:$0xff] (!%p150_p6)   ;;  %v1857_v9 = vld [vmem:[%s2428_s1 + $0x20] sm:$0xff] (!%p150_p6)   ;;  %v1859_v13 = vld [vmem:[%s2428_s1 + $0x28] sm:$0xff] (!%p150_p6)  }
   0xe   : > { %v1860_v14 = vld [vmem:[%s2428_s1 + $0x70] sm:$0xff] (!%p150_p6)   ;;  %v1862_v16 = vld [vmem:[%s2428_s1 + $0x78] sm:$0xff] (!%p150_p6)   ;;  %v1876_v18 = vld [vmem:[%s2428_s1 + $0x80] sm:$0xff] (!%p150_p6)   ;;  %s2205_s12 = scalar_lea.vmem (!%p150_p6), [#allocation2], %s1757_s26  }
   0xf   : > { %v1861_v15 = vld [vmem:[%s2428_s1 + $0x30] sm:$0xff] (!%p150_p6)   ;;  %v1863_v17 = vld [vmem:[%s2428_s1 + $0x38] sm:$0xff] (!%p150_p6)   ;;  %v1883_v23 = vld [vmem:[%s2428_s1 + $0x88] sm:$0xff] (!%p150_p6)  }
  0x10   : > { %1596 = vmatpush3.bf16.msra.mxu0 (!%p150_p6), %v1851_v3  ;;  %1750 = vmatpush3.bf16.msra.mxu1 (!%p150_p6), %v1851_v3 }
  0x11   : > { %1597 = vmatprep.subr.bf16.mxu0 (!%p150_p6), %v1852_v4  ;;  %1743 = vmatprep.subr.bf16.mxu1 (!%p150_p6), %v1852_v4 }
  0x12   : > { %s185_s5 = scalar_select %p184_p7, %s2067_s23, 161 }
  0x13   : > { %s1128_s27 = ssub.s32 (%p2059_p4), 162, %s2067_s23  ;;  %s1592_s28 = smul.u32 (%p2059_p4), 112, %s2047_s15 }
  0x14   : > { %s1758_s10 = smul.u32 12, %s185_s5  ;;  %1598 = vmatpush3.bf16.msra.mxu0 %v1853_v5  ;;  %1751 = vmatpush3.bf16.msra.mxu1 %v1853_v5  ;;  %p1129_p8 = scmp.lt.s32.totalorder (%p2059_p4), %s1128_s27, 28 }
  0x15   : > { %1599 = vmatprep.subr.bf16.mxu0 %v1854_v6  ;;  %1744 = vmatprep.subr.bf16.mxu1 %v1854_v6  ;;  %s2312_s4 = scalar_lea.vmem (%p2059_p4), %s2430_s3, %s1592_s28  }
  0x16   : > { %s2098_s24 = scalar_lea.vmem %s2427_s0, %s1758_s10 }
  0x17   : > { %v1866_v11 = vld [vmem:[%s2098_s24 + $0x4] ss:$12 sps:$4 sm:$0xff]   ;;  %v1869_v12 = vld [vmem:[%s2098_s24 + $0x10c] ss:$12 sps:$4 sm:$0xff]   ;;  %v1867_v20 = vld [vmem:[%s2098_s24 + $0x108] ss:$12 sps:$4 sm:$0xff]  }
  0x18   : > { %1600 = vmatpush3.bf16.msra.mxu0 %v1855_v7  ;;  %1752 = vmatpush3.bf16.msra.mxu1 %v1855_v7  ;;  %v1864_v19 = vld [vmem:[%s2098_s24] ss:$12 sps:$4 sm:$0xff]   ;;  %v1870_v21 = vld [vmem:[%s2098_s24 + $0x1c] ss:$12 sps:$4 sm:$0xff]   ;;  %v1872_v22 = vld [vmem:[%s2098_s24 + $0x124] ss:$12 sps:$4 sm:$0xff]  }
  0x19   : > { %1601 = vmatprep.subr.bf16.mxu0 %v1856_v8  ;;  %1745 = vmatprep.subr.bf16.mxu1 %v1856_v8  ;;  %v1874_v24 = vld [vmem:[%s2098_s24 + $0x18] ss:$12 sps:$4 sm:$0xff]   ;;  %v1875_v25 = vld [vmem:[%s2098_s24 + $0x120] ss:$12 sps:$4 sm:$0xff]   ;;  %v1879_v27 = vld [vmem:[%s2098_s24 + $0x13c] ss:$12 sps:$4 sm:$0xff]  }
  0x1a   : > { %693 = vmatprep.mubr.bf16.mxu0 %v1866_v11  ;;  %781 = vmatprep.mubr.bf16.mxu1 %v1869_v12  ;;  %v1877_v26 = vld [vmem:[%s2098_s24 + $0x34] ss:$12 sps:$4 sm:$0xff]   ;;  %v1881_v28 = vld [vmem:[%s2098_s24 + $0x30] ss:$12 sps:$4 sm:$0xff]   ;;  %v1882_v29 = vld [vmem:[%s2098_s24 + $0x138] ss:$12 sps:$4 sm:$0xff]  }
  0x1b   : > { %v1884_v30 = vld [vmem:[%s2098_s24 + $0x4c] ss:$12 sps:$4 sm:$0xff]   ;;  %v1886_v31 = vld [vmem:[%s2098_s24 + $0x8] ss:$12 sps:$4 sm:$0xff]   ;;  %v1889_v34 = vld [vmem:[%s2098_s24 + $0x64] ss:$12 sps:$4 sm:$0xff]  }
  0x1c   : > { %1602 = vmatpush3.bf16.msra.mxu0 %v1857_v9  ;;  %1753 = vmatpush3.bf16.msra.mxu1 %v1857_v9  ;;  %v1887_v32 = vld [vmem:[%s2098_s24 + $0x48] ss:$12 sps:$4 sm:$0xff]   ;;  %v1888_v33 = vld [vmem:[%s2098_s24 + $0x20] ss:$12 sps:$4 sm:$0xff]   ;;  %v1891_v35 = vld [vmem:[%s2098_s24 + $0x38] ss:$12 sps:$4 sm:$0xff]  }
  0x1d   : > { %1603 = vmatprep.subr.bf16.mxu0 %v1858_v10  ;;  %1746 = vmatprep.subr.bf16.mxu1 %v1858_v10  ;;  %v1892_v36 = vld [vmem:[%s2098_s24 + $0x60] ss:$12 sps:$4 sm:$0xff]   ;;  %v1893_v37 = vld [vmem:[%s2098_s24 + $0x50] ss:$12 sps:$4 sm:$0xff]   ;;  %v1896_v39 = vld [vmem:[%s2098_s24 + $0x68] ss:$12 sps:$4 sm:$0xff]  }
  0x1e   : > { %v1894_v38 = vld [vmem:[%s2098_s24 + $0x7c] ss:$12 sps:$4 sm:$0xff]   ;;  %v1897_v40 = vld [vmem:[%s2098_s24 + $0x78] ss:$12 sps:$4 sm:$0xff]   ;;  %v1898_v41 = vld [vmem:[%s2098_s24 + $0x80] ss:$12 sps:$4 sm:$0xff]  }
  0x1f   : > { %v1899_v42 = vld [vmem:[%s2098_s24 + $0x94] ss:$12 sps:$4 sm:$0xff]   ;;  %v1901_v43 = vld [vmem:[%s2098_s24 + $0x98] ss:$12 sps:$4 sm:$0xff]   ;;  %v1902_v44 = vld [vmem:[%s2098_s24 + $0x90] ss:$12 sps:$4 sm:$0xff]  }
  0x20   : > { %1604 = vmatpush3.bf16.msra.mxu0 %v1859_v13  ;;  %1754 = vmatpush3.bf16.msra.mxu1 %v1859_v13  ;;  %v1903_v45 = vld [vmem:[%s2098_s24 + $0xb0] ss:$12 sps:$4 sm:$0xff]   ;;  %v1904_v46 = vld [vmem:[%s2098_s24 + $0xac] ss:$12 sps:$4 sm:$0xff]   ;;  %v1906_v47 = vld [vmem:[%s2098_s24 + $0xc8] ss:$12 sps:$4 sm:$0xff]  }
  0x21   : > { %1605 = vmatprep.subr.bf16.mxu0 %v1860_v14  ;;  %1747 = vmatprep.subr.bf16.mxu1 %v1860_v14  ;;  %v1907_v48 = vld [vmem:[%s2098_s24 + $0xa8] ss:$12 sps:$4 sm:$0xff]   ;;  %v1908_v49 = vld [vmem:[%s2098_s24 + $0xe0] ss:$12 sps:$4 sm:$0xff]   ;;  %v1909_v50 = vld [vmem:[%s2098_s24 + $0xc4] ss:$12 sps:$4 sm:$0xff]  }
  0x22   : > { %v1911_v51 = vld [vmem:[%s2098_s24 + $0xf8] ss:$12 sps:$4 sm:$0xff]   ;;  %v1912_v52 = vld [vmem:[%s2098_s24 + $0xc0] ss:$12 sps:$4 sm:$0xff]   ;;  %v1913_v53 = vld [vmem:[%s2098_s24 + $0x110] ss:$12 sps:$4 sm:$0xff]  }
  0x23   : > { %v1914_v54 = vld [vmem:[%s2098_s24 + $0xdc] ss:$12 sps:$4 sm:$0xff]   ;;  %v1917_v56 = vld [vmem:[%s2098_s24 + $0xd8] ss:$12 sps:$4 sm:$0xff]   ;;  %v1918_v57 = vld [vmem:[%s2098_s24 + $0x140] ss:$12 sps:$4 sm:$0xff]  }
  0x24   : > { %1606 = vmatpush3.bf16.msra.mxu0 %v1861_v15  ;;  %1755 = vmatpush3.bf16.msra.mxu1 %v1861_v15  ;;  %v1916_v55 = vld [vmem:[%s2098_s24 + $0x128] ss:$12 sps:$4 sm:$0xff]   ;;  %v1921_v59 = vld [vmem:[%s2098_s24 + $0xf0] ss:$12 sps:$4 sm:$0xff]  }
  0x25   : > { %1607 = vmatprep.subr.bf16.mxu0 %v1862_v16  ;;  %1748 = vmatprep.subr.bf16.mxu1 %v1862_v16  ;;  %v1919_v58 = vld [vmem:[%s2098_s24 + $0xf4] ss:$12 sps:$4 sm:$0xff]  }
  0x28   : > { %1608 = vmatpush3.bf16.msra.mxu0 %v1863_v17  ;;  %1756 = vmatpush3.bf16.msra.mxu1 %v1863_v17 }
  0x29   : > { %1709 = vmatprep.subr.bf16.mxu1 %v1876_v18 }
  0x2b   : > { %694 = vmatmul.mubr.bf16.vlgmr.msra.gmra.mrb[0].mxu0 %v1864_v19  ;;  %782 = vmatmul.mubr.bf16.vlgmr.msra.gmra.mrb[0].mxu1 %v1867_v20 }
  0x2c   : > { %701 = vmatprep.mubr.bf16.mxu0 %v1870_v21  ;;  %789 = vmatprep.mubr.bf16.mxu1 %v1872_v22 }
  0x2d   : > { %1710 = vmatpush3.bf16.msra.mxu1 %v1876_v18 }
  0x2e   : > { %1711 = vmatprep.subr.bf16.mxu1 %v1883_v23 }
  0x31   : > { %1712 = vmatpush3.bf16.msra.mxu1 %v1883_v23 }
  0x33   : > { %702 = vmatmul.mubr.bf16.gmra.mrb[4].mxu0 %v1874_v24  ;;  %790 = vmatmul.mubr.bf16.gmra.mrb[4].mxu1 %v1875_v25 }
  0x34   : > { %709 = vmatprep.mubr.bf16.mxu0 %v1877_v26  ;;  %797 = vmatprep.mubr.bf16.mxu1 %v1879_v27 }
  0x3b   : > { %710 = vmatmul.mubr.bf16.gmra.mrb[8].mxu0 %v1881_v28  ;;  %798 = vmatmul.mubr.bf16.gmra.mrb[8].mxu1 %v1882_v29 }
  0x3c   : > { %717 = vmatprep.mubr.bf16.mxu0 %v1884_v30  ;;  %1713 = vmatprep.mubr.msk.bf16.mxu1 %vm618_vm0, %v1886_v31 }
  0x43   : > { %718 = vmatmul.mubr.bf16.gmra.mrb[12].mxu0 %v1887_v32  ;;  %1714 = vmatmul.mubr.msk.bf16.vlgmr.msra.gmra.mrb[12].mxu1 %vm618_vm0, %v1888_v33  ;;  %v2199_v32 = vld [vmem:[%s2429_s2] ss:$0 sm:$0xff] }
  0x44   : > { %725 = vmatprep.mubr.bf16.mxu0 %v1889_v34  ;;  %1717 = vmatprep.mubr.msk.bf16.mxu1 %vm618_vm0, %v1891_v35 }
  0x4b   : > { %726 = vmatmul.mubr.bf16.gmra.mrb[16].mxu0 %v1892_v36  ;;  %1718 = vmatmul.mubr.msk.bf16.gmra.mrb[16].mxu1 %vm618_vm0, %v1893_v37 }
  0x4c   : > { %733 = vmatprep.mubr.bf16.mxu0 %v1894_v38  ;;  %1721 = vmatprep.mubr.msk.bf16.mxu1 %vm618_vm0, %v1896_v39 }
  0x53   : > { %734 = vmatmul.mubr.bf16.gmra.mrb[20].mxu0 %v1897_v40  ;;  %1722 = vmatmul.mubr.msk.bf16.gmra.mrb[20].mxu1 %vm618_vm0, %v1898_v41 }
  0x54   : > { %741 = vmatprep.mubr.bf16.mxu0 %v1899_v42  ;;  %1725 = vmatprep.mubr.msk.bf16.mxu1 %vm618_vm0, %v1901_v43 }
  0x5b   : > { %742 = vmatmul.mubr.bf16.gmra.mrb[24].mxu0 %v1902_v44  ;;  %1726 = vmatmul.mubr.msk.bf16.gmra.mrb[24].mxu1 %vm618_vm0, %v1903_v45 }
  0x5c   : > { %749 = vmatprep.mubr.bf16.mxu0 %v1904_v46  ;;  %1729 = vmatprep.mubr.msk.bf16.mxu1 %vm618_vm0, %v1906_v47 }
  0x63   : > { %750 = vmatmul.mubr.bf16.gmra.mrb[28].mxu0 %v1907_v48  ;;  %1730 = vmatmul.mubr.msk.bf16.gmra.mrb[28].mxu1 %vm618_vm0, %v1908_v49 }
  0x64   : > { %757 = vmatprep.mubr.bf16.mxu0 %v1909_v50  ;;  %1733 = vmatprep.mubr.msk.bf16.mxu1 %vm618_vm0, %v1911_v51 }
  0x6b   : > { %758 = vmatmul.mubr.bf16.gmra.mrb[32].mxu0 %v1912_v52  ;;  %1734 = vmatmul.mubr.msk.bf16.gmra.mrb[32].mxu1 %vm618_vm0, %v1913_v53 }
  0x6c   : > { %765 = vmatprep.mubr.bf16.mxu0 %v1914_v54  ;;  %1737 = vmatprep.mubr.msk.bf16.mxu1 %vm618_vm0, %v1916_v55 }
  0x73   : > { %766 = vmatmul.mubr.bf16.gmra.mrb[36].mxu0 %v1917_v56  ;;  %1738 = vmatmul.mubr.msk.bf16.gmra.mrb[36].mxu1 %vm618_vm0, %v1918_v57 }
  0x74   : > { %773 = vmatprep.mubr.bf16.mxu0 %v1919_v58 }
  0x7b   : > { %774 = vmatmul.mubr.bf16.gmra.mrb[40].mxu0 %v1921_v59 }
  0xfe   : > { %v1609_v60 = vpop.f32.mrb[0].mxu0  ;;  %v1675_v61 = vpop.f32.mrb[0].mxu1 }
  0xff   : > { %v1610_v62 = vpop.f32.mrb[1].mxu0  ;;  %v1676_v63 = vpop.f32.mrb[1].mxu1 }
 0x100   : > { %v1611_v0 = vadd.f32 %v1610_v62, %v1609_v60  ;;  %v1612_v1 = vpop.f32.mrb[2].mxu0  ;;  %v2183_v2 = vadd.f32 %v1676_v63, %v1675_v61  ;;  %v1678_v3 = vpop.f32.mrb[2].mxu1 }
 0x101   : > { %v1613_v4 = vpop.f32.mrb[3].mxu0  ;;  %v1679_v5 = vpop.f32.mrb[3].mxu1 }
 0x102   : > { %v1614_v6 = vadd.f32 %v1613_v4, %v1612_v1  ;;  %v2185_v7 = vadd.f32 %v1679_v5, %v1678_v3  ;;  %v696_v36 = vadd.f32 %v1611_v0, %v2199_v32 }
 0x104   : > { %v699_v45 = vadd.f32 %v1614_v6, %v2199_v32 }
 0x106   : > { %v1615_v8 = vpop.f32.mrb[4].mxu0  ;;  %v1681_v9 = vpop.f32.mrb[4].mxu1 }
 0x107   : > { %v1616_v10 = vpop.f32.mrb[5].mxu0  ;;  %v1682_v11 = vpop.f32.mrb[5].mxu1 }
 0x108   : > { %v1617_v12 = vadd.f32 %v1616_v10, %v1615_v8  ;;  %v1618_v13 = vpop.f32.mrb[6].mxu0  ;;  %v2187_v14 = vadd.f32 %v1682_v11, %v1681_v9  ;;  %v1684_v15 = vpop.f32.mrb[6].mxu1 }
 0x109   : > { %v1619_v16 = vpop.f32.mrb[7].mxu0  ;;  %v1685_v17 = vpop.f32.mrb[7].mxu1 }
 0x10a   : > { %v1620_v18 = vadd.f32 %v1619_v16, %v1618_v13  ;;  %v2189_v19 = vadd.f32 %v1685_v17, %v1684_v15  ;;  %v704_v33 = vadd.f32 %v1617_v12, %v2199_v32 }
 0x10c   : > { %v707_v40 = vadd.f32 %v1620_v18, %v2199_v32 }
 0x10e   : > { %v1621_v20 = vpop.f32.mrb[8].mxu0  ;;  %v1687_v21 = vpop.f32.mrb[8].mxu1 }
 0x10f   : > { %v1622_v22 = vpop.f32.mrb[9].mxu0  ;;  %v1688_v23 = vpop.f32.mrb[9].mxu1 }
 0x110   : > { %v1623_v24 = vadd.f32 %v1622_v22, %v1621_v20  ;;  %v1624_v25 = vpop.f32.mrb[10].mxu0  ;;  %v2191_v26 = vadd.f32 %v1688_v23, %v1687_v21  ;;  %v1690_v27 = vpop.f32.mrb[10].mxu1 }
 0x111   : > { %v1625_v28 = vpop.f32.mrb[11].mxu0  ;;  %v1691_v29 = vpop.f32.mrb[11].mxu1 }
 0x112   : > { %v1626_v30 = vadd.f32 %v1625_v28, %v1624_v25  ;;  %v2193_v31 = vadd.f32 %v1691_v29, %v1690_v27  ;;  %v712_v62 = vadd.f32 %v1623_v24, %v2199_v32 }
 0x114   : > { %v715_v9 = vadd.f32 %v1626_v30, %v2199_v32 }
 0x116   : > { %v1627_v34 = vpop.f32.mrb[12].mxu0  ;;  %v1715_v35 = vpop.f32.mrb[12].mxu1 }
 0x117   : > { %v849_v37 = vadd.f32 %v1715_v35, %v704_v33  ;;  %v1628_v38 = vpop.f32.mrb[13].mxu0  ;;  %v840_v39 = vpop.f32.mrb[13].mxu1 }
 0x118   : > { %v1629_v41 = vadd.f32 %v1628_v38, %v1627_v34  ;;  %v841_v42 = vadd.f32 %v840_v39, %v696_v36  ;;  %v1630_v43 = vpop.f32.mrb[14].mxu0  ;;  %v1716_v44 = vpop.f32.mrb[14].mxu1 }
 0x119   : > { %v953_v46 = vmax.f32 %v849_v37, 0.0  ;;  %v852_v47 = vadd.f32 %v1716_v44, %v707_v40  ;;  %v1631_v48 = vpop.f32.mrb[15].mxu0  ;;  %v843_v49 = vpop.f32.mrb[15].mxu1 }
 0x11a   : > { %v951_v50 = vmax.f32 %v841_v42, 0.0  ;;  %v1632_v51 = vadd.f32 %v1631_v48, %v1630_v43  ;;  %v844_v52 = vadd.f32 %v843_v49, %v699_v45  ;;  %v720_v58 = vadd.f32 %v1629_v41, %v2199_v32 }
 0x11b   : > { %v1566_v53 = vpack.c.bf16 %v953_v46, %v953_v46  ;;  %v954_v54 = vmax.f32 %v852_v47, 0.0 }
 0x11c   : > { %v1564_v55 = vpack.c.bf16 %v951_v50, %v951_v50  ;;  %v952_v56 = vmax.f32 %v844_v52, 0.0  ;;  %v723_v3 = vadd.f32 %v1632_v51, %v2199_v32 }
 0x11d   : > { %1094 = vst.msk [vmem:[%s2205_s12 + $0x8] sm:$0xf] %vm1091_vm1, %v1566_v53  ;;  %v1567_v57 = vpack.c.bf16 %v954_v54, %v954_v54 }
 0x11e   : > { %1092 = vst.msk [vmem:[%s2205_s12] sm:$0xf] %vm1091_vm1, %v1564_v55  ;;  %v1565_v59 = vpack.c.bf16 %v952_v56, %v952_v56  ;;  %v1633_v60 = vpop.f32.mrb[16].mxu0  ;;  %v1719_v61 = vpop.f32.mrb[16].mxu1 }
 0x11f   : > { %1095 = vst.msk [vmem:[%s2205_s12 + $0xc] sm:$0xf] %vm1091_vm1, %v1567_v57  ;;  %v865_v63 = vadd.f32 %v1719_v61, %v720_v58  ;;  %v1634_v0 = vpop.f32.mrb[17].mxu0  ;;  %v856_v1 = vpop.f32.mrb[17].mxu1 }
 0x120   : > { %1093 = vst.msk [vmem:[%s2205_s12 + $0x4] sm:$0xf] %vm1091_vm1, %v1565_v59  ;;  %v1635_v4 = vadd.f32 %v1634_v0, %v1633_v60  ;;  %v857_v5 = vadd.f32 %v856_v1, %v712_v62  ;;  %v1636_v6 = vpop.f32.mrb[18].mxu0  ;;  %v1720_v8 = vpop.f32.mrb[18].mxu1 }
 0x121   : > { %v957_v10 = vmax.f32 %v865_v63, 0.0  ;;  %v868_v11 = vadd.f32 %v1720_v8, %v723_v3  ;;  %v1637_v12 = vpop.f32.mrb[19].mxu0  ;;  %v859_v13 = vpop.f32.mrb[19].mxu1 }
 0x122   : > { %v955_v15 = vmax.f32 %v857_v5, 0.0  ;;  %v1638_v16 = vadd.f32 %v1637_v12, %v1636_v6  ;;  %v860_v17 = vadd.f32 %v859_v13, %v715_v9  ;;  %v728_v28 = vadd.f32 %v1635_v4, %v2199_v32 }
 0x123   : > { %v1570_v18 = vpack.c.bf16 %v957_v10, %v957_v10  ;;  %v958_v20 = vmax.f32 %v868_v11, 0.0 }
 0x124   : > { %v1568_v21 = vpack.c.bf16 %v955_v15, %v955_v15  ;;  %v956_v22 = vmax.f32 %v860_v17, 0.0  ;;  %v731_v37 = vadd.f32 %v1638_v16, %v2199_v32 }
 0x125   : > { %1098 = vst.msk [vmem:[%s2205_s12 + $0x18] sm:$0xf] %vm1091_vm1, %v1570_v18  ;;  %v1571_v23 = vpack.c.bf16 %v958_v20, %v958_v20 }
 0x126   : > { %1096 = vst.msk [vmem:[%s2205_s12 + $0x10] sm:$0xf] %vm1091_vm1, %v1568_v21  ;;  %v1569_v24 = vpack.c.bf16 %v956_v22, %v956_v22  ;;  %v1639_v25 = vpop.f32.mrb[20].mxu0  ;;  %v1723_v27 = vpop.f32.mrb[20].mxu1 }
 0x127   : > { %1099 = vst.msk [vmem:[%s2205_s12 + $0x1c] sm:$0xf] %vm1091_vm1, %v1571_v23  ;;  %v1640_v29 = vpop.f32.mrb[21].mxu0  ;;  %v872_v30 = vpop.f32.mrb[21].mxu1 }
 0x128   : > { %1097 = vst.msk [vmem:[%s2205_s12 + $0x14] sm:$0xf] %vm1091_vm1, %v1569_v24  ;;  %v1641_v33 = vadd.f32 %v1640_v29, %v1639_v25  ;;  %v873_v34 = vadd.f32 %v872_v30, %v728_v28  ;;  %v1642_v35 = vpop.f32.mrb[22].mxu0  ;;  %v1724_v36 = vpop.f32.mrb[22].mxu1  ;;  %v784_v25 = vadd.f32 %v2183_v2, %v2199_v32 }
 0x129   : > { %v1643_v38 = vpop.f32.mrb[23].mxu0  ;;  %v875_v39 = vpop.f32.mrb[23].mxu1 }
 0x12a   : > { %v736_v40 = vadd.f32 %v1641_v33, %v2199_v32  ;;  %v959_v41 = vmax.f32 %v873_v34, 0.0  ;;  %v1644_v42 = vadd.f32 %v1643_v38, %v1642_v35  ;;  %v876_v43 = vadd.f32 %v875_v39, %v731_v37 }
 0x12c   : > { %v881_v44 = vadd.f32 %v1723_v27, %v736_v40  ;;  %v1572_v45 = vpack.c.bf16 %v959_v41, %v959_v41  ;;  %v739_v46 = vadd.f32 %v1644_v42, %v2199_v32  ;;  %v960_v47 = vmax.f32 %v876_v43, 0.0 }
 0x12e   : > { %v961_v48 = vmax.f32 %v881_v44, 0.0  ;;  %1100 = vst.msk [vmem:[%s2205_s12 + $0x20] sm:$0xf] %vm1091_vm1, %v1572_v45  ;;  %v884_v49 = vadd.f32 %v1724_v36, %v739_v46  ;;  %v1573_v50 = vpack.c.bf16 %v960_v47, %v960_v47  ;;  %v1645_v51 = vpop.f32.mrb[24].mxu0  ;;  %v1727_v52 = vpop.f32.mrb[24].mxu1  ;;  %v787_v36 = vadd.f32 %v2185_v7, %v2199_v32 }
 0x12f   : > { %v1646_v53 = vpop.f32.mrb[25].mxu0  ;;  %v888_v54 = vpop.f32.mrb[25].mxu1 }
 0x130   : > { %v1574_v55 = vpack.c.bf16 %v961_v48, %v961_v48  ;;  %v962_v56 = vmax.f32 %v884_v49, 0.0  ;;  %1101 = vst.msk [vmem:[%s2205_s12 + $0x24] sm:$0xf] %vm1091_vm1, %v1573_v50  ;;  %v1647_v57 = vadd.f32 %v1646_v53, %v1645_v51  ;;  %v1648_v58 = vpop.f32.mrb[26].mxu0  ;;  %v1728_v59 = vpop.f32.mrb[26].mxu1 }
 0x131   : > { %v1649_v60 = vpop.f32.mrb[27].mxu0  ;;  %v891_v61 = vpop.f32.mrb[27].mxu1 }
 0x132   : > { %1102 = vst.msk [vmem:[%s2205_s12 + $0x28] sm:$0xf] %vm1091_vm1, %v1574_v55  ;;  %v1575_v62 = vpack.c.bf16 %v962_v56, %v962_v56  ;;  %v1650_v63 = vadd.f32 %v1649_v60, %v1648_v58  ;;  %v744_v0 = vadd.f32 %v1647_v57, %v2199_v32  ;;  %v792_v57 = vadd.f32 %v2187_v14, %v2199_v32 }
 0x134   : > { %1103 = vst.msk [vmem:[%s2205_s12 + $0x2c] sm:$0xf] %vm1091_vm1, %v1575_v62  ;;  %v889_v1 = vadd.f32 %v888_v54, %v744_v0  ;;  %v747_v3 = vadd.f32 %v1650_v63, %v2199_v32 }
 0x136   : > { %v963_v4 = vmax.f32 %v889_v1, 0.0  ;;  %v892_v5 = vadd.f32 %v891_v61, %v747_v3  ;;  %v1651_v6 = vpop.f32.mrb[28].mxu0  ;;  %v2241_v8 = vpop.f32.mrb[28].mxu1  ;;  %v803_v61 = vadd.f32 %v2193_v31, %v2199_v32 }
 0x137   : > { %v1652_v9 = vpop.f32.mrb[29].mxu0  ;;  %v904_v10 = vpop.f32.mrb[29].mxu1 }
 0x138   : > { %v1576_v11 = vpack.c.bf16 %v963_v4, %v963_v4  ;;  %v964_v12 = vmax.f32 %v892_v5, 0.0  ;;  %v1653_v13 = vadd.f32 %v1652_v9, %v1651_v6  ;;  %v1654_v15 = vpop.f32.mrb[30].mxu0  ;;  %v2243_v16 = vpop.f32.mrb[30].mxu1  ;;  %v795_v6 = vadd.f32 %v2189_v19, %v2199_v32 }
 0x139   : > { %v1655_v17 = vpop.f32.mrb[31].mxu0  ;;  %v907_v18 = vpop.f32.mrb[31].mxu1 }
 0x13a   : > { %1104 = vst.msk [vmem:[%s2205_s12 + $0x30] sm:$0xf] %vm1091_vm1, %v1576_v11  ;;  %v1577_v20 = vpack.c.bf16 %v964_v12, %v964_v12  ;;  %v752_v21 = vadd.f32 %v1653_v13, %v2199_v32  ;;  %v1656_v22 = vadd.f32 %v1655_v17, %v1654_v15 }
 0x13c   : > { %1105 = vst.msk [vmem:[%s2205_s12 + $0x34] sm:$0xf] %vm1091_vm1, %v1577_v20  ;;  %v897_v23 = vadd.f32 %v1727_v52, %v752_v21  ;;  %v755_v24 = vadd.f32 %v1656_v22, %v2199_v32  ;;  %v800_v52 = vadd.f32 %v2191_v26, %v2199_v32 }
 0x13e   : > { %v965_v27 = vmax.f32 %v897_v23, 0.0  ;;  %v900_v28 = vadd.f32 %v1728_v59, %v755_v24  ;;  %v1657_v29 = vpop.f32.mrb[32].mxu0  ;;  %v1735_v30 = vpop.f32.mrb[32].mxu1 }
 0x13f   : > { %v929_v33 = vadd.f32 %v1735_v30, %v784_v25  ;;  %v1658_v34 = vpop.f32.mrb[33].mxu0  ;;  %v2253_v35 = vpop.f32.mrb[33].mxu1 }
 0x140   : > { %v1578_v37 = vpack.c.bf16 %v965_v27, %v965_v27  ;;  %v966_v38 = vmax.f32 %v900_v28, 0.0  ;;  %v1659_v39 = vadd.f32 %v1658_v34, %v1657_v29  ;;  %v1660_v40 = vpop.f32.mrb[34].mxu0  ;;  %v1736_v41 = vpop.f32.mrb[34].mxu1 }
 0x141   : > { %v973_v2 = vmax.f32 %v929_v33, 0.0  ;;  %v932_v42 = vadd.f32 %v1736_v41, %v787_v36  ;;  %v1661_v43 = vpop.f32.mrb[35].mxu0  ;;  %v2257_v44 = vpop.f32.mrb[35].mxu1 }
 0x142   : > { %1106 = vst.msk [vmem:[%s2205_s12 + $0x38] sm:$0xf] %vm1091_vm1, %v1578_v37  ;;  %v1579_v45 = vpack.c.bf16 %v966_v38, %v966_v38  ;;  %v760_v46 = vadd.f32 %v1659_v39, %v2199_v32  ;;  %v1662_v47 = vadd.f32 %v1661_v43, %v1660_v40 }
 0x143   : > { %v1586_v7 = vpack.c.bf16 %v973_v2, %v973_v2  ;;  %v974_v48 = vmax.f32 %v932_v42, 0.0 }
 0x144   : > { %1107 = vst.msk [vmem:[%s2205_s12 + $0x3c] sm:$0xf] %vm1091_vm1, %v1579_v45  ;;  %v905_v49 = vadd.f32 %v904_v10, %v760_v46  ;;  %v763_v50 = vadd.f32 %v1662_v47, %v2199_v32 }
 0x145   : > { %1114 = vst.msk [vmem:[%s2205_s12 + $0x58] sm:$0xf] %vm1091_vm1, %v1586_v7  ;;  %v1587_v51 = vpack.c.bf16 %v974_v48, %v974_v48 }
 0x146   : > { %v967_v53 = vmax.f32 %v905_v49, 0.0  ;;  %v908_v54 = vadd.f32 %v907_v18, %v763_v50  ;;  %v1663_v55 = vpop.f32.mrb[36].mxu0  ;;  %v1739_v56 = vpop.f32.mrb[36].mxu1 }
 0x147   : > { %1115 = vst.msk [vmem:[%s2205_s12 + $0x5c] sm:$0xf] %vm1091_vm1, %v1587_v51  ;;  %v945_v58 = vadd.f32 %v1739_v56, %v800_v52  ;;  %v1664_v59 = vpop.f32.mrb[37].mxu0  ;;  %v936_v60 = vpop.f32.mrb[37].mxu1 }
 0x148   : > { %v1580_v62 = vpack.c.bf16 %v967_v53, %v967_v53  ;;  %v968_v63 = vmax.f32 %v908_v54, 0.0  ;;  %v1665_v0 = vadd.f32 %v1664_v59, %v1663_v55  ;;  %v937_v26 = vadd.f32 %v936_v60, %v792_v57  ;;  %v1666_v1 = vpop.f32.mrb[38].mxu0  ;;  %v1740_v3 = vpop.f32.mrb[38].mxu1 }
 0x149   : > { %v977_v4 = vmax.f32 %v945_v58, 0.0  ;;  %v948_v5 = vadd.f32 %v1740_v3, %v803_v61  ;;  %v1667_v14 = vpop.f32.mrb[39].mxu0  ;;  %v939_v9 = vpop.f32.mrb[39].mxu1 }
 0x14a   : > { %1108 = vst.msk [vmem:[%s2205_s12 + $0x40] sm:$0xf] %vm1091_vm1, %v1580_v62  ;;  %v1581_v10 = vpack.c.bf16 %v968_v63, %v968_v63  ;;  %v768_v31 = vadd.f32 %v1665_v0, %v2199_v32  ;;  %v975_v11 = vmax.f32 %v937_v26, 0.0  ;;  %v1668_v12 = vadd.f32 %v1667_v14, %v1666_v1 }
 0x14b   : > { %v1590_v13 = vpack.c.bf16 %v977_v4, %v977_v4  ;;  %v978_v15 = vmax.f32 %v948_v5, 0.0  ;;  %v940_v17 = vadd.f32 %v939_v9, %v795_v6 }
 0x14c   : > { %1109 = vst.msk [vmem:[%s2205_s12 + $0x44] sm:$0xf] %vm1091_vm1, %v1581_v10  ;;  %v913_v18 = vadd.f32 %v2241_v8, %v768_v31  ;;  %v1588_v20 = vpack.c.bf16 %v975_v11, %v975_v11  ;;  %v771_v19 = vadd.f32 %v1668_v12, %v2199_v32 }
 0x14d   : > { %1118 = vst.msk [vmem:[%s2205_s12 + $0x68] sm:$0xf] %vm1091_vm1, %v1590_v13  ;;  %v1591_v21 = vpack.c.bf16 %v978_v15, %v978_v15  ;;  %v976_v22 = vmax.f32 %v940_v17, 0.0 }
 0x14e   : > { %v969_v23 = vmax.f32 %v913_v18, 0.0  ;;  %1116 = vst.msk [vmem:[%s2205_s12 + $0x60] sm:$0xf] %vm1091_vm1, %v1588_v20  ;;  %v916_v24 = vadd.f32 %v2243_v16, %v771_v19  ;;  %v1669_v25 = vpop.f32.mrb[40].mxu0 }
 0x14f   : > { %1119 = vst.msk [vmem:[%s2205_s12 + $0x6c] sm:$0xf] %vm1091_vm1, %v1591_v21  ;;  %v1589_v27 = vpack.c.bf16 %v976_v22, %v976_v22  ;;  %v1670_v8 = vpop.f32.mrb[41].mxu0 }
 0x150   : > { %v1582_v28 = vpack.c.bf16 %v969_v23, %v969_v23  ;;  %v970_v29 = vmax.f32 %v916_v24, 0.0  ;;  %v1671_v30 = vadd.f32 %v1670_v8, %v1669_v25  ;;  %v1672_v33 = vpop.f32.mrb[42].mxu0 }
 0x151   : > { %1117 = vst.msk [vmem:[%s2205_s12 + $0x64] sm:$0xf] %vm1091_vm1, %v1589_v27  ;;  %v1673_v34 = vpop.f32.mrb[43].mxu0 }
 0x152   : > { %1110 = vst.msk [vmem:[%s2205_s12 + $0x48] sm:$0xf] %vm1091_vm1, %v1582_v28  ;;  %v1583_v36 = vpack.c.bf16 %v970_v29, %v970_v29  ;;  %v776_v37 = vadd.f32 %v1671_v30, %v2199_v32  ;;  %v1674_v16 = vadd.f32 %v1673_v34, %v1672_v33 }
 0x154   : > { %1111 = vst.msk [vmem:[%s2205_s12 + $0x4c] sm:$0xf] %vm1091_vm1, %v1583_v36  ;;  %v921_v38 = vadd.f32 %v2253_v35, %v776_v37  ;;  %v779_v39 = vadd.f32 %v1674_v16, %v2199_v32 }
 0x156   : > { %v971_v40 = vmax.f32 %v921_v38, 0.0  ;;  %v924_v41 = vadd.f32 %v2257_v44, %v779_v39  ;;  %1126 = sbr.rel (!%p2059_p4) target bundleno = 429 (0x1ad), region = 36 }
 0x158   : > { %v1584_v2 = vpack.c.bf16 %v971_v40, %v971_v40  ;;  %v972_v42 = vmax.f32 %v924_v41, 0.0 }
 0x15a   : > { %1112 = vst.msk [vmem:[%s2205_s12 + $0x50] sm:$0xf] %vm1091_vm1, %v1584_v2  ;;  %v1585_v43 = vpack.c.bf16 %v972_v42, %v972_v42 }
 0x15c   : > { %1113 = vst.msk [vmem:[%s2205_s12 + $0x54] sm:$0xf] %vm1091_vm1, %v1585_v43 }
 0x15d   : > { %s2439_s27 = smov (!%p1129_p8, %s1128_s27), 28 }
 0x15e   : > { %s1552_s5 = sshll.u32 %s2439_s27, 6 }
 0x15f   : > { %p1555_p9 = scmp.eq.s32.totalorder %s1552_s5, 0 }
 0x160   : > { %1922 = sdivrem.u32 (!%p1555_p9), %s2439_s27, 28 }
 0x161   : > { %1137 = sbr.rel (%p1555_p9) target bundleno = 429 (0x1ad), region = 40 }
 0x169   : > { %s2318_s20 = spop.drf %1922 }
 0x16a   : > { %p1556_p10 = scmp.le.s32.totalorder %s2318_s20, 0 }
 0x16b   : > { %s2432_s15 = smov (!%p1556_p10), %s2312_s4  ;;  %s2433_s23 = smov (!%p1556_p10), %s2205_s12 }
 0x16c   : > { %1400 = sbr.rel (%p1556_p10) target bundleno = 400 (0x190), region = 112  ;;  %s2327_s6 = smov (!%p1556_p10), 0  }
 0x16d   : > { %s2329_s7 = smov (!%p1556_p10), 0  }
 0x173 LB: >> { %v1154_v32 = vld [vmem:[%s1988_s23] sm:$0xf]  ;;  %v1156_v35 = vld [vmem:[%s1988_s23 + $0x4] sm:$0xf]  ;;  %v1158_v44 = vld [vmem:[%s1988_s23 + $0x8] sm:$0xf]  ;;  %s1996_s7 = sphi %s2329_s7, %s1148_s7   ;;  %s1992_s6 = sphi %s2327_s6, %s2434_s6   ;;  %s1988_s23 = sphi %s2433_s23, %s1215_s23   ;;  %s1984_s15 = sphi %s2432_s15, %s1216_s15  }
 0x174   : >> { %1155 = vst [vmem:[%s1984_s15] sm:$0xf] %v1154_v32  ;;  %1157 = vst [vmem:[%s1984_s15 + $0x4] sm:$0xf] %v1156_v35  ;;  %v1160_v45 = vld [vmem:[%s1988_s23 + $0xc] sm:$0xf]  ;;  %s1210_s8 = sadd.s32 1, %s1992_s6 }
 0x175   : >> { %1159 = vst [vmem:[%s1984_s15 + $0x8] sm:$0xf] %v1158_v44  ;;  %v1162_v46 = vld [vmem:[%s1988_s23 + $0x10] sm:$0xf]  ;;  %v1164_v47 = vld [vmem:[%s1988_s23 + $0x14] sm:$0xf]  ;;  %p1211_p11 = scmp.ge.s32.totalorder %s1210_s8, %s2318_s20 }
 0x176   : >> { %1161 = vst [vmem:[%s1984_s15 + $0xc] sm:$0xf] %v1160_v45  ;;  %1163 = vst [vmem:[%s1984_s15 + $0x10] sm:$0xf] %v1162_v46  ;;  %v1166_v7 = vld [vmem:[%s1988_s23 + $0x18] sm:$0xf] }
 0x177   : >> { %1165 = vst [vmem:[%s1984_s15 + $0x14] sm:$0xf] %v1164_v47  ;;  %v1168_v48 = vld [vmem:[%s1988_s23 + $0x1c] sm:$0xf]  ;;  %v1170_v49 = vld [vmem:[%s1988_s23 + $0x20] sm:$0xf] }
 0x178   : >> { %1167 = vst [vmem:[%s1984_s15 + $0x18] sm:$0xf] %v1166_v7  ;;  %1169 = vst [vmem:[%s1984_s15 + $0x1c] sm:$0xf] %v1168_v48  ;;  %v1172_v50 = vld [vmem:[%s1988_s23 + $0x24] sm:$0xf] }
 0x179   : >> { %1171 = vst [vmem:[%s1984_s15 + $0x20] sm:$0xf] %v1170_v49  ;;  %v1174_v51 = vld [vmem:[%s1988_s23 + $0x28] sm:$0xf]  ;;  %v1176_v52 = vld [vmem:[%s1988_s23 + $0x2c] sm:$0xf] }
 0x17a   : >> { %1173 = vst [vmem:[%s1984_s15 + $0x24] sm:$0xf] %v1172_v50  ;;  %1175 = vst [vmem:[%s1984_s15 + $0x28] sm:$0xf] %v1174_v51  ;;  %v1178_v53 = vld [vmem:[%s1988_s23 + $0x30] sm:$0xf] }
 0x17b   : >> { %1177 = vst [vmem:[%s1984_s15 + $0x2c] sm:$0xf] %v1176_v52  ;;  %v1180_v54 = vld [vmem:[%s1988_s23 + $0x34] sm:$0xf]  ;;  %v1182_v55 = vld [vmem:[%s1988_s23 + $0x38] sm:$0xf] }
 0x17c   : >> { %1179 = vst [vmem:[%s1984_s15 + $0x30] sm:$0xf] %v1178_v53  ;;  %1181 = vst [vmem:[%s1984_s15 + $0x34] sm:$0xf] %v1180_v54  ;;  %v1184_v56 = vld [vmem:[%s1988_s23 + $0x3c] sm:$0xf] }
 0x17d   : >> { %1183 = vst [vmem:[%s1984_s15 + $0x38] sm:$0xf] %v1182_v55  ;;  %v1186_v57 = vld [vmem:[%s1988_s23 + $0x40] sm:$0xf]  ;;  %v1188_v58 = vld [vmem:[%s1988_s23 + $0x44] sm:$0xf] }
 0x17e   : >> { %1185 = vst [vmem:[%s1984_s15 + $0x3c] sm:$0xf] %v1184_v56  ;;  %1187 = vst [vmem:[%s1984_s15 + $0x40] sm:$0xf] %v1186_v57  ;;  %v1190_v59 = vld [vmem:[%s1988_s23 + $0x48] sm:$0xf] }
 0x17f   : >> { %1189 = vst [vmem:[%s1984_s15 + $0x44] sm:$0xf] %v1188_v58  ;;  %v1192_v60 = vld [vmem:[%s1988_s23 + $0x4c] sm:$0xf]  ;;  %v1194_v61 = vld [vmem:[%s1988_s23 + $0x50] sm:$0xf] }
 0x180   : >> { %1191 = vst [vmem:[%s1984_s15 + $0x48] sm:$0xf] %v1190_v59  ;;  %1193 = vst [vmem:[%s1984_s15 + $0x4c] sm:$0xf] %v1192_v60  ;;  %v1196_v62 = vld [vmem:[%s1988_s23 + $0x54] sm:$0xf] }
 0x181   : >> { %1195 = vst [vmem:[%s1984_s15 + $0x50] sm:$0xf] %v1194_v61  ;;  %v1198_v63 = vld [vmem:[%s1988_s23 + $0x58] sm:$0xf]  ;;  %v1200_v0 = vld [vmem:[%s1988_s23 + $0x5c] sm:$0xf] }
 0x182   : >> { %1197 = vst [vmem:[%s1984_s15 + $0x54] sm:$0xf] %v1196_v62  ;;  %1199 = vst [vmem:[%s1984_s15 + $0x58] sm:$0xf] %v1198_v63  ;;  %v1202_v26 = vld [vmem:[%s1988_s23 + $0x60] sm:$0xf] }
 0x183   : >> { %1201 = vst [vmem:[%s1984_s15 + $0x5c] sm:$0xf] %v1200_v0  ;;  %v1204_v1 = vld [vmem:[%s1988_s23 + $0x64] sm:$0xf]  ;;  %v1206_v3 = vld [vmem:[%s1988_s23 + $0x68] sm:$0xf] }
 0x184   : >> { %1203 = vst [vmem:[%s1984_s15 + $0x60] sm:$0xf] %v1202_v26  ;;  %1205 = vst [vmem:[%s1984_s15 + $0x64] sm:$0xf] %v1204_v1  ;;  %v1208_v4 = vld [vmem:[%s1988_s23 + $0x6c] sm:$0xf] }
 0x185   : >> { %1207 = vst [vmem:[%s1984_s15 + $0x68] sm:$0xf] %v1206_v3  ;;  %1209 = vst [vmem:[%s1984_s15 + $0x6c] sm:$0xf] %v1208_v4  ;;  %s2441_s8 = smov (%p1211_p11, %s1210_s8), 0  ;;  %s1148_s7 = sadd.s32 1, %s1996_s7  }
 0x186   : >> { %s1213_s9 = smul.u32 112, %s2441_s8  ;;  %p1147_p12 = scmp.ge.s32.totalorder %s1148_s7, %s2318_s20 }
 0x187   : >> { %s2434_s6 = smov %s2441_s8 }
 0x188   : >> { %s1215_s23 = scalar_lea.vmem %s2205_s12, %s1213_s9 [#allocation2]   ;;  %s1216_s15 = scalar_lea.vmem %s2312_s4, %s1213_s9  }
 0x189   : > { %1150 = sbr.rel (!%p1147_p12) target bundleno = 371 (0x173), region = 118 }
 0x190 PF: > { %1924 = sdivrem.u32 %s2439_s27, 28 }
 0x191   : > { %s1557_s10 = smul.u32 112, %s2318_s20 }
 0x193   : > { %s1221_s11 = scalar_lea.vmem %s2205_s12, %s1557_s10 [#allocation2]   ;;  %s1223_s14 = scalar_lea.vmem %s2312_s4, %s1557_s10  }
 0x199   : > { %s1925_s17 = spop.drf %1924 }
 0x19a   : > { %p1559_p13 = scmp.le.s32.totalorder %s1925_s17, 0 }
 0x19b   : > { %s1998_s18 = smov (!%p1559_p13), %s1223_s14   ;;  %s2002_s21 = smov (!%p1559_p13), %s1221_s11  }
 0x19c   : > { %1414 = sbr.rel (%p1559_p13) target bundleno = 429 (0x1ad), region = 123  ;;  %s2006_s22 = smov (!%p1559_p13), 0  }
 0x19d   : > { %s2010_s24 = smov (!%p1559_p13), 0  }
 0x1a3 LB: >> { %v1233_v5 = vld [vmem:[%s2004_s21] sm:$0xf]  ;;  %s1235_s25 = sadd.s32 1, %s2008_s22  ;;  %s1227_s24 = sadd.s32 1, %s2012_s24   ;;  %s2012_s24 = sphi %s2010_s24, %s1227_s24   ;;  %s2008_s22 = sphi %s2006_s22, %s2007_s22   ;;  %s2004_s21 = sphi %s2002_s21, %s1240_s21   ;;  %s2000_s18 = sphi %s1998_s18, %s1241_s18  }
 0x1a4   : >> { %1234 = vst [vmem:[%s2000_s18] sm:$0xf] %v1233_v5  ;;  %p1236_p0 = scmp.ge.s32.totalorder %s1235_s25, %s1925_s17  ;;  %p1226_p1 = scmp.ge.s32.totalorder %s1227_s24, %s1925_s17 }
 0x1a6   : >> { %s2443_s25 = smov (%p1236_p0, %s1235_s25), 0  ;;  %1229 = sbr.rel (!%p1226_p1) target bundleno = 419 (0x1a3), region = 129 }
 0x1a7   : >> { %s1560_s26 = sshll.u32 %s2443_s25, 2  ;;  %s2007_s22 = smov %s2443_s25  }
 0x1a8   : >> { %s1240_s21 = scalar_lea.vmem %s1221_s11, %s1560_s26 [#allocation2]   ;;  %s1241_s18 = scalar_lea.vmem %s1223_s14, %s1560_s26  }
 0x1ad PF: > { %p10_p2 = scmp.ge.s32.totalorder %s2049_s16, 8   ;;  %s2435_s12 = smov %s1976_s13 }
 0x1ae   : > { %s2436_s13 = smov %s2057_s19  ;;  %s2437_s14 = smov %s2049_s16 }
 0x1af   :  { %12 = sbr.rel (!%p10_p2) target bundleno = 2 (0x2), region = 140 }

// kernel: stcae_encoder_forward.10
= control target key start
LH: loop header
LB: loop body
LE: loop exit
PB: predicated region body
PF: predicated region fallthrough
CT: control target
= control target key end

     0   :  { %s2034_s12 = smov 0   ;;  %s2036_s13 = smov 0   ;;  %s2427_s0 = inlined_call_operand.vmem [shape: bf16[1296,288], index: 0, kind: input, shape index: {}]   ;;  %s2428_s1 = inlined_call_operand.vmem [shape: bf16[288,64], index: 1, kind: input, shape index: {}]   ;;  %s2429_s2 = inlined_call_operand.vmem [shape: f32[1,64], index: 2, kind: input, shape index: {}]   ;;  %s2430_s3 = inlined_call_operand.vmem [shape: bf16[1296,64], index: 3, kind: output, shape index: {}]  }
   0x1   :  { %s2038_s14 = smov 0  }
   0x2 LB: > { %s2047_s15 = sadd.s32 4294967295, %s1980_s14   ;;  %s2049_s16 = sadd.s32 1, %s1980_s14   ;;  %s1980_s14 = sphi %s2038_s14, %s2437_s14   ;;  %s1976_s13 = sphi %s2036_s13, %s2436_s13   ;;  %s1972_s12 = sphi %s2034_s12, %s2435_s12  }
   0x3   : > { %s85_s17 = ssub.s32 %s1980_s14, %s2049_s16  ;;  %s88_s18 = sadd.s32 1, %s1976_s13 }
   0x4   : > { %p86_p0 = scmp.eq.s32.totalorder %s85_s17, 0  ;;  %p98_p1 = scmp.ne.s32.totalorder %s1976_s13, %s1972_s12 }
   0x5   : > { %p99_p2 = scmp.eq.s32.totalorder %s2047_s15, 5  ;;  %p1447_p3 = scmp.ge.s32.totalorder %s1980_s14, 1 }
   0x6   : > { %s2057_s19 = scalar_select %p86_p0, %s1976_s13, %s88_s18  }
   0x7   : > { %p2059_p4 = por %p99_p2, %p98_p1  ;;  %p149_p5 = scmp.lt.s32.totalorder %s1980_s14, 7 }
   0x9   : > { %p150_p6 = pnand %p1447_p3, %p149_p5 }
   0xa   : > { %v1848_v0 = vld [vmem:[%s2428_s1 + $0x40] sm:$0xff] (!%p150_p6)   ;;  %s2067_s23 = smul.u32 (!%p150_p6), 28, %s2047_s15  ;;  %v1850_v2 = vld [vmem:[%s2428_s1 + $0x48] sm:$0xff] (!%p150_p6)   ;;  %v1852_v4 = vld [vmem:[%s2428_s1 + $0x50] sm:$0xff] (!%p150_p6)   ;;  %vm618_vm0 = vcmask (!%p150_p6), 261120   ;;  %s175_s22 = sand.u32 (!%p150_p6), 1, %s1972_s12  }
   0xb   : > { %153 = sbr.rel (%p150_p6) target bundleno = 429 (0x1ad), region = 32  ;;  %v1849_v1 = vld [vmem:[%s2428_s1] sm:$0xff] (!%p150_p6)   ;;  %1593 = vmatprep.subr.bf16.mxu0 (!%p150_p6), %v1848_v0  ;;  %1741 = vmatprep.subr.bf16.mxu1 (!%p150_p6), %v1848_v0  ;;  %v1851_v3 = vld [vmem:[%s2428_s1 + $0x8] sm:$0xff] (!%p150_p6)   ;;  %v1853_v5 = vld [vmem:[%s2428_s1 + $0x10] sm:$0xff] (!%p150_p6)   ;;  %vm1091_vm1 = vcmask (!%p150_p6), 519168  }
   0xc   : > { %p184_p7 = scmp.lt.s32.totalorder (!%p150_p6), %s2067_s23, 161  ;;  %1594 = vmatpush3.bf16.msra.mxu0 (!%p150_p6), %v1849_v1  ;;  %1749 = vmatpush3.bf16.msra.mxu1 (!%p150_p6), %v1849_v1  ;;  %v1854_v6 = vld [vmem:[%s2428_s1 + $0x58] sm:$0xff] (!%p150_p6)   ;;  %v1856_v8 = vld [vmem:[%s2428_s1 + $0x60] sm:$0xff] (!%p150_p6)   ;;  %v1858_v10 = vld [vmem:[%s2428_s1 + $0x68] sm:$0xff] (!%p150_p6)   ;;  %s1757_s26 = smul.u32 (!%p150_p6), 112, %s175_s22 }
   0xd   : > { %1595 = vmatprep.subr.bf16.mxu0 (!%p150_p6), %v1850_v2  ;;  %1742 = vmatprep.subr.bf16.mxu1 (!%p150_p6), %v1850_v2  ;;  %v1855_v7 = vld [vmem:[%s2428_s1 + $0x18] sm:$0xff] (!%p150_p6)   ;;  %v1857_v9 = vld [vmem:[%s2428_s1 + $0x20] sm:$0xff] (!%p150_p6)   ;;  %v1859_v13 = vld [vmem:[%s2428_s1 + $0x28] sm:$0xff] (!%p150_p6)  }
   0xe   : > { %v1860_v14 = vld [vmem:[%s2428_s1 + $0x70] sm:$0xff] (!%p150_p6)   ;;  %v1862_v16 = vld [vmem:[%s2428_s1 + $0x78] sm:$0xff] (!%p150_p6)   ;;  %v1876_v18 = vld [vmem:[%s2428_s1 + $0x80] sm:$0xff] (!%p150_p6)   ;;  %s2205_s12 = scalar_lea.vmem (!%p150_p6), [#allocation2], %s1757_s26  }
   0xf   : > { %v1861_v15 = vld [vmem:[%s2428_s1 + $0x30] sm:$0xff] (!%p150_p6)   ;;  %v1863_v17 = vld [vmem:[%s2428_s1 + $0x38] sm:$0xff] (!%p150_p6)   ;;  %v1883_v23 = vld [vmem:[%s2428_s1 + $0x88] sm:$0xff] (!%p150_p6)  }
  0x10   : > { %1596 = vmatpush3.bf16.msra.mxu0 (!%p150_p6), %v1851_v3  ;;  %1750 = vmatpush3.bf16.msra.mxu1 (!%p150_p6), %v1851_v3 }
  0x11   : > { %1597 = vmatprep.subr.bf16.mxu0 (!%p150_p6), %v1852_v4  ;;  %1743 = vmatprep.subr.bf16.mxu1 (!%p150_p6), %v1852_v4 }
  0x12   : > { %s185_s5 = scalar_select %p184_p7, %s2067_s23, 161 }
  0x13   : > { %s1128_s27 = ssub.s32 (%p2059_p4), 162, %s2067_s23  ;;  %s1592_s28 = smul.u32 (%p2059_p4), 112, %s2047_s15 }
  0x14   : > { %s1758_s10 = smul.u32 12, %s185_s5  ;;  %1598 = vmatpush3.bf16.msra.mxu0 %v1853_v5  ;;  %1751 = vmatpush3.bf16.msra.mxu1 %v1853_v5  ;;  %p1129_p8 = scmp.lt.s32.totalorder (%p2059_p4), %s1128_s27, 28 }
  0x15   : > { %1599 = vmatprep.subr.bf16.mxu0 %v1854_v6  ;;  %1744 = vmatprep.subr.bf16.mxu1 %v1854_v6  ;;  %s2312_s4 = scalar_lea.vmem (%p2059_p4), %s2430_s3, %s1592_s28  }
  0x16   : > { %s2098_s24 = scalar_lea.vmem %s2427_s0, %s1758_s10 }
  0x17   : > { %v1866_v11 = vld [vmem:[%s2098_s24 + $0x4] ss:$12 sps:$4 sm:$0xff]   ;;  %v1869_v12 = vld [vmem:[%s2098_s24 + $0x10c] ss:$12 sps:$4 sm:$0xff]   ;;  %v1867_v20 = vld [vmem:[%s2098_s24 + $0x108] ss:$12 sps:$4 sm:$0xff]  }
  0x18   : > { %1600 = vmatpush3.bf16.msra.mxu0 %v1855_v7  ;;  %1752 = vmatpush3.bf16.msra.mxu1 %v1855_v7  ;;  %v1864_v19 = vld [vmem:[%s2098_s24] ss:$12 sps:$4 sm:$0xff]   ;;  %v1870_v21 = vld [vmem:[%s2098_s24 + $0x1c] ss:$12 sps:$4 sm:$0xff]   ;;  %v1872_v22 = vld [vmem:[%s2098_s24 + $0x124] ss:$12 sps:$4 sm:$0xff]  }
  0x19   : > { %1601 = vmatprep.subr.bf16.mxu0 %v1856_v8  ;;  %1745 = vmatprep.subr.bf16.mxu1 %v1856_v8  ;;  %v1874_v24 = vld [vmem:[%s2098_s24 + $0x18] ss:$12 sps:$4 sm:$0xff]   ;;  %v1875_v25 = vld [vmem:[%s2098_s24 + $0x120] ss:$12 sps:$4 sm:$0xff]   ;;  %v1879_v27 = vld [vmem:[%s2098_s24 + $0x13c] ss:$12 sps:$4 sm:$0xff]  }
  0x1a   : > { %693 = vmatprep.mubr.bf16.mxu0 %v1866_v11  ;;  %781 = vmatprep.mubr.bf16.mxu1 %v1869_v12  ;;  %v1877_v26 = vld [vmem:[%s2098_s24 + $0x34] ss:$12 sps:$4 sm:$0xff]   ;;  %v1881_v28 = vld [vmem:[%s2098_s24 + $0x30] ss:$12 sps:$4 sm:$0xff]   ;;  %v1882_v29 = vld [vmem:[%s2098_s24 + $0x138] ss:$12 sps:$4 sm:$0xff]  }
  0x1b   : > { %v1884_v30 = vld [vmem:[%s2098_s24 + $0x4c] ss:$12 sps:$4 sm:$0xff]   ;;  %v1886_v31 = vld [vmem:[%s2098_s24 + $0x8] ss:$12 sps:$4 sm:$0xff]   ;;  %v1889_v34 = vld [vmem:[%s2098_s24 + $0x64] ss:$12 sps:$4 sm:$0xff]  }
  0x1c   : > { %1602 = vmatpush3.bf16.msra.mxu0 %v1857_v9  ;;  %1753 = vmatpush3.bf16.msra.mxu1 %v1857_v9  ;;  %v1887_v32 = vld [vmem:[%s2098_s24 + $0x48] ss:$12 sps:$4 sm:$0xff]   ;;  %v1888_v33 = vld [vmem:[%s2098_s24 + $0x20] ss:$12 sps:$4 sm:$0xff]   ;;  %v1891_v35 = vld [vmem:[%s2098_s24 + $0x38] ss:$12 sps:$4 sm:$0xff]  }
  0x1d   : > { %1603 = vmatprep.subr.bf16.mxu0 %v1858_v10  ;;  %1746 = vmatprep.subr.bf16.mxu1 %v1858_v10  ;;  %v1892_v36 = vld [vmem:[%s2098_s24 + $0x60] ss:$12 sps:$4 sm:$0xff]   ;;  %v1893_v37 = vld [vmem:[%s2098_s24 + $0x50] ss:$12 sps:$4 sm:$0xff]   ;;  %v1896_v39 = vld [vmem:[%s2098_s24 + $0x68] ss:$12 sps:$4 sm:$0xff]  }
  0x1e   : > { %v1894_v38 = vld [vmem:[%s2098_s24 + $0x7c] ss:$12 sps:$4 sm:$0xff]   ;;  %v1897_v40 = vld [vmem:[%s2098_s24 + $0x78] ss:$12 sps:$4 sm:$0xff]   ;;  %v1898_v41 = vld [vmem:[%s2098_s24 + $0x80] ss:$12 sps:$4 sm:$0xff]  }
  0x1f   : > { %v1899_v42 = vld [vmem:[%s2098_s24 + $0x94] ss:$12 sps:$4 sm:$0xff]   ;;  %v1901_v43 = vld [vmem:[%s2098_s24 + $0x98] ss:$12 sps:$4 sm:$0xff]   ;;  %v1902_v44 = vld [vmem:[%s2098_s24 + $0x90] ss:$12 sps:$4 sm:$0xff]  }
  0x20   : > { %1604 = vmatpush3.bf16.msra.mxu0 %v1859_v13  ;;  %1754 = vmatpush3.bf16.msra.mxu1 %v1859_v13  ;;  %v1903_v45 = vld [vmem:[%s2098_s24 + $0xb0] ss:$12 sps:$4 sm:$0xff]   ;;  %v1904_v46 = vld [vmem:[%s2098_s24 + $0xac] ss:$12 sps:$4 sm:$0xff]   ;;  %v1906_v47 = vld [vmem:[%s2098_s24 + $0xc8] ss:$12 sps:$4 sm:$0xff]  }
  0x21   : > { %1605 = vmatprep.subr.bf16.mxu0 %v1860_v14  ;;  %1747 = vmatprep.subr.bf16.mxu1 %v1860_v14  ;;  %v1907_v48 = vld [vmem:[%s2098_s24 + $0xa8] ss:$12 sps:$4 sm:$0xff]   ;;  %v1908_v49 = vld [vmem:[%s2098_s24 + $0xe0] ss:$12 sps:$4 sm:$0xff]   ;;  %v1909_v50 = vld [vmem:[%s2098_s24 + $0xc4] ss:$12 sps:$4 sm:$0xff]  }
  0x22   : > { %v1911_v51 = vld [vmem:[%s2098_s24 + $0xf8] ss:$12 sps:$4 sm:$0xff]   ;;  %v1912_v52 = vld [vmem:[%s2098_s24 + $0xc0] ss:$12 sps:$4 sm:$0xff]   ;;  %v1913_v53 = vld [vmem:[%s2098_s24 + $0x110] ss:$12 sps:$4 sm:$0xff]  }
  0x23   : > { %v1914_v54 = vld [vmem:[%s2098_s24 + $0xdc] ss:$12 sps:$4 sm:$0xff]   ;;  %v1917_v56 = vld [vmem:[%s2098_s24 + $0xd8] ss:$12 sps:$4 sm:$0xff]   ;;  %v1918_v57 = vld [vmem:[%s2098_s24 + $0x140] ss:$12 sps:$4 sm:$0xff]  }
  0x24   : > { %1606 = vmatpush3.bf16.msra.mxu0 %v1861_v15  ;;  %1755 = vmatpush3.bf16.msra.mxu1 %v1861_v15  ;;  %v1916_v55 = vld [vmem:[%s2098_s24 + $0x128] ss:$12 sps:$4 sm:$0xff]   ;;  %v1921_v59 = vld [vmem:[%s2098_s24 + $0xf0] ss:$12 sps:$4 sm:$0xff]  }
  0x25   : > { %1607 = vmatprep.subr.bf16.mxu0 %v1862_v16  ;;  %1748 = vmatprep.subr.bf16.mxu1 %v1862_v16  ;;  %v1919_v58 = vld [vmem:[%s2098_s24 + $0xf4] ss:$12 sps:$4 sm:$0xff]  }
  0x28   : > { %1608 = vmatpush3.bf16.msra.mxu0 %v1863_v17  ;;  %1756 = vmatpush3.bf16.msra.mxu1 %v1863_v17 }
  0x29   : > { %1709 = vmatprep.subr.bf16.mxu1 %v1876_v18 }
  0x2b   : > { %694 = vmatmul.mubr.bf16.vlgmr.msra.gmra.mrb[0].mxu0 %v1864_v19  ;;  %782 = vmatmul.mubr.bf16.vlgmr.msra.gmra.mrb[0].mxu1 %v1867_v20 }
  0x2c   : > { %701 = vmatprep.mubr.bf16.mxu0 %v1870_v21  ;;  %789 = vmatprep.mubr.bf16.mxu1 %v1872_v22 }
  0x2d   : > { %1710 = vmatpush3.bf16.msra.mxu1 %v1876_v18 }
  0x2e   : > { %1711 = vmatprep.subr.bf16.mxu1 %v1883_v23 }
  0x31   : > { %1712 = vmatpush3.bf16.msra.mxu1 %v1883_v23 }
  0x33   : > { %702 = vmatmul.mubr.bf16.gmra.mrb[4].mxu0 %v1874_v24  ;;  %790 = vmatmul.mubr.bf16.gmra.mrb[4].mxu1 %v1875_v25 }
  0x34   : > { %709 = vmatprep.mubr.bf16.mxu0 %v1877_v26  ;;  %797 = vmatprep.mubr.bf16.mxu1 %v1879_v27 }
  0x3b   : > { %710 = vmatmul.mubr.bf16.gmra.mrb[8].mxu0 %v1881_v28  ;;  %798 = vmatmul.mubr.bf16.gmra.mrb[8].mxu1 %v1882_v29 }
  0x3c   : > { %717 = vmatprep.mubr.bf16.mxu0 %v1884_v30  ;;  %1713 = vmatprep.mubr.msk.bf16.mxu1 %vm618_vm0, %v1886_v31 }
  0x43   : > { %718 = vmatmul.mubr.bf16.gmra.mrb[12].mxu0 %v1887_v32  ;;  %1714 = vmatmul.mubr.msk.bf16.vlgmr.msra.gmra.mrb[12].mxu1 %vm618_vm0, %v1888_v33  ;;  %v2199_v32 = vld [vmem:[%s2429_s2] ss:$0 sm:$0xff] }
  0x44   : > { %725 = vmatprep.mubr.bf16.mxu0 %v1889_v34  ;;  %1717 = vmatprep.mubr.msk.bf16.mxu1 %vm618_vm0, %v1891_v35 }
  0x4b   : > { %726 = vmatmul.mubr.bf16.gmra.mrb[16].mxu0 %v1892_v36  ;;  %1718 = vmatmul.mubr.msk.bf16.gmra.mrb[16].mxu1 %vm618_vm0, %v1893_v37 }
  0x4c   : > { %733 = vmatprep.mubr.bf16.mxu0 %v1894_v38  ;;  %1721 = vmatprep.mubr.msk.bf16.mxu1 %vm618_vm0, %v1896_v39 }
  0x53   : > { %734 = vmatmul.mubr.bf16.gmra.mrb[20].mxu0 %v1897_v40  ;;  %1722 = vmatmul.mubr.msk.bf16.gmra.mrb[20].mxu1 %vm618_vm0, %v1898_v41 }
  0x54   : > { %741 = vmatprep.mubr.bf16.mxu0 %v1899_v42  ;;  %1725 = vmatprep.mubr.msk.bf16.mxu1 %vm618_vm0, %v1901_v43 }
  0x5b   : > { %742 = vmatmul.mubr.bf16.gmra.mrb[24].mxu0 %v1902_v44  ;;  %1726 = vmatmul.mubr.msk.bf16.gmra.mrb[24].mxu1 %vm618_vm0, %v1903_v45 }
  0x5c   : > { %749 = vmatprep.mubr.bf16.mxu0 %v1904_v46  ;;  %1729 = vmatprep.mubr.msk.bf16.mxu1 %vm618_vm0, %v1906_v47 }
  0x63   : > { %750 = vmatmul.mubr.bf16.gmra.mrb[28].mxu0 %v1907_v48  ;;  %1730 = vmatmul.mubr.msk.bf16.gmra.mrb[28].mxu1 %vm618_vm0, %v1908_v49 }
  0x64   : > { %757 = vmatprep.mubr.bf16.mxu0 %v1909_v50  ;;  %1733 = vmatprep.mubr.msk.bf16.mxu1 %vm618_vm0, %v1911_v51 }
  0x6b   : > { %758 = vmatmul.mubr.bf16.gmra.mrb[32].mxu0 %v1912_v52  ;;  %1734 = vmatmul.mubr.msk.bf16.gmra.mrb[32].mxu1 %vm618_vm0, %v1913_v53 }
  0x6c   : > { %765 = vmatprep.mubr.bf16.mxu0 %v1914_v54  ;;  %1737 = vmatprep.mubr.msk.bf16.mxu1 %vm618_vm0, %v1916_v55 }
  0x73   : > { %766 = vmatmul.mubr.bf16.gmra.mrb[36].mxu0 %v1917_v56  ;;  %1738 = vmatmul.mubr.msk.bf16.gmra.mrb[36].mxu1 %vm618_vm0, %v1918_v57 }
  0x74   : > { %773 = vmatprep.mubr.bf16.mxu0 %v1919_v58 }
  0x7b   : > { %774 = vmatmul.mubr.bf16.gmra.mrb[40].mxu0 %v1921_v59 }
  0xfe   : > { %v1609_v60 = vpop.f32.mrb[0].mxu0  ;;  %v1675_v61 = vpop.f32.mrb[0].mxu1 }
  0xff   : > { %v1610_v62 = vpop.f32.mrb[1].mxu0  ;;  %v1676_v63 = vpop.f32.mrb[1].mxu1 }
 0x100   : > { %v1611_v0 = vadd.f32 %v1610_v62, %v1609_v60  ;;  %v1612_v1 = vpop.f32.mrb[2].mxu0  ;;  %v2183_v2 = vadd.f32 %v1676_v63, %v1675_v61  ;;  %v1678_v3 = vpop.f32.mrb[2].mxu1 }
 0x101   : > { %v1613_v4 = vpop.f32.mrb[3].mxu0  ;;  %v1679_v5 = vpop.f32.mrb[3].mxu1 }
 0x102   : > { %v1614_v6 = vadd.f32 %v1613_v4, %v1612_v1  ;;  %v2185_v7 = vadd.f32 %v1679_v5, %v1678_v3  ;;  %v696_v36 = vadd.f32 %v1611_v0, %v2199_v32 }
 0x104   : > { %v699_v45 = vadd.f32 %v1614_v6, %v2199_v32 }
 0x106   : > { %v1615_v8 = vpop.f32.mrb[4].mxu0  ;;  %v1681_v9 = vpop.f32.mrb[4].mxu1 }
 0x107   : > { %v1616_v10 = vpop.f32.mrb[5].mxu0  ;;  %v1682_v11 = vpop.f32.mrb[5].mxu1 }
 0x108   : > { %v1617_v12 = vadd.f32 %v1616_v10, %v1615_v8  ;;  %v1618_v13 = vpop.f32.mrb[6].mxu0  ;;  %v2187_v14 = vadd.f32 %v1682_v11, %v1681_v9  ;;  %v1684_v15 = vpop.f32.mrb[6].mxu1 }
 0x109   : > { %v1619_v16 = vpop.f32.mrb[7].mxu0  ;;  %v1685_v17 = vpop.f32.mrb[7].mxu1 }
 0x10a   : > { %v1620_v18 = vadd.f32 %v1619_v16, %v1618_v13  ;;  %v2189_v19 = vadd.f32 %v1685_v17, %v1684_v15  ;;  %v704_v33 = vadd.f32 %v1617_v12, %v2199_v32 }
 0x10c   : > { %v707_v40 = vadd.f32 %v1620_v18, %v2199_v32 }
 0x10e   : > { %v1621_v20 = vpop.f32.mrb[8].mxu0  ;;  %v1687_v21 = vpop.f32.mrb[8].mxu1 }
 0x10f   : > { %v1622_v22 = vpop.f32.mrb[9].mxu0  ;;  %v1688_v23 = vpop.f32.mrb[9].mxu1 }
 0x110   : > { %v1623_v24 = vadd.f32 %v1622_v22, %v1621_v20  ;;  %v1624_v25 = vpop.f32.mrb[10].mxu0  ;;  %v2191_v26 = vadd.f32 %v1688_v23, %v1687_v21  ;;  %v1690_v27 = vpop.f32.mrb[10].mxu1 }
 0x111   : > { %v1625_v28 = vpop.f32.mrb[11].mxu0  ;;  %v1691_v29 = vpop.f32.mrb[11].mxu1 }
 0x112   : > { %v1626_v30 = vadd.f32 %v1625_v28, %v1624_v25  ;;  %v2193_v31 = vadd.f32 %v1691_v29, %v1690_v27  ;;  %v712_v62 = vadd.f32 %v1623_v24, %v2199_v32 }
 0x114   : > { %v715_v9 = vadd.f32 %v1626_v30, %v2199_v32 }
 0x116   : > { %v1627_v34 = vpop.f32.mrb[12].mxu0  ;;  %v1715_v35 = vpop.f32.mrb[12].mxu1 }
 0x117   : > { %v849_v37 = vadd.f32 %v1715_v35, %v704_v33  ;;  %v1628_v38 = vpop.f32.mrb[13].mxu0  ;;  %v840_v39 = vpop.f32.mrb[13].mxu1 }
 0x118   : > { %v1629_v41 = vadd.f32 %v1628_v38, %v1627_v34  ;;  %v841_v42 = vadd.f32 %v840_v39, %v696_v36  ;;  %v1630_v43 = vpop.f32.mrb[14].mxu0  ;;  %v1716_v44 = vpop.f32.mrb[14].mxu1 }
 0x119   : > { %v953_v46 = vmax.f32 %v849_v37, 0.0  ;;  %v852_v47 = vadd.f32 %v1716_v44, %v707_v40  ;;  %v1631_v48 = vpop.f32.mrb[15].mxu0  ;;  %v843_v49 = vpop.f32.mrb[15].mxu1 }
 0x11a   : > { %v951_v50 = vmax.f32 %v841_v42, 0.0  ;;  %v1632_v51 = vadd.f32 %v1631_v48, %v1630_v43  ;;  %v844_v52 = vadd.f32 %v843_v49, %v699_v45  ;;  %v720_v58 = vadd.f32 %v1629_v41, %v2199_v32 }
 0x11b   : > { %v1566_v53 = vpack.c.bf16 %v953_v46, %v953_v46  ;;  %v954_v54 = vmax.f32 %v852_v47, 0.0 }
 0x11c   : > { %v1564_v55 = vpack.c.bf16 %v951_v50, %v951_v50  ;;  %v952_v56 = vmax.f32 %v844_v52, 0.0  ;;  %v723_v3 = vadd.f32 %v1632_v51, %v2199_v32 }
 0x11d   : > { %1094 = vst.msk [vmem:[%s2205_s12 + $0x8] sm:$0xf] %vm1091_vm1, %v1566_v53  ;;  %v1567_v57 = vpack.c.bf16 %v954_v54, %v954_v54 }
 0x11e   : > { %1092 = vst.msk [vmem:[%s2205_s12] sm:$0xf] %vm1091_vm1, %v1564_v55  ;;  %v1565_v59 = vpack.c.bf16 %v952_v56, %v952_v56  ;;  %v1633_v60 = vpop.f32.mrb[16].mxu0  ;;  %v1719_v61 = vpop.f32.mrb[16].mxu1 }
 0x11f   : > { %1095 = vst.msk [vmem:[%s2205_s12 + $0xc] sm:$0xf] %vm1091_vm1, %v1567_v57  ;;  %v865_v63 = vadd.f32 %v1719_v61, %v720_v58  ;;  %v1634_v0 = vpop.f32.mrb[17].mxu0  ;;  %v856_v1 = vpop.f32.mrb[17].mxu1 }
 0x120   : > { %1093 = vst.msk [vmem:[%s2205_s12 + $0x4] sm:$0xf] %vm1091_vm1, %v1565_v59  ;;  %v1635_v4 = vadd.f32 %v1634_v0, %v1633_v60  ;;  %v857_v5 = vadd.f32 %v856_v1, %v712_v62  ;;  %v1636_v6 = vpop.f32.mrb[18].mxu0  ;;  %v1720_v8 = vpop.f32.mrb[18].mxu1 }
 0x121   : > { %v957_v10 = vmax.f32 %v865_v63, 0.0  ;;  %v868_v11 = vadd.f32 %v1720_v8, %v723_v3  ;;  %v1637_v12 = vpop.f32.mrb[19].mxu0  ;;  %v859_v13 = vpop.f32.mrb[19].mxu1 }
 0x122   : > { %v955_v15 = vmax.f32 %v857_v5, 0.0  ;;  %v1638_v16 = vadd.f32 %v1637_v12, %v1636_v6  ;;  %v860_v17 = vadd.f32 %v859_v13, %v715_v9  ;;  %v728_v28 = vadd.f32 %v1635_v4, %v2199_v32 }
 0x123   : > { %v1570_v18 = vpack.c.bf16 %v957_v10, %v957_v10  ;;  %v958_v20 = vmax.f32 %v868_v11, 0.0 }
 0x124   : > { %v1568_v21 = vpack.c.bf16 %v955_v15, %v955_v15  ;;  %v956_v22 = vmax.f32 %v860_v17, 0.0  ;;  %v731_v37 = vadd.f32 %v1638_v16, %v2199_v32 }
 0x125   : > { %1098 = vst.msk [vmem:[%s2205_s12 + $0x18] sm:$0xf] %vm1091_vm1, %v1570_v18  ;;  %v1571_v23 = vpack.c.bf16 %v958_v20, %v958_v20 }
 0x126   : > { %1096 = vst.msk [vmem:[%s2205_s12 + $0x10] sm:$0xf] %vm1091_vm1, %v1568_v21  ;;  %v1569_v24 = vpack.c.bf16 %v956_v22, %v956_v22  ;;  %v1639_v25 = vpop.f32.mrb[20].mxu0  ;;  %v1723_v27 = vpop.f32.mrb[20].mxu1 }
 0x127   : > { %1099 = vst.msk [vmem:[%s2205_s12 + $0x1c] sm:$0xf] %vm1091_vm1, %v1571_v23  ;;  %v1640_v29 = vpop.f32.mrb[21].mxu0  ;;  %v872_v30 = vpop.f32.mrb[21].mxu1 }
 0x128   : > { %1097 = vst.msk [vmem:[%s2205_s12 + $0x14] sm:$0xf] %vm1091_vm1, %v1569_v24  ;;  %v1641_v33 = vadd.f32 %v1640_v29, %v1639_v25  ;;  %v873_v34 = vadd.f32 %v872_v30, %v728_v28  ;;  %v1642_v35 = vpop.f32.mrb[22].mxu0  ;;  %v1724_v36 = vpop.f32.mrb[22].mxu1  ;;  %v784_v25 = vadd.f32 %v2183_v2, %v2199_v32 }
 0x129   : > { %v1643_v38 = vpop.f32.mrb[23].mxu0  ;;  %v875_v39 = vpop.f32.mrb[23].mxu1 }
 0x12a   : > { %v736_v40 = vadd.f32 %v1641_v33, %v2199_v32  ;;  %v959_v41 = vmax.f32 %v873_v34, 0.0  ;;  %v1644_v42 = vadd.f32 %v1643_v38, %v1642_v35  ;;  %v876_v43 = vadd.f32 %v875_v39, %v731_v37 }
 0x12c   : > { %v881_v44 = vadd.f32 %v1723_v27, %v736_v40  ;;  %v1572_v45 = vpack.c.bf16 %v959_v41, %v959_v41  ;;  %v739_v46 = vadd.f32 %v1644_v42, %v2199_v32  ;;  %v960_v47 = vmax.f32 %v876_v43, 0.0 }
 0x12e   : > { %v961_v48 = vmax.f32 %v881_v44, 0.0  ;;  %1100 = vst.msk [vmem:[%s2205_s12 + $0x20] sm:$0xf] %vm1091_vm1, %v1572_v45  ;;  %v884_v49 = vadd.f32 %v1724_v36, %v739_v46  ;;  %v1573_v50 = vpack.c.bf16 %v960_v47, %v960_v47  ;;  %v1645_v51 = vpop.f32.mrb[24].mxu0  ;;  %v1727_v52 = vpop.f32.mrb[24].mxu1  ;;  %v787_v36 = vadd.f32 %v2185_v7, %v2199_v32 }
 0x12f   : > { %v1646_v53 = vpop.f32.mrb[25].mxu0  ;;  %v888_v54 = vpop.f32.mrb[25].mxu1 }
 0x130   : > { %v1574_v55 = vpack.c.bf16 %v961_v48, %v961_v48  ;;  %v962_v56 = vmax.f32 %v884_v49, 0.0  ;;  %1101 = vst.msk [vmem:[%s2205_s12 + $0x24] sm:$0xf] %vm1091_vm1, %v1573_v50  ;;  %v1647_v57 = vadd.f32 %v1646_v53, %v1645_v51  ;;  %v1648_v58 = vpop.f32.mrb[26].mxu0  ;;  %v1728_v59 = vpop.f32.mrb[26].mxu1 }
 0x131   : > { %v1649_v60 = vpop.f32.mrb[27].mxu0  ;;  %v891_v61 = vpop.f32.mrb[27].mxu1 }
 0x132   : > { %1102 = vst.msk [vmem:[%s2205_s12 + $0x28] sm:$0xf] %vm1091_vm1, %v1574_v55  ;;  %v1575_v62 = vpack.c.bf16 %v962_v56, %v962_v56  ;;  %v1650_v63 = vadd.f32 %v1649_v60, %v1648_v58  ;;  %v744_v0 = vadd.f32 %v1647_v57, %v2199_v32  ;;  %v792_v57 = vadd.f32 %v2187_v14, %v2199_v32 }
 0x134   : > { %1103 = vst.msk [vmem:[%s2205_s12 + $0x2c] sm:$0xf] %vm1091_vm1, %v1575_v62  ;;  %v889_v1 = vadd.f32 %v888_v54, %v744_v0  ;;  %v747_v3 = vadd.f32 %v1650_v63, %v2199_v32 }
 0x136   : > { %v963_v4 = vmax.f32 %v889_v1, 0.0  ;;  %v892_v5 = vadd.f32 %v891_v61, %v747_v3  ;;  %v1651_v6 = vpop.f32.mrb[28].mxu0  ;;  %v2241_v8 = vpop.f32.mrb[28].mxu1  ;;  %v803_v61 = vadd.f32 %v2193_v31, %v2199_v32 }
 0x137   : > { %v1652_v9 = vpop.f32.mrb[29].mxu0  ;;  %v904_v10 = vpop.f32.mrb[29].mxu1 }
 0x138   : > { %v1576_v11 = vpack.c.bf16 %v963_v4, %v963_v4  ;;  %v964_v12 = vmax.f32 %v892_v5, 0.0  ;;  %v1653_v13 = vadd.f32 %v1652_v9, %v1651_v6  ;;  %v1654_v15 = vpop.f32.mrb[30].mxu0  ;;  %v2243_v16 = vpop.f32.mrb[30].mxu1  ;;  %v795_v6 = vadd.f32 %v2189_v19, %v2199_v32 }
 0x139   : > { %v1655_v17 = vpop.f32.mrb[31].mxu0  ;;  %v907_v18 = vpop.f32.mrb[31].mxu1 }
 0x13a   : > { %1104 = vst.msk [vmem:[%s2205_s12 + $0x30] sm:$0xf] %vm1091_vm1, %v1576_v11  ;;  %v1577_v20 = vpack.c.bf16 %v964_v12, %v964_v12  ;;  %v752_v21 = vadd.f32 %v1653_v13, %v2199_v32  ;;  %v1656_v22 = vadd.f32 %v1655_v17, %v1654_v15 }
 0x13c   : > { %1105 = vst.msk [vmem:[%s2205_s12 + $0x34] sm:$0xf] %vm1091_vm1, %v1577_v20  ;;  %v897_v23 = vadd.f32 %v1727_v52, %v752_v21  ;;  %v755_v24 = vadd.f32 %v1656_v22, %v2199_v32  ;;  %v800_v52 = vadd.f32 %v2191_v26, %v2199_v32 }
 0x13e   : > { %v965_v27 = vmax.f32 %v897_v23, 0.0  ;;  %v900_v28 = vadd.f32 %v1728_v59, %v755_v24  ;;  %v1657_v29 = vpop.f32.mrb[32].mxu0  ;;  %v1735_v30 = vpop.f32.mrb[32].mxu1 }
 0x13f   : > { %v929_v33 = vadd.f32 %v1735_v30, %v784_v25  ;;  %v1658_v34 = vpop.f32.mrb[33].mxu0  ;;  %v2253_v35 = vpop.f32.mrb[33].mxu1 }
 0x140   : > { %v1578_v37 = vpack.c.bf16 %v965_v27, %v965_v27  ;;  %v966_v38 = vmax.f32 %v900_v28, 0.0  ;;  %v1659_v39 = vadd.f32 %v1658_v34, %v1657_v29  ;;  %v1660_v40 = vpop.f32.mrb[34].mxu0  ;;  %v1736_v41 = vpop.f32.mrb[34].mxu1 }
 0x141   : > { %v973_v2 = vmax.f32 %v929_v33, 0.0  ;;  %v932_v42 = vadd.f32 %v1736_v41, %v787_v36  ;;  %v1661_v43 = vpop.f32.mrb[35].mxu0  ;;  %v2257_v44 = vpop.f32.mrb[35].mxu1 }
 0x142   : > { %1106 = vst.msk [vmem:[%s2205_s12 + $0x38] sm:$0xf] %vm1091_vm1, %v1578_v37  ;;  %v1579_v45 = vpack.c.bf16 %v966_v38, %v966_v38  ;;  %v760_v46 = vadd.f32 %v1659_v39, %v2199_v32  ;;  %v1662_v47 = vadd.f32 %v1661_v43, %v1660_v40 }
 0x143   : > { %v1586_v7 = vpack.c.bf16 %v973_v2, %v973_v2  ;;  %v974_v48 = vmax.f32 %v932_v42, 0.0 }
 0x144   : > { %1107 = vst.msk [vmem:[%s2205_s12 + $0x3c] sm:$0xf] %vm1091_vm1, %v1579_v45  ;;  %v905_v49 = vadd.f32 %v904_v10, %v760_v46  ;;  %v763_v50 = vadd.f32 %v1662_v47, %v2199_v32 }
 0x145   : > { %1114 = vst.msk [vmem:[%s2205_s12 + $0x58] sm:$0xf] %vm1091_vm1, %v1586_v7  ;;  %v1587_v51 = vpack.c.bf16 %v974_v48, %v974_v48 }
 0x146   : > { %v967_v53 = vmax.f32 %v905_v49, 0.0  ;;  %v908_v54 = vadd.f32 %v907_v18, %v763_v50  ;;  %v1663_v55 = vpop.f32.mrb[36].mxu0  ;;  %v1739_v56 = vpop.f32.mrb[36].mxu1 }
 0x147   : > { %1115 = vst.msk [vmem:[%s2205_s12 + $0x5c] sm:$0xf] %vm1091_vm1, %v1587_v51  ;;  %v945_v58 = vadd.f32 %v1739_v56, %v800_v52  ;;  %v1664_v59 = vpop.f32.mrb[37].mxu0  ;;  %v936_v60 = vpop.f32.mrb[37].mxu1 }
 0x148   : > { %v1580_v62 = vpack.c.bf16 %v967_v53, %v967_v53  ;;  %v968_v63 = vmax.f32 %v908_v54, 0.0  ;;  %v1665_v0 = vadd.f32 %v1664_v59, %v1663_v55  ;;  %v937_v26 = vadd.f32 %v936_v60, %v792_v57  ;;  %v1666_v1 = vpop.f32.mrb[38].mxu0  ;;  %v1740_v3 = vpop.f32.mrb[38].mxu1 }
 0x149   : > { %v977_v4 = vmax.f32 %v945_v58, 0.0  ;;  %v948_v5 = vadd.f32 %v1740_v3, %v803_v61  ;;  %v1667_v14 = vpop.f32.mrb[39].mxu0  ;;  %v939_v9 = vpop.f32.mrb[39].mxu1 }
 0x14a   : > { %1108 = vst.msk [vmem:[%s2205_s12 + $0x40] sm:$0xf] %vm1091_vm1, %v1580_v62  ;;  %v1581_v10 = vpack.c.bf16 %v968_v63, %v968_v63  ;;  %v768_v31 = vadd.f32 %v1665_v0, %v2199_v32  ;;  %v975_v11 = vmax.f32 %v937_v26, 0.0  ;;  %v1668_v12 = vadd.f32 %v1667_v14, %v1666_v1 }
 0x14b   : > { %v1590_v13 = vpack.c.bf16 %v977_v4, %v977_v4  ;;  %v978_v15 = vmax.f32 %v948_v5, 0.0  ;;  %v940_v17 = vadd.f32 %v939_v9, %v795_v6 }
 0x14c   : > { %1109 = vst.msk [vmem:[%s2205_s12 + $0x44] sm:$0xf] %vm1091_vm1, %v1581_v10  ;;  %v913_v18 = vadd.f32 %v2241_v8, %v768_v31  ;;  %v1588_v20 = vpack.c.bf16 %v975_v11, %v975_v11  ;;  %v771_v19 = vadd.f32 %v1668_v12, %v2199_v32 }
 0x14d   : > { %1118 = vst.msk [vmem:[%s2205_s12 + $0x68] sm:$0xf] %vm1091_vm1, %v1590_v13  ;;  %v1591_v21 = vpack.c.bf16 %v978_v15, %v978_v15  ;;  %v976_v22 = vmax.f32 %v940_v17, 0.0 }
 0x14e   : > { %v969_v23 = vmax.f32 %v913_v18, 0.0  ;;  %1116 = vst.msk [vmem:[%s2205_s12 + $0x60] sm:$0xf] %vm1091_vm1, %v1588_v20  ;;  %v916_v24 = vadd.f32 %v2243_v16, %v771_v19  ;;  %v1669_v25 = vpop.f32.mrb[40].mxu0 }
 0x14f   : > { %1119 = vst.msk [vmem:[%s2205_s12 + $0x6c] sm:$0xf] %vm1091_vm1, %v1591_v21  ;;  %v1589_v27 = vpack.c.bf16 %v976_v22, %v976_v22  ;;  %v1670_v8 = vpop.f32.mrb[41].mxu0 }
 0x150   : > { %v1582_v28 = vpack.c.bf16 %v969_v23, %v969_v23  ;;  %v970_v29 = vmax.f32 %v916_v24, 0.0  ;;  %v1671_v30 = vadd.f32 %v1670_v8, %v1669_v25  ;;  %v1672_v33 = vpop.f32.mrb[42].mxu0 }
 0x151   : > { %1117 = vst.msk [vmem:[%s2205_s12 + $0x64] sm:$0xf] %vm1091_vm1, %v1589_v27  ;;  %v1673_v34 = vpop.f32.mrb[43].mxu0 }
 0x152   : > { %1110 = vst.msk [vmem:[%s2205_s12 + $0x48] sm:$0xf] %vm1091_vm1, %v1582_v28  ;;  %v1583_v36 = vpack.c.bf16 %v970_v29, %v970_v29  ;;  %v776_v37 = vadd.f32 %v1671_v30, %v2199_v32  ;;  %v1674_v16 = vadd.f32 %v1673_v34, %v1672_v33 }
 0x154   : > { %1111 = vst.msk [vmem:[%s2205_s12 + $0x4c] sm:$0xf] %vm1091_vm1, %v1583_v36  ;;  %v921_v38 = vadd.f32 %v2253_v35, %v776_v37  ;;  %v779_v39 = vadd.f32 %v1674_v16, %v2199_v32 }
 0x156   : > { %v971_v40 = vmax.f32 %v921_v38, 0.0  ;;  %v924_v41 = vadd.f32 %v2257_v44, %v779_v39  ;;  %1126 = sbr.rel (!%p2059_p4) target bundleno = 429 (0x1ad), region = 36 }
 0x158   : > { %v1584_v2 = vpack.c.bf16 %v971_v40, %v971_v40  ;;  %v972_v42 = vmax.f32 %v924_v41, 0.0 }
 0x15a   : > { %1112 = vst.msk [vmem:[%s2205_s12 + $0x50] sm:$0xf] %vm1091_vm1, %v1584_v2  ;;  %v1585_v43 = vpack.c.bf16 %v972_v42, %v972_v42 }
 0x15c   : > { %1113 = vst.msk [vmem:[%s2205_s12 + $0x54] sm:$0xf] %vm1091_vm1, %v1585_v43 }
 0x15d   : > { %s2439_s27 = smov (!%p1129_p8, %s1128_s27), 28 }
 0x15e   : > { %s1552_s5 = sshll.u32 %s2439_s27, 6 }
 0x15f   : > { %p1555_p9 = scmp.eq.s32.totalorder %s1552_s5, 0 }
 0x160   : > { %1922 = sdivrem.u32 (!%p1555_p9), %s2439_s27, 28 }
 0x161   : > { %1137 = sbr.rel (%p1555_p9) target bundleno = 429 (0x1ad), region = 40 }
 0x169   : > { %s2318_s20 = spop.drf %1922 }
 0x16a   : > { %p1556_p10 = scmp.le.s32.totalorder %s2318_s20, 0 }
 0x16b   : > { %s2432_s15 = smov (!%p1556_p10), %s2312_s4  ;;  %s2433_s23 = smov (!%p1556_p10), %s2205_s12 }
 0x16c   : > { %1400 = sbr.rel (%p1556_p10) target bundleno = 400 (0x190), region = 112  ;;  %s2327_s6 = smov (!%p1556_p10), 0  }
 0x16d   : > { %s2329_s7 = smov (!%p1556_p10), 0  }
 0x173 LB: >> { %v1154_v32 = vld [vmem:[%s1988_s23] sm:$0xf]  ;;  %v1156_v35 = vld [vmem:[%s1988_s23 + $0x4] sm:$0xf]  ;;  %v1158_v44 = vld [vmem:[%s1988_s23 + $0x8] sm:$0xf]  ;;  %s1996_s7 = sphi %s2329_s7, %s1148_s7   ;;  %s1992_s6 = sphi %s2327_s6, %s2434_s6   ;;  %s1988_s23 = sphi %s2433_s23, %s1215_s23   ;;  %s1984_s15 = sphi %s2432_s15, %s1216_s15  }
 0x174   : >> { %1155 = vst [vmem:[%s1984_s15] sm:$0xf] %v1154_v32  ;;  %1157 = vst [vmem:[%s1984_s15 + $0x4] sm:$0xf] %v1156_v35  ;;  %v1160_v45 = vld [vmem:[%s1988_s23 + $0xc] sm:$0xf]  ;;  %s1210_s8 = sadd.s32 1, %s1992_s6 }
 0x175   : >> { %1159 = vst [vmem:[%s1984_s15 + $0x8] sm:$0xf] %v1158_v44  ;;  %v1162_v46 = vld [vmem:[%s1988_s23 + $0x10] sm:$0xf]  ;;  %v1164_v47 = vld [vmem:[%s1988_s23 + $0x14] sm:$0xf]  ;;  %p1211_p11 = scmp.ge.s32.totalorder %s1210_s8, %s2318_s20 }
 0x176   : >> { %1161 = vst [vmem:[%s1984_s15 + $0xc] sm:$0xf] %v1160_v45  ;;  %1163 = vst [vmem:[%s1984_s15 + $0x10] sm:$0xf] %v1162_v46  ;;  %v1166_v7 = vld [vmem:[%s1988_s23 + $0x18] sm:$0xf] }
 0x177   : >> { %1165 = vst [vmem:[%s1984_s15 + $0x14] sm:$0xf] %v1164_v47  ;;  %v1168_v48 = vld [vmem:[%s1988_s23 + $0x1c] sm:$0xf]  ;;  %v1170_v49 = vld [vmem:[%s1988_s23 + $0x20] sm:$0xf] }
 0x178   : >> { %1167 = vst [vmem:[%s1984_s15 + $0x18] sm:$0xf] %v1166_v7  ;;  %1169 = vst [vmem:[%s1984_s15 + $0x1c] sm:$0xf] %v1168_v48  ;;  %v1172_v50 = vld [vmem:[%s1988_s23 + $0x24] sm:$0xf] }
 0x179   : >> { %1171 = vst [vmem:[%s1984_s15 + $0x20] sm:$0xf] %v1170_v49  ;;  %v1174_v51 = vld [vmem:[%s1988_s23 + $0x28] sm:$0xf]  ;;  %v1176_v52 = vld [vmem:[%s1988_s23 + $0x2c] sm:$0xf] }
 0x17a   : >> { %1173 = vst [vmem:[%s1984_s15 + $0x24] sm:$0xf] %v1172_v50  ;;  %1175 = vst [vmem:[%s1984_s15 + $0x28] sm:$0xf] %v1174_v51  ;;  %v1178_v53 = vld [vmem:[%s1988_s23 + $0x30] sm:$0xf] }
 0x17b   : >> { %1177 = vst [vmem:[%s1984_s15 + $0x2c] sm:$0xf] %v1176_v52  ;;  %v1180_v54 = vld [vmem:[%s1988_s23 + $0x34] sm:$0xf]  ;;  %v1182_v55 = vld [vmem:[%s1988_s23 + $0x38] sm:$0xf] }
 0x17c   : >> { %1179 = vst [vmem:[%s1984_s15 + $0x30] sm:$0xf] %v1178_v53  ;;  %1181 = vst [vmem:[%s1984_s15 + $0x34] sm:$0xf] %v1180_v54  ;;  %v1184_v56 = vld [vmem:[%s1988_s23 + $0x3c] sm:$0xf] }
 0x17d   : >> { %1183 = vst [vmem:[%s1984_s15 + $0x38] sm:$0xf] %v1182_v55  ;;  %v1186_v57 = vld [vmem:[%s1988_s23 + $0x40] sm:$0xf]  ;;  %v1188_v58 = vld [vmem:[%s1988_s23 + $0x44] sm:$0xf] }
 0x17e   : >> { %1185 = vst [vmem:[%s1984_s15 + $0x3c] sm:$0xf] %v1184_v56  ;;  %1187 = vst [vmem:[%s1984_s15 + $0x40] sm:$0xf] %v1186_v57  ;;  %v1190_v59 = vld [vmem:[%s1988_s23 + $0x48] sm:$0xf] }
 0x17f   : >> { %1189 = vst [vmem:[%s1984_s15 + $0x44] sm:$0xf] %v1188_v58  ;;  %v1192_v60 = vld [vmem:[%s1988_s23 + $0x4c] sm:$0xf]  ;;  %v1194_v61 = vld [vmem:[%s1988_s23 + $0x50] sm:$0xf] }
 0x180   : >> { %1191 = vst [vmem:[%s1984_s15 + $0x48] sm:$0xf] %v1190_v59  ;;  %1193 = vst [vmem:[%s1984_s15 + $0x4c] sm:$0xf] %v1192_v60  ;;  %v1196_v62 = vld [vmem:[%s1988_s23 + $0x54] sm:$0xf] }
 0x181   : >> { %1195 = vst [vmem:[%s1984_s15 + $0x50] sm:$0xf] %v1194_v61  ;;  %v1198_v63 = vld [vmem:[%s1988_s23 + $0x58] sm:$0xf]  ;;  %v1200_v0 = vld [vmem:[%s1988_s23 + $0x5c] sm:$0xf] }
 0x182   : >> { %1197 = vst [vmem:[%s1984_s15 + $0x54] sm:$0xf] %v1196_v62  ;;  %1199 = vst [vmem:[%s1984_s15 + $0x58] sm:$0xf] %v1198_v63  ;;  %v1202_v26 = vld [vmem:[%s1988_s23 + $0x60] sm:$0xf] }
 0x183   : >> { %1201 = vst [vmem:[%s1984_s15 + $0x5c] sm:$0xf] %v1200_v0  ;;  %v1204_v1 = vld [vmem:[%s1988_s23 + $0x64] sm:$0xf]  ;;  %v1206_v3 = vld [vmem:[%s1988_s23 + $0x68] sm:$0xf] }
 0x184   : >> { %1203 = vst [vmem:[%s1984_s15 + $0x60] sm:$0xf] %v1202_v26  ;;  %1205 = vst [vmem:[%s1984_s15 + $0x64] sm:$0xf] %v1204_v1  ;;  %v1208_v4 = vld [vmem:[%s1988_s23 + $0x6c] sm:$0xf] }
 0x185   : >> { %1207 = vst [vmem:[%s1984_s15 + $0x68] sm:$0xf] %v1206_v3  ;;  %1209 = vst [vmem:[%s1984_s15 + $0x6c] sm:$0xf] %v1208_v4  ;;  %s2441_s8 = smov (%p1211_p11, %s1210_s8), 0  ;;  %s1148_s7 = sadd.s32 1, %s1996_s7  }
 0x186   : >> { %s1213_s9 = smul.u32 112, %s2441_s8  ;;  %p1147_p12 = scmp.ge.s32.totalorder %s1148_s7, %s2318_s20 }
 0x187   : >> { %s2434_s6 = smov %s2441_s8 }
 0x188   : >> { %s1215_s23 = scalar_lea.vmem %s2205_s12, %s1213_s9 [#allocation2]   ;;  %s1216_s15 = scalar_lea.vmem %s2312_s4, %s1213_s9  }
 0x189   : > { %1150 = sbr.rel (!%p1147_p12) target bundleno = 371 (0x173), region = 118 }
 0x190 PF: > { %1924 = sdivrem.u32 %s2439_s27, 28 }
 0x191   : > { %s1557_s10 = smul.u32 112, %s2318_s20 }
 0x193   : > { %s1221_s11 = scalar_lea.vmem %s2205_s12, %s1557_s10 [#allocation2]   ;;  %s1223_s14 = scalar_lea.vmem %s2312_s4, %s1557_s10  }
 0x199   : > { %s1925_s17 = spop.drf %1924 }
 0x19a   : > { %p1559_p13 = scmp.le.s32.totalorder %s1925_s17, 0 }
 0x19b   : > { %s1998_s18 = smov (!%p1559_p13), %s1223_s14   ;;  %s2002_s21 = smov (!%p1559_p13), %s1221_s11  }
 0x19c   : > { %1414 = sbr.rel (%p1559_p13) target bundleno = 429 (0x1ad), region = 123  ;;  %s2006_s22 = smov (!%p1559_p13), 0  }
 0x19d   : > { %s2010_s24 = smov (!%p1559_p13), 0  }
 0x1a3 LB: >> { %v1233_v5 = vld [vmem:[%s2004_s21] sm:$0xf]  ;;  %s1235_s25 = sadd.s32 1, %s2008_s22  ;;  %s1227_s24 = sadd.s32 1, %s2012_s24   ;;  %s2012_s24 = sphi %s2010_s24, %s1227_s24   ;;  %s2008_s22 = sphi %s2006_s22, %s2007_s22   ;;  %s2004_s21 = sphi %s2002_s21, %s1240_s21   ;;  %s2000_s18 = sphi %s1998_s18, %s1241_s18  }
 0x1a4   : >> { %1234 = vst [vmem:[%s2000_s18] sm:$0xf] %v1233_v5  ;;  %p1236_p0 = scmp.ge.s32.totalorder %s1235_s25, %s1925_s17  ;;  %p1226_p1 = scmp.ge.s32.totalorder %s1227_s24, %s1925_s17 }
 0x1a6   : >> { %s2443_s25 = smov (%p1236_p0, %s1235_s25), 0  ;;  %1229 = sbr.rel (!%p1226_p1) target bundleno = 419 (0x1a3), region = 129 }
 0x1a7   : >> { %s1560_s26 = sshll.u32 %s2443_s25, 2  ;;  %s2007_s22 = smov %s2443_s25  }
 0x1a8   : >> { %s1240_s21 = scalar_lea.vmem %s1221_s11, %s1560_s26 [#allocation2]   ;;  %s1241_s18 = scalar_lea.vmem %s1223_s14, %s1560_s26  }
 0x1ad PF: > { %p10_p2 = scmp.ge.s32.totalorder %s2049_s16, 8   ;;  %s2435_s12 = smov %s1976_s13 }
 0x1ae   : > { %s2436_s13 = smov %s2057_s19  ;;  %s2437_s14 = smov %s2049_s16 }
 0x1af   :  { %12 = sbr.rel (!%p10_p2) target bundleno = 2 (0x2), region = 140 }

// kernel: stcae_encoder_forward.11
= control target key start
LH: loop header
LB: loop body
LE: loop exit
PB: predicated region body
PF: predicated region fallthrough
CT: control target
= control target key end

     0   :  { %s5401_s12 = smov 0   ;;  %s5403_s13 = smov 0   ;;  %s6452_s0 = inlined_call_operand.vmem [shape: bf16[1296,1728], index: 0, kind: input, shape index: {}]   ;;  %s6453_s1 = inlined_call_operand.vmem [shape: bf16[1728,64], index: 1, kind: input, shape index: {}]   ;;  %s6454_s2 = inlined_call_operand.vmem [shape: f32[1,64], index: 2, kind: input, shape index: {}]   ;;  %s6455_s3 = inlined_call_operand.vmem [shape: bf16[1296,64], index: 3, kind: output, shape index: {}]  }
   0x1   :  { %s5405_s14 = smov 0  }
   0x2 LB: > { %s5414_s15 = sadd.s32 4294967295, %s5346_s14   ;;  %s5416_s16 = sadd.s32 1, %s5346_s14   ;;  %s5346_s14 = sphi %s5405_s14, %s6462_s14   ;;  %s5342_s13 = sphi %s5403_s13, %s6461_s13   ;;  %s5338_s12 = sphi %s5401_s12, %s6460_s12  }
   0x3   : > { %s85_s17 = ssub.s32 %s5346_s14, %s5416_s16  ;;  %s88_s18 = sadd.s32 1, %s5342_s13 }
   0x4   : > { %p86_p0 = scmp.eq.s32.totalorder %s85_s17, 0  ;;  %p98_p1 = scmp.ne.s32.totalorder %s5342_s13, %s5338_s12 }
   0x5   : > { %p99_p2 = scmp.eq.s32.totalorder %s5414_s15, 5  ;;  %p3788_p3 = scmp.ge.s32.totalorder %s5346_s14, 1 }
   0x6   : > { %s5424_s19 = scalar_select %p86_p0, %s5342_s13, %s88_s18  }
   0x7   : > { %p5426_p4 = por %p99_p2, %p98_p1  ;;  %p149_p5 = scmp.lt.s32.totalorder %s5346_s14, 7 }
   0x9   : > { %p150_p6 = pnand %p3788_p3, %p149_p5 }
   0xa   : > { %v4886_v0 = vld [vmem:[%s6453_s1 + $0x40] sm:$0xff] (!%p150_p6)   ;;  %s5434_s23 = smul.u32 (!%p150_p6), 28, %s5414_s15  ;;  %v4888_v2 = vld [vmem:[%s6453_s1 + $0x48] sm:$0xff] (!%p150_p6)   ;;  %v4890_v4 = vld [vmem:[%s6453_s1 + $0x50] sm:$0xff] (!%p150_p6)   ;;  %vm2234_vm0 = vcmask (!%p150_p6), 523264   ;;  %vm3432_vm1 = vcmask (!%p150_p6), 519168  }
   0xb   : > { %153 = sbr.rel (%p150_p6) target bundleno = 733 (0x2dd), region = 32  ;;  %v4887_v1 = vld [vmem:[%s6453_s1] sm:$0xff] (!%p150_p6)   ;;  %4778 = vmatprep.subr.bf16.mxu1 (!%p150_p6), %v4886_v0  ;;  %4178 = vmatprep.subr.bf16.mxu0 (!%p150_p6), %v4886_v0  ;;  %v4889_v3 = vld [vmem:[%s6453_s1 + $0x8] sm:$0xff] (!%p150_p6)   ;;  %v4891_v5 = vld [vmem:[%s6453_s1 + $0x10] sm:$0xff] (!%p150_p6)  }
   0xc   : > { %p184_p7 = scmp.lt.s32.totalorder (!%p150_p6), %s5434_s23, 161  ;;  %4786 = vmatpush3.bf16.msra.mxu1 (!%p150_p6), %v4887_v1  ;;  %4179 = vmatpush3.bf16.msra.mxu0 (!%p150_p6), %v4887_v1  ;;  %v4892_v6 = vld [vmem:[%s6453_s1 + $0x58] sm:$0xff] (!%p150_p6)   ;;  %v4894_v8 = vld [vmem:[%s6453_s1 + $0x60] sm:$0xff] (!%p150_p6)   ;;  %v4896_v10 = vld [vmem:[%s6453_s1 + $0x68] sm:$0xff] (!%p150_p6)  }
   0xd   : > { %4779 = vmatprep.subr.bf16.mxu1 (!%p150_p6), %v4888_v2  ;;  %4180 = vmatprep.subr.bf16.mxu0 (!%p150_p6), %v4888_v2  ;;  %v4893_v7 = vld [vmem:[%s6453_s1 + $0x18] sm:$0xff] (!%p150_p6)   ;;  %v4895_v9 = vld [vmem:[%s6453_s1 + $0x20] sm:$0xff] (!%p150_p6)   ;;  %v4897_v12 = vld [vmem:[%s6453_s1 + $0x28] sm:$0xff] (!%p150_p6)  }
   0xe   : > { %v4898_v14 = vld [vmem:[%s6453_s1 + $0x70] sm:$0xff] (!%p150_p6)   ;;  %v4900_v16 = vld [vmem:[%s6453_s1 + $0x78] sm:$0xff] (!%p150_p6)   ;;  %v4905_v18 = vld [vmem:[%s6453_s1 + $0xc0] sm:$0xff] (!%p150_p6)  }
   0xf   : > { %v4899_v15 = vld [vmem:[%s6453_s1 + $0x30] sm:$0xff] (!%p150_p6)   ;;  %v4901_v17 = vld [vmem:[%s6453_s1 + $0x38] sm:$0xff] (!%p150_p6)   ;;  %v4910_v20 = vld [vmem:[%s6453_s1 + $0x140] sm:$0xff] (!%p150_p6)  }
  0x10   : > { %4787 = vmatpush3.bf16.msra.mxu1 (!%p150_p6), %v4889_v3  ;;  %4181 = vmatpush3.bf16.msra.mxu0 (!%p150_p6), %v4889_v3  ;;  %v4909_v22 = vld [vmem:[%s6453_s1 + $0x80] sm:$0xff] (!%p150_p6)   ;;  %v4914_v25 = vld [vmem:[%s6453_s1 + $0xc8] sm:$0xff] (!%p150_p6)   ;;  %v4922_v30 = vld [vmem:[%s6453_s1 + $0xd0] sm:$0xff] (!%p150_p6)  }
  0x11   : > { %4780 = vmatprep.subr.bf16.mxu1 (!%p150_p6), %v4890_v4  ;;  %4182 = vmatprep.subr.bf16.mxu0 (!%p150_p6), %v4890_v4  ;;  %v4911_v23 = vld [vmem:[%s6453_s1 + $0x100] sm:$0xff] (!%p150_p6)   ;;  %v4916_v26 = vld [vmem:[%s6453_s1 + $0x88] sm:$0xff] (!%p150_p6)   ;;  %v4930_v33 = vld [vmem:[%s6453_s1 + $0x150] sm:$0xff] (!%p150_p6)  }
  0x12   : > { %s185_s5 = scalar_select %p184_p7, %s5434_s23, 161  ;;  %v4920_v28 = vld [vmem:[%s6453_s1 + $0x148] sm:$0xff]   ;;  %v4925_v35 = vld [vmem:[%s6453_s1 + $0x90] sm:$0xff]   ;;  %v4932_v38 = vld [vmem:[%s6453_s1 + $0xd8] sm:$0xff]  }
  0x13   : > { %v4921_v29 = vld [vmem:[%s6453_s1 + $0x108] sm:$0xff]   ;;  %v4931_v37 = vld [vmem:[%s6453_s1 + $0x110] sm:$0xff]   ;;  %v4940_v39 = vld [vmem:[%s6453_s1 + $0x158] sm:$0xff]   ;;  %s3469_s9 = ssub.s32 (%p5426_p4), 162, %s5434_s23 }
  0x14   : > { %s4795_s10 = smul.u32 56, %s185_s5  ;;  %4788 = vmatpush3.bf16.msra.mxu1 %v4891_v5  ;;  %4183 = vmatpush3.bf16.msra.mxu0 %v4891_v5  ;;  %v4933_v40 = vld [vmem:[%s6453_s1 + $0x98] sm:$0xff]   ;;  %v4942_v43 = vld [vmem:[%s6453_s1 + $0xe0] sm:$0xff]   ;;  %v4952_v50 = vld [vmem:[%s6453_s1 + $0xe8] sm:$0xff]   ;;  %p3470_p8 = scmp.lt.s32.totalorder (%p5426_p4), %s3469_s9, 28 }
  0x15   : > { %4781 = vmatprep.subr.bf16.mxu1 %v4892_v6  ;;  %4184 = vmatprep.subr.bf16.mxu0 %v4892_v6  ;;  %v4941_v41 = vld [vmem:[%s6453_s1 + $0x118] sm:$0xff]   ;;  %v4949_v47 = vld [vmem:[%s6453_s1 + $0x160] sm:$0xff]   ;;  %v4953_v53 = vld [vmem:[%s6453_s1 + $0xa8] sm:$0xff]  }
  0x16   : > { %s5465_s24 = scalar_lea.vmem %s6452_s0, %s4795_s10  ;;  %v4943_v48 = vld [vmem:[%s6453_s1 + $0xa0] sm:$0xff]   ;;  %v4957_v54 = vld [vmem:[%s6453_s1 + $0x168] sm:$0xff]   ;;  %v4962_v58 = vld [vmem:[%s6453_s1 + $0xf0] sm:$0xff]   ;;  %s4177_s10 = smul.u32 (%p5426_p4), 112, %s5414_s15 }
  0x17   : > { %v4904_v11 = vld [vmem:[%s5465_s24 + $0x314] ss:$56 sps:$4 sm:$0xff]   ;;  %v4908_v13 = vld [vmem:[%s5465_s24 + $0x4] ss:$56 sps:$4 sm:$0xff]   ;;  %v4902_v19 = vld [vmem:[%s5465_s24 + $0x310] ss:$56 sps:$4 sm:$0xff]  }
  0x18   : > { %4789 = vmatpush3.bf16.msra.mxu1 %v4893_v7  ;;  %4185 = vmatpush3.bf16.msra.mxu0 %v4893_v7  ;;  %v4906_v21 = vld [vmem:[%s5465_s24] ss:$56 sps:$4 sm:$0xff]   ;;  %v4912_v24 = vld [vmem:[%s5465_s24 + $0x384] ss:$56 sps:$4 sm:$0xff]   ;;  %v4917_v27 = vld [vmem:[%s5465_s24 + $0x74] ss:$56 sps:$4 sm:$0xff]   ;;  %s6337_s17 = scalar_lea.vmem (%p5426_p4), %s6455_s3, %s4177_s10  }
  0x19   : > { %4782 = vmatprep.subr.bf16.mxu1 %v4894_v8  ;;  %4186 = vmatprep.subr.bf16.mxu0 %v4894_v8  ;;  %v4915_v31 = vld [vmem:[%s5465_s24 + $0x380] ss:$56 sps:$4 sm:$0xff]   ;;  %v4919_v32 = vld [vmem:[%s5465_s24 + $0x70] ss:$56 sps:$4 sm:$0xff]   ;;  %v4923_v34 = vld [vmem:[%s5465_s24 + $0x3f4] ss:$56 sps:$4 sm:$0xff]  }
  0x1a   : > { %2365 = vmatprep.mubr.bf16.mxu1 %v4904_v11  ;;  %2309 = vmatprep.mubr.bf16.mxu0 %v4908_v13  ;;  %v4927_v36 = vld [vmem:[%s5465_s24 + $0xe4] ss:$56 sps:$4 sm:$0xff]   ;;  %v4926_v42 = vld [vmem:[%s5465_s24 + $0x3f0] ss:$56 sps:$4 sm:$0xff]   ;;  %v4929_v44 = vld [vmem:[%s5465_s24 + $0xe0] ss:$56 sps:$4 sm:$0xff]  }
  0x1b   : > { %v4934_v45 = vld [vmem:[%s5465_s24 + $0x464] ss:$56 sps:$4 sm:$0xff]   ;;  %v4937_v46 = vld [vmem:[%s5465_s24 + $0x154] ss:$56 sps:$4 sm:$0xff]   ;;  %v4936_v51 = vld [vmem:[%s5465_s24 + $0x460] ss:$56 sps:$4 sm:$0xff]  }
  0x1c   : > { %4790 = vmatpush3.bf16.msra.mxu1 %v4895_v9  ;;  %4187 = vmatpush3.bf16.msra.mxu0 %v4895_v9  ;;  %v4951_v49 = vld [vmem:[%s6453_s1 + $0x120] sm:$0xff]   ;;  %v4939_v52 = vld [vmem:[%s5465_s24 + $0x150] ss:$56 sps:$4 sm:$0xff]   ;;  %v4944_v55 = vld [vmem:[%s5465_s24 + $0x4d4] ss:$56 sps:$4 sm:$0xff]  }
  0x1d   : > { %4783 = vmatprep.subr.bf16.mxu1 %v4896_v10  ;;  %4188 = vmatprep.subr.bf16.mxu0 %v4896_v10  ;;  %v4947_v56 = vld [vmem:[%s5465_s24 + $0x1c4] ss:$56 sps:$4 sm:$0xff]   ;;  %v4960_v57 = vld [vmem:[%s6453_s1 + $0x128] sm:$0xff]   ;;  %v4963_v59 = vld [vmem:[%s6453_s1 + $0xb0] sm:$0xff]  }
  0x1e   : > { %v4966_v60 = vld [vmem:[%s6453_s1 + $0x170] sm:$0xff]   ;;  %v4950_v62 = vld [vmem:[%s5465_s24 + $0x1c0] ss:$56 sps:$4 sm:$0xff]   ;;  %v4954_v0 = vld [vmem:[%s5465_s24 + $0x544] ss:$56 sps:$4 sm:$0xff]  }
  0x1f   : > { %v4946_v61 = vld [vmem:[%s5465_s24 + $0x4d0] ss:$56 sps:$4 sm:$0xff]   ;;  %v4958_v1 = vld [vmem:[%s5465_s24 + $0x234] ss:$56 sps:$4 sm:$0xff]   ;;  %v4971_v2 = vld [vmem:[%s6453_s1 + $0xf8] sm:$0xff]  }
  0x20   : > { %4791 = vmatpush3.bf16.msra.mxu1 %v4897_v12  ;;  %4189 = vmatpush3.bf16.msra.mxu0 %v4897_v12  ;;  %v4968_v63 = vld [vmem:[%s6453_s1 + $0x130] sm:$0xff]   ;;  %v4973_v3 = vld [vmem:[%s6453_s1 + $0xb8] sm:$0xff]   ;;  %v4979_v7 = vld [vmem:[%s6453_s1 + $0x1c0] sm:$0xff]  }
  0x21   : > { %4784 = vmatprep.subr.bf16.mxu1 %v4898_v14  ;;  %4190 = vmatprep.subr.bf16.mxu0 %v4898_v14  ;;  %v4974_v4 = vld [vmem:[%s6453_s1 + $0x178] sm:$0xff]   ;;  %v4961_v8 = vld [vmem:[%s5465_s24 + $0x230] ss:$56 sps:$4 sm:$0xff]   ;;  %v4964_v9 = vld [vmem:[%s5465_s24 + $0x5b4] ss:$56 sps:$4 sm:$0xff]  }
  0x22   : > { %v4978_v5 = vld [vmem:[%s6453_s1 + $0x138] sm:$0xff]   ;;  %v4984_v11 = vld [vmem:[%s6453_s1 + $0x240] sm:$0xff]   ;;  %v4967_v12 = vld [vmem:[%s5465_s24 + $0x5b0] ss:$56 sps:$4 sm:$0xff]  }
  0x23   : > { %v4956_v6 = vld [vmem:[%s5465_s24 + $0x540] ss:$56 sps:$4 sm:$0xff]   ;;  %v4969_v10 = vld [vmem:[%s5465_s24 + $0x2a4] ss:$56 sps:$4 sm:$0xff]  }
  0x24   : > { %4792 = vmatpush3.bf16.msra.mxu1 %v4899_v15  ;;  %4191 = vmatpush3.bf16.msra.mxu0 %v4899_v15  ;;  %v4972_v13 = vld [vmem:[%s5465_s24 + $0x2a0] ss:$56 sps:$4 sm:$0xff]   ;;  %v4977_v14 = vld [vmem:[%s5465_s24 + $0xc] ss:$56 sps:$4 sm:$0xff]  }
  0x25   : > { %4785 = vmatprep.subr.bf16.mxu1 %v4900_v16  ;;  %4192 = vmatprep.subr.bf16.mxu0 %v4900_v16  ;;  %v4982_v15 = vld [vmem:[%s5465_s24 + $0x14] ss:$56 sps:$4 sm:$0xff]   ;;  %v4975_v16 = vld [vmem:[%s5465_s24 + $0x8] ss:$56 sps:$4 sm:$0xff]  }
  0x28   : > { %4793 = vmatpush3.bf16.msra.mxu1 %v4901_v17  ;;  %4193 = vmatpush3.bf16.msra.mxu0 %v4901_v17  ;;  %v4980_v17 = vld [vmem:[%s5465_s24 + $0x10] ss:$56 sps:$4 sm:$0xff]  }
  0x29   : > { %4278 = vmatprep.subr.bf16.mxu1 %v4905_v18  ;;  %4378 = vmatprep.subr.bf16.mxu0 %v4910_v20  ;;  %v4983_v18 = vld [vmem:[%s6453_s1 + $0x180] sm:$0xff]   ;;  %v4986_v20 = vld [vmem:[%s5465_s24 + $0x7c] ss:$56 sps:$4 sm:$0xff]  }
  0x2b   : > { %2366 = vmatmul.mubr.bf16.vlgmr.msra.gmra.mrb[0].mxu1 %v4902_v19  ;;  %2310 = vmatmul.mubr.bf16.vlgmr.msra.gmra.mrb[0].mxu0 %v4906_v21  ;;  %v4985_v19 = vld [vmem:[%s6453_s1 + $0x200] sm:$0xff]  }
  0x2c   : > { %4279 = vmatpush3.bf16.msra.mxu1 %v4909_v22  ;;  %4379 = vmatpush3.bf16.msra.mxu0 %v4911_v23  ;;  %v4989_v21 = vld [vmem:[%s5465_s24 + $0x84] ss:$56 sps:$4 sm:$0xff]   ;;  %v4992_v22 = vld [vmem:[%s6453_s1 + $0x1c8] sm:$0xff]  }
  0x2d   : > { %2373 = vmatprep.mubr.bf16.mxu1 %v4912_v24  ;;  %4280 = vmatprep.subr.bf16.mxu1 %v4914_v25  ;;  %v5000_v23 = vld [vmem:[%s6453_s1 + $0x248] sm:$0xff]  }
  0x2e   : > { %2317 = vmatprep.mubr.bf16.mxu0 %v4917_v27  ;;  %4380 = vmatprep.subr.bf16.mxu0 %v4920_v28  ;;  %v4995_v24 = vld [vmem:[%s6453_s1 + $0x188] sm:$0xff]   ;;  %v4988_v27 = vld [vmem:[%s5465_s24 + $0x78] ss:$56 sps:$4 sm:$0xff]  }
  0x2f   : > { %v5001_v25 = vld [vmem:[%s6453_s1 + $0x208] sm:$0xff]   ;;  %v5015_v28 = vld [vmem:[%s6453_s1 + $0x250] sm:$0xff]  }
  0x30   : > { %4281 = vmatpush3.bf16.msra.mxu1 %v4916_v26  ;;  %4381 = vmatpush3.bf16.msra.mxu0 %v4921_v29  ;;  %v5008_v26 = vld [vmem:[%s6453_s1 + $0x1d0] sm:$0xff]   ;;  %v4991_v29 = vld [vmem:[%s5465_s24 + $0x80] ss:$56 sps:$4 sm:$0xff]  }
  0x31   : > { %4282 = vmatprep.subr.bf16.mxu1 %v4922_v30  ;;  %4382 = vmatprep.subr.bf16.mxu0 %v4930_v33  ;;  %v4993_v30 = vld [vmem:[%s5465_s24 + $0xec] ss:$56 sps:$4 sm:$0xff]   ;;  %v5017_v33 = vld [vmem:[%s6453_s1 + $0x210] sm:$0xff]  }
  0x33   : > { %2374 = vmatmul.mubr.bf16.gmra.mrb[4].mxu1 %v4915_v31  ;;  %2318 = vmatmul.mubr.bf16.gmra.mrb[4].mxu0 %v4919_v32  ;;  %v4997_v31 = vld [vmem:[%s5465_s24 + $0xf4] ss:$56 sps:$4 sm:$0xff]  }
  0x34   : > { %2381 = vmatprep.mubr.bf16.mxu1 %v4923_v34  ;;  %4283 = vmatpush3.bf16.msra.mxu1 %v4925_v35  ;;  %v5009_v32 = vld [vmem:[%s6453_s1 + $0x190] sm:$0xff]   ;;  %v5024_v34 = vld [vmem:[%s6453_s1 + $0x1d8] sm:$0xff]  }
  0x35   : > { %2325 = vmatprep.mubr.bf16.mxu0 %v4927_v36  ;;  %4383 = vmatpush3.bf16.msra.mxu0 %v4931_v37  ;;  %v5028_v35 = vld [vmem:[%s6453_s1 + $0x258] sm:$0xff]   ;;  %v4996_v37 = vld [vmem:[%s5465_s24 + $0xe8] ss:$56 sps:$4 sm:$0xff]  }
  0x36   : > { %4284 = vmatprep.subr.bf16.mxu1 %v4932_v38  ;;  %4384 = vmatprep.subr.bf16.mxu0 %v4940_v39  ;;  %v5025_v36 = vld [vmem:[%s6453_s1 + $0x198] sm:$0xff]   ;;  %v4999_v39 = vld [vmem:[%s5465_s24 + $0xf0] ss:$56 sps:$4 sm:$0xff]  }
  0x37   : > { %v5030_v38 = vld [vmem:[%s6453_s1 + $0x218] sm:$0xff]  }
  0x38   : > { %4285 = vmatpush3.bf16.msra.mxu1 %v4933_v40  ;;  %v5002_v40 = vld [vmem:[%s5465_s24 + $0x15c] ss:$56 sps:$4 sm:$0xff]  }
  0x39   : > { %4385 = vmatpush3.bf16.msra.mxu0 %v4941_v41  ;;  %4286 = vmatprep.subr.bf16.mxu1 %v4942_v43  ;;  %v5005_v41 = vld [vmem:[%s5465_s24 + $0x164] ss:$56 sps:$4 sm:$0xff]  }
  0x3a   : > { %4386 = vmatprep.subr.bf16.mxu0 %v4949_v47  ;;  %v5040_v43 = vld [vmem:[%s6453_s1 + $0x1a0] sm:$0xff]  }
  0x3b   : > { %2382 = vmatmul.mubr.bf16.gmra.mrb[8].mxu1 %v4926_v42  ;;  %2326 = vmatmul.mubr.bf16.gmra.mrb[8].mxu0 %v4929_v44  ;;  %v5037_v42 = vld [vmem:[%s6453_s1 + $0x1e0] sm:$0xff]  }
  0x3c   : > { %2389 = vmatprep.mubr.bf16.mxu1 %v4934_v45  ;;  %2333 = vmatprep.mubr.bf16.mxu0 %v4937_v46  ;;  %v5042_v44 = vld [vmem:[%s6453_s1 + $0x260] sm:$0xff]   ;;  %v5004_v46 = vld [vmem:[%s5465_s24 + $0x158] ss:$56 sps:$4 sm:$0xff]  }
  0x3d   : > { %4287 = vmatpush3.bf16.msra.mxu1 %v4943_v48  ;;  %4387 = vmatpush3.bf16.msra.mxu0 %v4951_v49  ;;  %v5043_v45 = vld [vmem:[%s6453_s1 + $0x220] sm:$0xff]   ;;  %v5013_v49 = vld [vmem:[%s5465_s24 + $0x1d4] ss:$56 sps:$4 sm:$0xff]  }
  0x3e   : > { %4288 = vmatprep.subr.bf16.mxu1 %v4952_v50  ;;  %4388 = vmatprep.subr.bf16.mxu0 %v4957_v54  ;;  %v5007_v47 = vld [vmem:[%s5465_s24 + $0x160] ss:$56 sps:$4 sm:$0xff]   ;;  %v5010_v48 = vld [vmem:[%s5465_s24 + $0x1cc] ss:$56 sps:$4 sm:$0xff]  }
  0x3f   : > { %v5050_v50 = vld [vmem:[%s6453_s1 + $0x1e8] sm:$0xff]  }
  0x40   : > { %v5012_v54 = vld [vmem:[%s5465_s24 + $0x1c8] ss:$56 sps:$4 sm:$0xff]  }
  0x41   : > { %4289 = vmatpush3.bf16.msra.mxu1 %v4953_v53  ;;  %4389 = vmatpush3.bf16.msra.mxu0 %v4960_v57  ;;  %v5059_v53 = vld [vmem:[%s6453_s1 + $0x228] sm:$0xff]   ;;  %v5021_v57 = vld [vmem:[%s5465_s24 + $0x244] ss:$56 sps:$4 sm:$0xff]  }
  0x42   : > { %4290 = vmatprep.subr.bf16.mxu1 %v4962_v58  ;;  %4390 = vmatprep.subr.bf16.mxu0 %v4966_v60  ;;  %v5066_v58 = vld [vmem:[%s6453_s1 + $0x1f0] sm:$0xff]  }
  0x43   : > { %2390 = vmatmul.mubr.bf16.gmra.mrb[12].mxu1 %v4936_v51  ;;  %2334 = vmatmul.mubr.bf16.gmra.mrb[12].mxu0 %v4939_v52  ;;  %v5053_v51 = vld [vmem:[%s6453_s1 + $0x1a8] sm:$0xff]   ;;  %v5020_v60 = vld [vmem:[%s5465_s24 + $0x238] ss:$56 sps:$4 sm:$0xff]  }
  0x44   : > { %2397 = vmatprep.mubr.bf16.mxu1 %v4944_v55  ;;  %2341 = vmatprep.mubr.bf16.mxu0 %v4947_v56  ;;  %v5058_v52 = vld [vmem:[%s6453_s1 + $0x268] sm:$0xff]   ;;  %v5018_v56 = vld [vmem:[%s5465_s24 + $0x23c] ss:$56 sps:$4 sm:$0xff]  }
  0x45   : > { %4291 = vmatpush3.bf16.msra.mxu1 %v4963_v59  ;;  %4391 = vmatpush3.bf16.msra.mxu0 %v4968_v63  ;;  %v5016_v55 = vld [vmem:[%s5465_s24 + $0x1d0] ss:$56 sps:$4 sm:$0xff]  }
  0x46   : > { %4292 = vmatprep.subr.bf16.mxu1 %v4971_v2  ;;  %4392 = vmatprep.subr.bf16.mxu0 %v4974_v4  ;;  %v5067_v59 = vld [vmem:[%s6453_s1 + $0x1b0] sm:$0xff]   ;;  %v5082_v2 = vld [vmem:[%s6453_s1 + $0x1f8] sm:$0xff]   ;;  %v5029_v4 = vld [vmem:[%s5465_s24 + $0x2a8] ss:$56 sps:$4 sm:$0xff]  }
  0x47   : > { %v5075_v63 = vld [vmem:[%s6453_s1 + $0x230] sm:$0xff]  }
  0x49   : > { %4293 = vmatpush3.bf16.msra.mxu1 %v4973_v3  ;;  %4393 = vmatpush3.bf16.msra.mxu0 %v4978_v5  ;;  %v5083_v3 = vld [vmem:[%s6453_s1 + $0x1b8] sm:$0xff]   ;;  %v5033_v5 = vld [vmem:[%s5465_s24 + $0x2b0] ss:$56 sps:$4 sm:$0xff]  }
  0x4a   : > { %4478 = vmatprep.subr.bf16.mxu1 %v4979_v7  ;;  %4578 = vmatprep.subr.bf16.mxu0 %v4984_v11  ;;  %v5088_v7 = vld [vmem:[%s6453_s1 + $0x238] sm:$0xff]   ;;  %v5095_v11 = vld [vmem:[%s6453_s1 + $0x2c0] sm:$0xff]  }
  0x4b   : > { %2398 = vmatmul.mubr.bf16.gmra.mrb[16].mxu1 %v4946_v61  ;;  %2342 = vmatmul.mubr.bf16.gmra.mrb[16].mxu0 %v4950_v62  ;;  %v5023_v61 = vld [vmem:[%s5465_s24 + $0x240] ss:$56 sps:$4 sm:$0xff]   ;;  %v5073_v62 = vld [vmem:[%s6453_s1 + $0x270] sm:$0xff]  }
  0x4c   : > { %2405 = vmatprep.mubr.bf16.mxu1 %v4954_v0  ;;  %2349 = vmatprep.mubr.bf16.mxu0 %v4958_v1  ;;  %v5026_v0 = vld [vmem:[%s5465_s24 + $0x2ac] ss:$56 sps:$4 sm:$0xff]  }
  0x4d   : > { %v5031_v1 = vld [vmem:[%s5465_s24 + $0x2b4] ss:$56 sps:$4 sm:$0xff]  }
  0x53   : > { %2406 = vmatmul.mubr.bf16.gmra.mrb[20].mxu1 %v4956_v6  ;;  %2350 = vmatmul.mubr.bf16.gmra.mrb[20].mxu0 %v4961_v8  ;;  %v5086_v6 = vld [vmem:[%s6453_s1 + $0x278] sm:$0xff]  }
  0x54   : > { %2413 = vmatprep.mubr.bf16.mxu1 %v4964_v9  ;;  %2357 = vmatprep.mubr.bf16.mxu0 %v4969_v10  ;;  %v5034_v8 = vld [vmem:[%s5465_s24 + $0x31c] ss:$56 sps:$4 sm:$0xff]   ;;  %v5380_v10 = vmov 0  }
  0x55   : > { %v5038_v9 = vld [vmem:[%s5465_s24 + $0x324] ss:$56 sps:$4 sm:$0xff]  }
  0x5b   : > { %2414 = vmatmul.mubr.bf16.gmra.mrb[24].mxu1 %v4967_v12  ;;  %2358 = vmatmul.mubr.bf16.gmra.mrb[24].mxu0 %v4972_v13  ;;  %v5036_v12 = vld [vmem:[%s5465_s24 + $0x318] ss:$56 sps:$4 sm:$0xff]  }
  0x5c   : > { %2454 = vmatprep.mubr.bf16.mxu1 %v4977_v14  ;;  %2599 = vmatprep.mubr.bf16.mxu0 %v4982_v15  ;;  %v5041_v13 = vld [vmem:[%s5465_s24 + $0x320] ss:$56 sps:$4 sm:$0xff]   ;;  %v5044_v14 = vld [vmem:[%s5465_s24 + $0x38c] ss:$56 sps:$4 sm:$0xff]  }
  0x5d   : > { %v5047_v15 = vld [vmem:[%s5465_s24 + $0x394] ss:$56 sps:$4 sm:$0xff]  }
  0x63   : > { %2455 = vmatmul.mubr.bf16.vlgmr.msra.gmra.mrb[28].mxu1 %v4975_v16  ;;  %2600 = vmatmul.mubr.bf16.vlgmr.msra.gmra.mrb[28].mxu0 %v4980_v17  ;;  %v5046_v16 = vld [vmem:[%s5465_s24 + $0x388] ss:$56 sps:$4 sm:$0xff]  }
  0x64   : > { %4479 = vmatpush3.bf16.msra.mxu1 %v4983_v18  ;;  %4579 = vmatpush3.bf16.msra.mxu0 %v4985_v19  ;;  %v5049_v17 = vld [vmem:[%s5465_s24 + $0x390] ss:$56 sps:$4 sm:$0xff]   ;;  %v5051_v18 = vld [vmem:[%s5465_s24 + $0x3fc] ss:$56 sps:$4 sm:$0xff]  }
  0x65   : > { %2462 = vmatprep.mubr.bf16.mxu1 %v4986_v20  ;;  %2607 = vmatprep.mubr.bf16.mxu0 %v4989_v21  ;;  %v5055_v19 = vld [vmem:[%s5465_s24 + $0x404] ss:$56 sps:$4 sm:$0xff]   ;;  %v5054_v20 = vld [vmem:[%s5465_s24 + $0x3f8] ss:$56 sps:$4 sm:$0xff]  }
  0x66   : > { %4480 = vmatprep.subr.bf16.mxu1 %v4992_v22  ;;  %4580 = vmatprep.subr.bf16.mxu0 %v5000_v23  ;;  %v5057_v21 = vld [vmem:[%s5465_s24 + $0x400] ss:$56 sps:$4 sm:$0xff]   ;;  %v5060_v22 = vld [vmem:[%s5465_s24 + $0x46c] ss:$56 sps:$4 sm:$0xff]  }
  0x67   : > { %v5063_v23 = vld [vmem:[%s5465_s24 + $0x474] ss:$56 sps:$4 sm:$0xff]  }
  0x68   : > { %4481 = vmatpush3.bf16.msra.mxu1 %v4995_v24  ;;  %4581 = vmatpush3.bf16.msra.mxu0 %v5001_v25  ;;  %v5062_v24 = vld [vmem:[%s5465_s24 + $0x468] ss:$56 sps:$4 sm:$0xff]  }
  0x69   : > { %4482 = vmatprep.subr.bf16.mxu1 %v5008_v26  ;;  %4582 = vmatprep.subr.bf16.mxu0 %v5015_v28  ;;  %v5065_v25 = vld [vmem:[%s5465_s24 + $0x470] ss:$56 sps:$4 sm:$0xff]   ;;  %v5068_v26 = vld [vmem:[%s5465_s24 + $0x4dc] ss:$56 sps:$4 sm:$0xff]  }
  0x6a   : > { %v5070_v28 = vld [vmem:[%s5465_s24 + $0x4d8] ss:$56 sps:$4 sm:$0xff]  }
  0x6b   : > { %2463 = vmatmul.mubr.bf16.gmra.mrb[32].mxu1 %v4988_v27  ;;  %2608 = vmatmul.mubr.bf16.gmra.mrb[32].mxu0 %v4991_v29  ;;  %v5071_v27 = vld [vmem:[%s5465_s24 + $0x4e4] ss:$56 sps:$4 sm:$0xff]   ;;  %v5074_v29 = vld [vmem:[%s5465_s24 + $0x4e0] ss:$56 sps:$4 sm:$0xff]  }
  0x6c   : > { %2470 = vmatprep.mubr.bf16.mxu1 %v4993_v30  ;;  %2615 = vmatprep.mubr.bf16.mxu0 %v4997_v31  ;;  %v5076_v30 = vld [vmem:[%s5465_s24 + $0x54c] ss:$56 sps:$4 sm:$0xff]  }
  0x6d   : > { %4483 = vmatpush3.bf16.msra.mxu1 %v5009_v32  ;;  %4583 = vmatpush3.bf16.msra.mxu0 %v5017_v33  ;;  %v5079_v31 = vld [vmem:[%s5465_s24 + $0x554] ss:$56 sps:$4 sm:$0xff]   ;;  %v5078_v32 = vld [vmem:[%s5465_s24 + $0x548] ss:$56 sps:$4 sm:$0xff]  }
  0x6e   : > { %4484 = vmatprep.subr.bf16.mxu1 %v5024_v34  ;;  %4584 = vmatprep.subr.bf16.mxu0 %v5028_v35  ;;  %v5081_v33 = vld [vmem:[%s5465_s24 + $0x550] ss:$56 sps:$4 sm:$0xff]   ;;  %v5084_v34 = vld [vmem:[%s5465_s24 + $0x5bc] ss:$56 sps:$4 sm:$0xff]  }
  0x6f   : > { %v5089_v35 = vld [vmem:[%s5465_s24 + $0x5c4] ss:$56 sps:$4 sm:$0xff]  }
  0x71   : > { %4485 = vmatpush3.bf16.msra.mxu1 %v5025_v36  ;;  %4585 = vmatpush3.bf16.msra.mxu0 %v5030_v38  ;;  %v5087_v36 = vld [vmem:[%s5465_s24 + $0x5b8] ss:$56 sps:$4 sm:$0xff]   ;;  %v5094_v38 = vld [vmem:[%s5465_s24 + $0x1c] ss:$56 sps:$4 sm:$0xff]  }
  0x72   : > { %4486 = vmatprep.subr.bf16.mxu1 %v5037_v42  ;;  %4586 = vmatprep.subr.bf16.mxu0 %v5042_v44  ;;  %v5099_v42 = vld [vmem:[%s6453_s1 + $0x280] sm:$0xff]  }
  0x73   : > { %2471 = vmatmul.mubr.bf16.gmra.mrb[36].mxu1 %v4996_v37  ;;  %2616 = vmatmul.mubr.bf16.gmra.mrb[36].mxu0 %v4999_v39  ;;  %v5091_v37 = vld [vmem:[%s5465_s24 + $0x5c0] ss:$56 sps:$4 sm:$0xff]   ;;  %v5098_v39 = vld [vmem:[%s5465_s24 + $0x24] ss:$56 sps:$4 sm:$0xff]  }
  0x74   : > { %2478 = vmatprep.mubr.bf16.mxu1 %v5002_v40  ;;  %2623 = vmatprep.mubr.bf16.mxu0 %v5005_v41  ;;  %v5092_v40 = vld [vmem:[%s5465_s24 + $0x18] ss:$56 sps:$4 sm:$0xff]   ;;  %v5101_v44 = vld [vmem:[%s5465_s24 + $0x8c] ss:$56 sps:$4 sm:$0xff]  }
  0x75   : > { %4487 = vmatpush3.bf16.msra.mxu1 %v5040_v43  ;;  %4587 = vmatpush3.bf16.msra.mxu0 %v5043_v45  ;;  %v5096_v41 = vld [vmem:[%s5465_s24 + $0x20] ss:$56 sps:$4 sm:$0xff]   ;;  %v5104_v45 = vld [vmem:[%s5465_s24 + $0x94] ss:$56 sps:$4 sm:$0xff]  }
  0x76   : > { %4488 = vmatprep.subr.bf16.mxu1 %v5050_v50  ;;  %4588 = vmatprep.subr.bf16.mxu0 %v5058_v52  ;;  %v5100_v43 = vld [vmem:[%s6453_s1 + $0x300] sm:$0xff]   ;;  %v5108_v52 = vld [vmem:[%s5465_s24 + $0xfc] ss:$56 sps:$4 sm:$0xff]  }
  0x77   : > { %v5103_v50 = vld [vmem:[%s5465_s24 + $0x88] ss:$56 sps:$4 sm:$0xff]  }
  0x79   : > { %4489 = vmatpush3.bf16.msra.mxu1 %v5053_v51  ;;  %4589 = vmatpush3.bf16.msra.mxu0 %v5059_v53  ;;  %v5106_v51 = vld [vmem:[%s5465_s24 + $0x90] ss:$56 sps:$4 sm:$0xff]   ;;  %v5113_v53 = vld [vmem:[%s5465_s24 + $0x104] ss:$56 sps:$4 sm:$0xff]  }
  0x7a   : > { %4490 = vmatprep.subr.bf16.mxu1 %v5066_v58  ;;  %4590 = vmatprep.subr.bf16.mxu0 %v5073_v62  ;;  %v5139_v58 = vld [vmem:[%s6453_s1 + $0x298] sm:$0xff]   ;;  %v5116_v62 = vld [vmem:[%s5465_s24 + $0x16c] ss:$56 sps:$4 sm:$0xff]  }
  0x7b   : > { %2479 = vmatmul.mubr.bf16.gmra.mrb[40].mxu1 %v5004_v46  ;;  %2624 = vmatmul.mubr.bf16.gmra.mrb[40].mxu0 %v5007_v47  ;;  %v5107_v46 = vld [vmem:[%s6453_s1 + $0x2c8] sm:$0xff]  }
  0x7c   : > { %2486 = vmatprep.mubr.bf16.mxu1 %v5010_v48  ;;  %2631 = vmatprep.mubr.bf16.mxu0 %v5013_v49  ;;  %v5110_v47 = vld [vmem:[%s6453_s1 + $0x288] sm:$0xff]   ;;  %v5123_v49 = vld [vmem:[%s6453_s1 + $0x2d0] sm:$0xff]  }
  0x7d   : > { %4491 = vmatpush3.bf16.msra.mxu1 %v5067_v59  ;;  %4591 = vmatpush3.bf16.msra.mxu0 %v5075_v63  ;;  %v5112_v48 = vld [vmem:[%s6453_s1 + $0x308] sm:$0xff]   ;;  %v5111_v59 = vld [vmem:[%s5465_s24 + $0xf8] ss:$56 sps:$4 sm:$0xff]  }
  0x7e   : > { %4492 = vmatprep.subr.bf16.mxu1 %v5082_v2  ;;  %4592 = vmatprep.subr.bf16.mxu0 %v5086_v6  ;;  %v5119_v63 = vld [vmem:[%s5465_s24 + $0x174] ss:$56 sps:$4 sm:$0xff]   ;;  %v5118_v6 = vld [vmem:[%s5465_s24 + $0x168] ss:$56 sps:$4 sm:$0xff]  }
  0x7f   : > { %v5163_v2 = vld [vmem:[%s6453_s1 + $0x2e8] sm:$0xff]  }
  0x81   : > { %4493 = vmatpush3.bf16.msra.mxu1 %v5083_v3  ;;  %4593 = vmatpush3.bf16.msra.mxu0 %v5088_v7  ;;  %v5147_v3 = vld [vmem:[%s6453_s1 + $0x328] sm:$0xff]  }
  0x82   : > { %3147 = vmatprep.subr.bf16.mxu0 %v5380_v10  ;;  %4678 = vmatprep.subr.bf16.mxu1 %v5095_v11  ;;  %v5122_v7 = vld [vmem:[%s5465_s24 + $0x170] ss:$56 sps:$4 sm:$0xff]  }
  0x83   : > { %2487 = vmatmul.mubr.bf16.gmra.mrb[44].mxu1 %v5012_v54  ;;  %2632 = vmatmul.mubr.bf16.gmra.mrb[44].mxu0 %v5016_v55  ;;  %v5121_v54 = vld [vmem:[%s6453_s1 + $0x310] sm:$0xff]  }
  0x84   : > { %2494 = vmatprep.mubr.bf16.mxu1 %v5018_v56  ;;  %2639 = vmatprep.mubr.bf16.mxu0 %v5021_v57  ;;  %v5124_v55 = vld [vmem:[%s6453_s1 + $0x290] sm:$0xff]   ;;  %v5138_v56 = vld [vmem:[%s6453_s1 + $0x2d8] sm:$0xff]  }
  0x85   : > { %v5131_v57 = vld [vmem:[%s6453_s1 + $0x318] sm:$0xff]   ;;  %v5156_v11 = vld [vmem:[%s6453_s1 + $0x330] sm:$0xff]  }
  0x8b   : > { %2495 = vmatmul.mubr.bf16.gmra.mrb[48].mxu1 %v5020_v60  ;;  %2640 = vmatmul.mubr.bf16.gmra.mrb[48].mxu0 %v5023_v61  ;;  %v5115_v60 = vld [vmem:[%s5465_s24 + $0x100] ss:$56 sps:$4 sm:$0xff]  }
  0x8c   : > { %2502 = vmatprep.mubr.bf16.mxu1 %v5026_v0  ;;  %2647 = vmatprep.mubr.bf16.mxu0 %v5031_v1  ;;  %v5151_v61 = vld [vmem:[%s6453_s1 + $0x2e0] sm:$0xff]  }
  0x8d   : > { %v5140_v0 = vld [vmem:[%s6453_s1 + $0x320] sm:$0xff]  }
  0x8e   : > { %v5154_v1 = vld [vmem:[%s6453_s1 + $0x2a0] sm:$0xff]  }
  0x93   : > { %2503 = vmatmul.mubr.bf16.gmra.mrb[52].mxu1 %v5029_v4  ;;  %2648 = vmatmul.mubr.bf16.gmra.mrb[52].mxu0 %v5033_v5  ;;  %v5166_v4 = vld [vmem:[%s6453_s1 + $0x2a8] sm:$0xff]   ;;  %v5179_v5 = vld [vmem:[%s6453_s1 + $0x2f0] sm:$0xff]  }
  0x94   : > { %2510 = vmatprep.mubr.bf16.mxu1 %v5034_v8  ;;  %2655 = vmatprep.mubr.bf16.mxu0 %v5038_v9  ;;  %v5125_v8 = vld [vmem:[%s5465_s24 + $0x1dc] ss:$56 sps:$4 sm:$0xff]  }
  0x95   : > { %v5128_v9 = vld [vmem:[%s5465_s24 + $0x1e4] ss:$56 sps:$4 sm:$0xff]  }
  0x9b   : > { %2511 = vmatmul.mubr.bf16.gmra.mrb[56].mxu1 %v5036_v12  ;;  %2656 = vmatmul.mubr.bf16.gmra.mrb[56].mxu0 %v5041_v13  ;;  %v5180_v12 = vld [vmem:[%s6453_s1 + $0x2b0] sm:$0xff]   ;;  %v5194_v13 = vld [vmem:[%s6453_s1 + $0x2f8] sm:$0xff]  }
  0x9c   : > { %2518 = vmatprep.mubr.bf16.mxu1 %v5044_v14  ;;  %2663 = vmatprep.mubr.bf16.mxu0 %v5047_v15  ;;  %v5168_v14 = vld [vmem:[%s6453_s1 + $0x338] sm:$0xff]  }
  0x9d   : > { %v5195_v15 = vld [vmem:[%s6453_s1 + $0x2b8] sm:$0xff]  }
  0xa3   : > { %2519 = vmatmul.mubr.bf16.gmra.mrb[60].mxu1 %v5046_v16  ;;  %2664 = vmatmul.mubr.bf16.gmra.mrb[60].mxu0 %v5049_v17  ;;  %v5127_v16 = vld [vmem:[%s5465_s24 + $0x1d8] ss:$56 sps:$4 sm:$0xff]  }
  0xa4   : > { %2526 = vmatprep.mubr.bf16.mxu1 %v5051_v18  ;;  %2671 = vmatprep.mubr.bf16.mxu0 %v5055_v19  ;;  %v5130_v17 = vld [vmem:[%s5465_s24 + $0x1e0] ss:$56 sps:$4 sm:$0xff]   ;;  %v5132_v18 = vld [vmem:[%s5465_s24 + $0x24c] ss:$56 sps:$4 sm:$0xff]  }
  0xa5   : > { %v5135_v19 = vld [vmem:[%s5465_s24 + $0x254] ss:$56 sps:$4 sm:$0xff]  }
  0xab   : > { %2527 = vmatmul.mubr.bf16.gmra.mrb[64].mxu1 %v5054_v20  ;;  %2672 = vmatmul.mubr.bf16.gmra.mrb[64].mxu0 %v5057_v21  ;;  %v5177_v20 = vld [vmem:[%s6453_s1 + $0x340] sm:$0xff]   ;;  %v5187_v21 = vld [vmem:[%s6453_s1 + $0x348] sm:$0xff]  }
  0xac   : > { %2534 = vmatprep.mubr.bf16.mxu1 %v5060_v22  ;;  %2679 = vmatprep.mubr.bf16.mxu0 %v5063_v23  ;;  %v5134_v22 = vld [vmem:[%s5465_s24 + $0x248] ss:$56 sps:$4 sm:$0xff]  }
  0xad   : > { %v5137_v23 = vld [vmem:[%s5465_s24 + $0x250] ss:$56 sps:$4 sm:$0xff]  }
  0xb3   : > { %2535 = vmatmul.mubr.bf16.gmra.mrb[68].mxu1 %v5062_v24  ;;  %2680 = vmatmul.mubr.bf16.gmra.mrb[68].mxu0 %v5065_v25  ;;  %v5141_v24 = vld [vmem:[%s5465_s24 + $0x2bc] ss:$56 sps:$4 sm:$0xff]  }
  0xb4   : > { %2542 = vmatprep.mubr.bf16.mxu1 %v5068_v26  ;;  %2687 = vmatprep.mubr.bf16.mxu0 %v5071_v27  ;;  %v5144_v25 = vld [vmem:[%s5465_s24 + $0x2c4] ss:$56 sps:$4 sm:$0xff]   ;;  %v5196_v26 = vld [vmem:[%s6453_s1 + $0x350] sm:$0xff]  }
  0xb5   : > { %v5203_v27 = vld [vmem:[%s6453_s1 + $0x358] sm:$0xff]  }
  0xbb   : > { %2543 = vmatmul.mubr.bf16.gmra.mrb[72].mxu1 %v5070_v28  ;;  %2688 = vmatmul.mubr.bf16.gmra.mrb[72].mxu0 %v5074_v29 }
  0xbc   : > { %2550 = vmatprep.mubr.bf16.mxu1 %v5076_v30  ;;  %2695 = vmatprep.mubr.bf16.mxu0 %v5079_v31 }
  0xc3   : > { %2551 = vmatmul.mubr.bf16.gmra.mrb[76].mxu1 %v5078_v32  ;;  %2696 = vmatmul.mubr.bf16.gmra.mrb[76].mxu0 %v5081_v33  ;;  %v5143_v32 = vld [vmem:[%s5465_s24 + $0x2b8] ss:$56 sps:$4 sm:$0xff]  }
  0xc4   : > { %2558 = vmatprep.mubr.bf16.mxu1 %v5084_v34  ;;  %2703 = vmatprep.mubr.bf16.mxu0 %v5089_v35  ;;  %v5146_v33 = vld [vmem:[%s5465_s24 + $0x2c0] ss:$56 sps:$4 sm:$0xff]  }
  0xcb   : > { %2559 = vmatmul.mubr.bf16.gmra.mrb[80].mxu1 %v5087_v36  ;;  %2704 = vmatmul.mubr.bf16.gmra.mrb[80].mxu0 %v5091_v37 }
  0xcc   : > { %2744 = vmatprep.mubr.bf16.mxu1 %v5094_v38  ;;  %2889 = vmatprep.mubr.bf16.mxu0 %v5098_v39  ;;  %v5148_v38 = vld [vmem:[%s5465_s24 + $0x32c] ss:$56 sps:$4 sm:$0xff]  }
  0xcd   : > { %v5152_v39 = vld [vmem:[%s5465_s24 + $0x334] ss:$56 sps:$4 sm:$0xff]  }
  0xd3   : > { %2745 = vmatmul.mubr.bf16.vlgmr.msra.gmra.mrb[84].mxu1 %v5092_v40  ;;  %2890 = vmatmul.mubr.bf16.vlgmr.msra.gmra.mrb[84].mxu0 %v5096_v41 }
  0xd4   : > { %4679 = vmatpush3.bf16.msra.mxu1 %v5099_v42  ;;  %3148 = vmatpush1.bf16.msra.mxu0 %v5100_v43 }
  0xd5   : > { %2752 = vmatprep.mubr.bf16.mxu1 %v5101_v44  ;;  %2897 = vmatprep.mubr.bf16.mxu0 %v5104_v45 }
  0xd6   : > { %4680 = vmatprep.subr.bf16.mxu1 %v5107_v46  ;;  %3149 = vmatprep.subr.bf16.mxu0 %v5380_v10 }
  0xd8   : > { %4681 = vmatpush3.bf16.msra.mxu1 %v5110_v47  ;;  %3150 = vmatpush1.bf16.msra.mxu0 %v5112_v48  ;;  %v5150_v47 = vld [vmem:[%s5465_s24 + $0x328] ss:$56 sps:$4 sm:$0xff]  }
  0xd9   : > { %3151 = vmatprep.subr.bf16.mxu0 %v5380_v10  ;;  %4682 = vmatprep.subr.bf16.mxu1 %v5123_v49  ;;  %v5155_v48 = vld [vmem:[%s5465_s24 + $0x330] ss:$56 sps:$4 sm:$0xff]  }
  0xdb   : > { %2753 = vmatmul.mubr.bf16.gmra.mrb[88].mxu1 %v5103_v50  ;;  %2898 = vmatmul.mubr.bf16.gmra.mrb[88].mxu0 %v5106_v51 }
  0xdc   : > { %2760 = vmatprep.mubr.bf16.mxu1 %v5108_v52  ;;  %2905 = vmatprep.mubr.bf16.mxu0 %v5113_v53  ;;  %v5157_v53 = vld [vmem:[%s5465_s24 + $0x39c] ss:$56 sps:$4 sm:$0xff]  }
  0xdd   : > { %3152 = vmatpush1.bf16.msra.mxu0 %v5121_v54  ;;  %4683 = vmatpush3.bf16.msra.mxu1 %v5124_v55  ;;  %v5160_v54 = vld [vmem:[%s5465_s24 + $0x3a4] ss:$56 sps:$4 sm:$0xff]   ;;  %v5907_v55 = vld [vmem:[%s6454_s2] ss:$0 sm:$0xff] }
  0xde   : > { %3153 = vmatprep.subr.bf16.mxu0 %v5380_v10  ;;  %4684 = vmatprep.subr.bf16.mxu1 %v5138_v56 }
  0xe1   : > { %3154 = vmatpush1.bf16.msra.mxu0 %v5131_v57  ;;  %4685 = vmatpush3.bf16.msra.mxu1 %v5139_v58 }
  0xe2   : > { %3155 = vmatprep.subr.bf16.mxu0 %v5380_v10  ;;  %4686 = vmatprep.subr.bf16.mxu1 %v5151_v61 }
  0xe3   : > { %2761 = vmatmul.mubr.bf16.gmra.mrb[92].mxu1 %v5111_v59  ;;  %2906 = vmatmul.mubr.bf16.gmra.mrb[92].mxu0 %v5115_v60 }
  0xe4   : > { %2768 = vmatprep.mubr.bf16.mxu1 %v5116_v62  ;;  %2913 = vmatprep.mubr.bf16.mxu0 %v5119_v63 }
  0xe5   : > { %3156 = vmatpush1.bf16.msra.mxu0 %v5140_v0  ;;  %4687 = vmatpush3.bf16.msra.mxu1 %v5154_v1 }
  0xe6   : > { %3157 = vmatprep.subr.bf16.mxu0 %v5380_v10  ;;  %4688 = vmatprep.subr.bf16.mxu1 %v5163_v2  ;;  %v5159_v2 = vld [vmem:[%s5465_s24 + $0x398] ss:$56 sps:$4 sm:$0xff]  }
  0xe9   : > { %3158 = vmatpush1.bf16.msra.mxu0 %v5147_v3  ;;  %4689 = vmatpush3.bf16.msra.mxu1 %v5166_v4  ;;  %v5162_v3 = vld [vmem:[%s5465_s24 + $0x3a0] ss:$56 sps:$4 sm:$0xff]  }
  0xea   : > { %3159 = vmatprep.subr.bf16.mxu0 %v5380_v10  ;;  %4690 = vmatprep.subr.bf16.mxu1 %v5179_v5 }
  0xeb   : > { %2769 = vmatmul.mubr.bf16.gmra.mrb[96].mxu1 %v5118_v6  ;;  %2914 = vmatmul.mubr.bf16.gmra.mrb[96].mxu0 %v5122_v7 }
  0xec   : > { %2776 = vmatprep.mubr.bf16.mxu1 %v5125_v8  ;;  %2921 = vmatprep.mubr.bf16.mxu0 %v5128_v9  ;;  %v5164_v8 = vld [vmem:[%s5465_s24 + $0x40c] ss:$56 sps:$4 sm:$0xff]  }
  0xed   : > { %3160 = vmatpush1.bf16.msra.mxu0 %v5156_v11  ;;  %4691 = vmatpush3.bf16.msra.mxu1 %v5180_v12  ;;  %v5169_v9 = vld [vmem:[%s5465_s24 + $0x414] ss:$56 sps:$4 sm:$0xff]  }
  0xee   : > { %3161 = vmatprep.subr.bf16.mxu0 %v5380_v10  ;;  %4692 = vmatprep.subr.bf16.mxu1 %v5194_v13 }
  0xf1   : > { %3162 = vmatpush1.bf16.msra.mxu0 %v5168_v14  ;;  %4693 = vmatpush3.bf16.msra.mxu1 %v5195_v15 }
  0xf2   : > { %3163 = vmatprep.subr.bf16.mxu0 %v5380_v10 }
  0xf3   : > { %2777 = vmatmul.mubr.bf16.gmra.mrb[100].mxu1 %v5127_v16  ;;  %2922 = vmatmul.mubr.bf16.gmra.mrb[100].mxu0 %v5130_v17 }
  0xf4   : > { %2784 = vmatprep.mubr.bf16.mxu1 %v5132_v18  ;;  %2929 = vmatprep.mubr.bf16.mxu0 %v5135_v19 }
  0xf5   : > { %3164 = vmatpush1.bf16.msra.mxu0 %v5177_v20 }
  0xf6   : > { %3165 = vmatprep.subr.bf16.mxu0 %v5380_v10 }
  0xf9   : > { %3166 = vmatpush1.bf16.msra.mxu0 %v5187_v21  ;;  %v5167_v21 = vld [vmem:[%s5465_s24 + $0x408] ss:$56 sps:$4 sm:$0xff]  }
  0xfa   : > { %3167 = vmatprep.subr.bf16.mxu0 %v5380_v10 }
  0xfb   : > { %2785 = vmatmul.mubr.bf16.gmra.mrb[104].mxu1 %v5134_v22  ;;  %2930 = vmatmul.mubr.bf16.gmra.mrb[104].mxu0 %v5137_v23  ;;  %v5171_v22 = vld [vmem:[%s5465_s24 + $0x410] ss:$56 sps:$4 sm:$0xff]  }
  0xfc   : > { %2792 = vmatprep.mubr.bf16.mxu1 %v5141_v24  ;;  %2937 = vmatprep.mubr.bf16.mxu0 %v5144_v25 }
  0xfd   : > { %3168 = vmatpush1.bf16.msra.mxu0 %v5196_v26 }
  0xfe   : > { %v4236_v28 = vpop.f32.mrb[0].mxu1  ;;  %v4194_v29 = vpop.f32.mrb[0].mxu0  ;;  %3169 = vmatprep.subr.bf16.mxu0 %v5380_v10 }
  0xff   : > { %v4237_v30 = vpop.f32.mrb[1].mxu1  ;;  %v4195_v31 = vpop.f32.mrb[1].mxu0 }
 0x100   : > { %v5888_v34 = vadd.f32 %v4237_v30, %v4236_v28  ;;  %v4239_v35 = vpop.f32.mrb[2].mxu1  ;;  %v5890_v36 = vadd.f32 %v4195_v31, %v4194_v29  ;;  %v4197_v37 = vpop.f32.mrb[2].mxu0  ;;  %v5175_v28 = vld [vmem:[%s5465_s24 + $0x484] ss:$56 sps:$4 sm:$0xff]  }
 0x101   : > { %v4240_v40 = vpop.f32.mrb[3].mxu1  ;;  %v4198_v41 = vpop.f32.mrb[3].mxu0  ;;  %3170 = vmatpush1.bf16.msra.mxu0 %v5203_v27  ;;  %v5172_v27 = vld [vmem:[%s5465_s24 + $0x47c] ss:$56 sps:$4 sm:$0xff]  }
 0x102   : > { %v5894_v42 = vadd.f32 %v4240_v40, %v4239_v35  ;;  %v5896_v10 = vadd.f32 %v4198_v41, %v4197_v37  ;;  %v5174_v41 = vld [vmem:[%s5465_s24 + $0x478] ss:$56 sps:$4 sm:$0xff]  }
 0x103   : > { %2793 = vmatmul.mubr.bf16.gmra.mrb[108].mxu1 %v5143_v32  ;;  %2938 = vmatmul.mubr.bf16.gmra.mrb[108].mxu0 %v5146_v33 }
 0x104   : > { %2800 = vmatprep.mubr.bf16.mxu1 %v5148_v38  ;;  %2945 = vmatprep.mubr.bf16.mxu0 %v5152_v39 }
 0x106   : > { %v4242_v43 = vpop.f32.mrb[4].mxu1  ;;  %v4200_v44 = vpop.f32.mrb[4].mxu0 }
 0x107   : > { %v4243_v45 = vpop.f32.mrb[5].mxu1  ;;  %v4201_v46 = vpop.f32.mrb[5].mxu0 }
 0x108   : > { %v4244_v49 = vadd.f32 %v4243_v45, %v4242_v43  ;;  %v4245_v50 = vpop.f32.mrb[6].mxu1  ;;  %v5900_v51 = vadd.f32 %v4201_v46, %v4200_v44  ;;  %v4203_v52 = vpop.f32.mrb[6].mxu0  ;;  %v5178_v43 = vld [vmem:[%s5465_s24 + $0x480] ss:$56 sps:$4 sm:$0xff]  }
 0x109   : > { %v4246_v56 = vpop.f32.mrb[7].mxu1  ;;  %v4204_v57 = vpop.f32.mrb[7].mxu0 }
 0x10a   : > { %v5910_v58 = vadd.f32 %v4244_v49, %v5907_v55  ;;  %v4247_v59 = vadd.f32 %v4246_v56, %v4245_v50  ;;  %v5912_v60 = vadd.f32 %v4204_v57, %v4203_v52  ;;  %v5184_v49 = vld [vmem:[%s5465_s24 + $0x4f4] ss:$56 sps:$4 sm:$0xff]  }
 0x10b   : > { %2801 = vmatmul.mubr.bf16.gmra.mrb[112].mxu1 %v5150_v47  ;;  %2946 = vmatmul.mubr.bf16.gmra.mrb[112].mxu0 %v5155_v48  ;;  %v5181_v48 = vld [vmem:[%s5465_s24 + $0x4ec] ss:$56 sps:$4 sm:$0xff]  }
 0x10c   : > { %v5915_v61 = vadd.f32 %v4247_v59, %v5907_v55  ;;  %2808 = vmatprep.mubr.bf16.mxu1 %v5157_v53  ;;  %2953 = vmatprep.mubr.bf16.mxu0 %v5160_v54 }
 0x10e   : > { %v4248_v62 = vpop.f32.mrb[8].mxu1  ;;  %v4206_v63 = vpop.f32.mrb[8].mxu0 }
 0x10f   : > { %v4249_v0 = vpop.f32.mrb[9].mxu1  ;;  %v4207_v1 = vpop.f32.mrb[9].mxu0 }
 0x110   : > { %v4250_v4 = vadd.f32 %v4249_v0, %v4248_v62  ;;  %v4251_v5 = vpop.f32.mrb[10].mxu1  ;;  %v5919_v6 = vadd.f32 %v4207_v1, %v4206_v63  ;;  %v4209_v7 = vpop.f32.mrb[10].mxu0  ;;  %v5183_v1 = vld [vmem:[%s5465_s24 + $0x4e8] ss:$56 sps:$4 sm:$0xff]  }
 0x111   : > { %v4252_v11 = vpop.f32.mrb[11].mxu1  ;;  %v4210_v12 = vpop.f32.mrb[11].mxu0 }
 0x112   : > { %v5924_v13 = vadd.f32 %v4250_v4, %v5907_v55  ;;  %v4253_v14 = vadd.f32 %v4252_v11, %v4251_v5  ;;  %v5926_v15 = vadd.f32 %v4210_v12, %v4209_v7 }
 0x113   : > { %2809 = vmatmul.mubr.bf16.gmra.mrb[116].mxu1 %v5159_v2  ;;  %2954 = vmatmul.mubr.bf16.gmra.mrb[116].mxu0 %v5162_v3  ;;  %v5186_v2 = vld [vmem:[%s5465_s24 + $0x4f0] ss:$56 sps:$4 sm:$0xff]  }
 0x114   : > { %v5929_v16 = vadd.f32 %v4253_v14, %v5907_v55  ;;  %2816 = vmatprep.mubr.bf16.mxu1 %v5164_v8  ;;  %2961 = vmatprep.mubr.bf16.mxu0 %v5169_v9  ;;  %v5188_v8 = vld [vmem:[%s5465_s24 + $0x55c] ss:$56 sps:$4 sm:$0xff]  }
 0x115   : > { %v5191_v9 = vld [vmem:[%s5465_s24 + $0x564] ss:$56 sps:$4 sm:$0xff]  }
 0x116   : > { %v4254_v17 = vpop.f32.mrb[12].mxu1  ;;  %v4212_v18 = vpop.f32.mrb[12].mxu0 }
 0x117   : > { %v4255_v19 = vpop.f32.mrb[13].mxu1  ;;  %v4213_v20 = vpop.f32.mrb[13].mxu0 }
 0x118   : > { %v4256_v23 = vadd.f32 %v4255_v19, %v4254_v17  ;;  %v4257_v24 = vpop.f32.mrb[14].mxu1  ;;  %v5933_v25 = vadd.f32 %v4213_v20, %v4212_v18  ;;  %v4215_v26 = vpop.f32.mrb[14].mxu0 }
 0x119   : > { %v4258_v29 = vpop.f32.mrb[15].mxu1  ;;  %v4216_v30 = vpop.f32.mrb[15].mxu0 }
 0x11a   : > { %v5938_v31 = vadd.f32 %v4256_v23, %v5907_v55  ;;  %v4259_v32 = vadd.f32 %v4258_v29, %v4257_v24  ;;  %v5940_v33 = vadd.f32 %v4216_v30, %v4215_v26  ;;  %v5190_v24 = vld [vmem:[%s5465_s24 + $0x558] ss:$56 sps:$4 sm:$0xff]  }
 0x11b   : > { %2817 = vmatmul.mubr.bf16.gmra.mrb[120].mxu1 %v5167_v21  ;;  %2962 = vmatmul.mubr.bf16.gmra.mrb[120].mxu0 %v5171_v22  ;;  %v5193_v26 = vld [vmem:[%s5465_s24 + $0x560] ss:$56 sps:$4 sm:$0xff]  }
 0x11c   : > { %v5943_v35 = vadd.f32 %v4259_v32, %v5907_v55  ;;  %2824 = vmatprep.mubr.bf16.mxu1 %v5172_v27  ;;  %2969 = vmatprep.mubr.bf16.mxu0 %v5175_v28  ;;  %v5197_v32 = vld [vmem:[%s5465_s24 + $0x5cc] ss:$56 sps:$4 sm:$0xff]  }
 0x11e   : > { %v4260_v37 = vpop.f32.mrb[16].mxu1  ;;  %v4218_v38 = vpop.f32.mrb[16].mxu0 }
 0x11f   : > { %v4261_v39 = vpop.f32.mrb[17].mxu1  ;;  %v4219_v40 = vpop.f32.mrb[17].mxu0 }
 0x120   : > { %v4262_v44 = vadd.f32 %v4261_v39, %v4260_v37  ;;  %v4263_v45 = vpop.f32.mrb[18].mxu1  ;;  %v5947_v46 = vadd.f32 %v4219_v40, %v4218_v38  ;;  %v4221_v47 = vpop.f32.mrb[18].mxu0  ;;  %v5200_v37 = vld [vmem:[%s5465_s24 + $0x5d4] ss:$56 sps:$4 sm:$0xff]  }
 0x121   : > { %v4264_v50 = vpop.f32.mrb[19].mxu1  ;;  %v4222_v52 = vpop.f32.mrb[19].mxu0 }
 0x122   : > { %v5952_v53 = vadd.f32 %v4262_v44, %v5907_v55  ;;  %v4265_v54 = vadd.f32 %v4264_v50, %v4263_v45  ;;  %v5954_v56 = vadd.f32 %v4222_v52, %v4221_v47  ;;  %v5199_v50 = vld [vmem:[%s5465_s24 + $0x5c8] ss:$56 sps:$4 sm:$0xff]  }
 0x123   : > { %2825 = vmatmul.mubr.bf16.gmra.mrb[124].mxu1 %v5174_v41  ;;  %2970 = vmatmul.mubr.bf16.gmra.mrb[124].mxu0 %v5178_v43  ;;  %v5202_v52 = vld [vmem:[%s5465_s24 + $0x5d0] ss:$56 sps:$4 sm:$0xff]  }
 0x124   : > { %v5957_v57 = vadd.f32 %v4265_v54, %v5907_v55  ;;  %2832 = vmatprep.mubr.bf16.mxu1 %v5181_v48  ;;  %2977 = vmatprep.mubr.bf16.mxu0 %v5184_v49  ;;  %v2312_v54 = vadd.f32 %v5890_v36, %v5907_v55 }
 0x126   : > { %v4266_v59 = vpop.f32.mrb[20].mxu1  ;;  %v4224_v62 = vpop.f32.mrb[20].mxu0 }
 0x127   : > { %v4267_v63 = vpop.f32.mrb[21].mxu1  ;;  %v4225_v0 = vpop.f32.mrb[21].mxu0 }
 0x128   : > { %v4268_v3 = vadd.f32 %v4267_v63, %v4266_v59  ;;  %v4269_v4 = vpop.f32.mrb[22].mxu1  ;;  %v5961_v5 = vadd.f32 %v4225_v0, %v4224_v62  ;;  %v4227_v7 = vpop.f32.mrb[22].mxu0 }
 0x129   : > { %v4270_v11 = vpop.f32.mrb[23].mxu1  ;;  %v4228_v12 = vpop.f32.mrb[23].mxu0 }
 0x12a   : > { %v5966_v14 = vadd.f32 %v4268_v3, %v5907_v55  ;;  %v4271_v17 = vadd.f32 %v4270_v11, %v4269_v4  ;;  %v5968_v18 = vadd.f32 %v4228_v12, %v4227_v7  ;;  %v2315_v7 = vadd.f32 %v5896_v10, %v5907_v55 }
 0x12b   : > { %2833 = vmatmul.mubr.bf16.gmra.mrb[128].mxu1 %v5183_v1  ;;  %2978 = vmatmul.mubr.bf16.gmra.mrb[128].mxu0 %v5186_v2  ;;  %v5206_v1 = vld [vmem:[%s5465_s24 + $0x2c] ss:$56 sps:$4 sm:$0xff]  }
 0x12c   : > { %v5971_v19 = vadd.f32 %v4271_v17, %v5907_v55  ;;  %2840 = vmatprep.mubr.bf16.mxu1 %v5188_v8  ;;  %2985 = vmatprep.mubr.bf16.mxu0 %v5191_v9  ;;  %v5209_v2 = vld [vmem:[%s5465_s24 + $0x34] ss:$56 sps:$4 sm:$0xff]  }
 0x12e   : > { %v4272_v20 = vpop.f32.mrb[24].mxu1  ;;  %v4230_v21 = vpop.f32.mrb[24].mxu0 }
 0x12f   : > { %v4273_v22 = vpop.f32.mrb[25].mxu1  ;;  %v4231_v23 = vpop.f32.mrb[25].mxu0 }
 0x130   : > { %v4274_v27 = vadd.f32 %v4273_v22, %v4272_v20  ;;  %v4275_v28 = vpop.f32.mrb[26].mxu1  ;;  %v5975_v29 = vadd.f32 %v4231_v23, %v4230_v21  ;;  %v4233_v30 = vpop.f32.mrb[26].mxu0  ;;  %v5204_v23 = vld [vmem:[%s5465_s24 + $0x28] ss:$56 sps:$4 sm:$0xff]  }
 0x131   : > { %v4276_v38 = vpop.f32.mrb[27].mxu1  ;;  %v4234_v39 = vpop.f32.mrb[27].mxu0 }
 0x132   : > { %v5980_v40 = vadd.f32 %v4274_v27, %v5907_v55  ;;  %v4277_v41 = vadd.f32 %v4276_v38, %v4275_v28  ;;  %v5982_v43 = vadd.f32 %v4234_v39, %v4233_v30  ;;  %v5213_v38 = vld [vmem:[%s5465_s24 + $0xa4] ss:$56 sps:$4 sm:$0xff]  }
 0x133   : > { %2841 = vmatmul.mubr.bf16.gmra.mrb[132].mxu1 %v5190_v24  ;;  %2986 = vmatmul.mubr.bf16.gmra.mrb[132].mxu0 %v5193_v26  ;;  %v5207_v24 = vld [vmem:[%s5465_s24 + $0x30] ss:$56 sps:$4 sm:$0xff]   ;;  %v2320_v26 = vadd.f32 %v5900_v51, %v5907_v55 }
 0x134   : > { %v5985_v44 = vadd.f32 %v4277_v41, %v5907_v55  ;;  %2848 = vmatprep.mubr.bf16.mxu1 %v5197_v32  ;;  %2993 = vmatprep.mubr.bf16.mxu0 %v5200_v37  ;;  %v5210_v37 = vld [vmem:[%s5465_s24 + $0x9c] ss:$56 sps:$4 sm:$0xff]  }
 0x136   : > { %v4294_v45 = vpop.f32.mrb[28].mxu1  ;;  %v4394_v47 = vpop.f32.mrb[28].mxu0 }
 0x137   : > { %v4295_v48 = vpop.f32.mrb[29].mxu1  ;;  %v4395_v49 = vpop.f32.mrb[29].mxu0 }
 0x138   : > { %v4296_v59 = vadd.f32 %v4295_v48, %v4294_v45  ;;  %v4297_v62 = vpop.f32.mrb[30].mxu1  ;;  %v4396_v63 = vadd.f32 %v4395_v49, %v4394_v47  ;;  %v4397_v0 = vpop.f32.mrb[30].mxu0  ;;  %v2323_v45 = vadd.f32 %v5912_v60, %v5907_v55 }
 0x139   : > { %v4298_v3 = vpop.f32.mrb[31].mxu1  ;;  %v4398_v4 = vpop.f32.mrb[31].mxu0 }
 0x13a   : > { %v2457_v8 = vadd.f32 %v4296_v59, %v2312_v54  ;;  %v4299_v9 = vadd.f32 %v4298_v3, %v4297_v62  ;;  %v4399_v11 = vadd.f32 %v4398_v4, %v4397_v0  ;;  %v5215_v0 = vld [vmem:[%s5465_s24 + $0xa0] ss:$56 sps:$4 sm:$0xff]  }
 0x13b   : > { %2849 = vmatmul.mubr.bf16.gmra.mrb[136].mxu1 %v5199_v50  ;;  %2994 = vmatmul.mubr.bf16.gmra.mrb[136].mxu0 %v5202_v52 }
 0x13c   : > { %v2460_v36 = vadd.f32 %v4299_v9, %v2315_v7  ;;  %v5995_v12 = vadd.f32 %v4396_v63, %v2457_v8  ;;  %3034 = vmatprep.mubr.bf16.mxu1 %v5206_v1  ;;  %4095 = vmatprep.mubr.msk.bf16.mxu0 %vm2234_vm0, %v5209_v2  ;;  %v5212_v63 = vld [vmem:[%s5465_s24 + $0x98] ss:$56 sps:$4 sm:$0xff]   ;;  %v2328_v1 = vadd.f32 %v5919_v6, %v5907_v55  ;;  %v5216_v8 = vld [vmem:[%s5465_s24 + $0x10c] ss:$56 sps:$4 sm:$0xff]  }
 0x13d   : > { %v5219_v9 = vld [vmem:[%s5465_s24 + $0x114] ss:$56 sps:$4 sm:$0xff]  }
 0x13e   : > { %v5998_v17 = vadd.f32 %v4399_v11, %v2460_v36  ;;  %v4300_v20 = vpop.f32.mrb[32].mxu1  ;;  %v4400_v21 = vpop.f32.mrb[32].mxu0 }
 0x13f   : > { %v4301_v22 = vpop.f32.mrb[33].mxu1  ;;  %v4401_v10 = vpop.f32.mrb[33].mxu0 }
 0x140   : > { %v4302_v27 = vadd.f32 %v4301_v22, %v4300_v20  ;;  %v4303_v28 = vpop.f32.mrb[34].mxu1  ;;  %v4402_v30 = vadd.f32 %v4401_v10, %v4400_v21  ;;  %v4403_v32 = vpop.f32.mrb[34].mxu0  ;;  %v2331_v20 = vadd.f32 %v5926_v15, %v5907_v55 }
 0x141   : > { %v4304_v39 = vpop.f32.mrb[35].mxu1  ;;  %v4404_v41 = vpop.f32.mrb[35].mxu0 }
 0x142   : > { %v2465_v47 = vadd.f32 %v4302_v27, %v2320_v26  ;;  %v4305_v48 = vadd.f32 %v4304_v39, %v4303_v28  ;;  %v4405_v49 = vadd.f32 %v4404_v41, %v4403_v32  ;;  %v5221_v32 = vld [vmem:[%s5465_s24 + $0x110] ss:$56 sps:$4 sm:$0xff]  }
 0x143   : > { %3035 = vmatmul.mubr.bf16.vlgmr.msra.gmra.mrb[140].mxu1 %v5204_v23  ;;  %3180 = vmatmul.mubr.bf16.vlgmr.msra.gmra.mrb[140].mxu0 %v5207_v24 }
 0x144   : > { %v2468_v50 = vadd.f32 %v4305_v48, %v2323_v45  ;;  %v6008_v51 = vadd.f32 %v4402_v30, %v2465_v47  ;;  %3042 = vmatprep.mubr.bf16.mxu1 %v5210_v37  ;;  %4096 = vmatprep.mubr.msk.bf16.mxu0 %vm2234_vm0, %v5213_v38  ;;  %v5218_v30 = vld [vmem:[%s5465_s24 + $0x108] ss:$56 sps:$4 sm:$0xff]   ;;  %v2336_v37 = vadd.f32 %v5933_v25, %v5907_v55  ;;  %v5222_v47 = vld [vmem:[%s5465_s24 + $0x17c] ss:$56 sps:$4 sm:$0xff]  }
 0x145   : > { %v5225_v48 = vld [vmem:[%s5465_s24 + $0x184] ss:$56 sps:$4 sm:$0xff]  }
 0x146   : > { %v6011_v52 = vadd.f32 %v4405_v49, %v2468_v50  ;;  %v4306_v54 = vpop.f32.mrb[36].mxu1  ;;  %v4406_v59 = vpop.f32.mrb[36].mxu0 }
 0x147   : > { %v4307_v62 = vpop.f32.mrb[37].mxu1  ;;  %v4407_v60 = vpop.f32.mrb[37].mxu0 }
 0x148   : > { %v4308_v2 = vadd.f32 %v4307_v62, %v4306_v54  ;;  %v4309_v3 = vpop.f32.mrb[38].mxu1  ;;  %v4408_v4 = vadd.f32 %v4407_v60, %v4406_v59  ;;  %v4409_v7 = vpop.f32.mrb[38].mxu0  ;;  %v2339_v54 = vadd.f32 %v5940_v33, %v5907_v55 }
 0x149   : > { %v4310_v11 = vpop.f32.mrb[39].mxu1  ;;  %v4410_v36 = vpop.f32.mrb[39].mxu0 }
 0x14a   : > { %v2473_v21 = vadd.f32 %v4308_v2, %v2328_v1  ;;  %v4311_v22 = vadd.f32 %v4310_v11, %v4309_v3  ;;  %v4411_v10 = vadd.f32 %v4410_v36, %v4409_v7  ;;  %v5227_v7 = vld [vmem:[%s5465_s24 + $0x180] ss:$56 sps:$4 sm:$0xff]  }
 0x14b   : > { %3043 = vmatmul.mubr.bf16.gmra.mrb[144].mxu1 %v5212_v63  ;;  %3188 = vmatmul.mubr.bf16.gmra.mrb[144].mxu0 %v5215_v0 }
 0x14c   : > { %v2476_v23 = vadd.f32 %v4311_v22, %v2331_v20  ;;  %v6021_v6 = vadd.f32 %v4408_v4, %v2473_v21  ;;  %3050 = vmatprep.mubr.bf16.mxu1 %v5216_v8  ;;  %4097 = vmatprep.mubr.msk.bf16.mxu0 %vm2234_vm0, %v5219_v9  ;;  %v5224_v4 = vld [vmem:[%s5465_s24 + $0x178] ss:$56 sps:$4 sm:$0xff]   ;;  %v2344_v8 = vadd.f32 %v5947_v46, %v5907_v55  ;;  %v5228_v21 = vld [vmem:[%s5465_s24 + $0x1ec] ss:$56 sps:$4 sm:$0xff]  }
 0x14d   : > { %v5231_v22 = vld [vmem:[%s5465_s24 + $0x1f4] ss:$56 sps:$4 sm:$0xff]  }
 0x14e   : > { %v6024_v24 = vadd.f32 %v4411_v10, %v2476_v23  ;;  %v4312_v26 = vpop.f32.mrb[40].mxu1  ;;  %v4412_v27 = vpop.f32.mrb[40].mxu0 }
 0x14f   : > { %v4313_v28 = vpop.f32.mrb[41].mxu1  ;;  %v4413_v15 = vpop.f32.mrb[41].mxu0 }
 0x150   : > { %v4314_v38 = vadd.f32 %v4313_v28, %v4312_v26  ;;  %v4315_v39 = vpop.f32.mrb[42].mxu1  ;;  %v4414_v41 = vadd.f32 %v4413_v15, %v4412_v27  ;;  %v4415_v45 = vpop.f32.mrb[42].mxu0  ;;  %v2347_v26 = vadd.f32 %v5954_v56, %v5907_v55 }
 0x151   : > { %v4316_v49 = vpop.f32.mrb[43].mxu1  ;;  %v4416_v50 = vpop.f32.mrb[43].mxu0 }
 0x152   : > { %v2481_v59 = vadd.f32 %v4314_v38, %v2336_v37  ;;  %v4317_v62 = vadd.f32 %v4316_v49, %v4315_v39  ;;  %v4417_v60 = vadd.f32 %v4416_v50, %v4415_v45  ;;  %v5233_v45 = vld [vmem:[%s5465_s24 + $0x1f0] ss:$56 sps:$4 sm:$0xff]  }
 0x153   : > { %3051 = vmatmul.mubr.bf16.gmra.mrb[148].mxu1 %v5218_v30  ;;  %3196 = vmatmul.mubr.bf16.gmra.mrb[148].mxu0 %v5221_v32 }
 0x154   : > { %v2484_v63 = vadd.f32 %v4317_v62, %v2339_v54  ;;  %v6034_v25 = vadd.f32 %v4414_v41, %v2481_v59  ;;  %3058 = vmatprep.mubr.bf16.mxu1 %v5222_v47  ;;  %4098 = vmatprep.mubr.msk.bf16.mxu0 %vm2234_vm0, %v5225_v48  ;;  %v5230_v41 = vld [vmem:[%s5465_s24 + $0x1e8] ss:$56 sps:$4 sm:$0xff]   ;;  %v2352_v47 = vadd.f32 %v5961_v5, %v5907_v55  ;;  %v5234_v59 = vld [vmem:[%s5465_s24 + $0x25c] ss:$56 sps:$4 sm:$0xff]  }
 0x155   : > { %v5237_v62 = vld [vmem:[%s5465_s24 + $0x264] ss:$56 sps:$4 sm:$0xff]  }
 0x156   : > { %v6037_v0 = vadd.f32 %v4417_v60, %v2484_v63  ;;  %v4318_v1 = vpop.f32.mrb[44].mxu1  ;;  %v4418_v2 = vpop.f32.mrb[44].mxu0 }
 0x157   : > { %v4319_v3 = vpop.f32.mrb[45].mxu1  ;;  %v4419_v33 = vpop.f32.mrb[45].mxu0 }
 0x158   : > { %v4320_v9 = vadd.f32 %v4319_v3, %v4318_v1  ;;  %v4321_v11 = vpop.f32.mrb[46].mxu1  ;;  %v4420_v36 = vadd.f32 %v4419_v33, %v4418_v2  ;;  %v4421_v20 = vpop.f32.mrb[46].mxu0  ;;  %v2355_v1 = vadd.f32 %v5968_v18, %v5907_v55 }
 0x159   : > { %v4322_v10 = vpop.f32.mrb[47].mxu1  ;;  %v4422_v23 = vpop.f32.mrb[47].mxu0 }
 0x15a   : > { %v2489_v27 = vadd.f32 %v4320_v9, %v2344_v8  ;;  %v4323_v28 = vadd.f32 %v4322_v10, %v4321_v11  ;;  %v4423_v15 = vadd.f32 %v4422_v23, %v4421_v20  ;;  %v5239_v20 = vld [vmem:[%s5465_s24 + $0x260] ss:$56 sps:$4 sm:$0xff]  }
 0x15b   : > { %3059 = vmatmul.mubr.bf16.gmra.mrb[152].mxu1 %v5224_v4  ;;  %3204 = vmatmul.mubr.bf16.gmra.mrb[152].mxu0 %v5227_v7 }
 0x15c   : > { %v2492_v30 = vadd.f32 %v4323_v28, %v2347_v26  ;;  %v6047_v46 = vadd.f32 %v4420_v36, %v2489_v27  ;;  %3066 = vmatprep.mubr.bf16.mxu1 %v5228_v21  ;;  %4099 = vmatprep.mubr.msk.bf16.mxu0 %vm2234_vm0, %v5231_v22  ;;  %v5236_v36 = vld [vmem:[%s5465_s24 + $0x258] ss:$56 sps:$4 sm:$0xff]   ;;  %v2360_v21 = vadd.f32 %v5975_v29, %v5907_v55  ;;  %v5240_v27 = vld [vmem:[%s5465_s24 + $0x2cc] ss:$56 sps:$4 sm:$0xff]  }
 0x15d   : > { %v5243_v28 = vld [vmem:[%s5465_s24 + $0x2d4] ss:$56 sps:$4 sm:$0xff]  }
 0x15e   : > { %v6050_v32 = vadd.f32 %v4423_v15, %v2492_v30  ;;  %v4324_v37 = vpop.f32.mrb[48].mxu1  ;;  %v4424_v38 = vpop.f32.mrb[48].mxu0 }
 0x15f   : > { %v4325_v39 = vpop.f32.mrb[49].mxu1  ;;  %v4425_v56 = vpop.f32.mrb[49].mxu0 }
 0x160   : > { %v4326_v48 = vadd.f32 %v4325_v39, %v4324_v37  ;;  %v4327_v49 = vpop.f32.mrb[50].mxu1  ;;  %v4426_v50 = vadd.f32 %v4425_v56, %v4424_v38  ;;  %v4427_v54 = vpop.f32.mrb[50].mxu0  ;;  %v2363_v37 = vadd.f32 %v5982_v43, %v5907_v55 }
 0x161   : > { %v4328_v60 = vpop.f32.mrb[51].mxu1  ;;  %v4428_v63 = vpop.f32.mrb[51].mxu0 }
 0x162   : > { %v2497_v2 = vadd.f32 %v4326_v48, %v2352_v47  ;;  %v4329_v3 = vadd.f32 %v4328_v60, %v4327_v49  ;;  %v4429_v33 = vadd.f32 %v4428_v63, %v4427_v54  ;;  %v5245_v54 = vld [vmem:[%s5465_s24 + $0x2d0] ss:$56 sps:$4 sm:$0xff]  }
 0x163   : > { %3067 = vmatmul.mubr.bf16.gmra.mrb[156].mxu1 %v5230_v41  ;;  %3212 = vmatmul.mubr.bf16.gmra.mrb[156].mxu0 %v5233_v45 }
 0x164   : > { %v2500_v4 = vadd.f32 %v4329_v3, %v2355_v1  ;;  %v6060_v5 = vadd.f32 %v4426_v50, %v2497_v2  ;;  %3074 = vmatprep.mubr.bf16.mxu1 %v5234_v59  ;;  %4100 = vmatprep.mubr.msk.bf16.mxu0 %vm2234_vm0, %v5237_v62  ;;  %v5242_v50 = vld [vmem:[%s5465_s24 + $0x2c8] ss:$56 sps:$4 sm:$0xff]   ;;  %v2368_v59 = vadd.f32 %v5888_v34, %v5907_v55  ;;  %v5246_v2 = vld [vmem:[%s5465_s24 + $0x33c] ss:$56 sps:$4 sm:$0xff]  }
 0x165   : > { %v5249_v3 = vld [vmem:[%s5465_s24 + $0x344] ss:$56 sps:$4 sm:$0xff]  }
 0x166   : > { %v6063_v7 = vadd.f32 %v4429_v33, %v2500_v4  ;;  %v4330_v8 = vpop.f32.mrb[52].mxu1  ;;  %v4430_v9 = vpop.f32.mrb[52].mxu0 }
 0x167   : > { %v4331_v11 = vpop.f32.mrb[53].mxu1  ;;  %v4431_v18 = vpop.f32.mrb[53].mxu0 }
 0x168   : > { %v4332_v22 = vadd.f32 %v4331_v11, %v4330_v8  ;;  %v4333_v10 = vpop.f32.mrb[54].mxu1  ;;  %v4432_v23 = vadd.f32 %v4431_v18, %v4430_v9  ;;  %v4433_v26 = vpop.f32.mrb[54].mxu0  ;;  %v2371_v8 = vadd.f32 %v5894_v42, %v5907_v55  ;;  %v5248_v55 = vld [vmem:[%s5465_s24 + $0x338] ss:$56 sps:$4 sm:$0xff]  }
 0x169   : > { %v4334_v15 = vpop.f32.mrb[55].mxu1  ;;  %v4434_v30 = vpop.f32.mrb[55].mxu0 }
 0x16a   : > { %v2505_v38 = vadd.f32 %v4332_v22, %v2360_v21  ;;  %v4335_v39 = vadd.f32 %v4334_v15, %v4333_v10  ;;  %v4435_v56 = vadd.f32 %v4434_v30, %v4433_v26  ;;  %v5252_v30 = vld [vmem:[%s5465_s24 + $0x3ac] ss:$56 sps:$4 sm:$0xff]  }
 0x16b   : > { %3075 = vmatmul.mubr.bf16.gmra.mrb[160].mxu1 %v5236_v36  ;;  %3220 = vmatmul.mubr.bf16.gmra.mrb[160].mxu0 %v5239_v20 }
 0x16c   : > { %v2508_v41 = vadd.f32 %v4335_v39, %v2363_v37  ;;  %v6073_v29 = vadd.f32 %v4432_v23, %v2505_v38  ;;  %3082 = vmatprep.mubr.bf16.mxu1 %v5240_v27  ;;  %4101 = vmatprep.mubr.msk.bf16.mxu0 %vm2234_vm0, %v5243_v28  ;;  %v5251_v23 = vld [vmem:[%s5465_s24 + $0x340] ss:$56 sps:$4 sm:$0xff]   ;;  %v5255_v37 = vld [vmem:[%s5465_s24 + $0x3b4] ss:$56 sps:$4 sm:$0xff]  }
 0x16e   : > { %v6076_v45 = vadd.f32 %v4435_v56, %v2508_v41  ;;  %v4336_v47 = vpop.f32.mrb[56].mxu1  ;;  %v4436_v48 = vpop.f32.mrb[56].mxu0 }
 0x16f   : > { %v4337_v49 = vpop.f32.mrb[57].mxu1  ;;  %v4437_v43 = vpop.f32.mrb[57].mxu0 }
 0x170   : > { %v4338_v62 = vadd.f32 %v4337_v49, %v4336_v47  ;;  %v4339_v60 = vpop.f32.mrb[58].mxu1  ;;  %v4438_v63 = vadd.f32 %v4437_v43, %v4436_v48  ;;  %v4439_v1 = vpop.f32.mrb[58].mxu0 }
 0x171   : > { %v4340_v33 = vpop.f32.mrb[59].mxu1  ;;  %v4440_v4 = vpop.f32.mrb[59].mxu0 }
 0x172   : > { %v2513_v9 = vadd.f32 %v4338_v62, %v2368_v59  ;;  %v4341_v11 = vadd.f32 %v4340_v33, %v4339_v60  ;;  %v4441_v18 = vadd.f32 %v4440_v4, %v4439_v1  ;;  %v5257_v60 = vld [vmem:[%s5465_s24 + $0x3b0] ss:$56 sps:$4 sm:$0xff]   ;;  %v5258_v33 = vld [vmem:[%s5465_s24 + $0x41c] ss:$56 sps:$4 sm:$0xff]  }
 0x173   : > { %3083 = vmatmul.mubr.bf16.gmra.mrb[164].mxu1 %v5242_v50  ;;  %3228 = vmatmul.mubr.bf16.gmra.mrb[164].mxu0 %v5245_v54 }
 0x174   : > { %v2516_v34 = vadd.f32 %v4341_v11, %v2371_v8  ;;  %v6086_v36 = vadd.f32 %v4438_v63, %v2513_v9  ;;  %3090 = vmatprep.mubr.bf16.mxu1 %v5246_v2  ;;  %4102 = vmatprep.mubr.msk.bf16.mxu0 %vm2234_vm0, %v5249_v3 }
 0x176   : > { %v6089_v20 = vadd.f32 %v4441_v18, %v2516_v34  ;;  %v4342_v21 = vpop.f32.mrb[60].mxu1  ;;  %v4442_v22 = vpop.f32.mrb[60].mxu0 }
 0x177   : > { %v4343_v10 = vpop.f32.mrb[61].mxu1  ;;  %v4443_v42 = vpop.f32.mrb[61].mxu0 }
 0x178   : > { %v4344_v26 = vadd.f32 %v4343_v10, %v4342_v21  ;;  %v4345_v27 = vpop.f32.mrb[62].mxu1  ;;  %v4444_v28 = vadd.f32 %v4443_v42, %v4442_v22  ;;  %v4445_v15 = vpop.f32.mrb[62].mxu0 }
 0x179   : > { %v4346_v38 = vpop.f32.mrb[63].mxu1  ;;  %v4446_v39 = vpop.f32.mrb[63].mxu0 }
 0x17a   : > { %v2521_v56 = vadd.f32 %v4344_v26, %v5910_v58  ;;  %v4347_v41 = vadd.f32 %v4346_v38, %v4345_v27  ;;  %v4447_v47 = vadd.f32 %v4446_v39, %v4445_v15  ;;  %v5254_v58 = vld [vmem:[%s5465_s24 + $0x3a8] ss:$56 sps:$4 sm:$0xff]  }
 0x17b   : > { %3091 = vmatmul.mubr.bf16.gmra.mrb[168].mxu1 %v5248_v55  ;;  %3236 = vmatmul.mubr.bf16.gmra.mrb[168].mxu0 %v5251_v23  ;;  %v5263_v26 = vld [vmem:[%s5465_s24 + $0x420] ss:$56 sps:$4 sm:$0xff]  }
 0x17c   : > { %v2524_v48 = vadd.f32 %v4347_v41, %v5915_v61  ;;  %v6097_v49 = vadd.f32 %v4444_v28, %v2521_v56  ;;  %3098 = vmatprep.mubr.bf16.mxu1 %v5252_v30  ;;  %4103 = vmatprep.mubr.msk.bf16.mxu0 %vm2234_vm0, %v5255_v37  ;;  %v5261_v61 = vld [vmem:[%s5465_s24 + $0x424] ss:$56 sps:$4 sm:$0xff]  }
 0x17d   : > { %v5264_v37 = vld [vmem:[%s5465_s24 + $0x48c] ss:$56 sps:$4 sm:$0xff]  }
 0x17e   : > { %v6100_v43 = vadd.f32 %v4447_v47, %v2524_v48  ;;  %v4348_v50 = vpop.f32.mrb[64].mxu1  ;;  %v4448_v54 = vpop.f32.mrb[64].mxu0 }
 0x17f   : > { %v4349_v59 = vpop.f32.mrb[65].mxu1  ;;  %v4449_v62 = vpop.f32.mrb[65].mxu0 }
 0x180   : > { %v4350_v63 = vadd.f32 %v4349_v59, %v4348_v50  ;;  %v4351_v1 = vpop.f32.mrb[66].mxu1  ;;  %v4450_v2 = vadd.f32 %v4449_v62, %v4448_v54  ;;  %v4451_v3 = vpop.f32.mrb[66].mxu0 }
 0x181   : > { %v4352_v4 = vpop.f32.mrb[67].mxu1  ;;  %v4452_v8 = vpop.f32.mrb[67].mxu0 }
 0x182   : > { %v2529_v9 = vadd.f32 %v4350_v63, %v5924_v13  ;;  %v4353_v11 = vadd.f32 %v4352_v4, %v4351_v1  ;;  %v4453_v18 = vadd.f32 %v4452_v8, %v4451_v3  ;;  %v5260_v13 = vld [vmem:[%s5465_s24 + $0x418] ss:$56 sps:$4 sm:$0xff]  }
 0x183   : > { %3099 = vmatmul.mubr.bf16.gmra.mrb[172].mxu1 %v5254_v58  ;;  %3244 = vmatmul.mubr.bf16.gmra.mrb[172].mxu0 %v5257_v60  ;;  %v5269_v63 = vld [vmem:[%s5465_s24 + $0x490] ss:$56 sps:$4 sm:$0xff]  }
 0x184   : > { %v2532_v34 = vadd.f32 %v4353_v11, %v5929_v16  ;;  %v6108_v21 = vadd.f32 %v4450_v2, %v2529_v9  ;;  %3106 = vmatprep.mubr.bf16.mxu1 %v5258_v33  ;;  %4104 = vmatprep.mubr.msk.bf16.mxu0 %vm2234_vm0, %v5261_v61  ;;  %v5267_v16 = vld [vmem:[%s5465_s24 + $0x494] ss:$56 sps:$4 sm:$0xff]  }
 0x185   : > { %v5270_v61 = vld [vmem:[%s5465_s24 + $0x4fc] ss:$56 sps:$4 sm:$0xff]  }
 0x186   : > { %v6111_v22 = vadd.f32 %v4453_v18, %v2532_v34  ;;  %v4354_v10 = vpop.f32.mrb[68].mxu1  ;;  %v4454_v42 = vpop.f32.mrb[68].mxu0 }
 0x187   : > { %v4355_v55 = vpop.f32.mrb[69].mxu1  ;;  %v4455_v23 = vpop.f32.mrb[69].mxu0 }
 0x188   : > { %v4356_v27 = vadd.f32 %v4355_v55, %v4354_v10  ;;  %v4357_v28 = vpop.f32.mrb[70].mxu1  ;;  %v4456_v15 = vadd.f32 %v4455_v23, %v4454_v42  ;;  %v4457_v30 = vpop.f32.mrb[70].mxu0 }
 0x189   : > { %v4358_v38 = vpop.f32.mrb[71].mxu1  ;;  %v4458_v39 = vpop.f32.mrb[71].mxu0 }
 0x18a   : > { %v2537_v56 = vadd.f32 %v4356_v27, %v5938_v31  ;;  %v4359_v41 = vadd.f32 %v4358_v38, %v4357_v28  ;;  %v4459_v47 = vadd.f32 %v4458_v39, %v4457_v30  ;;  %v5266_v31 = vld [vmem:[%s5465_s24 + $0x488] ss:$56 sps:$4 sm:$0xff]  }
 0x18b   : > { %3107 = vmatmul.mubr.bf16.gmra.mrb[176].mxu1 %v5260_v13  ;;  %3252 = vmatmul.mubr.bf16.gmra.mrb[176].mxu0 %v5263_v26  ;;  %v5275_v27 = vld [vmem:[%s5465_s24 + $0x500] ss:$56 sps:$4 sm:$0xff]  }
 0x18c   : > { %v2540_v48 = vadd.f32 %v4359_v41, %v5943_v35  ;;  %v6119_v50 = vadd.f32 %v4456_v15, %v2537_v56  ;;  %3114 = vmatprep.mubr.bf16.mxu1 %v5264_v37  ;;  %4105 = vmatprep.mubr.msk.bf16.mxu0 %vm2234_vm0, %v5267_v16  ;;  %v5273_v35 = vld [vmem:[%s5465_s24 + $0x504] ss:$56 sps:$4 sm:$0xff]  }
 0x18d   : > { %v5276_v16 = vld [vmem:[%s5465_s24 + $0x56c] ss:$56 sps:$4 sm:$0xff]  }
 0x18e   : > { %v6122_v54 = vadd.f32 %v4459_v47, %v2540_v48  ;;  %v4360_v59 = vpop.f32.mrb[72].mxu1  ;;  %v4460_v62 = vpop.f32.mrb[72].mxu0 }
 0x18f   : > { %v4361_v58 = vpop.f32.mrb[73].mxu1  ;;  %v4461_v60 = vpop.f32.mrb[73].mxu0 }
 0x190   : > { %v4362_v1 = vadd.f32 %v4361_v58, %v4360_v59  ;;  %v4363_v2 = vpop.f32.mrb[74].mxu1  ;;  %v4462_v3 = vadd.f32 %v4461_v60, %v4460_v62  ;;  %v4463_v33 = vpop.f32.mrb[74].mxu0 }
 0x191   : > { %v4364_v4 = vpop.f32.mrb[75].mxu1  ;;  %v4464_v8 = vpop.f32.mrb[75].mxu0 }
 0x192   : > { %v2545_v9 = vadd.f32 %v4362_v1, %v5952_v53  ;;  %v4365_v11 = vadd.f32 %v4364_v4, %v4363_v2  ;;  %v4465_v18 = vadd.f32 %v4464_v8, %v4463_v33  ;;  %v5272_v53 = vld [vmem:[%s5465_s24 + $0x4f8] ss:$56 sps:$4 sm:$0xff]  }
 0x193   : > { %3115 = vmatmul.mubr.bf16.gmra.mrb[180].mxu1 %v5266_v31  ;;  %3260 = vmatmul.mubr.bf16.gmra.mrb[180].mxu0 %v5269_v63  ;;  %v5281_v1 = vld [vmem:[%s5465_s24 + $0x570] ss:$56 sps:$4 sm:$0xff]  }
 0x194   : > { %v2548_v34 = vadd.f32 %v4365_v11, %v5957_v57  ;;  %v6130_v10 = vadd.f32 %v4462_v3, %v2545_v9  ;;  %3122 = vmatprep.mubr.bf16.mxu1 %v5270_v61  ;;  %4106 = vmatprep.mubr.msk.bf16.mxu0 %vm2234_vm0, %v5273_v35  ;;  %v5279_v57 = vld [vmem:[%s5465_s24 + $0x574] ss:$56 sps:$4 sm:$0xff]  }
 0x195   : > { %v5282_v35 = vld [vmem:[%s5465_s24 + $0x5dc] ss:$56 sps:$4 sm:$0xff]  }
 0x196   : > { %v6133_v42 = vadd.f32 %v4465_v18, %v2548_v34  ;;  %v4366_v55 = vpop.f32.mrb[76].mxu1  ;;  %v4466_v23 = vpop.f32.mrb[76].mxu0 }
 0x197   : > { %v4367_v13 = vpop.f32.mrb[77].mxu1  ;;  %v4467_v26 = vpop.f32.mrb[77].mxu0 }
 0x198   : > { %v4368_v28 = vadd.f32 %v4367_v13, %v4366_v55  ;;  %v4369_v15 = vpop.f32.mrb[78].mxu1  ;;  %v4468_v30 = vadd.f32 %v4467_v26, %v4466_v23  ;;  %v4469_v37 = vpop.f32.mrb[78].mxu0 }
 0x199   : > { %v4370_v38 = vpop.f32.mrb[79].mxu1  ;;  %v4470_v39 = vpop.f32.mrb[79].mxu0 }
 0x19a   : > { %v2553_v56 = vadd.f32 %v4368_v28, %v5966_v14  ;;  %v4371_v41 = vadd.f32 %v4370_v38, %v4369_v15  ;;  %v4471_v47 = vadd.f32 %v4470_v39, %v4469_v37  ;;  %v5278_v14 = vld [vmem:[%s5465_s24 + $0x568] ss:$56 sps:$4 sm:$0xff]   ;;  %v5284_v28 = vld [vmem:[%s5465_s24 + $0x5d8] ss:$56 sps:$4 sm:$0xff]  }
 0x19b   : > { %3123 = vmatmul.mubr.bf16.gmra.mrb[184].mxu1 %v5272_v53  ;;  %3268 = vmatmul.mubr.bf16.gmra.mrb[184].mxu0 %v5275_v27  ;;  %v5287_v15 = vld [vmem:[%s5465_s24 + $0x5e0] ss:$56 sps:$4 sm:$0xff]  }
 0x19c   : > { %v2556_v48 = vadd.f32 %v4371_v41, %v5971_v19  ;;  %v6141_v59 = vadd.f32 %v4468_v30, %v2553_v56  ;;  %3130 = vmatprep.mubr.bf16.mxu1 %v5276_v16  ;;  %4107 = vmatprep.mubr.msk.bf16.mxu0 %vm2234_vm0, %v5279_v57  ;;  %v5285_v19 = vld [vmem:[%s5465_s24 + $0x5e4] ss:$56 sps:$4 sm:$0xff]   ;;  %s175_s24 = sand.u32 1, %s5338_s12  }
 0x19d   : > { %s4794_s8 = smul.u32 112, %s175_s24 }
 0x19e   : > { %v6144_v62 = vadd.f32 %v4471_v47, %v2556_v48  ;;  %v4372_v58 = vpop.f32.mrb[80].mxu1  ;;  %v4472_v60 = vpop.f32.mrb[80].mxu0 }
 0x19f   : > { %v4373_v31 = vpop.f32.mrb[81].mxu1  ;;  %v4473_v63 = vpop.f32.mrb[81].mxu0  ;;  %s6246_s12 = scalar_lea.vmem [#allocation2], %s4794_s8  }
 0x1a0   : > { %v4374_v2 = vadd.f32 %v4373_v31, %v4372_v58  ;;  %v4375_v3 = vpop.f32.mrb[82].mxu1  ;;  %v4474_v33 = vadd.f32 %v4473_v63, %v4472_v60  ;;  %v4475_v61 = vpop.f32.mrb[82].mxu0 }
 0x1a1   : > { %v4376_v4 = vpop.f32.mrb[83].mxu1  ;;  %v4476_v8 = vpop.f32.mrb[83].mxu0 }
 0x1a2   : > { %v2561_v9 = vadd.f32 %v4374_v2, %v5980_v40  ;;  %v4377_v11 = vadd.f32 %v4376_v4, %v4375_v3  ;;  %v4477_v18 = vadd.f32 %v4476_v8, %v4475_v61 }
 0x1a3   : > { %3131 = vmatmul.mubr.bf16.gmra.mrb[188].mxu1 %v5278_v14  ;;  %3276 = vmatmul.mubr.bf16.gmra.mrb[188].mxu0 %v5281_v1 }
 0x1a4   : > { %v2564_v34 = vadd.f32 %v4377_v11, %v5985_v44  ;;  %v6152_v55 = vadd.f32 %v4474_v33, %v2561_v9  ;;  %3138 = vmatprep.mubr.bf16.mxu1 %v5282_v35  ;;  %4108 = vmatprep.mubr.msk.bf16.mxu0 %vm2234_vm0, %v5285_v19 }
 0x1a6   : > { %v6155_v23 = vadd.f32 %v4477_v18, %v2564_v34  ;;  %v4494_v13 = vpop.f32.mrb[84].mxu1  ;;  %v4594_v26 = vpop.f32.mrb[84].mxu0 }
 0x1a7   : > { %v4495_v53 = vpop.f32.mrb[85].mxu1  ;;  %v4595_v27 = vpop.f32.mrb[85].mxu0 }
 0x1a8   : > { %v4496_v40 = vadd.f32 %v4495_v53, %v4494_v13  ;;  %v4497_v30 = vpop.f32.mrb[86].mxu1  ;;  %v4596_v37 = vadd.f32 %v4595_v27, %v4594_v26  ;;  %v4597_v16 = vpop.f32.mrb[86].mxu0 }
 0x1a9   : > { %v4498_v57 = vpop.f32.mrb[87].mxu1  ;;  %v4598_v38 = vpop.f32.mrb[87].mxu0 }
 0x1aa   : > { %v2747_v44 = vadd.f32 %v4496_v40, %v5995_v12  ;;  %v4499_v39 = vadd.f32 %v4498_v57, %v4497_v30  ;;  %v4599_v56 = vadd.f32 %v4598_v38, %v4597_v16 }
 0x1ab   : > { %3139 = vmatmul.mubr.bf16.gmra.mrb[192].mxu1 %v5284_v28  ;;  %3284 = vmatmul.mubr.bf16.gmra.mrb[192].mxu0 %v5287_v15 }
 0x1ac   : > { %v2750_v41 = vadd.f32 %v4499_v39, %v5998_v17  ;;  %v6161_v47 = vadd.f32 %v4596_v37, %v2747_v44 }
 0x1ae   : > { %v6163_v48 = vadd.f32 %v4599_v56, %v2750_v41  ;;  %v4500_v58 = vpop.f32.mrb[88].mxu1  ;;  %v4600_v60 = vpop.f32.mrb[88].mxu0 }
 0x1af   : > { %v4501_v31 = vpop.f32.mrb[89].mxu1  ;;  %v4601_v63 = vpop.f32.mrb[89].mxu0 }
 0x1b0   : > { %v4502_v14 = vadd.f32 %v4501_v31, %v4500_v58  ;;  %v4503_v1 = vpop.f32.mrb[90].mxu1  ;;  %v4602_v2 = vadd.f32 %v4601_v63, %v4600_v60  ;;  %v4603_v3 = vpop.f32.mrb[90].mxu0 }
 0x1b1   : > { %v4504_v33 = vpop.f32.mrb[91].mxu1  ;;  %v4604_v12 = vpop.f32.mrb[91].mxu0 }
 0x1b2   : > { %v2755_v61 = vadd.f32 %v4502_v14, %v6008_v51  ;;  %v4505_v35 = vadd.f32 %v4504_v33, %v4503_v1  ;;  %v4605_v19 = vadd.f32 %v4604_v12, %v4603_v3 }
 0x1b4   : > { %v2758_v17 = vadd.f32 %v4505_v35, %v6011_v52  ;;  %v6167_v4 = vadd.f32 %v4602_v2, %v2755_v61 }
 0x1b6   : > { %v6169_v8 = vadd.f32 %v4605_v19, %v2758_v17  ;;  %v4506_v9 = vpop.f32.mrb[92].mxu1  ;;  %v4606_v11 = vpop.f32.mrb[92].mxu0 }
 0x1b7   : > { %v4507_v18 = vpop.f32.mrb[93].mxu1  ;;  %v4607_v34 = vpop.f32.mrb[93].mxu0 }
 0x1b8   : > { %v4508_v13 = vadd.f32 %v4507_v18, %v4506_v9  ;;  %v4509_v26 = vpop.f32.mrb[94].mxu1  ;;  %v4608_v53 = vadd.f32 %v4607_v34, %v4606_v11  ;;  %v4609_v27 = vpop.f32.mrb[94].mxu0 }
 0x1b9   : > { %v4510_v28 = vpop.f32.mrb[95].mxu1  ;;  %v4610_v15 = vpop.f32.mrb[95].mxu0 }
 0x1ba   : > { %v2763_v51 = vadd.f32 %v4508_v13, %v6021_v6  ;;  %v4511_v40 = vadd.f32 %v4510_v28, %v4509_v26  ;;  %v4611_v30 = vadd.f32 %v4610_v15, %v4609_v27 }
 0x1bc   : > { %v2766_v52 = vadd.f32 %v4511_v40, %v6024_v24  ;;  %v6173_v37 = vadd.f32 %v4608_v53, %v2763_v51 }
 0x1be   : > { %v6175_v16 = vadd.f32 %v4611_v30, %v2766_v52  ;;  %v4512_v57 = vpop.f32.mrb[96].mxu1  ;;  %v4612_v38 = vpop.f32.mrb[96].mxu0 }
 0x1bf   : > { %v4513_v44 = vpop.f32.mrb[97].mxu1  ;;  %v4613_v39 = vpop.f32.mrb[97].mxu0 }
 0x1c0   : > { %v4514_v56 = vadd.f32 %v4513_v44, %v4512_v57  ;;  %v4515_v41 = vpop.f32.mrb[98].mxu1  ;;  %v4614_v58 = vadd.f32 %v4613_v39, %v4612_v38  ;;  %v4615_v60 = vpop.f32.mrb[98].mxu0 }
 0x1c1   : > { %v4516_v31 = vpop.f32.mrb[99].mxu1  ;;  %v4616_v63 = vpop.f32.mrb[99].mxu0 }
 0x1c2   : > { %v2771_v6 = vadd.f32 %v4514_v56, %v6034_v25  ;;  %v4517_v14 = vadd.f32 %v4516_v31, %v4515_v41  ;;  %v4617_v1 = vadd.f32 %v4616_v63, %v4615_v60 }
 0x1c4   : > { %v2774_v24 = vadd.f32 %v4517_v14, %v6037_v0  ;;  %v6179_v2 = vadd.f32 %v4614_v58, %v2771_v6 }
 0x1c6   : > { %v6181_v3 = vadd.f32 %v4617_v1, %v2774_v24  ;;  %v4518_v33 = vpop.f32.mrb[100].mxu1  ;;  %v4618_v12 = vpop.f32.mrb[100].mxu0 }
 0x1c7   : > { %v4519_v61 = vpop.f32.mrb[101].mxu1  ;;  %v4619_v35 = vpop.f32.mrb[101].mxu0 }
 0x1c8   : > { %v4520_v19 = vadd.f32 %v4519_v61, %v4518_v33  ;;  %v4521_v17 = vpop.f32.mrb[102].mxu1  ;;  %v4620_v9 = vadd.f32 %v4619_v35, %v4618_v12  ;;  %v4621_v11 = vpop.f32.mrb[102].mxu0 }
 0x1c9   : > { %v4522_v18 = vpop.f32.mrb[103].mxu1  ;;  %v4622_v34 = vpop.f32.mrb[103].mxu0 }
 0x1ca   : > { %v2779_v25 = vadd.f32 %v4520_v19, %v6047_v46  ;;  %v4523_v13 = vadd.f32 %v4522_v18, %v4521_v17  ;;  %v4623_v26 = vadd.f32 %v4622_v34, %v4621_v11 }
 0x1cc   : > { %v2782_v0 = vadd.f32 %v4523_v13, %v6050_v32  ;;  %v6185_v53 = vadd.f32 %v4620_v9, %v2779_v25 }
 0x1ce   : > { %v6187_v27 = vadd.f32 %v4623_v26, %v2782_v0  ;;  %v4524_v28 = vpop.f32.mrb[104].mxu1  ;;  %v4624_v15 = vpop.f32.mrb[104].mxu0 }
 0x1cf   : > { %v4525_v51 = vpop.f32.mrb[105].mxu1  ;;  %v4625_v40 = vpop.f32.mrb[105].mxu0 }
 0x1d0   : > { %v4526_v30 = vadd.f32 %v4525_v51, %v4524_v28  ;;  %v4527_v52 = vpop.f32.mrb[106].mxu1  ;;  %v4626_v57 = vadd.f32 %v4625_v40, %v4624_v15  ;;  %v4627_v38 = vpop.f32.mrb[106].mxu0 }
 0x1d1   : > { %v4528_v44 = vpop.f32.mrb[107].mxu1  ;;  %v4628_v39 = vpop.f32.mrb[107].mxu0 }
 0x1d2   : > { %v2787_v46 = vadd.f32 %v4526_v30, %v6060_v5  ;;  %v4529_v56 = vadd.f32 %v4528_v44, %v4527_v52  ;;  %v4629_v41 = vadd.f32 %v4628_v39, %v4627_v38 }
 0x1d4   : > { %v2790_v32 = vadd.f32 %v4529_v56, %v6063_v7  ;;  %v6191_v58 = vadd.f32 %v4626_v57, %v2787_v46 }
 0x1d6   : > { %v6193_v60 = vadd.f32 %v4629_v41, %v2790_v32  ;;  %v4530_v31 = vpop.f32.mrb[108].mxu1  ;;  %v4630_v63 = vpop.f32.mrb[108].mxu0 }
 0x1d7   : > { %v4531_v6 = vpop.f32.mrb[109].mxu1  ;;  %v4631_v14 = vpop.f32.mrb[109].mxu0 }
 0x1d8   : > { %v4532_v1 = vadd.f32 %v4531_v6, %v4530_v31  ;;  %v4533_v24 = vpop.f32.mrb[110].mxu1  ;;  %v4632_v33 = vadd.f32 %v4631_v14, %v4630_v63  ;;  %v4633_v12 = vpop.f32.mrb[110].mxu0 }
 0x1d9   : > { %v4534_v61 = vpop.f32.mrb[111].mxu1  ;;  %v4634_v35 = vpop.f32.mrb[111].mxu0 }
 0x1da   : > { %v2795_v5 = vadd.f32 %v4532_v1, %v6073_v29  ;;  %v4535_v19 = vadd.f32 %v4534_v61, %v4533_v24  ;;  %v4635_v17 = vadd.f32 %v4634_v35, %v4633_v12 }
 0x1dc   : > { %v2798_v7 = vadd.f32 %v4535_v19, %v6076_v45  ;;  %v6197_v9 = vadd.f32 %v4632_v33, %v2795_v5 }
 0x1de   : > { %v6199_v11 = vadd.f32 %v4635_v17, %v2798_v7  ;;  %v4536_v18 = vpop.f32.mrb[112].mxu1  ;;  %v4636_v34 = vpop.f32.mrb[112].mxu0 }
 0x1df   : > { %v4537_v25 = vpop.f32.mrb[113].mxu1  ;;  %v4637_v13 = vpop.f32.mrb[113].mxu0 }
 0x1e0   : > { %v4538_v26 = vadd.f32 %v4537_v25, %v4536_v18  ;;  %v4539_v0 = vpop.f32.mrb[114].mxu1  ;;  %v4638_v28 = vadd.f32 %v4637_v13, %v4636_v34  ;;  %v4639_v15 = vpop.f32.mrb[114].mxu0 }
 0x1e1   : > { %v4540_v51 = vpop.f32.mrb[115].mxu1  ;;  %v4640_v40 = vpop.f32.mrb[115].mxu0 }
 0x1e2   : > { %v2803_v29 = vadd.f32 %v4538_v26, %v6086_v36  ;;  %v4541_v30 = vadd.f32 %v4540_v51, %v4539_v0  ;;  %v4641_v52 = vadd.f32 %v4640_v40, %v4639_v15 }
 0x1e4   : > { %v2806_v45 = vadd.f32 %v4541_v30, %v6089_v20  ;;  %v6203_v57 = vadd.f32 %v4638_v28, %v2803_v29 }
 0x1e6   : > { %v6205_v38 = vadd.f32 %v4641_v52, %v2806_v45  ;;  %v4542_v44 = vpop.f32.mrb[116].mxu1  ;;  %v4642_v39 = vpop.f32.mrb[116].mxu0 }
 0x1e7   : > { %v4543_v46 = vpop.f32.mrb[117].mxu1  ;;  %v4643_v56 = vpop.f32.mrb[117].mxu0 }
 0x1e8   : > { %v4544_v41 = vadd.f32 %v4543_v46, %v4542_v44  ;;  %v4545_v32 = vpop.f32.mrb[118].mxu1  ;;  %v4644_v31 = vadd.f32 %v4643_v56, %v4642_v39  ;;  %v4645_v63 = vpop.f32.mrb[118].mxu0 }
 0x1e9   : > { %v4546_v6 = vpop.f32.mrb[119].mxu1  ;;  %v4646_v14 = vpop.f32.mrb[119].mxu0 }
 0x1ea   : > { %v2811_v36 = vadd.f32 %v4544_v41, %v6097_v49  ;;  %v4547_v1 = vadd.f32 %v4546_v6, %v4545_v32  ;;  %v4647_v24 = vadd.f32 %v4646_v14, %v4645_v63 }
 0x1ec   : > { %v2814_v20 = vadd.f32 %v4547_v1, %v6100_v43  ;;  %v6209_v33 = vadd.f32 %v4644_v31, %v2811_v36 }
 0x1ee   : > { %v6211_v12 = vadd.f32 %v4647_v24, %v2814_v20  ;;  %v4548_v61 = vpop.f32.mrb[120].mxu1  ;;  %v4648_v35 = vpop.f32.mrb[120].mxu0 }
 0x1ef   : > { %v4549_v5 = vpop.f32.mrb[121].mxu1  ;;  %v4649_v19 = vpop.f32.mrb[121].mxu0 }
 0x1f0   : > { %v4550_v17 = vadd.f32 %v4549_v5, %v4548_v61  ;;  %v4551_v7 = vpop.f32.mrb[122].mxu1  ;;  %v4650_v18 = vadd.f32 %v4649_v19, %v4648_v35  ;;  %v4651_v34 = vpop.f32.mrb[122].mxu0 }
 0x1f1   : > { %v4552_v25 = vpop.f32.mrb[123].mxu1  ;;  %v4652_v13 = vpop.f32.mrb[123].mxu0 }
 0x1f2   : > { %v2819_v49 = vadd.f32 %v4550_v17, %v6108_v21  ;;  %v4553_v26 = vadd.f32 %v4552_v25, %v4551_v7  ;;  %v4653_v0 = vadd.f32 %v4652_v13, %v4651_v34 }
 0x1f4   : > { %v2822_v43 = vadd.f32 %v4553_v26, %v6111_v22  ;;  %v6215_v28 = vadd.f32 %v4650_v18, %v2819_v49 }
 0x1f6   : > { %v6217_v15 = vadd.f32 %v4653_v0, %v2822_v43  ;;  %v4554_v51 = vpop.f32.mrb[124].mxu1  ;;  %v4654_v40 = vpop.f32.mrb[124].mxu0 }
 0x1f7   : > { %v4555_v29 = vpop.f32.mrb[125].mxu1  ;;  %v4655_v30 = vpop.f32.mrb[125].mxu0 }
 0x1f8   : > { %v4556_v52 = vadd.f32 %v4555_v29, %v4554_v51  ;;  %v4557_v45 = vpop.f32.mrb[126].mxu1  ;;  %v4656_v44 = vadd.f32 %v4655_v30, %v4654_v40  ;;  %v4657_v39 = vpop.f32.mrb[126].mxu0 }
 0x1f9   : > { %v4558_v46 = vpop.f32.mrb[127].mxu1  ;;  %v4658_v56 = vpop.f32.mrb[127].mxu0 }
 0x1fa   : > { %v2827_v21 = vadd.f32 %v4556_v52, %v6119_v50  ;;  %v4559_v41 = vadd.f32 %v4558_v46, %v4557_v45  ;;  %v4659_v32 = vadd.f32 %v4658_v56, %v4657_v39 }
 0x1fc   : > { %v2830_v22 = vadd.f32 %v4559_v41, %v6122_v54  ;;  %v6221_v31 = vadd.f32 %v4656_v44, %v2827_v21 }
 0x1fe   : > { %v6223_v63 = vadd.f32 %v4659_v32, %v2830_v22  ;;  %v4560_v6 = vpop.f32.mrb[128].mxu1  ;;  %v4660_v14 = vpop.f32.mrb[128].mxu0 }
 0x1ff   : > { %v4561_v36 = vpop.f32.mrb[129].mxu1  ;;  %v4661_v1 = vpop.f32.mrb[129].mxu0 }
 0x200   : > { %v4562_v24 = vadd.f32 %v4561_v36, %v4560_v6  ;;  %v4563_v20 = vpop.f32.mrb[130].mxu1  ;;  %v4662_v61 = vadd.f32 %v4661_v1, %v4660_v14  ;;  %v4663_v35 = vpop.f32.mrb[130].mxu0 }
 0x201   : > { %v4564_v5 = vpop.f32.mrb[131].mxu1  ;;  %v4664_v19 = vpop.f32.mrb[131].mxu0 }
 0x202   : > { %v2835_v50 = vadd.f32 %v4562_v24, %v6130_v10  ;;  %v4565_v17 = vadd.f32 %v4564_v5, %v4563_v20  ;;  %v4665_v7 = vadd.f32 %v4664_v19, %v4663_v35 }
 0x204   : > { %v2838_v54 = vadd.f32 %v4565_v17, %v6133_v42  ;;  %v6227_v18 = vadd.f32 %v4662_v61, %v2835_v50 }
 0x206   : > { %v6229_v34 = vadd.f32 %v4665_v7, %v2838_v54  ;;  %v4566_v25 = vpop.f32.mrb[132].mxu1  ;;  %v4666_v13 = vpop.f32.mrb[132].mxu0 }
 0x207   : > { %v4567_v49 = vpop.f32.mrb[133].mxu1  ;;  %v4667_v26 = vpop.f32.mrb[133].mxu0 }
 0x208   : > { %v4568_v0 = vadd.f32 %v4567_v49, %v4566_v25  ;;  %v4569_v43 = vpop.f32.mrb[134].mxu1  ;;  %v4668_v51 = vadd.f32 %v4667_v26, %v4666_v13  ;;  %v4669_v40 = vpop.f32.mrb[134].mxu0 }
 0x209   : > { %v4570_v29 = vpop.f32.mrb[135].mxu1  ;;  %v4670_v30 = vpop.f32.mrb[135].mxu0 }
 0x20a   : > { %v2843_v10 = vadd.f32 %v4568_v0, %v6141_v59  ;;  %v4571_v52 = vadd.f32 %v4570_v29, %v4569_v43  ;;  %v4671_v45 = vadd.f32 %v4670_v30, %v4669_v40 }
 0x20c   : > { %v2846_v42 = vadd.f32 %v4571_v52, %v6144_v62  ;;  %v6233_v44 = vadd.f32 %v4668_v51, %v2843_v10 }
 0x20e   : > { %v6235_v39 = vadd.f32 %v4671_v45, %v2846_v42  ;;  %v4572_v46 = vpop.f32.mrb[136].mxu1  ;;  %v4672_v56 = vpop.f32.mrb[136].mxu0 }
 0x20f   : > { %v4573_v21 = vpop.f32.mrb[137].mxu1  ;;  %v4673_v41 = vpop.f32.mrb[137].mxu0 }
 0x210   : > { %v4574_v32 = vadd.f32 %v4573_v21, %v4572_v46  ;;  %v4575_v22 = vpop.f32.mrb[138].mxu1  ;;  %v4674_v6 = vadd.f32 %v4673_v41, %v4672_v56  ;;  %v4675_v14 = vpop.f32.mrb[138].mxu0 }
 0x211   : > { %v4576_v36 = vpop.f32.mrb[139].mxu1  ;;  %v4676_v1 = vpop.f32.mrb[139].mxu0 }
 0x212   : > { %v2851_v59 = vadd.f32 %v4574_v32, %v6152_v55  ;;  %v4577_v24 = vadd.f32 %v4576_v36, %v4575_v22  ;;  %v4677_v20 = vadd.f32 %v4676_v1, %v4675_v14 }
 0x214   : > { %v2854_v62 = vadd.f32 %v4577_v24, %v6155_v23  ;;  %v6239_v61 = vadd.f32 %v4674_v6, %v2851_v59 }
 0x216   : > { %v6241_v35 = vadd.f32 %v4677_v20, %v2854_v62  ;;  %v4694_v5 = vpop.f32.mrb[140].mxu1  ;;  %v3181_v19 = vpop.f32.mrb[140].mxu0 }
 0x217   : > { %v4695_v50 = vpop.f32.mrb[141].mxu1  ;;  %v3183_v17 = vpop.f32.mrb[141].mxu0 }
 0x218   : > { %v4696_v7 = vadd.f32 %v4695_v50, %v4694_v5  ;;  %v4697_v54 = vpop.f32.mrb[142].mxu1  ;;  %v3184_v25 = vpop.f32.mrb[142].mxu0 }
 0x219   : > { %v4698_v13 = vpop.f32.mrb[143].mxu1  ;;  %v3186_v49 = vpop.f32.mrb[143].mxu0 }
 0x21a   : > { %v4699_v26 = vadd.f32 %v4698_v13, %v4697_v54  ;;  %v3037_v55 = vadd.f32 %v4696_v7, %v6161_v47 }
 0x21c   : > { %v3182_v0 = vadd.f32 %v3181_v19, %v3037_v55  ;;  %v3040_v23 = vadd.f32 %v4699_v26, %v6163_v48 }
 0x21e   : > { %v3292_v43 = vmax.f32 %v3182_v0, 0.0  ;;  %v3185_v51 = vadd.f32 %v3184_v25, %v3040_v23  ;;  %v4700_v40 = vpop.f32.mrb[144].mxu1  ;;  %v3189_v29 = vpop.f32.mrb[144].mxu0 }
 0x21f   : > { %v4701_v30 = vpop.f32.mrb[145].mxu1  ;;  %v3191_v10 = vpop.f32.mrb[145].mxu0 }
 0x220   : > { %v4149_v52 = vpack.c.bf16 %v3292_v43, %v3292_v43  ;;  %v3293_v45 = vmax.f32 %v3185_v51, 0.0  ;;  %v4702_v42 = vadd.f32 %v4701_v30, %v4700_v40  ;;  %v4703_v46 = vpop.f32.mrb[146].mxu1  ;;  %v3192_v56 = vpop.f32.mrb[146].mxu0 }
 0x221   : > { %v4704_v21 = vpop.f32.mrb[147].mxu1  ;;  %v3194_v41 = vpop.f32.mrb[147].mxu0 }
 0x222   : > { %3433 = vst.msk [vmem:[%s6246_s12] sm:$0xf] %vm3432_vm1, %v4149_v52  ;;  %v4150_v47 = vpack.c.bf16 %v3293_v45, %v3293_v45  ;;  %v4705_v48 = vadd.f32 %v4704_v21, %v4703_v46  ;;  %v3045_v32 = vadd.f32 %v4702_v42, %v6167_v4 }
 0x224   : > { %3434 = vst.msk [vmem:[%s6246_s12 + $0x4] sm:$0xf] %vm3432_vm1, %v4150_v47  ;;  %v3190_v22 = vadd.f32 %v3189_v29, %v3045_v32  ;;  %v3048_v6 = vadd.f32 %v4705_v48, %v6169_v8 }
 0x226   : > { %v3294_v14 = vmax.f32 %v3190_v22, 0.0  ;;  %v3193_v36 = vadd.f32 %v3192_v56, %v3048_v6  ;;  %v4706_v1 = vpop.f32.mrb[148].mxu1  ;;  %v3197_v59 = vpop.f32.mrb[148].mxu0 }
 0x227   : > { %v4707_v24 = vpop.f32.mrb[149].mxu1  ;;  %v3199_v20 = vpop.f32.mrb[149].mxu0 }
 0x228   : > { %v4151_v62 = vpack.c.bf16 %v3294_v14, %v3294_v14  ;;  %v3295_v5 = vmax.f32 %v3193_v36, 0.0  ;;  %v4708_v19 = vadd.f32 %v4707_v24, %v4706_v1  ;;  %v4709_v50 = vpop.f32.mrb[150].mxu1  ;;  %v3200_v17 = vpop.f32.mrb[150].mxu0 }
 0x229   : > { %v4710_v7 = vpop.f32.mrb[151].mxu1  ;;  %v3202_v4 = vpop.f32.mrb[151].mxu0 }
 0x22a   : > { %3435 = vst.msk [vmem:[%s6246_s12 + $0x8] sm:$0xf] %vm3432_vm1, %v4151_v62  ;;  %v4152_v54 = vpack.c.bf16 %v3295_v5, %v3295_v5  ;;  %v4711_v25 = vadd.f32 %v4710_v7, %v4709_v50  ;;  %v3053_v8 = vadd.f32 %v4708_v19, %v6173_v37 }
 0x22c   : > { %3436 = vst.msk [vmem:[%s6246_s12 + $0xc] sm:$0xf] %vm3432_vm1, %v4152_v54  ;;  %v3198_v13 = vadd.f32 %v3197_v59, %v3053_v8  ;;  %v3056_v49 = vadd.f32 %v4711_v25, %v6175_v16 }
 0x22e   : > { %v3296_v26 = vmax.f32 %v3198_v13, 0.0  ;;  %v3201_v55 = vadd.f32 %v3200_v17, %v3056_v49  ;;  %v4712_v0 = vpop.f32.mrb[152].mxu1  ;;  %v3205_v23 = vpop.f32.mrb[152].mxu0 }
 0x22f   : > { %v4713_v43 = vpop.f32.mrb[153].mxu1  ;;  %v3207_v51 = vpop.f32.mrb[153].mxu0 }
 0x230   : > { %v4153_v40 = vpack.c.bf16 %v3296_v26, %v3296_v26  ;;  %v3297_v29 = vmax.f32 %v3201_v55, 0.0  ;;  %v4714_v30 = vadd.f32 %v4713_v43, %v4712_v0  ;;  %v4715_v10 = vpop.f32.mrb[154].mxu1  ;;  %v3208_v52 = vpop.f32.mrb[154].mxu0 }
 0x231   : > { %v4716_v45 = vpop.f32.mrb[155].mxu1  ;;  %v3210_v37 = vpop.f32.mrb[155].mxu0 }
 0x232   : > { %3437 = vst.msk [vmem:[%s6246_s12 + $0x10] sm:$0xf] %vm3432_vm1, %v4153_v40  ;;  %v4154_v42 = vpack.c.bf16 %v3297_v29, %v3297_v29  ;;  %v4717_v46 = vadd.f32 %v4716_v45, %v4715_v10  ;;  %v3061_v16 = vadd.f32 %v4714_v30, %v6179_v2 }
 0x234   : > { %3438 = vst.msk [vmem:[%s6246_s12 + $0x14] sm:$0xf] %vm3432_vm1, %v4154_v42  ;;  %v3206_v56 = vadd.f32 %v3205_v23, %v3061_v16  ;;  %v3064_v21 = vadd.f32 %v4717_v46, %v6181_v3 }
 0x236   : > { %v3298_v41 = vmax.f32 %v3206_v56, 0.0  ;;  %v3209_v47 = vadd.f32 %v3208_v52, %v3064_v21  ;;  %v4718_v48 = vpop.f32.mrb[156].mxu1  ;;  %v3213_v32 = vpop.f32.mrb[156].mxu0 }
 0x237   : > { %v4719_v22 = vpop.f32.mrb[157].mxu1  ;;  %v3215_v6 = vpop.f32.mrb[157].mxu0 }
 0x238   : > { %v4155_v14 = vpack.c.bf16 %v3298_v41, %v3298_v41  ;;  %v3299_v36 = vmax.f32 %v3209_v47, 0.0  ;;  %v4720_v1 = vadd.f32 %v4719_v22, %v4718_v48  ;;  %v4721_v59 = vpop.f32.mrb[158].mxu1  ;;  %v3216_v24 = vpop.f32.mrb[158].mxu0 }
 0x239   : > { %v4722_v20 = vpop.f32.mrb[159].mxu1  ;;  %v3218_v2 = vpop.f32.mrb[159].mxu0 }
 0x23a   : > { %3439 = vst.msk [vmem:[%s6246_s12 + $0x18] sm:$0xf] %vm3432_vm1, %v4155_v14  ;;  %v4156_v62 = vpack.c.bf16 %v3299_v36, %v3299_v36  ;;  %v4723_v5 = vadd.f32 %v4722_v20, %v4721_v59  ;;  %v3069_v3 = vadd.f32 %v4720_v1, %v6185_v53 }
 0x23c   : > { %3440 = vst.msk [vmem:[%s6246_s12 + $0x1c] sm:$0xf] %vm3432_vm1, %v4156_v62  ;;  %v3214_v19 = vadd.f32 %v3213_v32, %v3069_v3  ;;  %v3072_v50 = vadd.f32 %v4723_v5, %v6187_v27 }
 0x23e   : > { %v3300_v17 = vmax.f32 %v3214_v19, 0.0  ;;  %v3217_v7 = vadd.f32 %v3216_v24, %v3072_v50  ;;  %v4724_v4 = vpop.f32.mrb[160].mxu1  ;;  %v3221_v54 = vpop.f32.mrb[160].mxu0 }
 0x23f   : > { %v4725_v25 = vpop.f32.mrb[161].mxu1  ;;  %v3223_v8 = vpop.f32.mrb[161].mxu0 }
 0x240   : > { %v4157_v13 = vpack.c.bf16 %v3300_v17, %v3300_v17  ;;  %v3301_v49 = vmax.f32 %v3217_v7, 0.0  ;;  %v4726_v26 = vadd.f32 %v4725_v25, %v4724_v4  ;;  %v4727_v55 = vpop.f32.mrb[162].mxu1  ;;  %v3224_v0 = vpop.f32.mrb[162].mxu0 }
 0x241   : > { %v4728_v23 = vpop.f32.mrb[163].mxu1  ;;  %v3226_v53 = vpop.f32.mrb[163].mxu0 }
 0x242   : > { %3441 = vst.msk [vmem:[%s6246_s12 + $0x20] sm:$0xf] %vm3432_vm1, %v4157_v13  ;;  %v4158_v43 = vpack.c.bf16 %v3301_v49, %v3301_v49  ;;  %v4729_v51 = vadd.f32 %v4728_v23, %v4727_v55  ;;  %v3077_v27 = vadd.f32 %v4726_v26, %v6191_v58 }
 0x244   : > { %3442 = vst.msk [vmem:[%s6246_s12 + $0x24] sm:$0xf] %vm3432_vm1, %v4158_v43  ;;  %v3222_v40 = vadd.f32 %v3221_v54, %v3077_v27  ;;  %v3080_v29 = vadd.f32 %v4729_v51, %v6193_v60 }
 0x246   : > { %v3302_v30 = vmax.f32 %v3222_v40, 0.0  ;;  %v3225_v10 = vadd.f32 %v3224_v0, %v3080_v29  ;;  %v4730_v52 = vpop.f32.mrb[164].mxu1  ;;  %v3229_v45 = vpop.f32.mrb[164].mxu0 }
 0x247   : > { %v4731_v37 = vpop.f32.mrb[165].mxu1  ;;  %v3231_v42 = vpop.f32.mrb[165].mxu0 }
 0x248   : > { %v4159_v46 = vpack.c.bf16 %v3302_v30, %v3302_v30  ;;  %v3303_v16 = vmax.f32 %v3225_v10, 0.0  ;;  %v4732_v56 = vadd.f32 %v4731_v37, %v4730_v52  ;;  %v4733_v21 = vpop.f32.mrb[166].mxu1  ;;  %v3232_v41 = vpop.f32.mrb[166].mxu0 }
 0x249   : > { %v4734_v47 = vpop.f32.mrb[167].mxu1  ;;  %v3234_v58 = vpop.f32.mrb[167].mxu0 }
 0x24a   : > { %3443 = vst.msk [vmem:[%s6246_s12 + $0x28] sm:$0xf] %vm3432_vm1, %v4159_v46  ;;  %v4160_v48 = vpack.c.bf16 %v3303_v16, %v3303_v16  ;;  %v4735_v32 = vadd.f32 %v4734_v47, %v4733_v21  ;;  %v3085_v60 = vadd.f32 %v4732_v56, %v6197_v9 }
 0x24c   : > { %3444 = vst.msk [vmem:[%s6246_s12 + $0x2c] sm:$0xf] %vm3432_vm1, %v4160_v48  ;;  %v3230_v22 = vadd.f32 %v3229_v45, %v3085_v60  ;;  %v3088_v6 = vadd.f32 %v4735_v32, %v6199_v11 }
 0x24e   : > { %v3304_v14 = vmax.f32 %v3230_v22, 0.0  ;;  %v3233_v36 = vadd.f32 %v3232_v41, %v3088_v6  ;;  %v4736_v1 = vpop.f32.mrb[168].mxu1  ;;  %v3237_v59 = vpop.f32.mrb[168].mxu0 }
 0x24f   : > { %v4737_v24 = vpop.f32.mrb[169].mxu1  ;;  %v3239_v20 = vpop.f32.mrb[169].mxu0 }
 0x250   : > { %v4161_v2 = vpack.c.bf16 %v3304_v14, %v3304_v14  ;;  %v3305_v62 = vmax.f32 %v3233_v36, 0.0  ;;  %v4738_v5 = vadd.f32 %v4737_v24, %v4736_v1  ;;  %v4739_v3 = vpop.f32.mrb[170].mxu1  ;;  %v3240_v19 = vpop.f32.mrb[170].mxu0 }
 0x251   : > { %v4740_v50 = vpop.f32.mrb[171].mxu1  ;;  %v3242_v9 = vpop.f32.mrb[171].mxu0 }
 0x252   : > { %3445 = vst.msk [vmem:[%s6246_s12 + $0x30] sm:$0xf] %vm3432_vm1, %v4161_v2  ;;  %v4162_v17 = vpack.c.bf16 %v3305_v62, %v3305_v62  ;;  %v4741_v7 = vadd.f32 %v4740_v50, %v4739_v3  ;;  %v3093_v11 = vadd.f32 %v4738_v5, %v6203_v57 }
 0x254   : > { %3446 = vst.msk [vmem:[%s6246_s12 + $0x34] sm:$0xf] %vm3432_vm1, %v4162_v17  ;;  %v3238_v4 = vadd.f32 %v3237_v59, %v3093_v11  ;;  %v3096_v54 = vadd.f32 %v4741_v7, %v6205_v38 }
 0x256   : > { %v3306_v25 = vmax.f32 %v3238_v4, 0.0  ;;  %v3241_v8 = vadd.f32 %v3240_v19, %v3096_v54  ;;  %v4742_v13 = vpop.f32.mrb[172].mxu1  ;;  %v3245_v49 = vpop.f32.mrb[172].mxu0 }
 0x257   : > { %v4743_v26 = vpop.f32.mrb[173].mxu1  ;;  %v3247_v55 = vpop.f32.mrb[173].mxu0 }
 0x258   : > { %v4163_v0 = vpack.c.bf16 %v3306_v25, %v3306_v25  ;;  %v3307_v23 = vmax.f32 %v3241_v8, 0.0  ;;  %v4744_v53 = vadd.f32 %v4743_v26, %v4742_v13  ;;  %v4745_v43 = vpop.f32.mrb[174].mxu1  ;;  %v3248_v51 = vpop.f32.mrb[174].mxu0 }
 0x259   : > { %v4746_v27 = vpop.f32.mrb[175].mxu1  ;;  %v3250_v57 = vpop.f32.mrb[175].mxu0 }
 0x25a   : > { %3447 = vst.msk [vmem:[%s6246_s12 + $0x38] sm:$0xf] %vm3432_vm1, %v4163_v0  ;;  %v4164_v40 = vpack.c.bf16 %v3307_v23, %v3307_v23  ;;  %v4747_v29 = vadd.f32 %v4746_v27, %v4745_v43  ;;  %v3101_v38 = vadd.f32 %v4744_v53, %v6209_v33 }
 0x25c   : > { %3448 = vst.msk [vmem:[%s6246_s12 + $0x3c] sm:$0xf] %vm3432_vm1, %v4164_v40  ;;  %v3246_v30 = vadd.f32 %v3245_v49, %v3101_v38  ;;  %v3104_v10 = vadd.f32 %v4747_v29, %v6211_v12 }
 0x25e   : > { %v3308_v52 = vmax.f32 %v3246_v30, 0.0  ;;  %v3249_v45 = vadd.f32 %v3248_v51, %v3104_v10  ;;  %v4748_v37 = vpop.f32.mrb[176].mxu1  ;;  %v3253_v42 = vpop.f32.mrb[176].mxu0 }
 0x25f   : > { %v4749_v46 = vpop.f32.mrb[177].mxu1  ;;  %v3255_v16 = vpop.f32.mrb[177].mxu0 }
 0x260   : > { %v4165_v56 = vpack.c.bf16 %v3308_v52, %v3308_v52  ;;  %v3309_v21 = vmax.f32 %v3249_v45, 0.0  ;;  %v4750_v41 = vadd.f32 %v4749_v46, %v4748_v37  ;;  %v4751_v47 = vpop.f32.mrb[178].mxu1  ;;  %v3256_v58 = vpop.f32.mrb[178].mxu0 }
 0x261   : > { %v4752_v48 = vpop.f32.mrb[179].mxu1  ;;  %v3258_v33 = vpop.f32.mrb[179].mxu0 }
 0x262   : > { %3449 = vst.msk [vmem:[%s6246_s12 + $0x40] sm:$0xf] %vm3432_vm1, %v4165_v56  ;;  %v4166_v32 = vpack.c.bf16 %v3309_v21, %v3309_v21  ;;  %v4753_v60 = vadd.f32 %v4752_v48, %v4751_v47  ;;  %v3109_v12 = vadd.f32 %v4750_v41, %v6215_v28 }
 0x264   : > { %3450 = vst.msk [vmem:[%s6246_s12 + $0x44] sm:$0xf] %vm3432_vm1, %v4166_v32  ;;  %v3254_v22 = vadd.f32 %v3253_v42, %v3109_v12  ;;  %v3112_v6 = vadd.f32 %v4753_v60, %v6217_v15 }
 0x266   : > { %v3310_v14 = vmax.f32 %v3254_v22, 0.0  ;;  %v3257_v36 = vadd.f32 %v3256_v58, %v3112_v6  ;;  %v4754_v1 = vpop.f32.mrb[180].mxu1  ;;  %v3261_v59 = vpop.f32.mrb[180].mxu0 }
 0x267   : > { %v4755_v24 = vpop.f32.mrb[181].mxu1  ;;  %v3263_v20 = vpop.f32.mrb[181].mxu0 }
 0x268   : > { %v4167_v2 = vpack.c.bf16 %v3310_v14, %v3310_v14  ;;  %v3311_v62 = vmax.f32 %v3257_v36, 0.0  ;;  %v4756_v5 = vadd.f32 %v4755_v24, %v4754_v1  ;;  %v4757_v3 = vpop.f32.mrb[182].mxu1  ;;  %v3264_v19 = vpop.f32.mrb[182].mxu0 }
 0x269   : > { %v4758_v50 = vpop.f32.mrb[183].mxu1  ;;  %v3266_v28 = vpop.f32.mrb[183].mxu0 }
 0x26a   : > { %3451 = vst.msk [vmem:[%s6246_s12 + $0x48] sm:$0xf] %vm3432_vm1, %v4167_v2  ;;  %v4168_v9 = vpack.c.bf16 %v3311_v62, %v3311_v62  ;;  %v4759_v17 = vadd.f32 %v4758_v50, %v4757_v3  ;;  %v3117_v15 = vadd.f32 %v4756_v5, %v6221_v31 }
 0x26c   : > { %3452 = vst.msk [vmem:[%s6246_s12 + $0x4c] sm:$0xf] %vm3432_vm1, %v4168_v9  ;;  %v3262_v7 = vadd.f32 %v3261_v59, %v3117_v15  ;;  %v3120_v11 = vadd.f32 %v4759_v17, %v6223_v63 }
 0x26e   : > { %v3312_v4 = vmax.f32 %v3262_v7, 0.0  ;;  %v3265_v54 = vadd.f32 %v3264_v19, %v3120_v11  ;;  %v4760_v25 = vpop.f32.mrb[184].mxu1  ;;  %v3269_v8 = vpop.f32.mrb[184].mxu0 }
 0x26f   : > { %v4761_v13 = vpop.f32.mrb[185].mxu1  ;;  %v3271_v49 = vpop.f32.mrb[185].mxu0 }
 0x270   : > { %v4169_v26 = vpack.c.bf16 %v3312_v4, %v3312_v4  ;;  %v3313_v55 = vmax.f32 %v3265_v54, 0.0  ;;  %v4762_v0 = vadd.f32 %v4761_v13, %v4760_v25  ;;  %v4763_v23 = vpop.f32.mrb[186].mxu1  ;;  %v3272_v53 = vpop.f32.mrb[186].mxu0 }
 0x271   : > { %v4764_v43 = vpop.f32.mrb[187].mxu1  ;;  %v3274_v31 = vpop.f32.mrb[187].mxu0 }
 0x272   : > { %3453 = vst.msk [vmem:[%s6246_s12 + $0x50] sm:$0xf] %vm3432_vm1, %v4169_v26  ;;  %v4170_v51 = vpack.c.bf16 %v3313_v55, %v3313_v55  ;;  %v4765_v27 = vadd.f32 %v4764_v43, %v4763_v23  ;;  %v3125_v63 = vadd.f32 %v4762_v0, %v6227_v18 }
 0x274   : > { %3454 = vst.msk [vmem:[%s6246_s12 + $0x54] sm:$0xf] %vm3432_vm1, %v4170_v51  ;;  %v3270_v57 = vadd.f32 %v3269_v8, %v3125_v63  ;;  %v3128_v40 = vadd.f32 %v4765_v27, %v6229_v34 }
 0x276   : > { %v3314_v29 = vmax.f32 %v3270_v57, 0.0  ;;  %v3273_v38 = vadd.f32 %v3272_v53, %v3128_v40  ;;  %v4766_v30 = vpop.f32.mrb[188].mxu1  ;;  %v3277_v10 = vpop.f32.mrb[188].mxu0 }
 0x277   : > { %v4767_v52 = vpop.f32.mrb[189].mxu1  ;;  %v3279_v45 = vpop.f32.mrb[189].mxu0 }
 0x278   : > { %v4171_v37 = vpack.c.bf16 %v3314_v29, %v3314_v29  ;;  %v3315_v42 = vmax.f32 %v3273_v38, 0.0  ;;  %v4768_v46 = vadd.f32 %v4767_v52, %v4766_v30  ;;  %v4769_v16 = vpop.f32.mrb[190].mxu1  ;;  %v3280_v56 = vpop.f32.mrb[190].mxu0 }
 0x279   : > { %v4770_v21 = vpop.f32.mrb[191].mxu1  ;;  %v3282_v18 = vpop.f32.mrb[191].mxu0 }
 0x27a   : > { %3455 = vst.msk [vmem:[%s6246_s12 + $0x58] sm:$0xf] %vm3432_vm1, %v4171_v37  ;;  %v4172_v41 = vpack.c.bf16 %v3315_v42, %v3315_v42  ;;  %v4771_v47 = vadd.f32 %v4770_v21, %v4769_v16  ;;  %v3133_v34 = vadd.f32 %v4768_v46, %v6233_v44 }
 0x27c   : > { %3456 = vst.msk [vmem:[%s6246_s12 + $0x5c] sm:$0xf] %vm3432_vm1, %v4172_v41  ;;  %v3278_v58 = vadd.f32 %v3277_v10, %v3133_v34  ;;  %v3136_v48 = vadd.f32 %v4771_v47, %v6235_v39 }
 0x27e   : > { %v3316_v33 = vmax.f32 %v3278_v58, 0.0  ;;  %v3281_v32 = vadd.f32 %v3280_v56, %v3136_v48  ;;  %v4772_v60 = vpop.f32.mrb[192].mxu1  ;;  %v3285_v12 = vpop.f32.mrb[192].mxu0 }
 0x27f   : > { %v4773_v22 = vpop.f32.mrb[193].mxu1  ;;  %v3287_v6 = vpop.f32.mrb[193].mxu0 }
 0x280   : > { %v4173_v14 = vpack.c.bf16 %v3316_v33, %v3316_v33  ;;  %v3317_v36 = vmax.f32 %v3281_v32, 0.0  ;;  %v4774_v1 = vadd.f32 %v4773_v22, %v4772_v60  ;;  %v4775_v59 = vpop.f32.mrb[194].mxu1  ;;  %v3288_v24 = vpop.f32.mrb[194].mxu0 }
 0x281   : > { %v4776_v44 = vpop.f32.mrb[195].mxu1  ;;  %v3290_v20 = vpop.f32.mrb[195].mxu0 }
 0x282   : > { %3457 = vst.msk [vmem:[%s6246_s12 + $0x60] sm:$0xf] %vm3432_vm1, %v4173_v14  ;;  %v4174_v2 = vpack.c.bf16 %v3317_v36, %v3317_v36  ;;  %v4777_v39 = vadd.f32 %v4776_v44, %v4775_v59  ;;  %v3141_v62 = vadd.f32 %v4774_v1, %v6239_v61 }
 0x284   : > { %3458 = vst.msk [vmem:[%s6246_s12 + $0x64] sm:$0xf] %vm3432_vm1, %v4174_v2  ;;  %v3286_v5 = vadd.f32 %v3285_v12, %v3141_v62  ;;  %v3144_v3 = vadd.f32 %v4777_v39, %v6241_v35 }
 0x286   : > { %v3318_v19 = vmax.f32 %v3286_v5, 0.0  ;;  %v3289_v50 = vadd.f32 %v3288_v24, %v3144_v3  ;;  %3467 = sbr.rel (!%p5426_p4) target bundleno = 733 (0x2dd), region = 36 }
 0x288   : > { %v4175_v28 = vpack.c.bf16 %v3318_v19, %v3318_v19  ;;  %v3319_v9 = vmax.f32 %v3289_v50, 0.0 }
 0x28a   : > { %3459 = vst.msk [vmem:[%s6246_s12 + $0x68] sm:$0xf] %vm3432_vm1, %v4175_v28  ;;  %v4176_v17 = vpack.c.bf16 %v3319_v9, %v3319_v9 }
 0x28c   : > { %3460 = vst.msk [vmem:[%s6246_s12 + $0x6c] sm:$0xf] %vm3432_vm1, %v4176_v17 }
 0x28d   : > { %s6464_s9 = smov (!%p3470_p8, %s3469_s9), 28 }
 0x28e   : > { %s4137_s18 = sshll.u32 %s6464_s9, 6 }
 0x28f   : > { %p4140_p9 = scmp.eq.s32.totalorder %s4137_s18, 0 }
 0x290   : > { %5288 = sdivrem.u32 (!%p4140_p9), %s6464_s9, 28 }
 0x291   : > { %3478 = sbr.rel (%p4140_p9) target bundleno = 733 (0x2dd), region = 40 }
 0x299   : > { %s6343_s20 = spop.drf %5288 }
 0x29a   : > { %p4141_p10 = scmp.le.s32.totalorder %s6343_s20, 0 }
 0x29b   : > { %s6457_s15 = smov (!%p4141_p10), %s6337_s17  ;;  %s6458_s23 = smov (!%p4141_p10), %s6246_s12 }
 0x29c   : > { %3741 = sbr.rel (%p4141_p10) target bundleno = 704 (0x2c0), region = 112  ;;  %s6352_s21 = smov (!%p4141_p10), 0  }
 0x29d   : > { %s6354_s22 = smov (!%p4141_p10), 0  }
 0x2a3 LB: >> { %v3495_v61 = vld [vmem:[%s5354_s23] sm:$0xf]  ;;  %v3497_v35 = vld [vmem:[%s5354_s23 + $0x4] sm:$0xf]  ;;  %v3499_v15 = vld [vmem:[%s5354_s23 + $0x8] sm:$0xf]  ;;  %s5362_s22 = sphi %s6354_s22, %s3489_s22   ;;  %s5358_s21 = sphi %s6352_s21, %s6459_s21   ;;  %s5354_s23 = sphi %s6458_s23, %s3556_s23   ;;  %s5350_s15 = sphi %s6457_s15, %s3557_s15  }
 0x2a4   : >> { %3496 = vst [vmem:[%s5350_s15] sm:$0xf] %v3495_v61  ;;  %3498 = vst [vmem:[%s5350_s15 + $0x4] sm:$0xf] %v3497_v35  ;;  %v3501_v7 = vld [vmem:[%s5354_s23 + $0xc] sm:$0xf]  ;;  %s3551_s25 = sadd.s32 1, %s5358_s21 }
 0x2a5   : >> { %3500 = vst [vmem:[%s5350_s15 + $0x8] sm:$0xf] %v3499_v15  ;;  %v3503_v11 = vld [vmem:[%s5354_s23 + $0x10] sm:$0xf]  ;;  %v3505_v4 = vld [vmem:[%s5354_s23 + $0x14] sm:$0xf]  ;;  %p3552_p11 = scmp.ge.s32.totalorder %s3551_s25, %s6343_s20 }
 0x2a6   : >> { %3502 = vst [vmem:[%s5350_s15 + $0xc] sm:$0xf] %v3501_v7  ;;  %3504 = vst [vmem:[%s5350_s15 + $0x10] sm:$0xf] %v3503_v11  ;;  %v3507_v54 = vld [vmem:[%s5354_s23 + $0x18] sm:$0xf] }
 0x2a7   : >> { %3506 = vst [vmem:[%s5350_s15 + $0x14] sm:$0xf] %v3505_v4  ;;  %v3509_v25 = vld [vmem:[%s5354_s23 + $0x1c] sm:$0xf]  ;;  %v3511_v8 = vld [vmem:[%s5354_s23 + $0x20] sm:$0xf] }
 0x2a8   : >> { %3508 = vst [vmem:[%s5350_s15 + $0x18] sm:$0xf] %v3507_v54  ;;  %3510 = vst [vmem:[%s5350_s15 + $0x1c] sm:$0xf] %v3509_v25  ;;  %v3513_v13 = vld [vmem:[%s5354_s23 + $0x24] sm:$0xf] }
 0x2a9   : >> { %3512 = vst [vmem:[%s5350_s15 + $0x20] sm:$0xf] %v3511_v8  ;;  %v3515_v49 = vld [vmem:[%s5354_s23 + $0x28] sm:$0xf]  ;;  %v3517_v26 = vld [vmem:[%s5354_s23 + $0x2c] sm:$0xf] }
 0x2aa   : >> { %3514 = vst [vmem:[%s5350_s15 + $0x24] sm:$0xf] %v3513_v13  ;;  %3516 = vst [vmem:[%s5350_s15 + $0x28] sm:$0xf] %v3515_v49  ;;  %v3519_v55 = vld [vmem:[%s5354_s23 + $0x30] sm:$0xf] }
 0x2ab   : >> { %3518 = vst [vmem:[%s5350_s15 + $0x2c] sm:$0xf] %v3517_v26  ;;  %v3521_v0 = vld [vmem:[%s5354_s23 + $0x34] sm:$0xf]  ;;  %v3523_v23 = vld [vmem:[%s5354_s23 + $0x38] sm:$0xf] }
 0x2ac   : >> { %3520 = vst [vmem:[%s5350_s15 + $0x30] sm:$0xf] %v3519_v55  ;;  %3522 = vst [vmem:[%s5350_s15 + $0x34] sm:$0xf] %v3521_v0  ;;  %v3525_v53 = vld [vmem:[%s5354_s23 + $0x3c] sm:$0xf] }
 0x2ad   : >> { %3524 = vst [vmem:[%s5350_s15 + $0x38] sm:$0xf] %v3523_v23  ;;  %v3527_v43 = vld [vmem:[%s5354_s23 + $0x40] sm:$0xf]  ;;  %v3529_v31 = vld [vmem:[%s5354_s23 + $0x44] sm:$0xf] }
 0x2ae   : >> { %3526 = vst [vmem:[%s5350_s15 + $0x3c] sm:$0xf] %v3525_v53  ;;  %3528 = vst [vmem:[%s5350_s15 + $0x40] sm:$0xf] %v3527_v43  ;;  %v3531_v51 = vld [vmem:[%s5354_s23 + $0x48] sm:$0xf] }
 0x2af   : >> { %3530 = vst [vmem:[%s5350_s15 + $0x44] sm:$0xf] %v3529_v31  ;;  %v3533_v27 = vld [vmem:[%s5354_s23 + $0x4c] sm:$0xf]  ;;  %v3535_v63 = vld [vmem:[%s5354_s23 + $0x50] sm:$0xf] }
 0x2b0   : >> { %3532 = vst [vmem:[%s5350_s15 + $0x48] sm:$0xf] %v3531_v51  ;;  %3534 = vst [vmem:[%s5350_s15 + $0x4c] sm:$0xf] %v3533_v27  ;;  %v3537_v57 = vld [vmem:[%s5354_s23 + $0x54] sm:$0xf] }
 0x2b1   : >> { %3536 = vst [vmem:[%s5350_s15 + $0x50] sm:$0xf] %v3535_v63  ;;  %v3539_v40 = vld [vmem:[%s5354_s23 + $0x58] sm:$0xf]  ;;  %v3541_v29 = vld [vmem:[%s5354_s23 + $0x5c] sm:$0xf] }
 0x2b2   : >> { %3538 = vst [vmem:[%s5350_s15 + $0x54] sm:$0xf] %v3537_v57  ;;  %3540 = vst [vmem:[%s5350_s15 + $0x58] sm:$0xf] %v3539_v40  ;;  %v3543_v38 = vld [vmem:[%s5354_s23 + $0x60] sm:$0xf] }
 0x2b3   : >> { %3542 = vst [vmem:[%s5350_s15 + $0x5c] sm:$0xf] %v3541_v29  ;;  %v3545_v30 = vld [vmem:[%s5354_s23 + $0x64] sm:$0xf]  ;;  %v3547_v10 = vld [vmem:[%s5354_s23 + $0x68] sm:$0xf] }
 0x2b4   : >> { %3544 = vst [vmem:[%s5350_s15 + $0x60] sm:$0xf] %v3543_v38  ;;  %3546 = vst [vmem:[%s5350_s15 + $0x64] sm:$0xf] %v3545_v30  ;;  %v3549_v52 = vld [vmem:[%s5354_s23 + $0x6c] sm:$0xf] }
 0x2b5   : >> { %3548 = vst [vmem:[%s5350_s15 + $0x68] sm:$0xf] %v3547_v10  ;;  %3550 = vst [vmem:[%s5350_s15 + $0x6c] sm:$0xf] %v3549_v52  ;;  %s6466_s25 = smov (%p3552_p11, %s3551_s25), 0  ;;  %s3489_s22 = sadd.s32 1, %s5362_s22  }
 0x2b6   : >> { %s3554_s26 = smul.u32 112, %s6466_s25  ;;  %p3488_p12 = scmp.ge.s32.totalorder %s3489_s22, %s6343_s20 }
 0x2b7   : >> { %s6459_s21 = smov %s6466_s25 }
 0x2b8   : >> { %s3556_s23 = scalar_lea.vmem %s6246_s12, %s3554_s26 [#allocation2]   ;;  %s3557_s15 = scalar_lea.vmem %s6337_s17, %s3554_s26  }
 0x2b9   : > { %3491 = sbr.rel (!%p3488_p12) target bundleno = 675 (0x2a3), region = 118 }
 0x2c0 PF: > { %5290 = sdivrem.u32 %s6464_s9, 28 }
 0x2c1   : > { %s4142_s27 = smul.u32 112, %s6343_s20 }
 0x2c3   : > { %s3562_s28 = scalar_lea.vmem %s6246_s12, %s4142_s27 [#allocation2]   ;;  %s3564_s29 = scalar_lea.vmem %s6337_s17, %s4142_s27  }
 0x2c9   : > { %s5291_s30 = spop.drf %5290 }
 0x2ca   : > { %p4144_p13 = scmp.le.s32.totalorder %s5291_s30, 0 }
 0x2cb   : > { %s5364_s4 = smov (!%p4144_p13), %s3564_s29   ;;  %s5368_s5 = smov (!%p4144_p13), %s3562_s28  }
 0x2cc   : > { %3755 = sbr.rel (%p4144_p13) target bundleno = 733 (0x2dd), region = 123  ;;  %s5372_s6 = smov (!%p4144_p13), 0  }
 0x2cd   : > { %s5376_s7 = smov (!%p4144_p13), 0  }
 0x2d3 LB: >> { %v3574_v45 = vld [vmem:[%s5370_s5] sm:$0xf]  ;;  %s3576_s24 = sadd.s32 1, %s5374_s6  ;;  %s3568_s7 = sadd.s32 1, %s5378_s7   ;;  %s5378_s7 = sphi %s5376_s7, %s3568_s7   ;;  %s5374_s6 = sphi %s5372_s6, %s5373_s6   ;;  %s5370_s5 = sphi %s5368_s5, %s3581_s5   ;;  %s5366_s4 = sphi %s5364_s4, %s3582_s4  }
 0x2d4   : >> { %3575 = vst [vmem:[%s5366_s4] sm:$0xf] %v3574_v45  ;;  %p3577_p0 = scmp.ge.s32.totalorder %s3576_s24, %s5291_s30  ;;  %p3567_p1 = scmp.ge.s32.totalorder %s3568_s7, %s5291_s30 }
 0x2d6   : >> { %s6468_s24 = smov (%p3577_p0, %s3576_s24), 0  ;;  %3570 = sbr.rel (!%p3567_p1) target bundleno = 723 (0x2d3), region = 129 }
 0x2d7   : >> { %s4145_s8 = sshll.u32 %s6468_s24, 2  ;;  %s5373_s6 = smov %s6468_s24  }
 0x2d8   : >> { %s3581_s5 = scalar_lea.vmem %s3562_s28, %s4145_s8 [#allocation2]   ;;  %s3582_s4 = scalar_lea.vmem %s3564_s29, %s4145_s8  }
 0x2dd PF: > { %p10_p2 = scmp.ge.s32.totalorder %s5416_s16, 8   ;;  %s6460_s12 = smov %s5342_s13 }
 0x2de   : > { %s6461_s13 = smov %s5424_s19  ;;  %s6462_s14 = smov %s5416_s16 }
 0x2df   :  { %12 = sbr.rel (!%p10_p2) target bundleno = 2 (0x2), region = 140 }

// kernel: stcae_encoder_forward.13
= control target key start
LH: loop header
LB: loop body
LE: loop exit
PB: predicated region body
PF: predicated region fallthrough
CT: control target
= control target key end

     0   :  { %s2621_s12 = smov 0   ;;  %s3085_s0 = inlined_call_operand.vmem [shape: bf16[128,1728], index: 0, kind: input, shape index: {}]   ;;  %s3086_s1 = inlined_call_operand.vmem [shape: bf16[1728,96], index: 1, kind: input, shape index: {}]   ;;  %s3087_s2 = inlined_call_operand.vmem [shape: f32[1,96], index: 2, kind: input, shape index: {}]   ;;  %s3088_s3 = inlined_call_operand.vmem [shape: bf16[128,96], index: 3, kind: output, shape index: {}]  }
   0x1 LB: > { %s1954_s13 = sadd.s32 4294967295, %s2598_s12   ;;  %p1958_p0 = scmp.ge.s32.totalorder %s2598_s12, 1  ;;  %s2598_s12 = sphi %s2621_s12, %s13_s12  }
   0x2   : > { %p139_p1 = scmp.lt.s32.totalorder %s2598_s12, 3 }
   0x4   : > { %p140_p2 = pnand %p1958_p0, %p139_p1 }
   0x5   : > { %v2400_v0 = vld [vmem:[%s3086_s1 + $0x40] sm:$0xff] (!%p140_p2)   ;;  %v2402_v2 = vld [vmem:[%s3086_s1 + $0x48] sm:$0xff] (!%p140_p2)   ;;  %v2404_v4 = vld [vmem:[%s3086_s1 + $0x50] sm:$0xff] (!%p140_p2)   ;;  %s1959_s24 = sshll.u32 (!%p140_p2), %s1954_s13, 3  ;;  %vm1381_vm0 = vcmask (!%p140_p2), 523264   ;;  %vm1889_vm1 = vcmask (!%p140_p2), 781312  }
   0x6   : > { %143 = sbr.rel (%p140_p2) target bundleno = 384 (0x180), region = 32  ;;  %v2401_v1 = vld [vmem:[%s3086_s1] sm:$0xff] (!%p140_p2)   ;;  %2150 = vmatprep.subr.bf16.mxu1 (!%p140_p2), %v2400_v0  ;;  %v2403_v3 = vld [vmem:[%s3086_s1 + $0x8] sm:$0xff] (!%p140_p2)   ;;  %v2405_v5 = vld [vmem:[%s3086_s1 + $0x10] sm:$0xff] (!%p140_p2)   ;;  %p165_p3 = scmp.lt.s32.totalorder (!%p140_p2), %s1959_s24, 15 }
   0x7   : > { %2151 = vmatpush3.bf16.msra.mxu1 (!%p140_p2), %v2401_v1  ;;  %v2406_v6 = vld [vmem:[%s3086_s1 + $0x58] sm:$0xff] (!%p140_p2)   ;;  %v2410_v8 = vld [vmem:[%s3086_s1 + $0x140] sm:$0xff] (!%p140_p2)   ;;  %v2414_v12 = vld [vmem:[%s3086_s1 + $0x148] sm:$0xff] (!%p140_p2)  }
   0x8   : > { %2152 = vmatprep.subr.bf16.mxu1 (!%p140_p2), %v2402_v2  ;;  %v2407_v7 = vld [vmem:[%s3086_s1 + $0x18] sm:$0xff] (!%p140_p2)   ;;  %v2408_v9 = vld [vmem:[%s3086_s1 + $0x60] sm:$0xff] (!%p140_p2)   ;;  %2230 = vmatprep.subr.bf16.mxu0 (!%p140_p2), %v2410_v8  ;;  %v2411_v13 = vld [vmem:[%s3086_s1 + $0x68] sm:$0xff] (!%p140_p2)  }
   0x9   : > { %v2412_v10 = vld [vmem:[%s3086_s1 + $0x100] sm:$0xff] (!%p140_p2)   ;;  %v2416_v14 = vld [vmem:[%s3086_s1 + $0x108] sm:$0xff] (!%p140_p2)   ;;  %v2418_v16 = vld [vmem:[%s3086_s1 + $0x150] sm:$0xff] (!%p140_p2)  }
   0xa   : > { %v2409_v11 = vld [vmem:[%s3086_s1 + $0x20] sm:$0xff] (!%p140_p2)   ;;  %2231 = vmatpush3.bf16.msra.mxu0 (!%p140_p2), %v2412_v10  ;;  %v2413_v15 = vld [vmem:[%s3086_s1 + $0x28] sm:$0xff] (!%p140_p2)   ;;  %v2415_v17 = vld [vmem:[%s3086_s1 + $0x70] sm:$0xff] (!%p140_p2)  }
   0xb   : > { %2153 = vmatpush3.bf16.msra.mxu1 (!%p140_p2), %v2403_v3  ;;  %2232 = vmatprep.subr.bf16.mxu0 (!%p140_p2), %v2414_v12  ;;  %v2420_v18 = vld [vmem:[%s3086_s1 + $0x110] sm:$0xff] (!%p140_p2)   ;;  %v2419_v20 = vld [vmem:[%s3086_s1 + $0x78] sm:$0xff] (!%p140_p2)   ;;  %v2426_v25 = vld [vmem:[%s3086_s1 + $0xc0] sm:$0xff] (!%p140_p2)  }
   0xc   : > { %2154 = vmatprep.subr.bf16.mxu1 (!%p140_p2), %v2404_v4  ;;  %v2417_v19 = vld [vmem:[%s3086_s1 + $0x30] sm:$0xff] (!%p140_p2)   ;;  %v2425_v22 = vld [vmem:[%s3086_s1 + $0x158] sm:$0xff] (!%p140_p2)   ;;  %v2429_v27 = vld [vmem:[%s3086_s1 + $0x160] sm:$0xff] (!%p140_p2)  }
   0xd   : > { %s3090_s24 = smov (!%p165_p3, %s1959_s24), 15  ;;  %v2421_v23 = vld [vmem:[%s3086_s1 + $0x38] sm:$0xff]   ;;  %v2428_v28 = vld [vmem:[%s3086_s1 + $0x80] sm:$0xff]   ;;  %v2430_v30 = vld [vmem:[%s3086_s1 + $0xc8] sm:$0xff]  }
   0xe   : > { %s2390_s19 = smul.u32 56, %s3090_s24  ;;  %2233 = vmatpush3.bf16.msra.mxu0 %v2416_v14  ;;  %v2427_v24 = vld [vmem:[%s3086_s1 + $0x118] sm:$0xff]   ;;  %v2431_v29 = vld [vmem:[%s3086_s1 + $0x120] sm:$0xff]   ;;  %v2435_v32 = vld [vmem:[%s3086_s1 + $0x168] sm:$0xff]   ;;  %s1962_s17 = sshll.u32 %s3090_s24, 2 }
   0xf   : > { %2155 = vmatpush3.bf16.msra.mxu1 %v2405_v5  ;;  %2234 = vmatprep.subr.bf16.mxu0 %v2418_v16  ;;  %v2432_v33 = vld [vmem:[%s3086_s1 + $0x88] sm:$0xff]   ;;  %v2437_v36 = vld [vmem:[%s3086_s1 + $0xd0] sm:$0xff]   ;;  %v2441_v40 = vld [vmem:[%s3086_s1 + $0xd8] sm:$0xff]   ;;  %s3058_s20 = scalar_lea.vmem %s3088_s3, %s1962_s17 }
  0x10   : > { %2156 = vmatprep.subr.bf16.mxu1 %v2406_v6  ;;  %s2692_s4 = scalar_lea.vmem %s3085_s0, %s2390_s19  ;;  %v2438_v34 = vld [vmem:[%s3086_s1 + $0x128] sm:$0xff]   ;;  %v2440_v37 = vld [vmem:[%s3086_s1 + $0x170] sm:$0xff]   ;;  %v2443_v42 = vld [vmem:[%s3086_s1 + $0x98] sm:$0xff]  }
  0x11   : > { %v2424_v21 = vld [vmem:[%s2692_s4 + $0x4] ss:$56 sps:$4 sm:$0xff]   ;;  %v2422_v26 = vld [vmem:[%s2692_s4] ss:$56 sps:$4 sm:$0xff]   ;;  %v2433_v31 = vld [vmem:[%s2692_s4 + $0x74] ss:$56 sps:$4 sm:$0xff]  }
  0x12   : > { %2235 = vmatpush3.bf16.msra.mxu0 %v2420_v18  ;;  %1426 = vmatprep.mubr.bf16.mxu1 %v2424_v21  ;;  %v2436_v35 = vld [vmem:[%s2692_s4 + $0x70] ss:$56 sps:$4 sm:$0xff]   ;;  %v2444_v41 = vld [vmem:[%s2692_s4 + $0xe4] ss:$56 sps:$4 sm:$0xff]   ;;  %v2447_v45 = vld [vmem:[%s2692_s4 + $0xe0] ss:$56 sps:$4 sm:$0xff]  }
  0x13   : > { %2157 = vmatpush3.bf16.msra.mxu1 %v2407_v7  ;;  %2236 = vmatprep.subr.bf16.mxu0 %v2425_v22  ;;  %v2439_v38 = vld [vmem:[%s3086_s1 + $0x90] sm:$0xff]   ;;  %v2446_v43 = vld [vmem:[%s3086_s1 + $0x178] sm:$0xff]   ;;  %v2448_v44 = vld [vmem:[%s3086_s1 + $0xe0] sm:$0xff]  }
  0x14   : > { %2158 = vmatprep.subr.bf16.mxu1 %v2408_v9  ;;  %v2442_v39 = vld [vmem:[%s3086_s1 + $0x130] sm:$0xff]   ;;  %v2449_v46 = vld [vmem:[%s3086_s1 + $0x138] sm:$0xff]   ;;  %v2450_v47 = vld [vmem:[%s3086_s1 + $0xa0] sm:$0xff]  }
  0x15   : > { %v2451_v48 = vld [vmem:[%s2692_s4 + $0x10] ss:$56 sps:$4 sm:$0xff]   ;;  %v2453_v49 = vld [vmem:[%s2692_s4 + $0x14] ss:$56 sps:$4 sm:$0xff]   ;;  %v2454_v50 = vld [vmem:[%s3086_s1 + $0x240] sm:$0xff]  }
  0x16   : > { %2237 = vmatpush3.bf16.msra.mxu0 %v2427_v24  ;;  %1556 = vmatprep.mubr.bf16.mxu0 %v2453_v49  ;;  %v2455_v51 = vld [vmem:[%s3086_s1 + $0xe8] sm:$0xff]   ;;  %v2456_v52 = vld [vmem:[%s3086_s1 + $0x200] sm:$0xff]   ;;  %v2462_v57 = vld [vmem:[%s3086_s1 + $0xf0] sm:$0xff]  }
  0x17   : > { %2159 = vmatpush3.bf16.msra.mxu1 %v2409_v11  ;;  %2238 = vmatprep.subr.bf16.mxu0 %v2429_v27  ;;  %v2457_v53 = vld [vmem:[%s3086_s1 + $0xa8] sm:$0xff]   ;;  %v2464_v59 = vld [vmem:[%s3086_s1 + $0xb0] sm:$0xff]   ;;  %v2465_v60 = vld [vmem:[%s2692_s4 + $0x84] ss:$56 sps:$4 sm:$0xff]  }
  0x18   : > { %2160 = vmatprep.subr.bf16.mxu1 %v2411_v13  ;;  %v2458_v54 = vld [vmem:[%s2692_s4 + $0x154] ss:$56 sps:$4 sm:$0xff]   ;;  %v2461_v56 = vld [vmem:[%s2692_s4 + $0x150] ss:$56 sps:$4 sm:$0xff]   ;;  %v2468_v62 = vld [vmem:[%s3086_s1 + $0xf8] sm:$0xff]  }
  0x19   : > { %v2460_v55 = vld [vmem:[%s3086_s1 + $0x248] sm:$0xff]   ;;  %v2467_v61 = vld [vmem:[%s3086_s1 + $0x250] sm:$0xff]   ;;  %v2469_v63 = vld [vmem:[%s2692_s4 + $0x80] ss:$56 sps:$4 sm:$0xff]  }
  0x1a   : > { %2239 = vmatpush3.bf16.msra.mxu0 %v2431_v29  ;;  %v2463_v58 = vld [vmem:[%s3086_s1 + $0x208] sm:$0xff]   ;;  %v2470_v0 = vld [vmem:[%s3086_s1 + $0x210] sm:$0xff]   ;;  %v2471_v1 = vld [vmem:[%s3086_s1 + $0xb8] sm:$0xff]  }
  0x1b   : > { %2161 = vmatpush3.bf16.msra.mxu1 %v2413_v15  ;;  %2240 = vmatprep.subr.bf16.mxu0 %v2435_v32  ;;  %v2472_v2 = vld [vmem:[%s2692_s4 + $0x8] ss:$56 sps:$4 sm:$0xff]   ;;  %v2474_v3 = vld [vmem:[%s2692_s4 + $0xc] ss:$56 sps:$4 sm:$0xff]   ;;  %v2475_v4 = vld [vmem:[%s3086_s1 + $0x258] sm:$0xff]  }
  0x1c   : > { %2162 = vmatprep.subr.bf16.mxu1 %v2415_v17  ;;  %v2476_v5 = vld [vmem:[%s3086_s1 + $0x1c0] sm:$0xff]   ;;  %v2477_v6 = vld [vmem:[%s3086_s1 + $0x218] sm:$0xff]   ;;  %v2479_v8 = vld [vmem:[%s2692_s4 + $0xf4] ss:$56 sps:$4 sm:$0xff]  }
  0x1d   : > { %v2478_v7 = vld [vmem:[%s3086_s1 + $0x180] sm:$0xff]   ;;  %v2482_v10 = vld [vmem:[%s2692_s4 + $0xf0] ss:$56 sps:$4 sm:$0xff]   ;;  %v2486_v14 = vld [vmem:[%s2692_s4 + $0x7c] ss:$56 sps:$4 sm:$0xff]  }
  0x1e   : > { %2241 = vmatpush3.bf16.msra.mxu0 %v2438_v34  ;;  %v2481_v9 = vld [vmem:[%s3086_s1 + $0x260] sm:$0xff]   ;;  %v2483_v11 = vld [vmem:[%s3086_s1 + $0x1c8] sm:$0xff]   ;;  %v2489_v16 = vld [vmem:[%s2692_s4 + $0x78] ss:$56 sps:$4 sm:$0xff]   ;;  %v2600_v34 = vmov 0  }
  0x1f   : > { %2163 = vmatpush3.bf16.msra.mxu1 %v2417_v19  ;;  %2242 = vmatprep.subr.bf16.mxu0 %v2440_v37  ;;  %v2484_v12 = vld [vmem:[%s3086_s1 + $0x220] sm:$0xff]   ;;  %v2485_v13 = vld [vmem:[%s3086_s1 + $0x188] sm:$0xff]   ;;  %v2490_v17 = vld [vmem:[%s3086_s1 + $0x1d0] sm:$0xff]  }
  0x20   : > { %2164 = vmatprep.subr.bf16.mxu1 %v2419_v20  ;;  %v2488_v15 = vld [vmem:[%s3086_s1 + $0x268] sm:$0xff]   ;;  %v2492_v19 = vld [vmem:[%s3086_s1 + $0x190] sm:$0xff]   ;;  %v2493_v20 = vld [vmem:[%s2692_s4 + $0x164] ss:$56 sps:$4 sm:$0xff]  }
  0x21   : > { %v2491_v18 = vld [vmem:[%s3086_s1 + $0x228] sm:$0xff]   ;;  %v2495_v21 = vld [vmem:[%s3086_s1 + $0x270] sm:$0xff]   ;;  %v2496_v22 = vld [vmem:[%s2692_s4 + $0x160] ss:$56 sps:$4 sm:$0xff]  }
  0x22   : > { %2243 = vmatpush3.bf16.msra.mxu0 %v2442_v39  ;;  %v2498_v24 = vld [vmem:[%s3086_s1 + $0x230] sm:$0xff]   ;;  %v2502_v27 = vld [vmem:[%s3086_s1 + $0x278] sm:$0xff]   ;;  %v2504_v29 = vld [vmem:[%s3086_s1 + $0x1e0] sm:$0xff]  }
  0x23   : > { %2165 = vmatpush3.bf16.msra.mxu1 %v2421_v23  ;;  %2244 = vmatprep.subr.bf16.mxu0 %v2446_v43  ;;  %v2497_v23 = vld [vmem:[%s3086_s1 + $0x1d8] sm:$0xff]   ;;  %v2512_v37 = vld [vmem:[%s3086_s1 + $0x1a8] sm:$0xff]  }
  0x24   : > { %2190 = vmatprep.subr.bf16.mxu1 %v2426_v25  ;;  %v2499_v25 = vld [vmem:[%s3086_s1 + $0x198] sm:$0xff]  }
  0x25   : > { %v2507_v32 = vld [vmem:[%s2692_s4 + $0x20] ss:$56 sps:$4 sm:$0xff]  }
  0x26   : > { %1427 = vmatmul.mubr.bf16.vlgmr.msra.gmra.mrb[0].mxu1 %v2422_v26  ;;  %2245 = vmatpush3.bf16.msra.mxu0 %v2449_v46  ;;  %v2500_v26 = vld [vmem:[%s2692_s4 + $0xec] ss:$56 sps:$4 sm:$0xff]   ;;  %v2515_v39 = vld [vmem:[%s2692_s4 + $0x158] ss:$56 sps:$4 sm:$0xff]  }
  0x27   : > { %2191 = vmatpush3.bf16.msra.mxu1 %v2428_v28  ;;  %1434 = vmatprep.mubr.bf16.mxu1 %v2433_v31  ;;  %v2503_v28 = vld [vmem:[%s2692_s4 + $0xe8] ss:$56 sps:$4 sm:$0xff]   ;;  %v2519_v43 = vld [vmem:[%s3086_s1 + $0x1f8] sm:$0xff]  }
  0x28   : > { %2192 = vmatprep.subr.bf16.mxu1 %v2430_v30  ;;  %2310 = vmatprep.subr.bf16.mxu0 %v2454_v50  ;;  %v2505_v30 = vld [vmem:[%s3086_s1 + $0x238] sm:$0xff]   ;;  %v2506_v31 = vld [vmem:[%s3086_s1 + $0x1a0] sm:$0xff]  }
  0x29   : > { %1557 = vmatmul.mubr.bf16.vlgmr.msra.gmra.mrb[0].mxu0 %v2451_v48  ;;  %v2522_v46 = vld [vmem:[%s2692_s4 + $0x18] ss:$56 sps:$4 sm:$0xff]   ;;  %v2525_v48 = vld [vmem:[%s3086_s1 + $0x2c0] sm:$0xff]  }
  0x2a   : > { %2311 = vmatpush3.bf16.msra.mxu0 %v2456_v52  ;;  %1564 = vmatprep.mubr.bf16.mxu0 %v2465_v60  ;;  %v2526_v49 = vld [vmem:[%s3086_s1 + $0x318] sm:$0xff]   ;;  %v2527_v50 = vld [vmem:[%s3086_s1 + $0x280] sm:$0xff]   ;;  %v2539_v60 = vld [vmem:[%s2692_s4 + $0x90] ss:$56 sps:$4 sm:$0xff]  }
  0x2b   : > { %2193 = vmatpush3.bf16.msra.mxu1 %v2432_v33  ;;  %2312 = vmatprep.subr.bf16.mxu0 %v2460_v55  ;;  %v2509_v33 = vld [vmem:[%s2692_s4 + $0x24] ss:$56 sps:$4 sm:$0xff]   ;;  %v2533_v55 = vld [vmem:[%s2692_s4 + $0x88] ss:$56 sps:$4 sm:$0xff]  }
  0x2c   : > { %2194 = vmatprep.subr.bf16.mxu1 %v2437_v36  ;;  %v2511_v36 = vld [vmem:[%s3086_s1 + $0x300] sm:$0xff]  }
  0x2d   : > { %v2529_v52 = vld [vmem:[%s3086_s1 + $0x320] sm:$0xff]  }
  0x2e   : > { %1435 = vmatmul.mubr.bf16.gmra.mrb[4].mxu1 %v2436_v35  ;;  %2313 = vmatpush3.bf16.msra.mxu0 %v2463_v58  ;;  %v2510_v35 = vld [vmem:[%s3086_s1 + $0x1e8] sm:$0xff]  }
  0x2f   : > { %2195 = vmatpush3.bf16.msra.mxu1 %v2439_v38  ;;  %1442 = vmatprep.mubr.bf16.mxu1 %v2444_v41  ;;  %v2513_v38 = vld [vmem:[%s2692_s4 + $0x15c] ss:$56 sps:$4 sm:$0xff]   ;;  %v2517_v41 = vld [vmem:[%s3086_s1 + $0x308] sm:$0xff]  }
  0x30   : > { %2196 = vmatprep.subr.bf16.mxu1 %v2441_v40  ;;  %2314 = vmatprep.subr.bf16.mxu0 %v2467_v61  ;;  %v2516_v40 = vld [vmem:[%s3086_s1 + $0x1f0] sm:$0xff]   ;;  %v2540_v61 = vld [vmem:[%s3086_s1 + $0x2d8] sm:$0xff]  }
  0x31   : > { %1565 = vmatmul.mubr.bf16.gmra.mrb[4].mxu0 %v2469_v63  ;;  %v2536_v58 = vld [vmem:[%s2692_s4 + $0x94] ss:$56 sps:$4 sm:$0xff]   ;;  %v2542_v63 = vld [vmem:[%s3086_s1 + $0x298] sm:$0xff]  }
  0x32   : > { %2315 = vmatpush3.bf16.msra.mxu0 %v2470_v0  ;;  %1572 = vmatprep.mubr.bf16.mxu0 %v2479_v8  ;;  %v2543_v0 = vld [vmem:[%s2692_s4 + $0xfc] ss:$56 sps:$4 sm:$0xff]   ;;  %v2553_v8 = vld [vmem:[%s3086_s1 + $0x340] sm:$0xff]  }
  0x33   : > { %2197 = vmatpush3.bf16.msra.mxu1 %v2443_v42  ;;  %2316 = vmatprep.subr.bf16.mxu0 %v2475_v4  ;;  %v2518_v42 = vld [vmem:[%s3086_s1 + $0x1b0] sm:$0xff]   ;;  %v2548_v4 = vld [vmem:[%s2692_s4 + $0x104] ss:$56 sps:$4 sm:$0xff]  }
  0x34   : > { %2198 = vmatprep.subr.bf16.mxu1 %v2448_v44  ;;  %v2520_v44 = vld [vmem:[%s3086_s1 + $0x310] sm:$0xff]  }
  0x36   : > { %1443 = vmatmul.mubr.bf16.gmra.mrb[8].mxu1 %v2447_v45  ;;  %2317 = vmatpush3.bf16.msra.mxu0 %v2477_v6  ;;  %v2521_v45 = vld [vmem:[%s3086_s1 + $0x1b8] sm:$0xff]  }
  0x37   : > { %2199 = vmatpush3.bf16.msra.mxu1 %v2450_v47  ;;  %1450 = vmatprep.mubr.bf16.mxu1 %v2458_v54  ;;  %v2524_v47 = vld [vmem:[%s2692_s4 + $0x1c] ss:$56 sps:$4 sm:$0xff]   ;;  %v2531_v54 = vld [vmem:[%s2692_s4 + $0x8c] ss:$56 sps:$4 sm:$0xff]   ;;  %v2551_v6 = vld [vmem:[%s2692_s4 + $0x100] ss:$56 sps:$4 sm:$0xff]  }
  0x38   : > { %2200 = vmatprep.subr.bf16.mxu1 %v2455_v51  ;;  %2318 = vmatprep.subr.bf16.mxu0 %v2481_v9  ;;  %v2528_v51 = vld [vmem:[%s3086_s1 + $0x2c8] sm:$0xff]  }
  0x39   : > { %1573 = vmatmul.mubr.bf16.gmra.mrb[8].mxu0 %v2482_v10  ;;  %v2554_v9 = vld [vmem:[%s3086_s1 + $0x2a8] sm:$0xff]  }
  0x3a   : > { %2319 = vmatpush3.bf16.msra.mxu0 %v2484_v12  ;;  %1580 = vmatprep.mubr.bf16.mxu0 %v2493_v20  ;;  %v2555_v10 = vld [vmem:[%s2692_s4 + $0x16c] ss:$56 sps:$4 sm:$0xff]   ;;  %v2558_v12 = vld [vmem:[%s3086_s1 + $0x2f0] sm:$0xff]   ;;  %v2567_v20 = vld [vmem:[%s2692_s4 + $0x28] ss:$56 sps:$4 sm:$0xff]  }
  0x3b   : > { %2201 = vmatpush3.bf16.msra.mxu1 %v2457_v53  ;;  %2320 = vmatprep.subr.bf16.mxu0 %v2488_v15  ;;  %v2530_v53 = vld [vmem:[%s3086_s1 + $0x288] sm:$0xff]   ;;  %v2562_v15 = vld [vmem:[%s3086_s1 + $0x2b0] sm:$0xff]  }
  0x3c   : > { %2202 = vmatprep.subr.bf16.mxu1 %v2462_v57  ;;  %v2535_v57 = vld [vmem:[%s3086_s1 + $0x328] sm:$0xff]  }
  0x3e   : > { %1451 = vmatmul.mubr.bf16.gmra.mrb[12].mxu1 %v2461_v56  ;;  %2321 = vmatpush3.bf16.msra.mxu0 %v2491_v18  ;;  %v2534_v56 = vld [vmem:[%s3086_s1 + $0x2d0] sm:$0xff]  }
  0x3f   : > { %2203 = vmatpush3.bf16.msra.mxu1 %v2464_v59  ;;  %1491 = vmatprep.mubr.bf16.mxu1 %v2474_v3  ;;  %v2538_v59 = vld [vmem:[%s3086_s1 + $0x290] sm:$0xff]   ;;  %v2547_v3 = vld [vmem:[%s3086_s1 + $0x338] sm:$0xff]  }
  0x40   : > { %2204 = vmatprep.subr.bf16.mxu1 %v2468_v62  ;;  %2322 = vmatprep.subr.bf16.mxu0 %v2495_v21  ;;  %v2541_v62 = vld [vmem:[%s3086_s1 + $0x330] sm:$0xff]   ;;  %v2569_v21 = vld [vmem:[%s2692_s4 + $0x2c] ss:$56 sps:$4 sm:$0xff]  }
  0x41   : > { %1581 = vmatmul.mubr.bf16.gmra.mrb[12].mxu0 %v2496_v22  ;;  %v2565_v18 = vld [vmem:[%s3086_s1 + $0x350] sm:$0xff]   ;;  %v2570_v22 = vld [vmem:[%s3086_s1 + $0x358] sm:$0xff]  }
  0x42   : > { %2323 = vmatpush3.bf16.msra.mxu0 %v2498_v24  ;;  %1686 = vmatprep.mubr.bf16.mxu0 %v2509_v33  ;;  %v2573_v24 = vld [vmem:[%s2692_s4 + $0x34] ss:$56 sps:$4 sm:$0xff]   ;;  %v2585_v33 = vld [vmem:[%s2692_s4 + $0x110] ss:$56 sps:$4 sm:$0xff]  }
  0x43   : > { %2205 = vmatpush3.bf16.msra.mxu1 %v2471_v1  ;;  %2324 = vmatprep.subr.bf16.mxu0 %v2502_v27  ;;  %v2545_v1 = vld [vmem:[%s2692_s4 + $0xf8] ss:$56 sps:$4 sm:$0xff]  }
  0x44   : > { %2270 = vmatprep.subr.bf16.mxu1 %v2476_v5  ;;  %v2550_v5 = vld [vmem:[%s3086_s1 + $0x2a0] sm:$0xff]   ;;  %v2576_v27 = vld [vmem:[%s2692_s4 + $0x98] ss:$56 sps:$4 sm:$0xff]  }
  0x46   : > { %1492 = vmatmul.mubr.bf16.vlgmr.msra.gmra.mrb[16].mxu1 %v2472_v2  ;;  %2325 = vmatpush3.bf16.msra.mxu0 %v2505_v30  ;;  %v2546_v2 = vld [vmem:[%s3086_s1 + $0x2e0] sm:$0xff]   ;;  %v2583_v30 = vld [vmem:[%s2692_s4 + $0x114] ss:$56 sps:$4 sm:$0xff]  }
  0x47   : > { %2271 = vmatpush3.bf16.msra.mxu1 %v2478_v7  ;;  %1499 = vmatprep.mubr.bf16.mxu1 %v2486_v14  ;;  %v2552_v7 = vld [vmem:[%s3086_s1 + $0x2e8] sm:$0xff]  }
  0x48   : > { %2272 = vmatprep.subr.bf16.mxu1 %v2483_v11  ;;  %1784 = vmatprep.subr.bf16.mxu0 %v2600_v34  ;;  %v2557_v11 = vld [vmem:[%s2692_s4 + $0x168] ss:$56 sps:$4 sm:$0xff]   ;;  %v2560_v14 = vld [vmem:[%s2692_s4 + $0x174] ss:$56 sps:$4 sm:$0xff]  }
  0x49   : > { %1687 = vmatmul.mubr.bf16.vlgmr.msra.gmra.mrb[16].mxu0 %v2507_v32  ;;  %v2586_v32 = vld [vmem:[%s2692_s4 + $0x17c] ss:$56 sps:$4 sm:$0xff]  }
  0x4a   : > { %1785 = vmatpush1.bf16.msra.mxu0 %v2511_v36  ;;  %1694 = vmatprep.mubr.bf16.mxu0 %v2536_v58  ;;  %v2591_v36 = vld [vmem:[%s2692_s4 + $0x180] ss:$56 sps:$4 sm:$0xff]  }
  0x4b   : > { %2273 = vmatpush3.bf16.msra.mxu1 %v2485_v13  ;;  %1786 = vmatprep.subr.bf16.mxu0 %v2600_v34  ;;  %v2559_v13 = vld [vmem:[%s3086_s1 + $0x348] sm:$0xff]  }
  0x4c   : > { %2274 = vmatprep.subr.bf16.mxu1 %v2490_v17  ;;  %v2564_v17 = vld [vmem:[%s3086_s1 + $0x2f8] sm:$0xff]  }
  0x4e   : > { %1500 = vmatmul.mubr.bf16.gmra.mrb[20].mxu1 %v2489_v16  ;;  %1787 = vmatpush1.bf16.msra.mxu0 %v2517_v41  ;;  %v2563_v16 = vld [vmem:[%s2692_s4 + $0x170] ss:$56 sps:$4 sm:$0xff]  }
  0x4f   : > { %2275 = vmatpush3.bf16.msra.mxu1 %v2492_v19  ;;  %1507 = vmatprep.mubr.bf16.mxu1 %v2500_v26  ;;  %v2566_v19 = vld [vmem:[%s3086_s1 + $0x2b8] sm:$0xff]  }
  0x50   : > { %2276 = vmatprep.subr.bf16.mxu1 %v2497_v23  ;;  %1788 = vmatprep.subr.bf16.mxu0 %v2600_v34  ;;  %v2571_v23 = vld [vmem:[%s2692_s4 + $0x30] ss:$56 sps:$4 sm:$0xff]   ;;  %v2577_v26 = vld [vmem:[%s2692_s4 + $0xa4] ss:$56 sps:$4 sm:$0xff]  }
  0x51   : > { %1695 = vmatmul.mubr.bf16.gmra.mrb[20].mxu0 %v2539_v60 }
  0x52   : > { %1789 = vmatpush1.bf16.msra.mxu0 %v2520_v44  ;;  %1702 = vmatprep.mubr.bf16.mxu0 %v2548_v4 }
  0x53   : > { %2277 = vmatpush3.bf16.msra.mxu1 %v2499_v25  ;;  %1790 = vmatprep.subr.bf16.mxu0 %v2600_v34  ;;  %v2574_v25 = vld [vmem:[%s2692_s4 + $0x9c] ss:$56 sps:$4 sm:$0xff]  }
  0x54   : > { %2278 = vmatprep.subr.bf16.mxu1 %v2504_v29  ;;  %v2579_v29 = vld [vmem:[%s2692_s4 + $0xa0] ss:$56 sps:$4 sm:$0xff]  }
  0x56   : > { %1508 = vmatmul.mubr.bf16.gmra.mrb[24].mxu1 %v2503_v28  ;;  %1791 = vmatpush1.bf16.msra.mxu0 %v2526_v49  ;;  %v2580_v28 = vld [vmem:[%s2692_s4 + $0x10c] ss:$56 sps:$4 sm:$0xff]  }
  0x57   : > { %2279 = vmatpush3.bf16.msra.mxu1 %v2506_v31  ;;  %1515 = vmatprep.mubr.bf16.mxu1 %v2513_v38  ;;  %v2582_v31 = vld [vmem:[%s2692_s4 + $0x108] ss:$56 sps:$4 sm:$0xff]  }
  0x58   : > { %2280 = vmatprep.subr.bf16.mxu1 %v2510_v35  ;;  %1792 = vmatprep.subr.bf16.mxu0 %v2600_v34  ;;  %v2588_v35 = vld [vmem:[%s2692_s4 + $0x178] ss:$56 sps:$4 sm:$0xff]  }
  0x59   : > { %1703 = vmatmul.mubr.bf16.gmra.mrb[24].mxu0 %v2551_v6 }
  0x5a   : > { %1793 = vmatpush1.bf16.msra.mxu0 %v2529_v52  ;;  %1710 = vmatprep.mubr.bf16.mxu0 %v2560_v14 }
  0x5b   : > { %2281 = vmatpush3.bf16.msra.mxu1 %v2512_v37  ;;  %1794 = vmatprep.subr.bf16.mxu0 %v2600_v34 }
  0x5c   : > { %2282 = vmatprep.subr.bf16.mxu1 %v2516_v40 }
  0x5e   : > { %1516 = vmatmul.mubr.bf16.gmra.mrb[28].mxu1 %v2515_v39  ;;  %1795 = vmatpush1.bf16.msra.mxu0 %v2535_v57 }
  0x5f   : > { %2283 = vmatpush3.bf16.msra.mxu1 %v2518_v42  ;;  %1621 = vmatprep.mubr.bf16.mxu1 %v2524_v47 }
  0x60   : > { %2284 = vmatprep.subr.bf16.mxu1 %v2519_v43  ;;  %1796 = vmatprep.subr.bf16.mxu0 %v2600_v34 }
  0x61   : > { %1711 = vmatmul.mubr.bf16.gmra.mrb[28].mxu0 %v2563_v16 }
  0x62   : > { %1797 = vmatpush1.bf16.msra.mxu0 %v2541_v62  ;;  %2128 = vmatprep.mubr.msk.bf16.mxu0 %vm1381_vm0, %v2573_v24 }
  0x63   : > { %2285 = vmatpush3.bf16.msra.mxu1 %v2521_v45  ;;  %1798 = vmatprep.subr.bf16.mxu0 %v2600_v34 }
  0x64   : > { %2350 = vmatprep.subr.bf16.mxu1 %v2525_v48 }
  0x66   : > { %1622 = vmatmul.mubr.bf16.vlgmr.msra.gmra.mrb[32].mxu1 %v2522_v46  ;;  %1799 = vmatpush1.bf16.msra.mxu0 %v2547_v3 }
  0x67   : > { %2351 = vmatpush3.bf16.msra.mxu1 %v2527_v50  ;;  %1629 = vmatprep.mubr.bf16.mxu1 %v2531_v54 }
  0x68   : > { %2352 = vmatprep.subr.bf16.mxu1 %v2528_v51  ;;  %1800 = vmatprep.subr.bf16.mxu0 %v2600_v34 }
  0x6a   : > { %1801 = vmatpush1.bf16.msra.mxu0 %v2553_v8  ;;  %v1963_v8 = vld [vmem:[%s3087_s2] ss:$0 sm:$0xff] }
  0x6b   : > { %2353 = vmatpush3.bf16.msra.mxu1 %v2530_v53  ;;  %1802 = vmatprep.subr.bf16.mxu0 %v2600_v34 }
  0x6c   : > { %2354 = vmatprep.subr.bf16.mxu1 %v2534_v56 }
  0x6e   : > { %1630 = vmatmul.mubr.bf16.gmra.mrb[36].mxu1 %v2533_v55  ;;  %1803 = vmatpush1.bf16.msra.mxu0 %v2559_v13 }
  0x6f   : > { %2355 = vmatpush3.bf16.msra.mxu1 %v2538_v59  ;;  %1637 = vmatprep.mubr.bf16.mxu1 %v2543_v0 }
  0x70   : > { %2356 = vmatprep.subr.bf16.mxu1 %v2540_v61  ;;  %1804 = vmatprep.subr.bf16.mxu0 %v2600_v34 }
  0x72   : > { %1805 = vmatpush1.bf16.msra.mxu0 %v2565_v18 }
  0x73   : > { %2357 = vmatpush3.bf16.msra.mxu1 %v2542_v63  ;;  %1806 = vmatprep.subr.bf16.mxu0 %v2600_v34  ;;  %v2589_v34 = vld [vmem:[%s2692_s4 + $0x184] ss:$56 sps:$4 sm:$0xff]  }
  0x74   : > { %2358 = vmatprep.subr.bf16.mxu1 %v2546_v2 }
  0x76   : > { %1638 = vmatmul.mubr.bf16.gmra.mrb[40].mxu1 %v2545_v1  ;;  %1807 = vmatpush1.bf16.msra.mxu0 %v2570_v22 }
  0x77   : > { %2359 = vmatpush3.bf16.msra.mxu1 %v2550_v5  ;;  %1645 = vmatprep.mubr.bf16.mxu1 %v2555_v10 }
  0x78   : > { %2360 = vmatprep.subr.bf16.mxu1 %v2552_v7 }
  0x79   : > { %1817 = vmatmul.mubr.bf16.vlgmr.msra.gmra.mrb[32].mxu0 %v2571_v23 }
  0x7a   : > { %2129 = vmatprep.mubr.msk.bf16.mxu0 %vm1381_vm0, %v2577_v26 }
  0x7b   : > { %2361 = vmatpush3.bf16.msra.mxu1 %v2554_v9 }
  0x7c   : > { %2362 = vmatprep.subr.bf16.mxu1 %v2558_v12 }
  0x7e   : > { %1646 = vmatmul.mubr.bf16.gmra.mrb[44].mxu1 %v2557_v11 }
  0x7f   : > { %2363 = vmatpush3.bf16.msra.mxu1 %v2562_v15  ;;  %1751 = vmatprep.mubr.bf16.mxu1 %v2569_v21 }
  0x80   : > { %2364 = vmatprep.subr.bf16.mxu1 %v2564_v17 }
  0x81   : > { %1825 = vmatmul.mubr.bf16.gmra.mrb[36].mxu0 %v2579_v29 }
  0x82   : > { %2130 = vmatprep.mubr.msk.bf16.mxu0 %vm1381_vm0, %v2583_v30 }
  0x83   : > { %2365 = vmatpush3.bf16.msra.mxu1 %v2566_v19 }
  0x86   : > { %1752 = vmatmul.mubr.bf16.vlgmr.msra.gmra.mrb[48].mxu1 %v2567_v20 }
  0x87   : > { %1759 = vmatprep.mubr.bf16.mxu1 %v2574_v25 }
  0x89   : > { %1833 = vmatmul.mubr.bf16.gmra.mrb[40].mxu0 %v2585_v33 }
  0x8a   : > { %2131 = vmatprep.mubr.msk.bf16.mxu0 %vm1381_vm0, %v2589_v34 }
  0x8e   : > { %1760 = vmatmul.mubr.bf16.gmra.mrb[52].mxu1 %v2576_v27 }
  0x8f   : > { %1767 = vmatprep.mubr.bf16.mxu1 %v2580_v28 }
  0x91   : > { %1841 = vmatmul.mubr.bf16.gmra.mrb[44].mxu0 %v2591_v36 }
  0x96   : > { %1768 = vmatmul.mubr.bf16.gmra.mrb[56].mxu1 %v2582_v31 }
  0x97   : > { %1775 = vmatprep.mubr.bf16.mxu1 %v2586_v32 }
  0x9e   : > { %1776 = vmatmul.mubr.bf16.gmra.mrb[60].mxu1 %v2588_v35 }
  0xf9   : > { %v2166_v37 = vpop.f32.mrb[0].mxu1 }
  0xfa   : > { %v2167_v38 = vpop.f32.mrb[1].mxu1 }
  0xfb   : > { %v2168_v39 = vadd.f32 %v2167_v38, %v2166_v37  ;;  %v2169_v40 = vpop.f32.mrb[2].mxu1 }
  0xfc   : > { %v2170_v41 = vpop.f32.mrb[3].mxu1  ;;  %v2246_v51 = vpop.f32.mrb[0].mxu0 }
  0xfd   : > { %v2171_v42 = vadd.f32 %v2170_v41, %v2169_v40  ;;  %v2247_v54 = vpop.f32.mrb[1].mxu0  ;;  %v1429_v12 = vadd.f32 %v2168_v39, %v1963_v8 }
  0xfe   : > { %v2248_v56 = vadd.f32 %v2247_v54, %v2246_v51  ;;  %v2249_v57 = vpop.f32.mrb[2].mxu0 }
  0xff   : > { %v2250_v59 = vpop.f32.mrb[3].mxu0  ;;  %v1432_v16 = vadd.f32 %v2171_v42, %v1963_v8 }
 0x100   : > { %v2251_v60 = vadd.f32 %v2250_v59, %v2249_v57 }
 0x101   : > { %v2172_v43 = vpop.f32.mrb[4].mxu1 }
 0x102   : > { %v2173_v44 = vpop.f32.mrb[5].mxu1 }
 0x103   : > { %v2174_v45 = vadd.f32 %v2173_v44, %v2172_v43  ;;  %v2175_v46 = vpop.f32.mrb[6].mxu1 }
 0x104   : > { %v2176_v47 = vpop.f32.mrb[7].mxu1  ;;  %v2252_v2 = vpop.f32.mrb[4].mxu0 }
 0x105   : > { %v2177_v48 = vadd.f32 %v2176_v47, %v2175_v46  ;;  %v2253_v4 = vpop.f32.mrb[5].mxu0  ;;  %v1437_v30 = vadd.f32 %v2174_v45, %v1963_v8 }
 0x106   : > { %v2254_v5 = vadd.f32 %v2253_v4, %v2252_v2  ;;  %v2255_v6 = vpop.f32.mrb[6].mxu0 }
 0x107   : > { %v2256_v7 = vpop.f32.mrb[7].mxu0  ;;  %v1440_v34 = vadd.f32 %v2177_v48, %v1963_v8 }
 0x108   : > { %v2257_v9 = vadd.f32 %v2256_v7, %v2255_v6 }
 0x109   : > { %v2178_v49 = vpop.f32.mrb[8].mxu1 }
 0x10a   : > { %v2179_v50 = vpop.f32.mrb[9].mxu1 }
 0x10b   : > { %v2180_v52 = vadd.f32 %v2179_v50, %v2178_v49  ;;  %v2181_v53 = vpop.f32.mrb[10].mxu1 }
 0x10c   : > { %v2182_v55 = vpop.f32.mrb[11].mxu1  ;;  %v2258_v19 = vpop.f32.mrb[8].mxu0 }
 0x10d   : > { %v2183_v58 = vadd.f32 %v2182_v55, %v2181_v53  ;;  %v2259_v21 = vpop.f32.mrb[9].mxu0  ;;  %v1445_v50 = vadd.f32 %v2180_v52, %v1963_v8 }
 0x10e   : > { %v2260_v23 = vadd.f32 %v2259_v21, %v2258_v19  ;;  %v2261_v24 = vpop.f32.mrb[10].mxu0 }
 0x10f   : > { %v2262_v25 = vpop.f32.mrb[11].mxu0  ;;  %v1448_v54 = vadd.f32 %v2183_v58, %v1963_v8 }
 0x110   : > { %v2263_v27 = vadd.f32 %v2262_v25, %v2261_v24 }
 0x111   : > { %v2184_v61 = vpop.f32.mrb[12].mxu1 }
 0x112   : > { %v2185_v62 = vpop.f32.mrb[13].mxu1 }
 0x113   : > { %v3033_v63 = vadd.f32 %v2185_v62, %v2184_v61  ;;  %v2187_v0 = vpop.f32.mrb[14].mxu1 }
 0x114   : > { %v2188_v1 = vpop.f32.mrb[15].mxu1  ;;  %v2264_v38 = vpop.f32.mrb[12].mxu0 }
 0x115   : > { %v3035_v3 = vadd.f32 %v2188_v1, %v2187_v0  ;;  %v2265_v40 = vpop.f32.mrb[13].mxu0  ;;  %v1453_v6 = vadd.f32 %v3033_v63, %v1963_v8 }
 0x116   : > { %v2266_v41 = vadd.f32 %v2265_v40, %v2264_v38  ;;  %v2267_v42 = vpop.f32.mrb[14].mxu0 }
 0x117   : > { %v2268_v44 = vpop.f32.mrb[15].mxu0  ;;  %v1456_v58 = vadd.f32 %v3035_v3, %v1963_v8 }
 0x118   : > { %v2269_v46 = vadd.f32 %v2268_v44, %v2267_v42 }
 0x119   : > { %v2206_v10 = vpop.f32.mrb[16].mxu1 }
 0x11a   : > { %v2207_v11 = vpop.f32.mrb[17].mxu1 }
 0x11b   : > { %v2208_v13 = vadd.f32 %v2207_v11, %v2206_v10  ;;  %v2209_v14 = vpop.f32.mrb[18].mxu1 }
 0x11c   : > { %v2210_v15 = vpop.f32.mrb[19].mxu1 }
 0x11d   : > { %v1494_v17 = vadd.f32 %v2208_v13, %v1429_v12  ;;  %v2211_v18 = vadd.f32 %v2210_v15, %v2209_v14 }
 0x11f   : > { %v1497_v20 = vadd.f32 %v2211_v18, %v1432_v16  ;;  %v1559_v22 = vadd.f32 %v2248_v56, %v1494_v17  ;;  %v2326_v56 = vpop.f32.mrb[16].mxu0 }
 0x120   : > { %v2327_v59 = vpop.f32.mrb[17].mxu0 }
 0x121   : > { %v1562_v26 = vadd.f32 %v2251_v60, %v1497_v20  ;;  %v2212_v28 = vpop.f32.mrb[20].mxu1  ;;  %v2328_v61 = vadd.f32 %v2327_v59, %v2326_v56  ;;  %v2329_v62 = vpop.f32.mrb[18].mxu0 }
 0x122   : > { %v2213_v29 = vpop.f32.mrb[21].mxu1  ;;  %v2330_v0 = vpop.f32.mrb[19].mxu0 }
 0x123   : > { %v2214_v31 = vadd.f32 %v2213_v29, %v2212_v28  ;;  %v2215_v32 = vpop.f32.mrb[22].mxu1  ;;  %v2331_v2 = vadd.f32 %v2330_v0, %v2329_v62 }
 0x124   : > { %v2216_v33 = vpop.f32.mrb[23].mxu1  ;;  %v2332_v28 = vpop.f32.mrb[20].mxu0 }
 0x125   : > { %v1502_v35 = vadd.f32 %v2214_v31, %v1437_v30  ;;  %v2217_v36 = vadd.f32 %v2216_v33, %v2215_v32  ;;  %v2333_v8 = vpop.f32.mrb[21].mxu0 }
 0x126   : > { %v2334_v31 = vadd.f32 %v2333_v8, %v2332_v28  ;;  %v2335_v32 = vpop.f32.mrb[22].mxu0 }
 0x127   : > { %v1505_v37 = vadd.f32 %v2217_v36, %v1440_v34  ;;  %v1567_v39 = vadd.f32 %v2254_v5, %v1502_v35  ;;  %v2336_v35 = vpop.f32.mrb[23].mxu0 }
 0x128   : > { %v2337_v36 = vadd.f32 %v2336_v35, %v2335_v32 }
 0x129   : > { %v1570_v43 = vadd.f32 %v2257_v9, %v1505_v37  ;;  %v2218_v47 = vpop.f32.mrb[24].mxu1 }
 0x12a   : > { %v2219_v49 = vpop.f32.mrb[25].mxu1 }
 0x12b   : > { %v2220_v51 = vadd.f32 %v2219_v49, %v2218_v47  ;;  %v2221_v45 = vpop.f32.mrb[26].mxu1 }
 0x12c   : > { %v2222_v53 = vpop.f32.mrb[27].mxu1  ;;  %v2338_v44 = vpop.f32.mrb[24].mxu0 }
 0x12d   : > { %v1510_v55 = vadd.f32 %v2220_v51, %v1445_v50  ;;  %v2223_v48 = vadd.f32 %v2222_v53, %v2221_v45  ;;  %v2339_v47 = vpop.f32.mrb[25].mxu0 }
 0x12e   : > { %v2340_v51 = vadd.f32 %v2339_v47, %v2338_v44  ;;  %v2341_v45 = vpop.f32.mrb[26].mxu0 }
 0x12f   : > { %v1513_v57 = vadd.f32 %v2223_v48, %v1448_v54  ;;  %v1575_v60 = vadd.f32 %v2260_v23, %v1510_v55 }
 0x131   : > { %v1578_v1 = vadd.f32 %v2263_v27, %v1513_v57  ;;  %v2224_v4 = vpop.f32.mrb[28].mxu1 }
 0x132   : > { %v2225_v5 = vpop.f32.mrb[29].mxu1 }
 0x133   : > { %v2226_v52 = vadd.f32 %v2225_v5, %v2224_v4  ;;  %v2227_v7 = vpop.f32.mrb[30].mxu1 }
 0x134   : > { %v2228_v9 = vpop.f32.mrb[31].mxu1 }
 0x135   : > { %v1518_v10 = vadd.f32 %v2226_v52, %v1453_v6  ;;  %v2229_v11 = vadd.f32 %v2228_v9, %v2227_v7 }
 0x137   : > { %v1521_v12 = vadd.f32 %v2229_v11, %v1456_v58  ;;  %v1583_v13 = vadd.f32 %v2266_v41, %v1518_v10 }
 0x139   : > { %v1586_v14 = vadd.f32 %v2269_v46, %v1521_v12  ;;  %v2286_v15 = vpop.f32.mrb[32].mxu1 }
 0x13a   : > { %v2287_v16 = vpop.f32.mrb[33].mxu1 }
 0x13b   : > { %v2288_v17 = vadd.f32 %v2287_v16, %v2286_v15  ;;  %v2289_v18 = vpop.f32.mrb[34].mxu1 }
 0x13c   : > { %v2290_v19 = vpop.f32.mrb[35].mxu1 }
 0x13d   : > { %v1624_v20 = vadd.f32 %v2288_v17, %v1559_v22  ;;  %v2291_v21 = vadd.f32 %v2290_v19, %v2289_v18 }
 0x13f   : > { %v1627_v23 = vadd.f32 %v2291_v21, %v1562_v26  ;;  %v1689_v24 = vadd.f32 %v2328_v61, %v1624_v20 }
 0x141   : > { %v2292_v63 = vpop.f32.mrb[36].mxu1  ;;  %v1692_v25 = vadd.f32 %v2331_v2, %v1627_v23 }
 0x142   : > { %v2293_v27 = vpop.f32.mrb[37].mxu1 }
 0x143   : > { %v2294_v29 = vadd.f32 %v2293_v27, %v2292_v63  ;;  %v2295_v3 = vpop.f32.mrb[38].mxu1 }
 0x144   : > { %v2296_v30 = vpop.f32.mrb[39].mxu1 }
 0x145   : > { %v1632_v33 = vadd.f32 %v2294_v29, %v1567_v39  ;;  %v2297_v34 = vadd.f32 %v2296_v30, %v2295_v3  ;;  %v2342_v39 = vpop.f32.mrb[27].mxu0 }
 0x146   : > { %v2344_v61 = vpop.f32.mrb[28].mxu0 }
 0x147   : > { %v1635_v37 = vadd.f32 %v2297_v34, %v1570_v43  ;;  %v3042_v38 = vadd.f32 %v2334_v31, %v1632_v33  ;;  %v2343_v43 = vadd.f32 %v2342_v39, %v2341_v45  ;;  %v2345_v0 = vpop.f32.mrb[29].mxu0 }
 0x148   : > { %v2347_v5 = vpop.f32.mrb[30].mxu0 }
 0x149   : > { %v3044_v22 = vadd.f32 %v2337_v36, %v1635_v37  ;;  %v2298_v26 = vpop.f32.mrb[40].mxu1  ;;  %v2348_v6 = vpop.f32.mrb[31].mxu0 }
 0x14a   : > { %v2299_v40 = vpop.f32.mrb[41].mxu1  ;;  %v2349_v7 = vadd.f32 %v2348_v6, %v2347_v5 }
 0x14b   : > { %v2300_v41 = vadd.f32 %v2299_v40, %v2298_v26  ;;  %v2301_v42 = vpop.f32.mrb[42].mxu1 }
 0x14c   : > { %v2302_v46 = vpop.f32.mrb[43].mxu1  ;;  %v1818_v15 = vpop.f32.mrb[32].mxu0 }
 0x14d   : > { %v1640_v49 = vadd.f32 %v2300_v41, %v1575_v60  ;;  %v2303_v50 = vadd.f32 %v2302_v46, %v2301_v42  ;;  %v2346_v60 = vadd.f32 %v2345_v0, %v2344_v61  ;;  %v1820_v17 = vpop.f32.mrb[33].mxu0 }
 0x14e   : > { %v1821_v19 = vpop.f32.mrb[34].mxu0 }
 0x14f   : > { %v1643_v53 = vadd.f32 %v2303_v50, %v1578_v1  ;;  %v3046_v54 = vadd.f32 %v2340_v51, %v1640_v49  ;;  %v1823_v20 = vpop.f32.mrb[35].mxu0 }
 0x151   : > { %v3048_v55 = vadd.f32 %v2343_v43, %v1643_v53  ;;  %v2304_v48 = vpop.f32.mrb[44].mxu1 }
 0x152   : > { %v2305_v56 = vpop.f32.mrb[45].mxu1 }
 0x153   : > { %v2306_v57 = vadd.f32 %v2305_v56, %v2304_v48  ;;  %v2307_v59 = vpop.f32.mrb[46].mxu1 }
 0x154   : > { %v2308_v62 = vpop.f32.mrb[47].mxu1  ;;  %v1826_v30 = vpop.f32.mrb[36].mxu0 }
 0x155   : > { %v1648_v2 = vadd.f32 %v2306_v57, %v1583_v13  ;;  %v2309_v4 = vadd.f32 %v2308_v62, %v2307_v59  ;;  %v1828_v32 = vpop.f32.mrb[37].mxu0 }
 0x156   : > { %v1829_v35 = vpop.f32.mrb[38].mxu0 }
 0x157   : > { %v1651_v52 = vadd.f32 %v2309_v4, %v1586_v14  ;;  %v3050_v1 = vadd.f32 %v2346_v60, %v1648_v2  ;;  %v1831_v36 = vpop.f32.mrb[39].mxu0 }
 0x159   : > { %v3052_v9 = vadd.f32 %v2349_v7, %v1651_v52  ;;  %v2366_v58 = vpop.f32.mrb[48].mxu1 }
 0x15a   : > { %v2367_v10 = vpop.f32.mrb[49].mxu1 }
 0x15b   : > { %v2368_v11 = vadd.f32 %v2367_v10, %v2366_v58  ;;  %v2369_v12 = vpop.f32.mrb[50].mxu1 }
 0x15c   : > { %v2370_v16 = vpop.f32.mrb[51].mxu1  ;;  %v1834_v51 = vpop.f32.mrb[40].mxu0 }
 0x15d   : > { %v2371_v18 = vadd.f32 %v2370_v16, %v2369_v12  ;;  %v1754_v13 = vadd.f32 %v2368_v11, %v1689_v24 }
 0x15f   : > { %v1819_v21 = vadd.f32 %v1818_v15, %v1754_v13  ;;  %v1757_v23 = vadd.f32 %v2371_v18, %v1692_v25 }
 0x161   : > { %v1849_v14 = vmax.f32 %v1819_v21, 0.0  ;;  %v1822_v63 = vadd.f32 %v1821_v19, %v1757_v23  ;;  %v2372_v27 = vpop.f32.mrb[52].mxu1 }
 0x162   : > { %v2373_v28 = vpop.f32.mrb[53].mxu1 }
 0x163   : > { %v2142_v29 = vpack.c.bf16 %v1849_v14, %v1849_v14  ;;  %v1850_v3 = vmax.f32 %v1822_v63, 0.0  ;;  %v2374_v24 = vadd.f32 %v2373_v28, %v2372_v27  ;;  %v2375_v8 = vpop.f32.mrb[54].mxu1 }
 0x164   : > { %v2376_v31 = vpop.f32.mrb[55].mxu1 }
 0x165   : > { %1890 = vst.msk [vmem:[%s3058_s20] sm:$0xf] %vm1889_vm1, %v2142_v29  ;;  %v2143_v25 = vpack.c.bf16 %v1850_v3, %v1850_v3  ;;  %v2377_v33 = vadd.f32 %v2376_v31, %v2375_v8  ;;  %v1762_v34 = vadd.f32 %v2374_v24, %v3042_v38  ;;  %v1836_v38 = vpop.f32.mrb[41].mxu0 }
 0x166   : > { %v1837_v48 = vpop.f32.mrb[42].mxu0 }
 0x167   : > { %1891 = vst.msk [vmem:[%s3058_s20 + $0x4] sm:$0xf] %vm1889_vm1, %v2143_v25  ;;  %v1827_v37 = vadd.f32 %v1826_v30, %v1762_v34  ;;  %v1765_v26 = vadd.f32 %v2377_v33, %v3044_v22  ;;  %v1839_v22 = vpop.f32.mrb[43].mxu0 }
 0x168   : > { %v1842_v6 = vpop.f32.mrb[44].mxu0 }
 0x169   : > { %v1851_v40 = vmax.f32 %v1827_v37, 0.0  ;;  %v1830_v41 = vadd.f32 %v1829_v35, %v1765_v26  ;;  %v2378_v42 = vpop.f32.mrb[56].mxu1  ;;  %v1844_v52 = vpop.f32.mrb[45].mxu0 }
 0x16a   : > { %v2379_v44 = vpop.f32.mrb[57].mxu1  ;;  %v1845_v10 = vpop.f32.mrb[46].mxu0 }
 0x16b   : > { %v2144_v46 = vpack.c.bf16 %v1851_v40, %v1851_v40  ;;  %v1852_v47 = vmax.f32 %v1830_v41, 0.0  ;;  %v2380_v49 = vadd.f32 %v2379_v44, %v2378_v42  ;;  %v2381_v50 = vpop.f32.mrb[58].mxu1  ;;  %v1847_v11 = vpop.f32.mrb[47].mxu0 }
 0x16c   : > { %v2382_v45 = vpop.f32.mrb[59].mxu1 }
 0x16d   : > { %1892 = vst.msk [vmem:[%s3058_s20 + $0x8] sm:$0xf] %vm1889_vm1, %v2144_v46  ;;  %v2145_v39 = vpack.c.bf16 %v1852_v47, %v1852_v47  ;;  %v2383_v53 = vadd.f32 %v2382_v45, %v2381_v50  ;;  %v1770_v43 = vadd.f32 %v2380_v49, %v3046_v54 }
 0x16f   : > { %1893 = vst.msk [vmem:[%s3058_s20 + $0xc] sm:$0xf] %vm1889_vm1, %v2145_v39  ;;  %v1835_v56 = vadd.f32 %v1834_v51, %v1770_v43  ;;  %v1773_v57 = vadd.f32 %v2383_v53, %v3048_v55 }
 0x171   : > { %v1853_v59 = vmax.f32 %v1835_v56, 0.0  ;;  %v1838_v61 = vadd.f32 %v1837_v48, %v1773_v57  ;;  %v2384_v62 = vpop.f32.mrb[60].mxu1 }
 0x172   : > { %v2385_v0 = vpop.f32.mrb[61].mxu1 }
 0x173   : > { %v2146_v2 = vpack.c.bf16 %v1853_v59, %v1853_v59  ;;  %v1854_v4 = vmax.f32 %v1838_v61, 0.0  ;;  %v2386_v60 = vadd.f32 %v2385_v0, %v2384_v62  ;;  %v2387_v5 = vpop.f32.mrb[62].mxu1 }
 0x174   : > { %v2388_v54 = vpop.f32.mrb[63].mxu1 }
 0x175   : > { %1894 = vst.msk [vmem:[%s3058_s20 + $0x10] sm:$0xf] %vm1889_vm1, %v2146_v2  ;;  %v2147_v7 = vpack.c.bf16 %v1854_v4, %v1854_v4  ;;  %v2389_v58 = vadd.f32 %v2388_v54, %v2387_v5  ;;  %v1778_v55 = vadd.f32 %v2386_v60, %v3050_v1 }
 0x177   : > { %1895 = vst.msk [vmem:[%s3058_s20 + $0x14] sm:$0xf] %vm1889_vm1, %v2147_v7  ;;  %v1843_v12 = vadd.f32 %v1842_v6, %v1778_v55  ;;  %v1781_v15 = vadd.f32 %v2389_v58, %v3052_v9 }
 0x179   : > { %v1855_v16 = vmax.f32 %v1843_v12, 0.0  ;;  %v1846_v17 = vadd.f32 %v1845_v10, %v1781_v15 }
 0x17b   : > { %v2148_v18 = vpack.c.bf16 %v1855_v16, %v1855_v16  ;;  %v1856_v13 = vmax.f32 %v1846_v17, 0.0 }
 0x17d   : > { %1896 = vst.msk [vmem:[%s3058_s20 + $0x18] sm:$0xf] %vm1889_vm1, %v2148_v18  ;;  %v2149_v19 = vpack.c.bf16 %v1856_v13, %v1856_v13 }
 0x17f   : > { %1897 = vst.msk [vmem:[%s3058_s20 + $0x1c] sm:$0xf] %vm1889_vm1, %v2149_v19 }
 0x180 PF: > { %s13_s12 = sadd.s32 1, %s2598_s12  }
 0x181   : > { %p10_p4 = scmp.ge.s32.totalorder %s13_s12, 4  }
 0x183   :  { %12 = sbr.rel (!%p10_p4) target bundleno = 1 (0x1), region = 62 }

// kernel: stcae_encoder_forward.14
= control target key start
LH: loop header
LB: loop body
LE: loop exit
PB: predicated region body
PF: predicated region fallthrough
CT: control target
= control target key end

     0   :  { %s3845_s12 = smov 0   ;;  %s4487_s0 = inlined_call_operand.vmem [shape: bf16[128,2592], index: 0, kind: input, shape index: {}]   ;;  %s4488_s1 = inlined_call_operand.vmem [shape: bf16[2592,96], index: 1, kind: input, shape index: {}]   ;;  %s4489_s2 = inlined_call_operand.vmem [shape: f32[1,96], index: 2, kind: input, shape index: {}]   ;;  %s4490_s3 = inlined_call_operand.vmem [shape: bf16[128,96], index: 3, kind: output, shape index: {}]  }
   0x1 LB: > { %s2822_s13 = sadd.s32 4294967295, %s3823_s12   ;;  %p2826_p0 = scmp.ge.s32.totalorder %s3823_s12, 1  ;;  %s3823_s12 = sphi %s3845_s12, %s13_s12  }
   0x2   : > { %p139_p1 = scmp.lt.s32.totalorder %s3823_s12, 3 }
   0x4   : > { %p140_p2 = pnand %p2826_p0, %p139_p1 }
   0x5   : > { %v3531_v0 = vld [vmem:[%s4488_s1 + $0x40] sm:$0xff] (!%p140_p2)   ;;  %v3535_v4 = vld [vmem:[%s4488_s1 + $0x48] sm:$0xff] (!%p140_p2)   ;;  %v3539_v8 = vld [vmem:[%s4488_s1 + $0x50] sm:$0xff] (!%p140_p2)   ;;  %s2827_s19 = sshll.u32 (!%p140_p2), %s2822_s13, 3  ;;  %vm1989_vm0 = vcmask (!%p140_p2), 261120   ;;  %vm2757_vm1 = vcmask (!%p140_p2), 781312  }
   0x6   : > { %143 = sbr.rel (%p140_p2) target bundleno = 422 (0x1a6), region = 32  ;;  %v3532_v1 = vld [vmem:[%s4488_s1 + $0xc0] sm:$0xff] (!%p140_p2)   ;;  %3100 = vmatprep.subr.bf16.mxu0 (!%p140_p2), %v3531_v0  ;;  %v3536_v5 = vld [vmem:[%s4488_s1 + $0xc8] sm:$0xff] (!%p140_p2)   ;;  %v3540_v9 = vld [vmem:[%s4488_s1 + $0xd0] sm:$0xff] (!%p140_p2)   ;;  %p165_p3 = scmp.lt.s32.totalorder (!%p140_p2), %s2827_s19, 15 }
   0x7   : > { %v3533_v2 = vld [vmem:[%s4488_s1] sm:$0xff] (!%p140_p2)   ;;  %3140 = vmatprep.subr.bf16.mxu1 (!%p140_p2), %v3532_v1  ;;  %v3537_v6 = vld [vmem:[%s4488_s1 + $0x8] sm:$0xff] (!%p140_p2)   ;;  %v3541_v10 = vld [vmem:[%s4488_s1 + $0x10] sm:$0xff] (!%p140_p2)  }
   0x8   : > { %v3534_v3 = vld [vmem:[%s4488_s1 + $0x80] sm:$0xff] (!%p140_p2)   ;;  %3101 = vmatpush3.bf16.msra.mxu0 (!%p140_p2), %v3533_v2  ;;  %v3538_v7 = vld [vmem:[%s4488_s1 + $0x88] sm:$0xff] (!%p140_p2)   ;;  %v3542_v11 = vld [vmem:[%s4488_s1 + $0x90] sm:$0xff] (!%p140_p2)  }
   0x9   : > { %3141 = vmatpush3.bf16.msra.mxu1 (!%p140_p2), %v3534_v3  ;;  %3102 = vmatprep.subr.bf16.mxu0 (!%p140_p2), %v3535_v4  ;;  %v3543_v12 = vld [vmem:[%s4488_s1 + $0x58] sm:$0xff] (!%p140_p2)   ;;  %v3547_v16 = vld [vmem:[%s4488_s1 + $0x60] sm:$0xff] (!%p140_p2)   ;;  %v3551_v20 = vld [vmem:[%s4488_s1 + $0x68] sm:$0xff] (!%p140_p2)  }
   0xa   : > { %3142 = vmatprep.subr.bf16.mxu1 (!%p140_p2), %v3536_v5  ;;  %v3544_v13 = vld [vmem:[%s4488_s1 + $0xd8] sm:$0xff] (!%p140_p2)   ;;  %v3548_v17 = vld [vmem:[%s4488_s1 + $0xe0] sm:$0xff] (!%p140_p2)   ;;  %v3552_v21 = vld [vmem:[%s4488_s1 + $0xe8] sm:$0xff] (!%p140_p2)  }
   0xb   : > { %v3545_v14 = vld [vmem:[%s4488_s1 + $0x18] sm:$0xff] (!%p140_p2)   ;;  %v3549_v18 = vld [vmem:[%s4488_s1 + $0x20] sm:$0xff] (!%p140_p2)   ;;  %v3553_v22 = vld [vmem:[%s4488_s1 + $0x28] sm:$0xff] (!%p140_p2)  }
   0xc   : > { %3103 = vmatpush3.bf16.msra.mxu0 (!%p140_p2), %v3537_v6  ;;  %v3546_v15 = vld [vmem:[%s4488_s1 + $0x98] sm:$0xff] (!%p140_p2)   ;;  %v3550_v19 = vld [vmem:[%s4488_s1 + $0xa0] sm:$0xff] (!%p140_p2)   ;;  %v3554_v23 = vld [vmem:[%s4488_s1 + $0xa8] sm:$0xff] (!%p140_p2)  }
   0xd   : > { %3143 = vmatpush3.bf16.msra.mxu1 %v3538_v7  ;;  %3104 = vmatprep.subr.bf16.mxu0 %v3539_v8  ;;  %s4492_s19 = smov (!%p165_p3, %s2827_s19), 15  ;;  %v3555_v24 = vld [vmem:[%s4488_s1 + $0x70] sm:$0xff]   ;;  %v3559_v28 = vld [vmem:[%s4488_s1 + $0x78] sm:$0xff]   ;;  %v3569_v36 = vld [vmem:[%s4488_s1 + $0x140] sm:$0xff]  }
   0xe   : > { %3144 = vmatprep.subr.bf16.mxu1 %v3540_v9  ;;  %v3556_v25 = vld [vmem:[%s4488_s1 + $0xf0] sm:$0xff]   ;;  %s3522_s16 = smul.u32 84, %s4492_s19  ;;  %v3560_v29 = vld [vmem:[%s4488_s1 + $0xf8] sm:$0xff]   ;;  %v3570_v37 = vld [vmem:[%s4488_s1 + $0x1c0] sm:$0xff]  }
   0xf   : > { %v3557_v26 = vld [vmem:[%s4488_s1 + $0x30] sm:$0xff]   ;;  %v3561_v30 = vld [vmem:[%s4488_s1 + $0x38] sm:$0xff]   ;;  %v3571_v38 = vld [vmem:[%s4488_s1 + $0x100] sm:$0xff]  }
  0x10   : > { %3105 = vmatpush3.bf16.msra.mxu0 %v3541_v10  ;;  %v3558_v27 = vld [vmem:[%s4488_s1 + $0xb0] sm:$0xff]   ;;  %s3951_s13 = scalar_lea.vmem %s4487_s0, %s3522_s16  ;;  %v3562_v31 = vld [vmem:[%s4488_s1 + $0xb8] sm:$0xff]   ;;  %v3572_v39 = vld [vmem:[%s4488_s1 + $0x180] sm:$0xff]  }
  0x11   : > { %3145 = vmatpush3.bf16.msra.mxu1 %v3542_v11  ;;  %3106 = vmatprep.subr.bf16.mxu0 %v3543_v12  ;;  %v3563_v32 = vld [vmem:[%s3951_s13] ss:$84 sps:$4 sm:$0xff]   ;;  %v3565_v33 = vld [vmem:[%s3951_s13 + $0x4] ss:$84 sps:$4 sm:$0xff]   ;;  %v3566_v34 = vld [vmem:[%s3951_s13 + $0x8] ss:$84 sps:$4 sm:$0xff]  }
  0x12   : > { %3146 = vmatprep.subr.bf16.mxu1 %v3544_v13  ;;  %v3568_v35 = vld [vmem:[%s3951_s13 + $0xc] ss:$84 sps:$4 sm:$0xff]   ;;  %2034 = vmatprep.mubr.bf16.mxu0 %v3565_v33  ;;  %v3579_v45 = vld [vmem:[%s3951_s13 + $0xb4] ss:$84 sps:$4 sm:$0xff]   ;;  %v3582_v47 = vld [vmem:[%s3951_s13 + $0xb0] ss:$84 sps:$4 sm:$0xff]  }
  0x13   : > { %2099 = vmatprep.mubr.bf16.mxu1 %v3568_v35  ;;  %v3573_v40 = vld [vmem:[%s4488_s1 + $0x148] sm:$0xff]   ;;  %v3583_v48 = vld [vmem:[%s4488_s1 + $0x150] sm:$0xff]   ;;  %v3587_v52 = vld [vmem:[%s4488_s1 + $0x158] sm:$0xff]  }
  0x14   : > { %3107 = vmatpush3.bf16.msra.mxu0 %v3545_v14  ;;  %v3574_v41 = vld [vmem:[%s4488_s1 + $0x1c8] sm:$0xff]   ;;  %v3584_v49 = vld [vmem:[%s4488_s1 + $0x1d0] sm:$0xff]   ;;  %v3588_v53 = vld [vmem:[%s4488_s1 + $0x1d8] sm:$0xff]  }
  0x15   : > { %3147 = vmatpush3.bf16.msra.mxu1 %v3546_v15  ;;  %3108 = vmatprep.subr.bf16.mxu0 %v3547_v16  ;;  %v3575_v42 = vld [vmem:[%s4488_s1 + $0x108] sm:$0xff]   ;;  %v3585_v50 = vld [vmem:[%s4488_s1 + $0x110] sm:$0xff]   ;;  %v3589_v54 = vld [vmem:[%s4488_s1 + $0x118] sm:$0xff]  }
  0x16   : > { %3148 = vmatprep.subr.bf16.mxu1 %v3548_v17  ;;  %v3576_v43 = vld [vmem:[%s4488_s1 + $0x188] sm:$0xff]   ;;  %v3586_v51 = vld [vmem:[%s4488_s1 + $0x190] sm:$0xff]   ;;  %v3590_v55 = vld [vmem:[%s4488_s1 + $0x198] sm:$0xff]  }
  0x17   : > { %v3577_v44 = vld [vmem:[%s3951_s13 + $0xac] ss:$84 sps:$4 sm:$0xff]   ;;  %v3581_v46 = vld [vmem:[%s3951_s13 + $0xa8] ss:$84 sps:$4 sm:$0xff]   ;;  %v3595_v58 = vld [vmem:[%s3951_s13 + $0x150] ss:$84 sps:$4 sm:$0xff]  }
  0x18   : > { %3109 = vmatpush3.bf16.msra.mxu0 %v3549_v18  ;;  %v3591_v56 = vld [vmem:[%s3951_s13 + $0x154] ss:$84 sps:$4 sm:$0xff]   ;;  %v3593_v57 = vld [vmem:[%s3951_s13 + $0x15c] ss:$84 sps:$4 sm:$0xff]   ;;  %v3596_v59 = vld [vmem:[%s3951_s13 + $0x158] ss:$84 sps:$4 sm:$0xff]  }
  0x19   : > { %3149 = vmatpush3.bf16.msra.mxu1 %v3550_v19  ;;  %3110 = vmatprep.subr.bf16.mxu0 %v3551_v20  ;;  %v3597_v60 = vld [vmem:[%s4488_s1 + $0x160] sm:$0xff]   ;;  %v3601_v0 = vld [vmem:[%s4488_s1 + $0x168] sm:$0xff]   ;;  %v3605_v4 = vld [vmem:[%s3951_s13 + $0x1fc] ss:$84 sps:$4 sm:$0xff]  }
  0x1a   : > { %3150 = vmatprep.subr.bf16.mxu1 %v3552_v21  ;;  %v3598_v61 = vld [vmem:[%s4488_s1 + $0x1e0] sm:$0xff]   ;;  %v3602_v1 = vld [vmem:[%s4488_s1 + $0x1e8] sm:$0xff]   ;;  %v3611_v8 = vld [vmem:[%s4488_s1 + $0x170] sm:$0xff]  }
  0x1b   : > { %v3599_v62 = vld [vmem:[%s4488_s1 + $0x120] sm:$0xff]   ;;  %v3603_v2 = vld [vmem:[%s4488_s1 + $0x128] sm:$0xff]   ;;  %v3612_v9 = vld [vmem:[%s4488_s1 + $0x1f0] sm:$0xff]  }
  0x1c   : > { %3111 = vmatpush3.bf16.msra.mxu0 %v3553_v22  ;;  %v3600_v63 = vld [vmem:[%s4488_s1 + $0x1a0] sm:$0xff]   ;;  %v3604_v3 = vld [vmem:[%s4488_s1 + $0x1a8] sm:$0xff]   ;;  %v3613_v10 = vld [vmem:[%s4488_s1 + $0x130] sm:$0xff]  }
  0x1d   : > { %3151 = vmatpush3.bf16.msra.mxu1 %v3554_v23  ;;  %3112 = vmatprep.subr.bf16.mxu0 %v3555_v24  ;;  %v3607_v5 = vld [vmem:[%s3951_s13 + $0x204] ss:$84 sps:$4 sm:$0xff]   ;;  %v3610_v7 = vld [vmem:[%s3951_s13 + $0x200] ss:$84 sps:$4 sm:$0xff]   ;;  %v3624_v19 = vld [vmem:[%s3951_s13 + $0x1c] ss:$84 sps:$4 sm:$0xff]  }
  0x1e   : > { %3152 = vmatprep.subr.bf16.mxu1 %v3556_v25  ;;  %v3609_v6 = vld [vmem:[%s3951_s13 + $0x1f8] ss:$84 sps:$4 sm:$0xff]   ;;  %v3614_v11 = vld [vmem:[%s4488_s1 + $0x1b0] sm:$0xff]   ;;  %v3625_v20 = vld [vmem:[%s4488_s1 + $0x240] sm:$0xff]  }
  0x1f   : > { %v3615_v12 = vld [vmem:[%s4488_s1 + $0x178] sm:$0xff]   ;;  %v3619_v16 = vld [vmem:[%s3951_s13 + $0x10] ss:$84 sps:$4 sm:$0xff]   ;;  %v3621_v17 = vld [vmem:[%s3951_s13 + $0x14] ss:$84 sps:$4 sm:$0xff]  }
  0x20   : > { %3113 = vmatpush3.bf16.msra.mxu0 %v3557_v26  ;;  %v3616_v13 = vld [vmem:[%s4488_s1 + $0x1f8] sm:$0xff]   ;;  %v3626_v21 = vld [vmem:[%s4488_s1 + $0x2c0] sm:$0xff]   ;;  %v3629_v24 = vld [vmem:[%s4488_s1 + $0x248] sm:$0xff]  }
  0x21   : > { %3153 = vmatpush3.bf16.msra.mxu1 %v3558_v27  ;;  %3114 = vmatprep.subr.bf16.mxu0 %v3559_v28  ;;  %v3617_v14 = vld [vmem:[%s4488_s1 + $0x138] sm:$0xff]   ;;  %v3627_v22 = vld [vmem:[%s4488_s1 + $0x200] sm:$0xff]   ;;  %v3630_v25 = vld [vmem:[%s4488_s1 + $0x2c8] sm:$0xff]  }
  0x22   : > { %3154 = vmatprep.subr.bf16.mxu1 %v3560_v29  ;;  %v3618_v15 = vld [vmem:[%s4488_s1 + $0x1b8] sm:$0xff]   ;;  %v3628_v23 = vld [vmem:[%s4488_s1 + $0x280] sm:$0xff]   ;;  %v3631_v26 = vld [vmem:[%s4488_s1 + $0x208] sm:$0xff]  }
  0x23   : > { %v3622_v18 = vld [vmem:[%s3951_s13 + $0x18] ss:$84 sps:$4 sm:$0xff]   ;;  %v3633_v28 = vld [vmem:[%s3951_s13 + $0xbc] ss:$84 sps:$4 sm:$0xff]  }
  0x24   : > { %3115 = vmatpush3.bf16.msra.mxu0 %v3561_v30  ;;  %v3632_v27 = vld [vmem:[%s4488_s1 + $0x288] sm:$0xff]   ;;  %v3635_v29 = vld [vmem:[%s3951_s13 + $0xc4] ss:$84 sps:$4 sm:$0xff]   ;;  %v3640_v33 = vld [vmem:[%s4488_s1 + $0x2d0] sm:$0xff]  }
  0x25   : > { %3155 = vmatpush3.bf16.msra.mxu1 %v3562_v31  ;;  %3180 = vmatprep.subr.bf16.mxu0 %v3569_v36  ;;  %v3637_v30 = vld [vmem:[%s3951_s13 + $0xb8] ss:$84 sps:$4 sm:$0xff]   ;;  %v3638_v31 = vld [vmem:[%s3951_s13 + $0xc0] ss:$84 sps:$4 sm:$0xff]  }
  0x26   : > { %3220 = vmatprep.subr.bf16.mxu1 %v3570_v37  ;;  %v3642_v35 = vld [vmem:[%s4488_s1 + $0x290] sm:$0xff]   ;;  %v3643_v36 = vld [vmem:[%s4488_s1 + $0x258] sm:$0xff]  }
  0x27   : > { %2035 = vmatmul.mubr.bf16.vlgmr.msra.gmra.mrb[0].mxu0 %v3563_v32  ;;  %v3639_v32 = vld [vmem:[%s4488_s1 + $0x250] sm:$0xff]   ;;  %v3644_v37 = vld [vmem:[%s4488_s1 + $0x2d8] sm:$0xff]  }
  0x28   : > { %2100 = vmatmul.mubr.bf16.vlgmr.msra.gmra.mrb[0].mxu1 %v3566_v34  ;;  %3181 = vmatpush3.bf16.msra.mxu0 %v3571_v38  ;;  %v3641_v34 = vld [vmem:[%s4488_s1 + $0x210] sm:$0xff]   ;;  %v3645_v38 = vld [vmem:[%s4488_s1 + $0x218] sm:$0xff]  }
  0x29   : > { %3221 = vmatpush3.bf16.msra.mxu1 %v3572_v39  ;;  %3182 = vmatprep.subr.bf16.mxu0 %v3573_v40  ;;  %v3646_v39 = vld [vmem:[%s4488_s1 + $0x298] sm:$0xff]  }
  0x2a   : > { %3222 = vmatprep.subr.bf16.mxu1 %v3574_v41  ;;  %2042 = vmatprep.mubr.bf16.mxu0 %v3577_v44  ;;  %v3647_v40 = vld [vmem:[%s3951_s13 + $0x164] ss:$84 sps:$4 sm:$0xff]   ;;  %v3649_v41 = vld [vmem:[%s3951_s13 + $0x16c] ss:$84 sps:$4 sm:$0xff]  }
  0x2b   : > { %2107 = vmatprep.mubr.bf16.mxu1 %v3579_v45  ;;  %v3653_v44 = vld [vmem:[%s4488_s1 + $0x260] sm:$0xff]  }
  0x2c   : > { %3183 = vmatpush3.bf16.msra.mxu0 %v3575_v42  ;;  %v3651_v42 = vld [vmem:[%s3951_s13 + $0x160] ss:$84 sps:$4 sm:$0xff]  }
  0x2d   : > { %3223 = vmatpush3.bf16.msra.mxu1 %v3576_v43  ;;  %3184 = vmatprep.subr.bf16.mxu0 %v3583_v48  ;;  %v3652_v43 = vld [vmem:[%s3951_s13 + $0x168] ss:$84 sps:$4 sm:$0xff]   ;;  %v3654_v45 = vld [vmem:[%s4488_s1 + $0x2e0] sm:$0xff]  }
  0x2e   : > { %3224 = vmatprep.subr.bf16.mxu1 %v3584_v49  ;;  %v3657_v48 = vld [vmem:[%s4488_s1 + $0x268] sm:$0xff]  }
  0x2f   : > { %2043 = vmatmul.mubr.bf16.gmra.mrb[4].mxu0 %v3581_v46  ;;  %v3655_v46 = vld [vmem:[%s4488_s1 + $0x220] sm:$0xff]   ;;  %v3658_v49 = vld [vmem:[%s4488_s1 + $0x2e8] sm:$0xff]  }
  0x30   : > { %2108 = vmatmul.mubr.bf16.gmra.mrb[4].mxu1 %v3582_v47  ;;  %3185 = vmatpush3.bf16.msra.mxu0 %v3585_v50  ;;  %v3656_v47 = vld [vmem:[%s4488_s1 + $0x2a0] sm:$0xff]   ;;  %v3659_v50 = vld [vmem:[%s4488_s1 + $0x228] sm:$0xff]  }
  0x31   : > { %3225 = vmatpush3.bf16.msra.mxu1 %v3586_v51  ;;  %3186 = vmatprep.subr.bf16.mxu0 %v3587_v52  ;;  %v3660_v51 = vld [vmem:[%s4488_s1 + $0x2a8] sm:$0xff]  }
  0x32   : > { %3226 = vmatprep.subr.bf16.mxu1 %v3588_v53  ;;  %2050 = vmatprep.mubr.bf16.mxu0 %v3591_v56  ;;  %v3661_v52 = vld [vmem:[%s3951_s13 + $0x20c] ss:$84 sps:$4 sm:$0xff]   ;;  %v3663_v53 = vld [vmem:[%s3951_s13 + $0x214] ss:$84 sps:$4 sm:$0xff]  }
  0x33   : > { %2115 = vmatprep.mubr.bf16.mxu1 %v3593_v57  ;;  %v3667_v56 = vld [vmem:[%s4488_s1 + $0x270] sm:$0xff]  }
  0x34   : > { %3187 = vmatpush3.bf16.msra.mxu0 %v3589_v54  ;;  %v3665_v54 = vld [vmem:[%s3951_s13 + $0x208] ss:$84 sps:$4 sm:$0xff]   ;;  %v3668_v57 = vld [vmem:[%s4488_s1 + $0x2f0] sm:$0xff]  }
  0x35   : > { %3227 = vmatpush3.bf16.msra.mxu1 %v3590_v55  ;;  %3188 = vmatprep.subr.bf16.mxu0 %v3597_v60  ;;  %v3666_v55 = vld [vmem:[%s3951_s13 + $0x210] ss:$84 sps:$4 sm:$0xff]   ;;  %v3671_v60 = vld [vmem:[%s4488_s1 + $0x278] sm:$0xff]  }
  0x36   : > { %3228 = vmatprep.subr.bf16.mxu1 %v3598_v61  ;;  %v3672_v61 = vld [vmem:[%s4488_s1 + $0x2f8] sm:$0xff]  }
  0x37   : > { %2051 = vmatmul.mubr.bf16.gmra.mrb[8].mxu0 %v3595_v58  ;;  %v3669_v58 = vld [vmem:[%s4488_s1 + $0x230] sm:$0xff]  }
  0x38   : > { %2116 = vmatmul.mubr.bf16.gmra.mrb[8].mxu1 %v3596_v59  ;;  %3189 = vmatpush3.bf16.msra.mxu0 %v3599_v62  ;;  %v3670_v59 = vld [vmem:[%s4488_s1 + $0x2b0] sm:$0xff]   ;;  %v3673_v62 = vld [vmem:[%s4488_s1 + $0x238] sm:$0xff]  }
  0x39   : > { %3229 = vmatpush3.bf16.msra.mxu1 %v3600_v63  ;;  %3190 = vmatprep.subr.bf16.mxu0 %v3601_v0  ;;  %v3674_v63 = vld [vmem:[%s4488_s1 + $0x2b8] sm:$0xff]   ;;  %v3675_v0 = vld [vmem:[%s3951_s13 + $0x20] ss:$84 sps:$4 sm:$0xff]  }
  0x3a   : > { %3230 = vmatprep.subr.bf16.mxu1 %v3602_v1  ;;  %2058 = vmatprep.mubr.bf16.mxu0 %v3605_v4  ;;  %v3677_v1 = vld [vmem:[%s3951_s13 + $0x24] ss:$84 sps:$4 sm:$0xff]  }
  0x3b   : > { %2123 = vmatprep.mubr.bf16.mxu1 %v3607_v5  ;;  %v3681_v4 = vld [vmem:[%s4488_s1 + $0x340] sm:$0xff]  }
  0x3c   : > { %3191 = vmatpush3.bf16.msra.mxu0 %v3603_v2  ;;  %v3678_v2 = vld [vmem:[%s3951_s13 + $0x28] ss:$84 sps:$4 sm:$0xff]   ;;  %v3682_v5 = vld [vmem:[%s4488_s1 + $0x3c0] sm:$0xff]  }
  0x3d   : > { %3231 = vmatpush3.bf16.msra.mxu1 %v3604_v3  ;;  %3192 = vmatprep.subr.bf16.mxu0 %v3611_v8  ;;  %v3680_v3 = vld [vmem:[%s3951_s13 + $0x2c] ss:$84 sps:$4 sm:$0xff]  }
  0x3e   : > { %3232 = vmatprep.subr.bf16.mxu1 %v3612_v9  ;;  %v3685_v8 = vld [vmem:[%s4488_s1 + $0x348] sm:$0xff]  }
  0x3f   : > { %2059 = vmatmul.mubr.bf16.gmra.mrb[12].mxu0 %v3609_v6  ;;  %v3683_v6 = vld [vmem:[%s4488_s1 + $0x300] sm:$0xff]   ;;  %v3686_v9 = vld [vmem:[%s4488_s1 + $0x3c8] sm:$0xff]  }
  0x40   : > { %2124 = vmatmul.mubr.bf16.gmra.mrb[12].mxu1 %v3610_v7  ;;  %3193 = vmatpush3.bf16.msra.mxu0 %v3613_v10  ;;  %v3684_v7 = vld [vmem:[%s4488_s1 + $0x380] sm:$0xff]   ;;  %v3687_v10 = vld [vmem:[%s4488_s1 + $0x308] sm:$0xff]  }
  0x41   : > { %3233 = vmatpush3.bf16.msra.mxu1 %v3614_v11  ;;  %3194 = vmatprep.subr.bf16.mxu0 %v3615_v12  ;;  %v3688_v11 = vld [vmem:[%s4488_s1 + $0x388] sm:$0xff]  }
  0x42   : > { %3234 = vmatprep.subr.bf16.mxu1 %v3616_v13  ;;  %2164 = vmatprep.mubr.bf16.mxu0 %v3621_v17  ;;  %v3689_v12 = vld [vmem:[%s3951_s13 + $0xcc] ss:$84 sps:$4 sm:$0xff]   ;;  %v3691_v13 = vld [vmem:[%s3951_s13 + $0xd4] ss:$84 sps:$4 sm:$0xff]  }
  0x43   : > { %2229 = vmatprep.mubr.bf16.mxu1 %v3624_v19  ;;  %v3696_v17 = vld [vmem:[%s4488_s1 + $0x3d0] sm:$0xff]  }
  0x44   : > { %3195 = vmatpush3.bf16.msra.mxu0 %v3617_v14  ;;  %v3693_v14 = vld [vmem:[%s3951_s13 + $0xc8] ss:$84 sps:$4 sm:$0xff]   ;;  %v3698_v19 = vld [vmem:[%s4488_s1 + $0x390] sm:$0xff]  }
  0x45   : > { %3235 = vmatpush3.bf16.msra.mxu1 %v3618_v15  ;;  %3260 = vmatprep.subr.bf16.mxu0 %v3625_v20  ;;  %v3694_v15 = vld [vmem:[%s3951_s13 + $0xd0] ss:$84 sps:$4 sm:$0xff]   ;;  %v3699_v20 = vld [vmem:[%s4488_s1 + $0x358] sm:$0xff]  }
  0x46   : > { %3300 = vmatprep.subr.bf16.mxu1 %v3626_v21  ;;  %v3700_v21 = vld [vmem:[%s4488_s1 + $0x3d8] sm:$0xff]  }
  0x47   : > { %2165 = vmatmul.mubr.bf16.vlgmr.msra.gmra.mrb[16].mxu0 %v3619_v16  ;;  %v3695_v16 = vld [vmem:[%s4488_s1 + $0x350] sm:$0xff]  }
  0x48   : > { %2230 = vmatmul.mubr.bf16.vlgmr.msra.gmra.mrb[16].mxu1 %v3622_v18  ;;  %3261 = vmatpush3.bf16.msra.mxu0 %v3627_v22  ;;  %v3697_v18 = vld [vmem:[%s4488_s1 + $0x310] sm:$0xff]   ;;  %v3701_v22 = vld [vmem:[%s4488_s1 + $0x318] sm:$0xff]  }
  0x49   : > { %3301 = vmatpush3.bf16.msra.mxu1 %v3628_v23  ;;  %3262 = vmatprep.subr.bf16.mxu0 %v3629_v24  ;;  %v3702_v23 = vld [vmem:[%s4488_s1 + $0x398] sm:$0xff]   ;;  %v3703_v24 = vld [vmem:[%s3951_s13 + $0x174] ss:$84 sps:$4 sm:$0xff]  }
  0x4a   : > { %3302 = vmatprep.subr.bf16.mxu1 %v3630_v25  ;;  %2172 = vmatprep.mubr.bf16.mxu0 %v3633_v28  ;;  %v3705_v25 = vld [vmem:[%s3951_s13 + $0x17c] ss:$84 sps:$4 sm:$0xff]   ;;  %v3709_v28 = vld [vmem:[%s4488_s1 + $0x360] sm:$0xff]  }
  0x4b   : > { %2237 = vmatprep.mubr.bf16.mxu1 %v3635_v29  ;;  %v3710_v29 = vld [vmem:[%s4488_s1 + $0x3e0] sm:$0xff]  }
  0x4c   : > { %3263 = vmatpush3.bf16.msra.mxu0 %v3631_v26  ;;  %v3707_v26 = vld [vmem:[%s3951_s13 + $0x170] ss:$84 sps:$4 sm:$0xff]  }
  0x4d   : > { %3303 = vmatpush3.bf16.msra.mxu1 %v3632_v27  ;;  %3264 = vmatprep.subr.bf16.mxu0 %v3639_v32  ;;  %v3708_v27 = vld [vmem:[%s3951_s13 + $0x178] ss:$84 sps:$4 sm:$0xff]  }
  0x4e   : > { %3304 = vmatprep.subr.bf16.mxu1 %v3640_v33  ;;  %v3713_v32 = vld [vmem:[%s4488_s1 + $0x368] sm:$0xff]  }
  0x4f   : > { %2173 = vmatmul.mubr.bf16.gmra.mrb[20].mxu0 %v3637_v30  ;;  %v3711_v30 = vld [vmem:[%s4488_s1 + $0x320] sm:$0xff]   ;;  %v3714_v33 = vld [vmem:[%s4488_s1 + $0x3e8] sm:$0xff]  }
  0x50   : > { %2238 = vmatmul.mubr.bf16.gmra.mrb[20].mxu1 %v3638_v31  ;;  %3265 = vmatpush3.bf16.msra.mxu0 %v3641_v34  ;;  %v3712_v31 = vld [vmem:[%s4488_s1 + $0x3a0] sm:$0xff]   ;;  %v3715_v34 = vld [vmem:[%s4488_s1 + $0x328] sm:$0xff]  }
  0x51   : > { %3305 = vmatpush3.bf16.msra.mxu1 %v3642_v35  ;;  %3266 = vmatprep.subr.bf16.mxu0 %v3643_v36  ;;  %v3716_v35 = vld [vmem:[%s4488_s1 + $0x3a8] sm:$0xff]   ;;  %v3717_v36 = vld [vmem:[%s3951_s13 + $0x21c] ss:$84 sps:$4 sm:$0xff]  }
  0x52   : > { %3306 = vmatprep.subr.bf16.mxu1 %v3644_v37  ;;  %2180 = vmatprep.mubr.bf16.mxu0 %v3647_v40  ;;  %v3719_v37 = vld [vmem:[%s3951_s13 + $0x224] ss:$84 sps:$4 sm:$0xff]   ;;  %v3723_v40 = vld [vmem:[%s4488_s1 + $0x370] sm:$0xff]  }
  0x53   : > { %2245 = vmatprep.mubr.bf16.mxu1 %v3649_v41  ;;  %v3724_v41 = vld [vmem:[%s4488_s1 + $0x3f0] sm:$0xff]  }
  0x54   : > { %3267 = vmatpush3.bf16.msra.mxu0 %v3645_v38  ;;  %v3721_v38 = vld [vmem:[%s3951_s13 + $0x218] ss:$84 sps:$4 sm:$0xff]  }
  0x55   : > { %3307 = vmatpush3.bf16.msra.mxu1 %v3646_v39  ;;  %3268 = vmatprep.subr.bf16.mxu0 %v3653_v44  ;;  %v3722_v39 = vld [vmem:[%s3951_s13 + $0x220] ss:$84 sps:$4 sm:$0xff]   ;;  %v3727_v44 = vld [vmem:[%s4488_s1 + $0x378] sm:$0xff]  }
  0x56   : > { %3308 = vmatprep.subr.bf16.mxu1 %v3654_v45  ;;  %v3728_v45 = vld [vmem:[%s4488_s1 + $0x3f8] sm:$0xff]  }
  0x57   : > { %2181 = vmatmul.mubr.bf16.gmra.mrb[24].mxu0 %v3651_v42  ;;  %v3725_v42 = vld [vmem:[%s4488_s1 + $0x330] sm:$0xff]  }
  0x58   : > { %2246 = vmatmul.mubr.bf16.gmra.mrb[24].mxu1 %v3652_v43  ;;  %3269 = vmatpush3.bf16.msra.mxu0 %v3655_v46  ;;  %v3726_v43 = vld [vmem:[%s4488_s1 + $0x3b0] sm:$0xff]   ;;  %v3729_v46 = vld [vmem:[%s4488_s1 + $0x338] sm:$0xff]  }
  0x59   : > { %3309 = vmatpush3.bf16.msra.mxu1 %v3656_v47  ;;  %3270 = vmatprep.subr.bf16.mxu0 %v3657_v48  ;;  %v3730_v47 = vld [vmem:[%s4488_s1 + $0x3b8] sm:$0xff]   ;;  %v3731_v48 = vld [vmem:[%s3951_s13 + $0x30] ss:$84 sps:$4 sm:$0xff]  }
  0x5a   : > { %3310 = vmatprep.subr.bf16.mxu1 %v3658_v49  ;;  %2188 = vmatprep.mubr.bf16.mxu0 %v3661_v52  ;;  %v3733_v49 = vld [vmem:[%s3951_s13 + $0x34] ss:$84 sps:$4 sm:$0xff]   ;;  %v3737_v52 = vld [vmem:[%s4488_s1 + $0x440] sm:$0xff]  }
  0x5b   : > { %2253 = vmatprep.mubr.bf16.mxu1 %v3663_v53  ;;  %v3738_v53 = vld [vmem:[%s4488_s1 + $0x4c0] sm:$0xff]  }
  0x5c   : > { %3271 = vmatpush3.bf16.msra.mxu0 %v3659_v50  ;;  %v3734_v50 = vld [vmem:[%s3951_s13 + $0x38] ss:$84 sps:$4 sm:$0xff]  }
  0x5d   : > { %3311 = vmatpush3.bf16.msra.mxu1 %v3660_v51  ;;  %3272 = vmatprep.subr.bf16.mxu0 %v3667_v56  ;;  %v3736_v51 = vld [vmem:[%s3951_s13 + $0x3c] ss:$84 sps:$4 sm:$0xff]   ;;  %v3741_v56 = vld [vmem:[%s4488_s1 + $0x448] sm:$0xff]  }
  0x5e   : > { %3312 = vmatprep.subr.bf16.mxu1 %v3668_v57  ;;  %v3742_v57 = vld [vmem:[%s4488_s1 + $0x4c8] sm:$0xff]  }
  0x5f   : > { %2189 = vmatmul.mubr.bf16.gmra.mrb[28].mxu0 %v3665_v54  ;;  %v3739_v54 = vld [vmem:[%s4488_s1 + $0x400] sm:$0xff]  }
  0x60   : > { %2254 = vmatmul.mubr.bf16.gmra.mrb[28].mxu1 %v3666_v55  ;;  %3273 = vmatpush3.bf16.msra.mxu0 %v3669_v58  ;;  %v3740_v55 = vld [vmem:[%s4488_s1 + $0x480] sm:$0xff]   ;;  %v3743_v58 = vld [vmem:[%s4488_s1 + $0x408] sm:$0xff]  }
  0x61   : > { %3313 = vmatpush3.bf16.msra.mxu1 %v3670_v59  ;;  %3274 = vmatprep.subr.bf16.mxu0 %v3671_v60  ;;  %v3744_v59 = vld [vmem:[%s4488_s1 + $0x488] sm:$0xff]   ;;  %v3745_v60 = vld [vmem:[%s3951_s13 + $0xdc] ss:$84 sps:$4 sm:$0xff]  }
  0x62   : > { %3314 = vmatprep.subr.bf16.mxu1 %v3672_v61  ;;  %2294 = vmatprep.mubr.bf16.mxu0 %v3677_v1  ;;  %v3747_v61 = vld [vmem:[%s3951_s13 + $0xe4] ss:$84 sps:$4 sm:$0xff]   ;;  %v3752_v1 = vld [vmem:[%s4488_s1 + $0x4d0] sm:$0xff]  }
  0x63   : > { %2359 = vmatprep.mubr.bf16.mxu1 %v3680_v3  ;;  %v3754_v3 = vld [vmem:[%s4488_s1 + $0x490] sm:$0xff]  }
  0x64   : > { %3275 = vmatpush3.bf16.msra.mxu0 %v3673_v62  ;;  %v3749_v62 = vld [vmem:[%s3951_s13 + $0xd8] ss:$84 sps:$4 sm:$0xff]  }
  0x65   : > { %3315 = vmatpush3.bf16.msra.mxu1 %v3674_v63  ;;  %3340 = vmatprep.subr.bf16.mxu0 %v3681_v4  ;;  %v3750_v63 = vld [vmem:[%s3951_s13 + $0xe0] ss:$84 sps:$4 sm:$0xff]   ;;  %v3755_v4 = vld [vmem:[%s4488_s1 + $0x458] sm:$0xff]  }
  0x66   : > { %3380 = vmatprep.subr.bf16.mxu1 %v3682_v5  ;;  %v3756_v5 = vld [vmem:[%s4488_s1 + $0x4d8] sm:$0xff]  }
  0x67   : > { %2295 = vmatmul.mubr.bf16.vlgmr.msra.gmra.mrb[32].mxu0 %v3675_v0  ;;  %v3751_v0 = vld [vmem:[%s4488_s1 + $0x450] sm:$0xff]  }
  0x68   : > { %2360 = vmatmul.mubr.bf16.vlgmr.msra.gmra.mrb[32].mxu1 %v3678_v2  ;;  %3341 = vmatpush3.bf16.msra.mxu0 %v3683_v6  ;;  %v3753_v2 = vld [vmem:[%s4488_s1 + $0x410] sm:$0xff]   ;;  %v3757_v6 = vld [vmem:[%s4488_s1 + $0x418] sm:$0xff]  }
  0x69   : > { %3381 = vmatpush3.bf16.msra.mxu1 %v3684_v7  ;;  %3342 = vmatprep.subr.bf16.mxu0 %v3685_v8  ;;  %v3758_v7 = vld [vmem:[%s4488_s1 + $0x498] sm:$0xff]  }
  0x6a   : > { %3382 = vmatprep.subr.bf16.mxu1 %v3686_v9  ;;  %2302 = vmatprep.mubr.bf16.mxu0 %v3689_v12  ;;  %v3759_v8 = vld [vmem:[%s3951_s13 + $0x184] ss:$84 sps:$4 sm:$0xff]   ;;  %v3761_v9 = vld [vmem:[%s3951_s13 + $0x18c] ss:$84 sps:$4 sm:$0xff]  }
  0x6b   : > { %2367 = vmatprep.mubr.bf16.mxu1 %v3691_v13  ;;  %v3765_v12 = vld [vmem:[%s4488_s1 + $0x460] sm:$0xff]  }
  0x6c   : > { %3343 = vmatpush3.bf16.msra.mxu0 %v3687_v10  ;;  %v3763_v10 = vld [vmem:[%s3951_s13 + $0x180] ss:$84 sps:$4 sm:$0xff]  }
  0x6d   : > { %3383 = vmatpush3.bf16.msra.mxu1 %v3688_v11  ;;  %3344 = vmatprep.subr.bf16.mxu0 %v3695_v16  ;;  %v3764_v11 = vld [vmem:[%s3951_s13 + $0x188] ss:$84 sps:$4 sm:$0xff]   ;;  %v3766_v13 = vld [vmem:[%s4488_s1 + $0x4e0] sm:$0xff]  }
  0x6e   : > { %3384 = vmatprep.subr.bf16.mxu1 %v3696_v17  ;;  %v3769_v16 = vld [vmem:[%s4488_s1 + $0x468] sm:$0xff]  }
  0x6f   : > { %2303 = vmatmul.mubr.bf16.gmra.mrb[36].mxu0 %v3693_v14  ;;  %v3767_v14 = vld [vmem:[%s4488_s1 + $0x420] sm:$0xff]   ;;  %v3770_v17 = vld [vmem:[%s4488_s1 + $0x4e8] sm:$0xff]  }
  0x70   : > { %2368 = vmatmul.mubr.bf16.gmra.mrb[36].mxu1 %v3694_v15  ;;  %3345 = vmatpush3.bf16.msra.mxu0 %v3697_v18  ;;  %v3768_v15 = vld [vmem:[%s4488_s1 + $0x4a0] sm:$0xff]   ;;  %v3771_v18 = vld [vmem:[%s4488_s1 + $0x428] sm:$0xff]  }
  0x71   : > { %3385 = vmatpush3.bf16.msra.mxu1 %v3698_v19  ;;  %3346 = vmatprep.subr.bf16.mxu0 %v3699_v20  ;;  %v3772_v19 = vld [vmem:[%s4488_s1 + $0x4a8] sm:$0xff]  }
  0x72   : > { %3386 = vmatprep.subr.bf16.mxu1 %v3700_v21  ;;  %2310 = vmatprep.mubr.bf16.mxu0 %v3703_v24  ;;  %v3773_v20 = vld [vmem:[%s3951_s13 + $0x22c] ss:$84 sps:$4 sm:$0xff]   ;;  %v3775_v21 = vld [vmem:[%s3951_s13 + $0x234] ss:$84 sps:$4 sm:$0xff]  }
  0x73   : > { %2375 = vmatprep.mubr.bf16.mxu1 %v3705_v25  ;;  %v3779_v24 = vld [vmem:[%s4488_s1 + $0x470] sm:$0xff]  }
  0x74   : > { %3347 = vmatpush3.bf16.msra.mxu0 %v3701_v22  ;;  %v3777_v22 = vld [vmem:[%s3951_s13 + $0x228] ss:$84 sps:$4 sm:$0xff]   ;;  %v3780_v25 = vld [vmem:[%s4488_s1 + $0x4f0] sm:$0xff]  }
  0x75   : > { %3387 = vmatpush3.bf16.msra.mxu1 %v3702_v23  ;;  %3348 = vmatprep.subr.bf16.mxu0 %v3709_v28  ;;  %v3778_v23 = vld [vmem:[%s3951_s13 + $0x230] ss:$84 sps:$4 sm:$0xff]   ;;  %v3783_v28 = vld [vmem:[%s4488_s1 + $0x478] sm:$0xff]  }
  0x76   : > { %3388 = vmatprep.subr.bf16.mxu1 %v3710_v29  ;;  %v3784_v29 = vld [vmem:[%s4488_s1 + $0x4f8] sm:$0xff]  }
  0x77   : > { %2311 = vmatmul.mubr.bf16.gmra.mrb[40].mxu0 %v3707_v26  ;;  %v3781_v26 = vld [vmem:[%s4488_s1 + $0x430] sm:$0xff]  }
  0x78   : > { %2376 = vmatmul.mubr.bf16.gmra.mrb[40].mxu1 %v3708_v27  ;;  %3349 = vmatpush3.bf16.msra.mxu0 %v3711_v30  ;;  %v3782_v27 = vld [vmem:[%s4488_s1 + $0x4b0] sm:$0xff]   ;;  %v3785_v30 = vld [vmem:[%s4488_s1 + $0x438] sm:$0xff]  }
  0x79   : > { %3389 = vmatpush3.bf16.msra.mxu1 %v3712_v31  ;;  %3350 = vmatprep.subr.bf16.mxu0 %v3713_v32  ;;  %v3786_v31 = vld [vmem:[%s4488_s1 + $0x4b8] sm:$0xff]   ;;  %v3787_v32 = vld [vmem:[%s3951_s13 + $0x40] ss:$84 sps:$4 sm:$0xff]  }
  0x7a   : > { %3390 = vmatprep.subr.bf16.mxu1 %v3714_v33  ;;  %2318 = vmatprep.mubr.bf16.mxu0 %v3717_v36  ;;  %v3789_v33 = vld [vmem:[%s3951_s13 + $0x44] ss:$84 sps:$4 sm:$0xff]  }
  0x7b   : > { %2383 = vmatprep.mubr.bf16.mxu1 %v3719_v37  ;;  %v3793_v36 = vld [vmem:[%s4488_s1 + $0x500] sm:$0xff]  }
  0x7c   : > { %3351 = vmatpush3.bf16.msra.mxu0 %v3715_v34  ;;  %v3790_v34 = vld [vmem:[%s3951_s13 + $0x48] ss:$84 sps:$4 sm:$0xff]   ;;  %v3794_v37 = vld [vmem:[%s3951_s13 + $0xec] ss:$84 sps:$4 sm:$0xff]  }
  0x7d   : > { %3391 = vmatpush3.bf16.msra.mxu1 %v3716_v35  ;;  %3352 = vmatprep.subr.bf16.mxu0 %v3723_v40  ;;  %v3792_v35 = vld [vmem:[%s3951_s13 + $0x4c] ss:$84 sps:$4 sm:$0xff]   ;;  %v3799_v40 = vld [vmem:[%s3951_s13 + $0xf0] ss:$84 sps:$4 sm:$0xff]  }
  0x7e   : > { %3392 = vmatprep.subr.bf16.mxu1 %v3724_v41  ;;  %v3800_v41 = vld [vmem:[%s3951_s13 + $0x194] ss:$84 sps:$4 sm:$0xff]  }
  0x7f   : > { %2319 = vmatmul.mubr.bf16.gmra.mrb[44].mxu0 %v3721_v38  ;;  %v3796_v38 = vld [vmem:[%s3951_s13 + $0xf4] ss:$84 sps:$4 sm:$0xff]  }
  0x80   : > { %2384 = vmatmul.mubr.bf16.gmra.mrb[44].mxu1 %v3722_v39  ;;  %3353 = vmatpush3.bf16.msra.mxu0 %v3725_v42  ;;  %v3798_v39 = vld [vmem:[%s3951_s13 + $0xe8] ss:$84 sps:$4 sm:$0xff]  }
  0x81   : > { %3393 = vmatpush3.bf16.msra.mxu1 %v3726_v43  ;;  %3354 = vmatprep.subr.bf16.mxu0 %v3727_v44  ;;  %v3806_v42 = vld [vmem:[%s4488_s1 + $0x508] sm:$0xff]   ;;  %v3802_v43 = vld [vmem:[%s3951_s13 + $0x19c] ss:$84 sps:$4 sm:$0xff]  }
  0x82   : > { %3394 = vmatprep.subr.bf16.mxu1 %v3728_v45  ;;  %2424 = vmatprep.mubr.bf16.mxu0 %v3733_v49  ;;  %v3804_v44 = vld [vmem:[%s3951_s13 + $0x190] ss:$84 sps:$4 sm:$0xff]  }
  0x83   : > { %2489 = vmatprep.mubr.bf16.mxu1 %v3736_v51  ;;  %v3807_v45 = vld [vmem:[%s3951_s13 + $0x23c] ss:$84 sps:$4 sm:$0xff]   ;;  %v3814_v51 = vld [vmem:[%s3951_s13 + $0x1a0] ss:$84 sps:$4 sm:$0xff]  }
  0x84   : > { %3355 = vmatpush3.bf16.msra.mxu0 %v3729_v46  ;;  %v3805_v46 = vld [vmem:[%s3951_s13 + $0x198] ss:$84 sps:$4 sm:$0xff]   ;;  %v3813_v49 = vld [vmem:[%s3951_s13 + $0x50] ss:$84 sps:$4 sm:$0xff]  }
  0x85   : > { %3395 = vmatpush3.bf16.msra.mxu1 %v3730_v47  ;;  %3420 = vmatprep.subr.bf16.mxu0 %v3737_v52  ;;  %v3809_v47 = vld [vmem:[%s3951_s13 + $0x244] ss:$84 sps:$4 sm:$0xff]  }
  0x86   : > { %3460 = vmatprep.subr.bf16.mxu1 %v3738_v53  ;;  %v3815_v52 = vld [vmem:[%s3951_s13 + $0xf8] ss:$84 sps:$4 sm:$0xff]   ;;  %v3816_v53 = vld [vmem:[%s3951_s13 + $0x248] ss:$84 sps:$4 sm:$0xff]  }
  0x87   : > { %2425 = vmatmul.mubr.bf16.vlgmr.msra.gmra.mrb[48].mxu0 %v3731_v48  ;;  %v3811_v48 = vld [vmem:[%s3951_s13 + $0x238] ss:$84 sps:$4 sm:$0xff]  }
  0x88   : > { %2490 = vmatmul.mubr.bf16.vlgmr.msra.gmra.mrb[48].mxu1 %v3734_v50  ;;  %3421 = vmatpush3.bf16.msra.mxu0 %v3739_v54  ;;  %v3812_v50 = vld [vmem:[%s3951_s13 + $0x240] ss:$84 sps:$4 sm:$0xff]   ;;  %s2830_s13 = sshll.u32 %s4492_s19, 2 }
  0x89   : > { %3461 = vmatpush3.bf16.msra.mxu1 %v3740_v55  ;;  %3422 = vmatprep.subr.bf16.mxu0 %v3741_v56  ;;  %v2831_v56 = vld [vmem:[%s4489_s2] ss:$0 sm:$0xff]  ;;  %s175_s5 = scalar_lea.vmem %s4490_s3, %s2830_s13 }
  0x8a   : > { %3462 = vmatprep.subr.bf16.mxu1 %v3742_v57  ;;  %2432 = vmatprep.mubr.bf16.mxu0 %v3745_v60 }
  0x8b   : > { %2497 = vmatprep.mubr.bf16.mxu1 %v3747_v61 }
  0x8c   : > { %3423 = vmatpush3.bf16.msra.mxu0 %v3743_v58 }
  0x8d   : > { %3463 = vmatpush3.bf16.msra.mxu1 %v3744_v59  ;;  %3424 = vmatprep.subr.bf16.mxu0 %v3751_v0 }
  0x8e   : > { %3464 = vmatprep.subr.bf16.mxu1 %v3752_v1 }
  0x8f   : > { %2433 = vmatmul.mubr.bf16.gmra.mrb[52].mxu0 %v3749_v62 }
  0x90   : > { %2498 = vmatmul.mubr.bf16.gmra.mrb[52].mxu1 %v3750_v63  ;;  %3425 = vmatpush3.bf16.msra.mxu0 %v3753_v2 }
  0x91   : > { %3465 = vmatpush3.bf16.msra.mxu1 %v3754_v3  ;;  %3426 = vmatprep.subr.bf16.mxu0 %v3755_v4 }
  0x92   : > { %3466 = vmatprep.subr.bf16.mxu1 %v3756_v5  ;;  %2440 = vmatprep.mubr.bf16.mxu0 %v3759_v8 }
  0x93   : > { %2505 = vmatprep.mubr.bf16.mxu1 %v3761_v9 }
  0x94   : > { %3427 = vmatpush3.bf16.msra.mxu0 %v3757_v6 }
  0x95   : > { %3467 = vmatpush3.bf16.msra.mxu1 %v3758_v7  ;;  %3428 = vmatprep.subr.bf16.mxu0 %v3765_v12 }
  0x96   : > { %3468 = vmatprep.subr.bf16.mxu1 %v3766_v13 }
  0x97   : > { %2441 = vmatmul.mubr.bf16.gmra.mrb[56].mxu0 %v3763_v10 }
  0x98   : > { %2506 = vmatmul.mubr.bf16.gmra.mrb[56].mxu1 %v3764_v11  ;;  %3429 = vmatpush3.bf16.msra.mxu0 %v3767_v14 }
  0x99   : > { %3469 = vmatpush3.bf16.msra.mxu1 %v3768_v15  ;;  %3430 = vmatprep.subr.bf16.mxu0 %v3769_v16 }
  0x9a   : > { %3470 = vmatprep.subr.bf16.mxu1 %v3770_v17  ;;  %2448 = vmatprep.mubr.bf16.mxu0 %v3773_v20 }
  0x9b   : > { %2513 = vmatprep.mubr.bf16.mxu1 %v3775_v21 }
  0x9c   : > { %3431 = vmatpush3.bf16.msra.mxu0 %v3771_v18 }
  0x9d   : > { %3471 = vmatpush3.bf16.msra.mxu1 %v3772_v19  ;;  %3432 = vmatprep.subr.bf16.mxu0 %v3779_v24 }
  0x9e   : > { %3472 = vmatprep.subr.bf16.mxu1 %v3780_v25 }
  0x9f   : > { %2449 = vmatmul.mubr.bf16.gmra.mrb[60].mxu0 %v3777_v22 }
  0xa0   : > { %2514 = vmatmul.mubr.bf16.gmra.mrb[60].mxu1 %v3778_v23  ;;  %3433 = vmatpush3.bf16.msra.mxu0 %v3781_v26 }
  0xa1   : > { %3473 = vmatpush3.bf16.msra.mxu1 %v3782_v27  ;;  %3434 = vmatprep.subr.bf16.mxu0 %v3783_v28 }
  0xa2   : > { %3474 = vmatprep.subr.bf16.mxu1 %v3784_v29  ;;  %2554 = vmatprep.mubr.bf16.mxu0 %v3789_v33 }
  0xa3   : > { %2619 = vmatprep.mubr.bf16.mxu1 %v3792_v35 }
  0xa4   : > { %3435 = vmatpush3.bf16.msra.mxu0 %v3785_v30 }
  0xa5   : > { %3475 = vmatpush3.bf16.msra.mxu1 %v3786_v31  ;;  %3506 = vmatprep.subr.bf16.mxu0 %v3793_v36 }
  0xa6   : > { %3518 = vmatprep.subr.bf16.mxu1 %v3793_v36 }
  0xa7   : > { %2555 = vmatmul.mubr.bf16.vlgmr.msra.gmra.mrb[64].mxu0 %v3787_v32 }
  0xa8   : > { %2620 = vmatmul.mubr.bf16.vlgmr.msra.gmra.mrb[64].mxu1 %v3790_v34  ;;  %3507 = vmatpush3.bf16.msra.mxu0 %v3793_v36 }
  0xa9   : > { %3520 = vmatpush3.bf16.msra.mxu1 %v3793_v36  ;;  %2562 = vmatprep.mubr.bf16.mxu0 %v3794_v37 }
  0xaa   : > { %2627 = vmatprep.mubr.bf16.mxu1 %v3796_v38  ;;  %3508 = vmatprep.subr.bf16.mxu0 %v3806_v42 }
  0xab   : > { %3519 = vmatprep.subr.bf16.mxu1 %v3806_v42 }
  0xac   : > { %3509 = vmatpush3.bf16.msra.mxu0 %v3806_v42 }
  0xad   : > { %3521 = vmatpush3.bf16.msra.mxu1 %v3806_v42 }
  0xaf   : > { %2563 = vmatmul.mubr.bf16.gmra.mrb[68].mxu0 %v3798_v39 }
  0xb0   : > { %2570 = vmatprep.mubr.bf16.mxu0 %v3800_v41  ;;  %2628 = vmatmul.mubr.bf16.gmra.mrb[68].mxu1 %v3799_v40 }
  0xb1   : > { %2635 = vmatprep.mubr.bf16.mxu1 %v3802_v43 }
  0xb7   : > { %2571 = vmatmul.mubr.bf16.gmra.mrb[72].mxu0 %v3804_v44 }
  0xb8   : > { %2578 = vmatprep.mubr.bf16.mxu0 %v3807_v45  ;;  %2636 = vmatmul.mubr.bf16.gmra.mrb[72].mxu1 %v3805_v46 }
  0xb9   : > { %2643 = vmatprep.mubr.bf16.mxu1 %v3809_v47 }
  0xbf   : > { %2579 = vmatmul.mubr.bf16.gmra.mrb[76].mxu0 %v3811_v48 }
  0xc0   : > { %3510 = vmatprep.mubr.msk.bf16.mxu0 %vm1989_vm0, %v3813_v49  ;;  %2644 = vmatmul.mubr.bf16.gmra.mrb[76].mxu1 %v3812_v50 }
  0xc1   : > { %3514 = vmatprep.mubr.msk.bf16.mxu1 %vm1989_vm0, %v3814_v51 }
  0xc7   : > { %3511 = vmatmul.mubr.msk.bf16.vlgmr.msra.gmra.mrb[80].mxu0 %vm1989_vm0, %v3815_v52 }
  0xc8   : > { %3515 = vmatmul.mubr.msk.bf16.vlgmr.msra.gmra.mrb[80].mxu1 %vm1989_vm0, %v3816_v53 }
  0xfa   : > { %v3116_v54 = vpop.f32.mrb[0].mxu0 }
  0xfb   : > { %v3156_v55 = vpop.f32.mrb[0].mxu1  ;;  %v3117_v57 = vpop.f32.mrb[1].mxu0 }
  0xfc   : > { %v3118_v58 = vadd.f32 %v3117_v57, %v3116_v54  ;;  %v3157_v59 = vpop.f32.mrb[1].mxu1  ;;  %v3119_v60 = vpop.f32.mrb[2].mxu0 }
  0xfd   : > { %v3158_v61 = vadd.f32 %v3157_v59, %v3156_v55  ;;  %v3159_v62 = vpop.f32.mrb[2].mxu1  ;;  %v3120_v63 = vpop.f32.mrb[3].mxu0 }
  0xfe   : > { %v2037_v0 = vadd.f32 %v3118_v58, %v2831_v56  ;;  %v3121_v1 = vadd.f32 %v3120_v63, %v3119_v60  ;;  %v3160_v2 = vpop.f32.mrb[3].mxu1 }
  0xff   : > { %v3161_v3 = vadd.f32 %v3160_v2, %v3159_v62 }
 0x100   : > { %v2102_v4 = vadd.f32 %v3158_v61, %v2037_v0  ;;  %v2040_v5 = vadd.f32 %v3121_v1, %v2831_v56 }
 0x102   : > { %v2105_v6 = vadd.f32 %v3161_v3, %v2040_v5  ;;  %v3122_v7 = vpop.f32.mrb[4].mxu0 }
 0x103   : > { %v3162_v8 = vpop.f32.mrb[4].mxu1  ;;  %v3123_v9 = vpop.f32.mrb[5].mxu0 }
 0x104   : > { %v3124_v10 = vadd.f32 %v3123_v9, %v3122_v7  ;;  %v3163_v11 = vpop.f32.mrb[5].mxu1  ;;  %v3125_v12 = vpop.f32.mrb[6].mxu0 }
 0x105   : > { %v3164_v13 = vadd.f32 %v3163_v11, %v3162_v8  ;;  %v3165_v14 = vpop.f32.mrb[6].mxu1  ;;  %v3126_v15 = vpop.f32.mrb[7].mxu0 }
 0x106   : > { %v2045_v16 = vadd.f32 %v3124_v10, %v2831_v56  ;;  %v3127_v17 = vadd.f32 %v3126_v15, %v3125_v12  ;;  %v3166_v18 = vpop.f32.mrb[7].mxu1 }
 0x107   : > { %v3167_v19 = vadd.f32 %v3166_v18, %v3165_v14 }
 0x108   : > { %v2110_v20 = vadd.f32 %v3164_v13, %v2045_v16  ;;  %v2048_v21 = vadd.f32 %v3127_v17, %v2831_v56 }
 0x10a   : > { %v4436_v22 = vadd.f32 %v3167_v19, %v2048_v21  ;;  %v3128_v23 = vpop.f32.mrb[8].mxu0 }
 0x10b   : > { %v3168_v24 = vpop.f32.mrb[8].mxu1  ;;  %v3129_v25 = vpop.f32.mrb[9].mxu0 }
 0x10c   : > { %v3130_v26 = vadd.f32 %v3129_v25, %v3128_v23  ;;  %v3169_v27 = vpop.f32.mrb[9].mxu1  ;;  %v3131_v28 = vpop.f32.mrb[10].mxu0 }
 0x10d   : > { %v3170_v29 = vadd.f32 %v3169_v27, %v3168_v24  ;;  %v3171_v30 = vpop.f32.mrb[10].mxu1  ;;  %v3132_v31 = vpop.f32.mrb[11].mxu0 }
 0x10e   : > { %v2053_v32 = vadd.f32 %v3130_v26, %v2831_v56  ;;  %v3133_v33 = vadd.f32 %v3132_v31, %v3131_v28  ;;  %v3172_v34 = vpop.f32.mrb[11].mxu1 }
 0x10f   : > { %v3173_v35 = vadd.f32 %v3172_v34, %v3171_v30 }
 0x110   : > { %v2118_v36 = vadd.f32 %v3170_v29, %v2053_v32  ;;  %v2056_v37 = vadd.f32 %v3133_v33, %v2831_v56 }
 0x112   : > { %v4438_v38 = vadd.f32 %v3173_v35, %v2056_v37  ;;  %v3134_v39 = vpop.f32.mrb[12].mxu0 }
 0x113   : > { %v3174_v40 = vpop.f32.mrb[12].mxu1  ;;  %v3135_v41 = vpop.f32.mrb[13].mxu0 }
 0x114   : > { %v3175_v42 = vpop.f32.mrb[13].mxu1  ;;  %v3136_v43 = vadd.f32 %v3135_v41, %v3134_v39  ;;  %v3137_v45 = vpop.f32.mrb[14].mxu0 }
 0x115   : > { %v3176_v44 = vadd.f32 %v3175_v42, %v3174_v40  ;;  %v3177_v46 = vpop.f32.mrb[14].mxu1  ;;  %v3138_v47 = vpop.f32.mrb[15].mxu0 }
 0x116   : > { %v3178_v48 = vpop.f32.mrb[15].mxu1  ;;  %v2061_v49 = vadd.f32 %v3136_v43, %v2831_v56  ;;  %v3139_v50 = vadd.f32 %v3138_v47, %v3137_v45 }
 0x117   : > { %v3179_v51 = vadd.f32 %v3178_v48, %v3177_v46 }
 0x118   : > { %v2126_v52 = vadd.f32 %v3176_v44, %v2061_v49  ;;  %v2064_v53 = vadd.f32 %v3139_v50, %v2831_v56 }
 0x11a   : > { %v4440_v54 = vadd.f32 %v3179_v51, %v2064_v53  ;;  %v3196_v55 = vpop.f32.mrb[16].mxu0 }
 0x11b   : > { %v3197_v57 = vpop.f32.mrb[17].mxu0  ;;  %v3236_v58 = vpop.f32.mrb[16].mxu1 }
 0x11c   : > { %v3198_v59 = vadd.f32 %v3197_v57, %v3196_v55  ;;  %v3199_v60 = vpop.f32.mrb[18].mxu0  ;;  %v3237_v61 = vpop.f32.mrb[17].mxu1 }
 0x11d   : > { %v3200_v62 = vpop.f32.mrb[19].mxu0  ;;  %v3238_v0 = vadd.f32 %v3237_v61, %v3236_v58  ;;  %v3239_v1 = vpop.f32.mrb[18].mxu1 }
 0x11e   : > { %v2167_v63 = vadd.f32 %v3198_v59, %v2102_v4  ;;  %v3201_v2 = vadd.f32 %v3200_v62, %v3199_v60  ;;  %v3240_v3 = vpop.f32.mrb[19].mxu1 }
 0x11f   : > { %v3241_v8 = vadd.f32 %v3240_v3, %v3239_v1 }
 0x120   : > { %v2232_v5 = vadd.f32 %v3238_v0, %v2167_v63  ;;  %v2170_v7 = vadd.f32 %v3201_v2, %v2105_v6 }
 0x122   : > { %v4442_v9 = vadd.f32 %v3241_v8, %v2170_v7  ;;  %v3202_v56 = vpop.f32.mrb[20].mxu0 }
 0x123   : > { %v3242_v10 = vpop.f32.mrb[20].mxu1  ;;  %v3203_v11 = vpop.f32.mrb[21].mxu0 }
 0x124   : > { %v3204_v12 = vadd.f32 %v3203_v11, %v3202_v56  ;;  %v3243_v13 = vpop.f32.mrb[21].mxu1  ;;  %v3205_v14 = vpop.f32.mrb[22].mxu0 }
 0x125   : > { %v3244_v15 = vadd.f32 %v3243_v13, %v3242_v10  ;;  %v3245_v16 = vpop.f32.mrb[22].mxu1  ;;  %v3206_v17 = vpop.f32.mrb[23].mxu0 }
 0x126   : > { %v2175_v18 = vadd.f32 %v3204_v12, %v2110_v20  ;;  %v3207_v4 = vadd.f32 %v3206_v17, %v3205_v14  ;;  %v3246_v19 = vpop.f32.mrb[23].mxu1 }
 0x127   : > { %v3247_v21 = vadd.f32 %v3246_v19, %v3245_v16 }
 0x128   : > { %v2240_v23 = vadd.f32 %v3244_v15, %v2175_v18  ;;  %v2178_v24 = vadd.f32 %v3207_v4, %v4436_v22 }
 0x12a   : > { %v4445_v6 = vadd.f32 %v3247_v21, %v2178_v24  ;;  %v3208_v25 = vpop.f32.mrb[24].mxu0 }
 0x12b   : > { %v3248_v26 = vpop.f32.mrb[24].mxu1  ;;  %v3209_v27 = vpop.f32.mrb[25].mxu0 }
 0x12c   : > { %v3249_v28 = vpop.f32.mrb[25].mxu1  ;;  %v3210_v29 = vadd.f32 %v3209_v27, %v3208_v25  ;;  %v3211_v31 = vpop.f32.mrb[26].mxu0 }
 0x12d   : > { %v3250_v30 = vadd.f32 %v3249_v28, %v3248_v26  ;;  %v3251_v32 = vpop.f32.mrb[26].mxu1  ;;  %v3212_v33 = vpop.f32.mrb[27].mxu0 }
 0x12e   : > { %v3252_v34 = vpop.f32.mrb[27].mxu1  ;;  %v2183_v35 = vadd.f32 %v3210_v29, %v2118_v36  ;;  %v3213_v20 = vadd.f32 %v3212_v33, %v3211_v31 }
 0x12f   : > { %v3253_v37 = vadd.f32 %v3252_v34, %v3251_v32 }
 0x130   : > { %v2248_v39 = vadd.f32 %v3250_v30, %v2183_v35  ;;  %v2186_v40 = vadd.f32 %v3213_v20, %v4438_v38 }
 0x132   : > { %v4448_v41 = vadd.f32 %v3253_v37, %v2186_v40  ;;  %v3214_v22 = vpop.f32.mrb[28].mxu0 }
 0x133   : > { %v3254_v42 = vpop.f32.mrb[28].mxu1  ;;  %v3215_v43 = vpop.f32.mrb[29].mxu0 }
 0x134   : > { %v3216_v44 = vadd.f32 %v3215_v43, %v3214_v22  ;;  %v3255_v45 = vpop.f32.mrb[29].mxu1  ;;  %v3217_v46 = vpop.f32.mrb[30].mxu0 }
 0x135   : > { %v3256_v47 = vadd.f32 %v3255_v45, %v3254_v42  ;;  %v3257_v48 = vpop.f32.mrb[30].mxu1  ;;  %v3218_v49 = vpop.f32.mrb[31].mxu0 }
 0x136   : > { %v2191_v50 = vadd.f32 %v3216_v44, %v2126_v52  ;;  %v3219_v51 = vadd.f32 %v3218_v49, %v3217_v46  ;;  %v3258_v53 = vpop.f32.mrb[31].mxu1 }
 0x137   : > { %v3259_v36 = vadd.f32 %v3258_v53, %v3257_v48 }
 0x138   : > { %v2256_v55 = vadd.f32 %v3256_v47, %v2191_v50  ;;  %v2194_v57 = vadd.f32 %v3219_v51, %v4440_v54 }
 0x13a   : > { %v4451_v58 = vadd.f32 %v3259_v36, %v2194_v57  ;;  %v3276_v38 = vpop.f32.mrb[32].mxu0 }
 0x13b   : > { %v3316_v59 = vpop.f32.mrb[32].mxu1  ;;  %v3277_v60 = vpop.f32.mrb[33].mxu0 }
 0x13c   : > { %v3278_v61 = vadd.f32 %v3277_v60, %v3276_v38  ;;  %v3317_v62 = vpop.f32.mrb[33].mxu1  ;;  %v3279_v63 = vpop.f32.mrb[34].mxu0 }
 0x13d   : > { %v3318_v0 = vadd.f32 %v3317_v62, %v3316_v59  ;;  %v3319_v1 = vpop.f32.mrb[34].mxu1  ;;  %v3280_v2 = vpop.f32.mrb[35].mxu0 }
 0x13e   : > { %v2297_v3 = vadd.f32 %v3278_v61, %v2232_v5  ;;  %v3281_v7 = vadd.f32 %v3280_v2, %v3279_v63  ;;  %v3320_v52 = vpop.f32.mrb[35].mxu1 }
 0x13f   : > { %v3321_v8 = vadd.f32 %v3320_v52, %v3319_v1 }
 0x140   : > { %v2362_v56 = vadd.f32 %v3318_v0, %v2297_v3  ;;  %v2300_v10 = vadd.f32 %v3281_v7, %v4442_v9 }
 0x142   : > { %v4454_v11 = vadd.f32 %v3321_v8, %v2300_v10  ;;  %v3282_v54 = vpop.f32.mrb[36].mxu0 }
 0x143   : > { %v3322_v12 = vpop.f32.mrb[36].mxu1  ;;  %v3283_v13 = vpop.f32.mrb[37].mxu0 }
 0x144   : > { %v3323_v14 = vpop.f32.mrb[37].mxu1  ;;  %v3284_v15 = vadd.f32 %v3283_v13, %v3282_v54  ;;  %v3285_v17 = vpop.f32.mrb[38].mxu0 }
 0x145   : > { %v3324_v16 = vadd.f32 %v3323_v14, %v3322_v12  ;;  %v3325_v18 = vpop.f32.mrb[38].mxu1  ;;  %v3286_v4 = vpop.f32.mrb[39].mxu0 }
 0x146   : > { %v3326_v19 = vpop.f32.mrb[39].mxu1  ;;  %v2305_v21 = vadd.f32 %v3284_v15, %v2240_v23  ;;  %v3287_v5 = vadd.f32 %v3286_v4, %v3285_v17 }
 0x147   : > { %v3327_v24 = vadd.f32 %v3326_v19, %v3325_v18 }
 0x148   : > { %v2370_v25 = vadd.f32 %v3324_v16, %v2305_v21  ;;  %v2308_v26 = vadd.f32 %v3287_v5, %v4445_v6 }
 0x14a   : > { %v4457_v27 = vadd.f32 %v3327_v24, %v2308_v26  ;;  %v3288_v9 = vpop.f32.mrb[40].mxu0 }
 0x14b   : > { %v3328_v28 = vpop.f32.mrb[40].mxu1  ;;  %v3289_v29 = vpop.f32.mrb[41].mxu0 }
 0x14c   : > { %v3290_v30 = vadd.f32 %v3289_v29, %v3288_v9  ;;  %v3329_v31 = vpop.f32.mrb[41].mxu1  ;;  %v3291_v32 = vpop.f32.mrb[42].mxu0 }
 0x14d   : > { %v3330_v33 = vadd.f32 %v3329_v31, %v3328_v28  ;;  %v3331_v34 = vpop.f32.mrb[42].mxu1  ;;  %v3292_v35 = vpop.f32.mrb[43].mxu0 }
 0x14e   : > { %v2313_v20 = vadd.f32 %v3290_v30, %v2248_v39  ;;  %v3293_v37 = vadd.f32 %v3292_v35, %v3291_v32  ;;  %v3332_v40 = vpop.f32.mrb[43].mxu1 }
 0x14f   : > { %v3333_v23 = vadd.f32 %v3332_v40, %v3331_v34 }
 0x150   : > { %v2378_v22 = vadd.f32 %v3330_v33, %v2313_v20  ;;  %v2316_v42 = vadd.f32 %v3293_v37, %v4448_v41 }
 0x152   : > { %v4460_v43 = vadd.f32 %v3333_v23, %v2316_v42  ;;  %v3294_v6 = vpop.f32.mrb[44].mxu0 }
 0x153   : > { %v3334_v44 = vpop.f32.mrb[44].mxu1  ;;  %v3295_v45 = vpop.f32.mrb[45].mxu0 }
 0x154   : > { %v3296_v46 = vadd.f32 %v3295_v45, %v3294_v6  ;;  %v3335_v47 = vpop.f32.mrb[45].mxu1  ;;  %v3297_v48 = vpop.f32.mrb[46].mxu0 }
 0x155   : > { %v3336_v49 = vadd.f32 %v3335_v47, %v3334_v44  ;;  %v3337_v50 = vpop.f32.mrb[46].mxu1  ;;  %v3298_v51 = vpop.f32.mrb[47].mxu0 }
 0x156   : > { %v2321_v53 = vadd.f32 %v3296_v46, %v2256_v55  ;;  %v3299_v36 = vadd.f32 %v3298_v51, %v3297_v48  ;;  %v3338_v39 = vpop.f32.mrb[47].mxu1 }
 0x157   : > { %v3339_v57 = vadd.f32 %v3338_v39, %v3337_v50 }
 0x158   : > { %v2386_v38 = vadd.f32 %v3336_v49, %v2321_v53  ;;  %v2324_v59 = vadd.f32 %v3299_v36, %v4451_v58 }
 0x15a   : > { %v4463_v60 = vadd.f32 %v3339_v57, %v2324_v59  ;;  %v3356_v41 = vpop.f32.mrb[48].mxu0 }
 0x15b   : > { %v3396_v61 = vpop.f32.mrb[48].mxu1  ;;  %v3357_v62 = vpop.f32.mrb[49].mxu0 }
 0x15c   : > { %v3358_v63 = vadd.f32 %v3357_v62, %v3356_v41  ;;  %v3397_v0 = vpop.f32.mrb[49].mxu1  ;;  %v3359_v1 = vpop.f32.mrb[50].mxu0 }
 0x15d   : > { %v3398_v2 = vadd.f32 %v3397_v0, %v3396_v61  ;;  %v3399_v3 = vpop.f32.mrb[50].mxu1  ;;  %v3360_v7 = vpop.f32.mrb[51].mxu0 }
 0x15e   : > { %v2427_v52 = vadd.f32 %v3358_v63, %v2362_v56  ;;  %v3361_v8 = vadd.f32 %v3360_v7, %v3359_v1  ;;  %v3400_v55 = vpop.f32.mrb[51].mxu1 }
 0x15f   : > { %v3401_v10 = vadd.f32 %v3400_v55, %v3399_v3 }
 0x160   : > { %v2492_v54 = vadd.f32 %v3398_v2, %v2427_v52  ;;  %v2430_v12 = vadd.f32 %v3361_v8, %v4454_v11 }
 0x162   : > { %v2495_v13 = vadd.f32 %v3401_v10, %v2430_v12  ;;  %v3362_v58 = vpop.f32.mrb[52].mxu0 }
 0x163   : > { %v3402_v14 = vpop.f32.mrb[52].mxu1  ;;  %v3363_v15 = vpop.f32.mrb[53].mxu0 }
 0x164   : > { %v3364_v16 = vadd.f32 %v3363_v15, %v3362_v58  ;;  %v3403_v17 = vpop.f32.mrb[53].mxu1  ;;  %v3365_v18 = vpop.f32.mrb[54].mxu0 }
 0x165   : > { %v3404_v4 = vadd.f32 %v3403_v17, %v3402_v14  ;;  %v3405_v19 = vpop.f32.mrb[54].mxu1  ;;  %v3366_v21 = vpop.f32.mrb[55].mxu0 }
 0x166   : > { %v2435_v5 = vadd.f32 %v3364_v16, %v2370_v25  ;;  %v3367_v24 = vadd.f32 %v3366_v21, %v3365_v18  ;;  %v3406_v26 = vpop.f32.mrb[55].mxu1 }
 0x167   : > { %v3407_v56 = vadd.f32 %v3406_v26, %v3405_v19 }
 0x168   : > { %v2500_v9 = vadd.f32 %v3404_v4, %v2435_v5  ;;  %v2438_v28 = vadd.f32 %v3367_v24, %v4457_v27 }
 0x16a   : > { %v2503_v29 = vadd.f32 %v3407_v56, %v2438_v28  ;;  %v3368_v30 = vpop.f32.mrb[56].mxu0 }
 0x16b   : > { %v3408_v11 = vpop.f32.mrb[56].mxu1  ;;  %v3369_v31 = vpop.f32.mrb[57].mxu0 }
 0x16c   : > { %v3370_v32 = vadd.f32 %v3369_v31, %v3368_v30  ;;  %v3409_v33 = vpop.f32.mrb[57].mxu1  ;;  %v3371_v34 = vpop.f32.mrb[58].mxu0 }
 0x16d   : > { %v3410_v35 = vadd.f32 %v3409_v33, %v3408_v11  ;;  %v3411_v20 = vpop.f32.mrb[58].mxu1  ;;  %v3372_v37 = vpop.f32.mrb[59].mxu0 }
 0x16e   : > { %v2443_v40 = vadd.f32 %v3370_v32, %v2378_v22  ;;  %v3373_v23 = vadd.f32 %v3372_v37, %v3371_v34  ;;  %v3412_v42 = vpop.f32.mrb[59].mxu1 }
 0x16f   : > { %v3413_v25 = vadd.f32 %v3412_v42, %v3411_v20 }
 0x170   : > { %v2508_v6 = vadd.f32 %v3410_v35, %v2443_v40  ;;  %v2446_v44 = vadd.f32 %v3373_v23, %v4460_v43 }
 0x172   : > { %v2511_v45 = vadd.f32 %v3413_v25, %v2446_v44  ;;  %v3374_v46 = vpop.f32.mrb[60].mxu0 }
 0x173   : > { %v3414_v27 = vpop.f32.mrb[60].mxu1  ;;  %v3375_v47 = vpop.f32.mrb[61].mxu0 }
 0x174   : > { %v3415_v48 = vpop.f32.mrb[61].mxu1  ;;  %v3376_v49 = vadd.f32 %v3375_v47, %v3374_v46  ;;  %v3377_v51 = vpop.f32.mrb[62].mxu0 }
 0x175   : > { %v3416_v50 = vadd.f32 %v3415_v48, %v3414_v27  ;;  %v3417_v53 = vpop.f32.mrb[62].mxu1  ;;  %v3378_v36 = vpop.f32.mrb[63].mxu0 }
 0x176   : > { %v3418_v39 = vpop.f32.mrb[63].mxu1  ;;  %v2451_v57 = vadd.f32 %v3376_v49, %v2386_v38  ;;  %v3379_v59 = vadd.f32 %v3378_v36, %v3377_v51 }
 0x177   : > { %v3419_v22 = vadd.f32 %v3418_v39, %v3417_v53 }
 0x178   : > { %v2516_v41 = vadd.f32 %v3416_v50, %v2451_v57  ;;  %v2454_v61 = vadd.f32 %v3379_v59, %v4463_v60 }
 0x17a   : > { %v2519_v62 = vadd.f32 %v3419_v22, %v2454_v61  ;;  %v3436_v63 = vpop.f32.mrb[64].mxu0 }
 0x17b   : > { %v3437_v43 = vpop.f32.mrb[65].mxu0  ;;  %v3476_v0 = vpop.f32.mrb[64].mxu1 }
 0x17c   : > { %v3438_v1 = vadd.f32 %v3437_v43, %v3436_v63  ;;  %v3439_v2 = vpop.f32.mrb[66].mxu0  ;;  %v3477_v3 = vpop.f32.mrb[65].mxu1 }
 0x17d   : > { %v3440_v7 = vpop.f32.mrb[67].mxu0  ;;  %v3478_v8 = vadd.f32 %v3477_v3, %v3476_v0  ;;  %v3479_v55 = vpop.f32.mrb[66].mxu1 }
 0x17e   : > { %v2557_v52 = vadd.f32 %v3438_v1, %v2492_v54  ;;  %v3441_v10 = vadd.f32 %v3440_v7, %v3439_v2  ;;  %v3480_v12 = vpop.f32.mrb[67].mxu1 }
 0x17f   : > { %v3481_v38 = vadd.f32 %v3480_v12, %v3479_v55 }
 0x180   : > { %v2560_v58 = vadd.f32 %v3441_v10, %v2495_v13  ;;  %v2622_v14 = vadd.f32 %v3478_v8, %v2557_v52 }
 0x182   : > { %v3442_v15 = vpop.f32.mrb[68].mxu0  ;;  %v4469_v16 = vadd.f32 %v3481_v38, %v2560_v58 }
 0x183   : > { %v3443_v60 = vpop.f32.mrb[69].mxu0  ;;  %v3482_v17 = vpop.f32.mrb[68].mxu1 }
 0x184   : > { %v3444_v18 = vadd.f32 %v3443_v60, %v3442_v15  ;;  %v3445_v4 = vpop.f32.mrb[70].mxu0  ;;  %v3483_v19 = vpop.f32.mrb[69].mxu1 }
 0x185   : > { %v3446_v21 = vpop.f32.mrb[71].mxu0  ;;  %v3484_v24 = vadd.f32 %v3483_v19, %v3482_v17  ;;  %v3485_v26 = vpop.f32.mrb[70].mxu1 }
 0x186   : > { %v2565_v5 = vadd.f32 %v3444_v18, %v2500_v9  ;;  %v3447_v54 = vadd.f32 %v3446_v21, %v3445_v4  ;;  %v3486_v56 = vpop.f32.mrb[71].mxu1 }
 0x187   : > { %v3487_v30 = vadd.f32 %v3486_v56, %v3485_v26 }
 0x188   : > { %v2568_v28 = vadd.f32 %v3447_v54, %v2503_v29  ;;  %v2630_v11 = vadd.f32 %v3484_v24, %v2565_v5 }
 0x18a   : > { %v3448_v13 = vpop.f32.mrb[72].mxu0  ;;  %v2633_v31 = vadd.f32 %v3487_v30, %v2568_v28 }
 0x18b   : > { %v3449_v32 = vpop.f32.mrb[73].mxu0  ;;  %v3488_v33 = vpop.f32.mrb[72].mxu1 }
 0x18c   : > { %v3450_v34 = vadd.f32 %v3449_v32, %v3448_v13  ;;  %v3451_v35 = vpop.f32.mrb[74].mxu0  ;;  %v3489_v20 = vpop.f32.mrb[73].mxu1 }
 0x18d   : > { %v3452_v37 = vpop.f32.mrb[75].mxu0  ;;  %v3490_v23 = vadd.f32 %v3489_v20, %v3488_v33  ;;  %v3491_v42 = vpop.f32.mrb[74].mxu1 }
 0x18e   : > { %v2573_v40 = vadd.f32 %v3450_v34, %v2508_v6  ;;  %v3453_v25 = vadd.f32 %v3452_v37, %v3451_v35  ;;  %v3492_v9 = vpop.f32.mrb[75].mxu1 }
 0x18f   : > { %v3493_v46 = vadd.f32 %v3492_v9, %v3491_v42 }
 0x190   : > { %v2576_v44 = vadd.f32 %v3453_v25, %v2511_v45  ;;  %v2638_v27 = vadd.f32 %v3490_v23, %v2573_v40 }
 0x192   : > { %v3454_v47 = vpop.f32.mrb[76].mxu0  ;;  %v2641_v29 = vadd.f32 %v3493_v46, %v2576_v44 }
 0x193   : > { %v3455_v48 = vpop.f32.mrb[77].mxu0  ;;  %v3494_v49 = vpop.f32.mrb[76].mxu1 }
 0x194   : > { %v3456_v50 = vadd.f32 %v3455_v48, %v3454_v47  ;;  %v3457_v51 = vpop.f32.mrb[78].mxu0  ;;  %v3495_v53 = vpop.f32.mrb[77].mxu1 }
 0x195   : > { %v3458_v36 = vpop.f32.mrb[79].mxu0  ;;  %v3496_v57 = vadd.f32 %v3495_v53, %v3494_v49  ;;  %v3497_v59 = vpop.f32.mrb[78].mxu1 }
 0x196   : > { %v2581_v39 = vadd.f32 %v3456_v50, %v2516_v41  ;;  %v3459_v6 = vadd.f32 %v3458_v36, %v3457_v51  ;;  %v3498_v22 = vpop.f32.mrb[79].mxu1 }
 0x197   : > { %v3499_v63 = vadd.f32 %v3498_v22, %v3497_v59 }
 0x198   : > { %v2584_v61 = vadd.f32 %v3459_v6, %v2519_v62  ;;  %v2646_v43 = vadd.f32 %v3496_v57, %v2581_v39 }
 0x19a   : > { %v3512_v45 = vpop.f32.mrb[80].mxu0  ;;  %v2649_v0 = vadd.f32 %v3499_v63, %v2584_v61 }
 0x19b   : > { %v2695_v1 = vadd.f32 %v3512_v45, %v2630_v11  ;;  %v2686_v2 = vpop.f32.mrb[81].mxu0  ;;  %v3516_v3 = vpop.f32.mrb[80].mxu1 }
 0x19c   : > { %v2687_v7 = vadd.f32 %v2686_v2, %v2622_v14  ;;  %v3513_v52 = vpop.f32.mrb[82].mxu0  ;;  %v2711_v55 = vadd.f32 %v3516_v3, %v2646_v43  ;;  %v2702_v10 = vpop.f32.mrb[81].mxu1 }
 0x19d   : > { %v2719_v8 = vmax.f32 %v2695_v1, 0.0  ;;  %v2698_v12 = vadd.f32 %v3513_v52, %v2633_v31  ;;  %v2689_v41 = vpop.f32.mrb[83].mxu0  ;;  %v2703_v58 = vadd.f32 %v2702_v10, %v2638_v27  ;;  %v3517_v38 = vpop.f32.mrb[82].mxu1 }
 0x19e   : > { %v2717_v62 = vmax.f32 %v2687_v7, 0.0  ;;  %v2690_v15 = vadd.f32 %v2689_v41, %v4469_v16  ;;  %v2723_v17 = vmax.f32 %v2711_v55, 0.0  ;;  %v2714_v14 = vadd.f32 %v3517_v38, %v2649_v0  ;;  %v2705_v4 = vpop.f32.mrb[83].mxu1 }
 0x19f   : > { %v3094_v60 = vpack.c.bf16 %v2719_v8, %v2719_v8  ;;  %v2720_v18 = vmax.f32 %v2698_v12, 0.0  ;;  %v2721_v21 = vmax.f32 %v2703_v58, 0.0  ;;  %v2706_v24 = vadd.f32 %v2705_v4, %v2641_v29 }
 0x1a0   : > { %v3092_v19 = vpack.c.bf16 %v2717_v62, %v2717_v62  ;;  %v2718_v5 = vmax.f32 %v2690_v15, 0.0  ;;  %v3098_v26 = vpack.c.bf16 %v2723_v17, %v2723_v17  ;;  %v2724_v56 = vmax.f32 %v2714_v14, 0.0 }
 0x1a1   : > { %2760 = vst.msk [vmem:[%s175_s5 + $0x8] sm:$0xf] %vm2757_vm1, %v3094_v60  ;;  %v3095_v54 = vpack.c.bf16 %v2720_v18, %v2720_v18  ;;  %v3096_v28 = vpack.c.bf16 %v2721_v21, %v2721_v21  ;;  %v2722_v11 = vmax.f32 %v2706_v24, 0.0 }
 0x1a2   : > { %2758 = vst.msk [vmem:[%s175_s5] sm:$0xf] %vm2757_vm1, %v3092_v19  ;;  %v3093_v30 = vpack.c.bf16 %v2718_v5, %v2718_v5  ;;  %2764 = vst.msk [vmem:[%s175_s5 + $0x18] sm:$0xf] %vm2757_vm1, %v3098_v26  ;;  %v3099_v16 = vpack.c.bf16 %v2724_v56, %v2724_v56 }
 0x1a3   : > { %2761 = vst.msk [vmem:[%s175_s5 + $0xc] sm:$0xf] %vm2757_vm1, %v3095_v54  ;;  %2762 = vst.msk [vmem:[%s175_s5 + $0x10] sm:$0xf] %vm2757_vm1, %v3096_v28  ;;  %v3097_v13 = vpack.c.bf16 %v2722_v11, %v2722_v11 }
 0x1a4   : > { %2759 = vst.msk [vmem:[%s175_s5 + $0x4] sm:$0xf] %vm2757_vm1, %v3093_v30  ;;  %2765 = vst.msk [vmem:[%s175_s5 + $0x1c] sm:$0xf] %vm2757_vm1, %v3099_v16 }
 0x1a5   : > { %2763 = vst.msk [vmem:[%s175_s5 + $0x14] sm:$0xf] %vm2757_vm1, %v3097_v13 }
 0x1a6 PF: > { %s13_s12 = sadd.s32 1, %s3823_s12  }
 0x1a7   : > { %p10_p4 = scmp.ge.s32.totalorder %s13_s12, 4  }
 0x1a9   :  { %12 = sbr.rel (!%p10_p4) target bundleno = 1 (0x1), region = 62 }

// kernel: stcae_encoder_forward.15
= control target key start
LH: loop header
LB: loop body
LE: loop exit
PB: predicated region body
PF: predicated region fallthrough
CT: control target
= control target key end

     0   :  { %vm2537_vm0 = vmmov 0   ;;  %vm1445_vm1 = vcmask 261120   ;;  %s3113_s1 = inlined_call_operand.vmem [shape: bf16[2592,128], index: 1, kind: input, shape index: {}]   ;;  %s3114_s0 = inlined_call_operand.vmem [shape: bf16[16,2592], index: 0, kind: input, shape index: {}]   ;;  %s3115_s2 = inlined_call_operand.vmem [shape: f32[1,128], index: 2, kind: input, shape index: {}]   ;;  %s3116_s3 = inlined_call_operand.vmem [shape: bf16[16,128], index: 3, kind: output, shape index: {}]  }
   0x1   :  { %v2343_v0 = vld [vmem:[%s3113_s1 + $0x40] sm:$0xff]   ;;  %v2347_v4 = vld [vmem:[%s3113_s1 + $0x48] sm:$0xff]   ;;  %v2351_v8 = vld [vmem:[%s3113_s1 + $0x50] sm:$0xff]  }
   0x2   :  { %v2344_v1 = vld [vmem:[%s3113_s1] sm:$0xff]   ;;  %2110 = vmatprep.subr.bf16.mxu0 %v2343_v0  ;;  %v2348_v5 = vld [vmem:[%s3113_s1 + $0x8] sm:$0xff]   ;;  %v2352_v9 = vld [vmem:[%s3113_s1 + $0x10] sm:$0xff]  }
   0x3   :  { %v2345_v2 = vld [vmem:[%s3113_s1 + $0xc0] sm:$0xff]   ;;  %2111 = vmatpush3.bf16.msra.mxu0 %v2344_v1  ;;  %v2349_v6 = vld [vmem:[%s3113_s1 + $0xc8] sm:$0xff]   ;;  %v2353_v10 = vld [vmem:[%s3113_s1 + $0xd0] sm:$0xff]  }
   0x4   :  { %v2346_v3 = vld [vmem:[%s3113_s1 + $0x80] sm:$0xff]   ;;  %2132 = vmatprep.subr.bf16.mxu1 %v2345_v2  ;;  %2112 = vmatprep.subr.bf16.mxu0 %v2347_v4  ;;  %v2350_v7 = vld [vmem:[%s3113_s1 + $0x88] sm:$0xff]   ;;  %v2354_v11 = vld [vmem:[%s3113_s1 + $0x90] sm:$0xff]  }
   0x5   :  { %2133 = vmatpush3.bf16.msra.mxu1 %v2346_v3  ;;  %v2355_v12 = vld [vmem:[%s3113_s1 + $0x58] sm:$0xff]   ;;  %v2359_v16 = vld [vmem:[%s3113_s1 + $0x60] sm:$0xff]   ;;  %v2363_v20 = vld [vmem:[%s3113_s1 + $0x68] sm:$0xff]  }
   0x6   :  { %2134 = vmatprep.subr.bf16.mxu1 %v2349_v6  ;;  %v2356_v13 = vld [vmem:[%s3113_s1 + $0x18] sm:$0xff]   ;;  %v2360_v17 = vld [vmem:[%s3113_s1 + $0x20] sm:$0xff]   ;;  %v2364_v21 = vld [vmem:[%s3113_s1 + $0x28] sm:$0xff]  }
   0x7   :  { %2113 = vmatpush3.bf16.msra.mxu0 %v2348_v5  ;;  %v2357_v14 = vld [vmem:[%s3113_s1 + $0xd8] sm:$0xff]   ;;  %v2361_v18 = vld [vmem:[%s3113_s1 + $0xe0] sm:$0xff]   ;;  %v2365_v22 = vld [vmem:[%s3113_s1 + $0xe8] sm:$0xff]  }
   0x8   :  { %2114 = vmatprep.subr.bf16.mxu0 %v2351_v8  ;;  %v2358_v15 = vld [vmem:[%s3113_s1 + $0x98] sm:$0xff]   ;;  %v2362_v19 = vld [vmem:[%s3113_s1 + $0xa0] sm:$0xff]   ;;  %v2366_v23 = vld [vmem:[%s3113_s1 + $0xa8] sm:$0xff]  }
   0x9   :  { %2135 = vmatpush3.bf16.msra.mxu1 %v2350_v7  ;;  %v2367_v24 = vld [vmem:[%s3113_s1 + $0x70] sm:$0xff]   ;;  %v2371_v28 = vld [vmem:[%s3113_s1 + $0x78] sm:$0xff]   ;;  %v2378_v34 = vld [vmem:[%s3113_s1 + $0x140] sm:$0xff]  }
   0xa   :  { %2136 = vmatprep.subr.bf16.mxu1 %v2353_v10  ;;  %v2368_v25 = vld [vmem:[%s3113_s1 + $0x30] sm:$0xff]   ;;  %v2372_v29 = vld [vmem:[%s3113_s1 + $0x38] sm:$0xff]   ;;  %v2381_v36 = vld [vmem:[%s3114_s0 + $0xc] ss:$84 sps:$4 sm:$0xff]  }
   0xb   :  { %2115 = vmatpush3.bf16.msra.mxu0 %v2352_v9  ;;  %v2369_v26 = vld [vmem:[%s3113_s1 + $0xf0] sm:$0xff]   ;;  %v2373_v30 = vld [vmem:[%s3113_s1 + $0xf8] sm:$0xff]   ;;  %v2382_v37 = vld [vmem:[%s3113_s1 + $0x100] sm:$0xff]   ;;  %1522 = vmatprep.mubr.bf16.mxu1 %v2381_v36 }
   0xc   :  { %2116 = vmatprep.subr.bf16.mxu0 %v2355_v12  ;;  %v2370_v27 = vld [vmem:[%s3113_s1 + $0xb0] sm:$0xff]   ;;  %v2374_v31 = vld [vmem:[%s3113_s1 + $0xb8] sm:$0xff]   ;;  %v2383_v38 = vld [vmem:[%s3113_s1 + $0x1c0] sm:$0xff]  }
   0xd   :  { %2137 = vmatpush3.bf16.msra.mxu1 %v2354_v11  ;;  %v2375_v32 = vld [vmem:[%s3114_s0] ss:$84 sps:$4 sm:$0xff]   ;;  %v2377_v33 = vld [vmem:[%s3114_s0 + $0x4] ss:$84 sps:$4 sm:$0xff]   ;;  %v2379_v35 = vld [vmem:[%s3114_s0 + $0x8] ss:$84 sps:$4 sm:$0xff]  }
   0xe   :  { %2138 = vmatprep.subr.bf16.mxu1 %v2357_v14  ;;  %1481 = vmatprep.mubr.bf16.mxu0 %v2377_v33  ;;  %v2384_v39 = vld [vmem:[%s3113_s1 + $0x180] sm:$0xff]   ;;  %v2385_v40 = vld [vmem:[%s3113_s1 + $0x148] sm:$0xff]   ;;  %v2389_v44 = vld [vmem:[%s3113_s1 + $0x150] sm:$0xff]  }
   0xf   :  { %2117 = vmatpush3.bf16.msra.mxu0 %v2356_v13  ;;  %v2386_v41 = vld [vmem:[%s3113_s1 + $0x108] sm:$0xff]   ;;  %v2390_v45 = vld [vmem:[%s3113_s1 + $0x110] sm:$0xff]   ;;  %v2393_v48 = vld [vmem:[%s3113_s1 + $0x158] sm:$0xff]  }
  0x10   :  { %2118 = vmatprep.subr.bf16.mxu0 %v2359_v16  ;;  %v2387_v42 = vld [vmem:[%s3113_s1 + $0x1c8] sm:$0xff]   ;;  %v2391_v46 = vld [vmem:[%s3113_s1 + $0x1d0] sm:$0xff]   ;;  %v2394_v49 = vld [vmem:[%s3113_s1 + $0x118] sm:$0xff]  }
  0x11   :  { %2139 = vmatpush3.bf16.msra.mxu1 %v2358_v15  ;;  %v2388_v43 = vld [vmem:[%s3113_s1 + $0x188] sm:$0xff]   ;;  %v2392_v47 = vld [vmem:[%s3113_s1 + $0x190] sm:$0xff]   ;;  %v2395_v50 = vld [vmem:[%s3113_s1 + $0x1d8] sm:$0xff]  }
  0x12   :  { %2140 = vmatprep.subr.bf16.mxu1 %v2361_v18  ;;  %v2396_v51 = vld [vmem:[%s3113_s1 + $0x198] sm:$0xff]   ;;  %v2397_v52 = vld [vmem:[%s3113_s1 + $0x160] sm:$0xff]   ;;  %v2401_v56 = vld [vmem:[%s3113_s1 + $0x168] sm:$0xff]  }
  0x13   :  { %2119 = vmatpush3.bf16.msra.mxu0 %v2360_v17  ;;  %v2398_v53 = vld [vmem:[%s3113_s1 + $0x120] sm:$0xff]   ;;  %v2402_v57 = vld [vmem:[%s3113_s1 + $0x128] sm:$0xff]   ;;  %v2405_v60 = vld [vmem:[%s3113_s1 + $0x170] sm:$0xff]  }
  0x14   :  { %2120 = vmatprep.subr.bf16.mxu0 %v2363_v20  ;;  %v2399_v54 = vld [vmem:[%s3113_s1 + $0x1e0] sm:$0xff]   ;;  %v2403_v58 = vld [vmem:[%s3113_s1 + $0x1e8] sm:$0xff]   ;;  %v2406_v61 = vld [vmem:[%s3113_s1 + $0x130] sm:$0xff]  }
  0x15   :  { %2141 = vmatpush3.bf16.msra.mxu1 %v2362_v19  ;;  %v2400_v55 = vld [vmem:[%s3113_s1 + $0x1a0] sm:$0xff]   ;;  %v2404_v59 = vld [vmem:[%s3113_s1 + $0x1a8] sm:$0xff]   ;;  %v2407_v62 = vld [vmem:[%s3113_s1 + $0x1f0] sm:$0xff]  }
  0x16   :  { %2142 = vmatprep.subr.bf16.mxu1 %v2365_v22  ;;  %v2408_v63 = vld [vmem:[%s3113_s1 + $0x1b0] sm:$0xff]   ;;  %v2409_v0 = vld [vmem:[%s3113_s1 + $0x178] sm:$0xff]   ;;  %v2416_v6 = vld [vmem:[%s3113_s1 + $0x240] sm:$0xff]  }
  0x17   :  { %2121 = vmatpush3.bf16.msra.mxu0 %v2364_v21  ;;  %v2410_v1 = vld [vmem:[%s3113_s1 + $0x138] sm:$0xff]   ;;  %v2413_v4 = vld [vmem:[%s3114_s0 + $0x10] ss:$84 sps:$4 sm:$0xff]   ;;  %v2415_v5 = vld [vmem:[%s3114_s0 + $0x14] ss:$84 sps:$4 sm:$0xff]  }
  0x18   :  { %2122 = vmatprep.subr.bf16.mxu0 %v2367_v24  ;;  %v2411_v2 = vld [vmem:[%s3113_s1 + $0x1f8] sm:$0xff]   ;;  %v2420_v9 = vld [vmem:[%s3113_s1 + $0x200] sm:$0xff]   ;;  %v2423_v12 = vld [vmem:[%s3113_s1 + $0x248] sm:$0xff]  }
  0x19   :  { %2143 = vmatpush3.bf16.msra.mxu1 %v2366_v23  ;;  %v2412_v3 = vld [vmem:[%s3113_s1 + $0x1b8] sm:$0xff]   ;;  %v2421_v10 = vld [vmem:[%s3113_s1 + $0x2c0] sm:$0xff]   ;;  %v2424_v13 = vld [vmem:[%s3113_s1 + $0x208] sm:$0xff]  }
  0x1a   :  { %2144 = vmatprep.subr.bf16.mxu1 %v2369_v26  ;;  %v2417_v7 = vld [vmem:[%s3114_s0 + $0x18] ss:$84 sps:$4 sm:$0xff]   ;;  %v2419_v8 = vld [vmem:[%s3114_s0 + $0x1c] ss:$84 sps:$4 sm:$0xff]   ;;  %v2422_v11 = vld [vmem:[%s3113_s1 + $0x280] sm:$0xff]  }
  0x1b   :  { %2123 = vmatpush3.bf16.msra.mxu0 %v2368_v25  ;;  %v2425_v14 = vld [vmem:[%s3113_s1 + $0x2c8] sm:$0xff]   ;;  %v2427_v16 = vld [vmem:[%s3113_s1 + $0x250] sm:$0xff]   ;;  %v2431_v20 = vld [vmem:[%s3113_s1 + $0x258] sm:$0xff]  }
  0x1c   :  { %2124 = vmatprep.subr.bf16.mxu0 %v2371_v28  ;;  %v2426_v15 = vld [vmem:[%s3113_s1 + $0x288] sm:$0xff]   ;;  %v2428_v17 = vld [vmem:[%s3113_s1 + $0x210] sm:$0xff]   ;;  %v2432_v21 = vld [vmem:[%s3113_s1 + $0x218] sm:$0xff]  }
  0x1d   :  { %2145 = vmatpush3.bf16.msra.mxu1 %v2370_v27  ;;  %v2429_v18 = vld [vmem:[%s3113_s1 + $0x2d0] sm:$0xff]   ;;  %v2433_v22 = vld [vmem:[%s3113_s1 + $0x2d8] sm:$0xff]   ;;  %v2435_v24 = vld [vmem:[%s3113_s1 + $0x260] sm:$0xff]  }
  0x1e   :  { %2146 = vmatprep.subr.bf16.mxu1 %v2373_v30  ;;  %v2430_v19 = vld [vmem:[%s3113_s1 + $0x290] sm:$0xff]   ;;  %v2434_v23 = vld [vmem:[%s3113_s1 + $0x298] sm:$0xff]   ;;  %v2436_v25 = vld [vmem:[%s3113_s1 + $0x220] sm:$0xff]  }
  0x1f   :  { %2125 = vmatpush3.bf16.msra.mxu0 %v2372_v29  ;;  %v2437_v26 = vld [vmem:[%s3113_s1 + $0x2e0] sm:$0xff]   ;;  %v2439_v28 = vld [vmem:[%s3113_s1 + $0x268] sm:$0xff]   ;;  %v2444_v33 = vld [vmem:[%s3113_s1 + $0x230] sm:$0xff]  }
  0x20   :  { %2154 = vmatprep.subr.bf16.mxu0 %v2378_v34  ;;  %v2438_v27 = vld [vmem:[%s3113_s1 + $0x2a0] sm:$0xff]   ;;  %v2440_v29 = vld [vmem:[%s3113_s1 + $0x228] sm:$0xff]   ;;  %v2445_v34 = vld [vmem:[%s3113_s1 + $0x2f0] sm:$0xff]  }
  0x21   :  { %2147 = vmatpush3.bf16.msra.mxu1 %v2374_v31  ;;  %v2441_v30 = vld [vmem:[%s3113_s1 + $0x2e8] sm:$0xff]   ;;  %v2447_v36 = vld [vmem:[%s3113_s1 + $0x278] sm:$0xff]  }
  0x22   :  { %1482 = vmatmul.mubr.bf16.vlgmr.msra.gmra.mrb[0].mxu0 %v2375_v32  ;;  %2176 = vmatprep.subr.bf16.mxu1 %v2383_v38  ;;  %v2442_v31 = vld [vmem:[%s3113_s1 + $0x2a8] sm:$0xff]   ;;  %v2443_v32 = vld [vmem:[%s3113_s1 + $0x270] sm:$0xff]   ;;  %v2449_v38 = vld [vmem:[%s3113_s1 + $0x2f8] sm:$0xff]  }
  0x23   :  { %2155 = vmatpush3.bf16.msra.mxu0 %v2382_v37  ;;  %1563 = vmatprep.mubr.bf16.mxu0 %v2415_v5  ;;  %v2448_v37 = vld [vmem:[%s3113_s1 + $0x238] sm:$0xff]   ;;  %v2482_v5 = vld [vmem:[%s3113_s1 + $0x330] sm:$0xff]  }
  0x24   :  { %1523 = vmatmul.mubr.bf16.vlgmr.msra.gmra.mrb[0].mxu1 %v2379_v35  ;;  %2156 = vmatprep.subr.bf16.mxu0 %v2385_v40  ;;  %v2446_v35 = vld [vmem:[%s3113_s1 + $0x2b0] sm:$0xff]  }
  0x25   :  { %2177 = vmatpush3.bf16.msra.mxu1 %v2384_v39  ;;  %1604 = vmatprep.mubr.bf16.mxu1 %v2419_v8  ;;  %v2450_v39 = vld [vmem:[%s3113_s1 + $0x2b8] sm:$0xff]   ;;  %v2451_v40 = vld [vmem:[%s3114_s0 + $0x20] ss:$84 sps:$4 sm:$0xff]  }
  0x26   :  { %2178 = vmatprep.subr.bf16.mxu1 %v2387_v42  ;;  %v2454_v42 = vld [vmem:[%s3113_s1 + $0x340] sm:$0xff]   ;;  %v2485_v8 = vld [vmem:[%s3113_s1 + $0x378] sm:$0xff]  }
  0x27   :  { %2157 = vmatpush3.bf16.msra.mxu0 %v2386_v41  ;;  %v2453_v41 = vld [vmem:[%s3114_s0 + $0x24] ss:$84 sps:$4 sm:$0xff]  }
  0x28   :  { %2158 = vmatprep.subr.bf16.mxu0 %v2389_v44  ;;  %v2457_v44 = vld [vmem:[%s3114_s0 + $0x2c] ss:$84 sps:$4 sm:$0xff]  }
  0x29   :  { %2179 = vmatpush3.bf16.msra.mxu1 %v2388_v43  ;;  %v2455_v43 = vld [vmem:[%s3114_s0 + $0x28] ss:$84 sps:$4 sm:$0xff]  }
  0x2a   :  { %2180 = vmatprep.subr.bf16.mxu1 %v2391_v46  ;;  %v2459_v46 = vld [vmem:[%s3113_s1 + $0x3c0] sm:$0xff]  }
  0x2b   :  { %2159 = vmatpush3.bf16.msra.mxu0 %v2390_v45  ;;  %v2458_v45 = vld [vmem:[%s3113_s1 + $0x300] sm:$0xff]  }
  0x2c   :  { %2160 = vmatprep.subr.bf16.mxu0 %v2393_v48  ;;  %v2461_v48 = vld [vmem:[%s3113_s1 + $0x348] sm:$0xff]  }
  0x2d   :  { %2181 = vmatpush3.bf16.msra.mxu1 %v2392_v47  ;;  %v2460_v47 = vld [vmem:[%s3113_s1 + $0x380] sm:$0xff]  }
  0x2e   :  { %2182 = vmatprep.subr.bf16.mxu1 %v2395_v50  ;;  %v2463_v50 = vld [vmem:[%s3113_s1 + $0x3c8] sm:$0xff]  }
  0x2f   :  { %2161 = vmatpush3.bf16.msra.mxu0 %v2394_v49  ;;  %v2462_v49 = vld [vmem:[%s3113_s1 + $0x308] sm:$0xff]  }
  0x30   :  { %2162 = vmatprep.subr.bf16.mxu0 %v2397_v52  ;;  %v2465_v52 = vld [vmem:[%s3113_s1 + $0x350] sm:$0xff]  }
  0x31   :  { %2183 = vmatpush3.bf16.msra.mxu1 %v2396_v51  ;;  %v2464_v51 = vld [vmem:[%s3113_s1 + $0x388] sm:$0xff]  }
  0x32   :  { %2184 = vmatprep.subr.bf16.mxu1 %v2399_v54  ;;  %v2467_v54 = vld [vmem:[%s3113_s1 + $0x3d0] sm:$0xff]  }
  0x33   :  { %2163 = vmatpush3.bf16.msra.mxu0 %v2398_v53  ;;  %v2466_v53 = vld [vmem:[%s3113_s1 + $0x310] sm:$0xff]  }
  0x34   :  { %2164 = vmatprep.subr.bf16.mxu0 %v2401_v56  ;;  %v2469_v56 = vld [vmem:[%s3113_s1 + $0x358] sm:$0xff]  }
  0x35   :  { %2185 = vmatpush3.bf16.msra.mxu1 %v2400_v55  ;;  %v2468_v55 = vld [vmem:[%s3113_s1 + $0x390] sm:$0xff]  }
  0x36   :  { %2186 = vmatprep.subr.bf16.mxu1 %v2403_v58  ;;  %v2471_v58 = vld [vmem:[%s3113_s1 + $0x3d8] sm:$0xff]  }
  0x37   :  { %2165 = vmatpush3.bf16.msra.mxu0 %v2402_v57  ;;  %v2470_v57 = vld [vmem:[%s3113_s1 + $0x318] sm:$0xff]  }
  0x38   :  { %2166 = vmatprep.subr.bf16.mxu0 %v2405_v60  ;;  %v2473_v60 = vld [vmem:[%s3113_s1 + $0x360] sm:$0xff]  }
  0x39   :  { %2187 = vmatpush3.bf16.msra.mxu1 %v2404_v59  ;;  %v2472_v59 = vld [vmem:[%s3113_s1 + $0x398] sm:$0xff]  }
  0x3a   :  { %2188 = vmatprep.subr.bf16.mxu1 %v2407_v62  ;;  %v2475_v62 = vld [vmem:[%s3113_s1 + $0x3e0] sm:$0xff]  }
  0x3b   :  { %2167 = vmatpush3.bf16.msra.mxu0 %v2406_v61  ;;  %v2474_v61 = vld [vmem:[%s3113_s1 + $0x320] sm:$0xff]  }
  0x3c   :  { %2168 = vmatprep.subr.bf16.mxu0 %v2409_v0  ;;  %v2477_v0 = vld [vmem:[%s3113_s1 + $0x368] sm:$0xff]  }
  0x3d   :  { %2189 = vmatpush3.bf16.msra.mxu1 %v2408_v63  ;;  %v2476_v63 = vld [vmem:[%s3113_s1 + $0x3a0] sm:$0xff]  }
  0x3e   :  { %2190 = vmatprep.subr.bf16.mxu1 %v2411_v2  ;;  %v2479_v2 = vld [vmem:[%s3113_s1 + $0x3e8] sm:$0xff]  }
  0x3f   :  { %2169 = vmatpush3.bf16.msra.mxu0 %v2410_v1  ;;  %v2478_v1 = vld [vmem:[%s3113_s1 + $0x328] sm:$0xff]  }
  0x40   :  { %2198 = vmatprep.subr.bf16.mxu0 %v2416_v6  ;;  %v2483_v6 = vld [vmem:[%s3113_s1 + $0x3f0] sm:$0xff]  }
  0x41   :  { %2191 = vmatpush3.bf16.msra.mxu1 %v2412_v3  ;;  %v2480_v3 = vld [vmem:[%s3113_s1 + $0x3a8] sm:$0xff]  }
  0x42   :  { %1564 = vmatmul.mubr.bf16.vlgmr.msra.gmra.mrb[4].mxu0 %v2413_v4  ;;  %2220 = vmatprep.subr.bf16.mxu1 %v2421_v10  ;;  %v2481_v4 = vld [vmem:[%s3113_s1 + $0x370] sm:$0xff]   ;;  %v2487_v10 = vld [vmem:[%s3113_s1 + $0x3f8] sm:$0xff]  }
  0x43   :  { %2199 = vmatpush3.bf16.msra.mxu0 %v2420_v9  ;;  %1645 = vmatprep.mubr.bf16.mxu0 %v2453_v41  ;;  %v2486_v9 = vld [vmem:[%s3113_s1 + $0x338] sm:$0xff]   ;;  %v2520_v41 = vld [vmem:[%s3113_s1 + $0x430] sm:$0xff]  }
  0x44   :  { %1605 = vmatmul.mubr.bf16.vlgmr.msra.gmra.mrb[4].mxu1 %v2417_v7  ;;  %2200 = vmatprep.subr.bf16.mxu0 %v2423_v12  ;;  %v2484_v7 = vld [vmem:[%s3113_s1 + $0x3b0] sm:$0xff]  }
  0x45   :  { %2221 = vmatpush3.bf16.msra.mxu1 %v2422_v11  ;;  %1686 = vmatprep.mubr.bf16.mxu1 %v2457_v44  ;;  %v2488_v11 = vld [vmem:[%s3113_s1 + $0x3b8] sm:$0xff]   ;;  %v2489_v12 = vld [vmem:[%s3114_s0 + $0x30] ss:$84 sps:$4 sm:$0xff]  }
  0x46   :  { %2222 = vmatprep.subr.bf16.mxu1 %v2425_v14  ;;  %v2492_v14 = vld [vmem:[%s3113_s1 + $0x440] sm:$0xff]   ;;  %v2523_v44 = vld [vmem:[%s3113_s1 + $0x478] sm:$0xff]  }
  0x47   :  { %2201 = vmatpush3.bf16.msra.mxu0 %v2424_v13  ;;  %v2491_v13 = vld [vmem:[%s3114_s0 + $0x34] ss:$84 sps:$4 sm:$0xff]  }
  0x48   :  { %2202 = vmatprep.subr.bf16.mxu0 %v2427_v16  ;;  %v2495_v16 = vld [vmem:[%s3114_s0 + $0x3c] ss:$84 sps:$4 sm:$0xff]  }
  0x49   :  { %2223 = vmatpush3.bf16.msra.mxu1 %v2426_v15  ;;  %v2493_v15 = vld [vmem:[%s3114_s0 + $0x38] ss:$84 sps:$4 sm:$0xff]  }
  0x4a   :  { %2224 = vmatprep.subr.bf16.mxu1 %v2429_v18  ;;  %v2497_v18 = vld [vmem:[%s3113_s1 + $0x4c0] sm:$0xff]  }
  0x4b   :  { %2203 = vmatpush3.bf16.msra.mxu0 %v2428_v17  ;;  %v2496_v17 = vld [vmem:[%s3113_s1 + $0x400] sm:$0xff]  }
  0x4c   :  { %2204 = vmatprep.subr.bf16.mxu0 %v2431_v20  ;;  %v2499_v20 = vld [vmem:[%s3113_s1 + $0x448] sm:$0xff]  }
  0x4d   :  { %2225 = vmatpush3.bf16.msra.mxu1 %v2430_v19  ;;  %v2498_v19 = vld [vmem:[%s3113_s1 + $0x480] sm:$0xff]  }
  0x4e   :  { %2226 = vmatprep.subr.bf16.mxu1 %v2433_v22  ;;  %v2501_v22 = vld [vmem:[%s3113_s1 + $0x4c8] sm:$0xff]  }
  0x4f   :  { %2205 = vmatpush3.bf16.msra.mxu0 %v2432_v21  ;;  %v2500_v21 = vld [vmem:[%s3113_s1 + $0x408] sm:$0xff]  }
  0x50   :  { %2206 = vmatprep.subr.bf16.mxu0 %v2435_v24  ;;  %v2503_v24 = vld [vmem:[%s3113_s1 + $0x450] sm:$0xff]  }
  0x51   :  { %2227 = vmatpush3.bf16.msra.mxu1 %v2434_v23  ;;  %v2502_v23 = vld [vmem:[%s3113_s1 + $0x488] sm:$0xff]  }
  0x52   :  { %2228 = vmatprep.subr.bf16.mxu1 %v2437_v26  ;;  %v2505_v26 = vld [vmem:[%s3113_s1 + $0x4d0] sm:$0xff]  }
  0x53   :  { %2207 = vmatpush3.bf16.msra.mxu0 %v2436_v25  ;;  %v2504_v25 = vld [vmem:[%s3113_s1 + $0x410] sm:$0xff]  }
  0x54   :  { %2208 = vmatprep.subr.bf16.mxu0 %v2439_v28  ;;  %v2507_v28 = vld [vmem:[%s3113_s1 + $0x458] sm:$0xff]  }
  0x55   :  { %2229 = vmatpush3.bf16.msra.mxu1 %v2438_v27  ;;  %v2506_v27 = vld [vmem:[%s3113_s1 + $0x490] sm:$0xff]  }
  0x56   :  { %2230 = vmatprep.subr.bf16.mxu1 %v2441_v30  ;;  %v2509_v30 = vld [vmem:[%s3113_s1 + $0x4d8] sm:$0xff]  }
  0x57   :  { %2209 = vmatpush3.bf16.msra.mxu0 %v2440_v29  ;;  %v2508_v29 = vld [vmem:[%s3113_s1 + $0x418] sm:$0xff]  }
  0x58   :  { %2210 = vmatprep.subr.bf16.mxu0 %v2443_v32  ;;  %v2511_v32 = vld [vmem:[%s3113_s1 + $0x460] sm:$0xff]  }
  0x59   :  { %2231 = vmatpush3.bf16.msra.mxu1 %v2442_v31  ;;  %v2510_v31 = vld [vmem:[%s3113_s1 + $0x498] sm:$0xff]  }
  0x5a   :  { %2232 = vmatprep.subr.bf16.mxu1 %v2445_v34  ;;  %v2513_v34 = vld [vmem:[%s3113_s1 + $0x4e0] sm:$0xff]  }
  0x5b   :  { %2211 = vmatpush3.bf16.msra.mxu0 %v2444_v33  ;;  %v2512_v33 = vld [vmem:[%s3113_s1 + $0x420] sm:$0xff]  }
  0x5c   :  { %2212 = vmatprep.subr.bf16.mxu0 %v2447_v36  ;;  %v2515_v36 = vld [vmem:[%s3113_s1 + $0x468] sm:$0xff]  }
  0x5d   :  { %2233 = vmatpush3.bf16.msra.mxu1 %v2446_v35  ;;  %v2514_v35 = vld [vmem:[%s3113_s1 + $0x4a0] sm:$0xff]  }
  0x5e   :  { %2234 = vmatprep.subr.bf16.mxu1 %v2449_v38  ;;  %v2517_v38 = vld [vmem:[%s3113_s1 + $0x4e8] sm:$0xff]  }
  0x5f   :  { %2213 = vmatpush3.bf16.msra.mxu0 %v2448_v37  ;;  %v2516_v37 = vld [vmem:[%s3113_s1 + $0x428] sm:$0xff]  }
  0x60   :  { %2242 = vmatprep.subr.bf16.mxu0 %v2454_v42  ;;  %v2521_v42 = vld [vmem:[%s3113_s1 + $0x4f0] sm:$0xff]  }
  0x61   :  { %2235 = vmatpush3.bf16.msra.mxu1 %v2450_v39  ;;  %v2518_v39 = vld [vmem:[%s3113_s1 + $0x4a8] sm:$0xff]  }
  0x62   :  { %1646 = vmatmul.mubr.bf16.vlgmr.msra.gmra.mrb[8].mxu0 %v2451_v40  ;;  %2264 = vmatprep.subr.bf16.mxu1 %v2459_v46  ;;  %v2519_v40 = vld [vmem:[%s3113_s1 + $0x470] sm:$0xff]   ;;  %v2525_v46 = vld [vmem:[%s3113_s1 + $0x4f8] sm:$0xff]  }
  0x63   :  { %2243 = vmatpush3.bf16.msra.mxu0 %v2458_v45  ;;  %1727 = vmatprep.mubr.bf16.mxu0 %v2491_v13  ;;  %v2524_v45 = vld [vmem:[%s3113_s1 + $0x438] sm:$0xff]  }
  0x64   :  { %1687 = vmatmul.mubr.bf16.vlgmr.msra.gmra.mrb[8].mxu1 %v2455_v43  ;;  %2244 = vmatprep.subr.bf16.mxu0 %v2461_v48  ;;  %v2522_v43 = vld [vmem:[%s3113_s1 + $0x4b0] sm:$0xff]  }
  0x65   :  { %2265 = vmatpush3.bf16.msra.mxu1 %v2460_v47  ;;  %1768 = vmatprep.mubr.bf16.mxu1 %v2495_v16  ;;  %v2526_v47 = vld [vmem:[%s3113_s1 + $0x4b8] sm:$0xff]   ;;  %v2527_v48 = vld [vmem:[%s3114_s0 + $0x40] ss:$84 sps:$4 sm:$0xff]  }
  0x66   :  { %2266 = vmatprep.subr.bf16.mxu1 %v2463_v50  ;;  %v2536_v50 = vmov 0.0  }
  0x67   :  { %2245 = vmatpush3.bf16.msra.mxu0 %v2462_v49  ;;  %v2529_v49 = vld [vmem:[%s3114_s0 + $0x44] ss:$84 sps:$4 sm:$0xff]  }
  0x68   :  { %2246 = vmatprep.subr.bf16.mxu0 %v2465_v52  ;;  %v2532_v52 = vld [vmem:[%s3114_s0 + $0x4c] ss:$84 sps:$4 sm:$0xff]  }
  0x69   :  { %2267 = vmatpush3.bf16.msra.mxu1 %v2464_v51  ;;  %v2530_v51 = vld [vmem:[%s3114_s0 + $0x48] ss:$84 sps:$4 sm:$0xff]  }
  0x6a   :  { %2268 = vmatprep.subr.bf16.mxu1 %v2467_v54  ;;  %v2534_v54 = vld [vmem:[%s3113_s1 + $0x508] sm:$0xff]  }
  0x6b   :  { %2247 = vmatpush3.bf16.msra.mxu0 %v2466_v53  ;;  %v2533_v53 = vld [vmem:[%s3113_s1 + $0x500] sm:$0xff]  }
  0x6c   :  { %2248 = vmatprep.subr.bf16.mxu0 %v2469_v56 }
  0x6d   :  { %2269 = vmatpush3.bf16.msra.mxu1 %v2468_v55  ;;  %v2535_v55 = vld [vmem:[%s3114_s0 + $0x50] ss:$84 sps:$4 sm:$0xff]  }
  0x6e   :  { %2270 = vmatprep.subr.bf16.mxu1 %v2471_v58 }
  0x6f   :  { %2249 = vmatpush3.bf16.msra.mxu0 %v2470_v57  ;;  %v1916_v57 = vld [vmem:[%s3115_s2] ss:$0 sm:$0xff] }
  0x70   :  { %2250 = vmatprep.subr.bf16.mxu0 %v2473_v60 }
  0x71   :  { %2271 = vmatpush3.bf16.msra.mxu1 %v2472_v59 }
  0x72   :  { %2272 = vmatprep.subr.bf16.mxu1 %v2475_v62 }
  0x73   :  { %2251 = vmatpush3.bf16.msra.mxu0 %v2474_v61 }
  0x74   :  { %2252 = vmatprep.subr.bf16.mxu0 %v2477_v0 }
  0x75   :  { %2273 = vmatpush3.bf16.msra.mxu1 %v2476_v63 }
  0x76   :  { %2274 = vmatprep.subr.bf16.mxu1 %v2479_v2 }
  0x77   :  { %2253 = vmatpush3.bf16.msra.mxu0 %v2478_v1 }
  0x78   :  { %2254 = vmatprep.subr.bf16.mxu0 %v2481_v4 }
  0x79   :  { %2275 = vmatpush3.bf16.msra.mxu1 %v2480_v3 }
  0x7a   :  { %2276 = vmatprep.subr.bf16.mxu1 %v2483_v6 }
  0x7b   :  { %2255 = vmatpush3.bf16.msra.mxu0 %v2482_v5 }
  0x7c   :  { %2256 = vmatprep.subr.bf16.mxu0 %v2485_v8 }
  0x7d   :  { %2277 = vmatpush3.bf16.msra.mxu1 %v2484_v7 }
  0x7e   :  { %2278 = vmatprep.subr.bf16.mxu1 %v2487_v10 }
  0x7f   :  { %2257 = vmatpush3.bf16.msra.mxu0 %v2486_v9 }
  0x80   :  { %2286 = vmatprep.subr.bf16.mxu0 %v2492_v14 }
  0x81   :  { %2279 = vmatpush3.bf16.msra.mxu1 %v2488_v11 }
  0x82   :  { %1728 = vmatmul.mubr.bf16.vlgmr.msra.gmra.mrb[12].mxu0 %v2489_v12  ;;  %2308 = vmatprep.subr.bf16.mxu1 %v2497_v18 }
  0x83   :  { %2287 = vmatpush3.bf16.msra.mxu0 %v2496_v17  ;;  %1809 = vmatprep.mubr.bf16.mxu0 %v2529_v49 }
  0x84   :  { %1769 = vmatmul.mubr.bf16.vlgmr.msra.gmra.mrb[12].mxu1 %v2493_v15  ;;  %2288 = vmatprep.subr.bf16.mxu0 %v2499_v20 }
  0x85   :  { %2309 = vmatpush3.bf16.msra.mxu1 %v2498_v19  ;;  %1850 = vmatprep.mubr.bf16.mxu1 %v2532_v52 }
  0x86   :  { %2310 = vmatprep.subr.bf16.mxu1 %v2501_v22 }
  0x87   :  { %2289 = vmatpush3.bf16.msra.mxu0 %v2500_v21 }
  0x88   :  { %2290 = vmatprep.subr.bf16.mxu0 %v2503_v24 }
  0x89   :  { %2311 = vmatpush3.bf16.msra.mxu1 %v2502_v23 }
  0x8a   :  { %2312 = vmatprep.subr.bf16.mxu1 %v2505_v26 }
  0x8b   :  { %2291 = vmatpush3.bf16.msra.mxu0 %v2504_v25 }
  0x8c   :  { %2292 = vmatprep.subr.bf16.mxu0 %v2507_v28 }
  0x8d   :  { %2313 = vmatpush3.bf16.msra.mxu1 %v2506_v27 }
  0x8e   :  { %2314 = vmatprep.subr.bf16.mxu1 %v2509_v30 }
  0x8f   :  { %2293 = vmatpush3.bf16.msra.mxu0 %v2508_v29 }
  0x90   :  { %2294 = vmatprep.subr.bf16.mxu0 %v2511_v32 }
  0x91   :  { %2315 = vmatpush3.bf16.msra.mxu1 %v2510_v31 }
  0x92   :  { %2316 = vmatprep.subr.bf16.mxu1 %v2513_v34 }
  0x93   :  { %2295 = vmatpush3.bf16.msra.mxu0 %v2512_v33 }
  0x94   :  { %2296 = vmatprep.subr.bf16.mxu0 %v2515_v36 }
  0x95   :  { %2317 = vmatpush3.bf16.msra.mxu1 %v2514_v35 }
  0x96   :  { %2318 = vmatprep.subr.bf16.mxu1 %v2517_v38 }
  0x97   :  { %2297 = vmatpush3.bf16.msra.mxu0 %v2516_v37 }
  0x98   :  { %2298 = vmatprep.subr.bf16.mxu0 %v2519_v40 }
  0x99   :  { %2319 = vmatpush3.bf16.msra.mxu1 %v2518_v39 }
  0x9a   :  { %2320 = vmatprep.subr.bf16.mxu1 %v2521_v42 }
  0x9b   :  { %2299 = vmatpush3.bf16.msra.mxu0 %v2520_v41 }
  0x9c   :  { %2300 = vmatprep.subr.bf16.mxu0 %v2523_v44 }
  0x9d   :  { %2321 = vmatpush3.bf16.msra.mxu1 %v2522_v43 }
  0x9e   :  { %2322 = vmatprep.subr.bf16.mxu1 %v2525_v46 }
  0x9f   :  { %2301 = vmatpush3.bf16.msra.mxu0 %v2524_v45 }
  0xa0   :  { %2333 = vmatprep.subr.bf16.mxu0 %v2536_v50 }
  0xa1   :  { %2323 = vmatpush3.bf16.msra.mxu1 %v2526_v47 }
  0xa2   :  { %1810 = vmatmul.mubr.bf16.vlgmr.msra.gmra.mrb[16].mxu0 %v2527_v48 }
  0xa3   :  { %2337 = vmatprep.mubr.msk.bf16.mxu0 %vm2537_vm0, %v2536_v50  ;;  %2334 = vmatpush3.bf16.msra.mxu0 %v2533_v53 }
  0xa4   :  { %1851 = vmatmul.mubr.bf16.vlgmr.msra.gmra.mrb[16].mxu1 %v2530_v51  ;;  %2335 = vmatprep.subr.bf16.mxu0 %v2536_v50 }
  0xa7   :  { %2336 = vmatpush3.bf16.msra.mxu0 %v2534_v54 }
  0xaa   :  { %2338 = vmatmul.mubr.msk.bf16.vlgmr.msra.gmra.mrb[20].mxu0 %vm1445_vm1, %v2535_v55 }
  0xf5   :  { %v2126_v56 = vpop.f32.mrb[0].mxu0 }
  0xf6   :  { %v2127_v58 = vpop.f32.mrb[1].mxu0 }
  0xf7   :  { %v2128_v59 = vadd.f32 %v2127_v58, %v2126_v56  ;;  %v2129_v60 = vpop.f32.mrb[2].mxu0  ;;  %v2148_v61 = vpop.f32.mrb[0].mxu1 }
  0xf8   :  { %v2130_v62 = vpop.f32.mrb[3].mxu0  ;;  %v2149_v63 = vpop.f32.mrb[1].mxu1 }
  0xf9   :  { %v1484_v0 = vadd.f32 %v2128_v59, %v1916_v57  ;;  %v2131_v1 = vadd.f32 %v2130_v62, %v2129_v60  ;;  %v2150_v2 = vadd.f32 %v2149_v63, %v2148_v61  ;;  %v2151_v3 = vpop.f32.mrb[2].mxu1 }
  0xfa   :  { %v2152_v4 = vpop.f32.mrb[3].mxu1 }
  0xfb   :  { %v1487_v5 = vadd.f32 %v2131_v1, %v1916_v57  ;;  %v1525_v6 = vadd.f32 %v2150_v2, %v1484_v0  ;;  %v2153_v7 = vadd.f32 %v2152_v4, %v2151_v3 }
  0xfd   :  { %v1528_v8 = vadd.f32 %v2153_v7, %v1487_v5 }
 0x115   :  { %v2170_v9 = vpop.f32.mrb[4].mxu0 }
 0x116   :  { %v2171_v10 = vpop.f32.mrb[5].mxu0 }
 0x117   :  { %v2172_v11 = vadd.f32 %v2171_v10, %v2170_v9  ;;  %v2173_v12 = vpop.f32.mrb[6].mxu0  ;;  %v2192_v13 = vpop.f32.mrb[4].mxu1 }
 0x118   :  { %v2174_v14 = vpop.f32.mrb[7].mxu0  ;;  %v2193_v17 = vpop.f32.mrb[5].mxu1 }
 0x119   :  { %v1566_v15 = vadd.f32 %v2172_v11, %v1525_v6  ;;  %v2175_v16 = vadd.f32 %v2174_v14, %v2173_v12  ;;  %v2194_v18 = vadd.f32 %v2193_v17, %v2192_v13  ;;  %v2195_v19 = vpop.f32.mrb[6].mxu1 }
 0x11a   :  { %v2196_v21 = vpop.f32.mrb[7].mxu1 }
 0x11b   :  { %v1569_v20 = vadd.f32 %v2175_v16, %v1528_v8  ;;  %v1607_v22 = vadd.f32 %v2194_v18, %v1566_v15  ;;  %v2197_v23 = vadd.f32 %v2196_v21, %v2195_v19 }
 0x11d   :  { %v1610_v24 = vadd.f32 %v2197_v23, %v1569_v20 }
 0x135   :  { %v2214_v25 = vpop.f32.mrb[8].mxu0 }
 0x136   :  { %v2215_v26 = vpop.f32.mrb[9].mxu0 }
 0x137   :  { %v2216_v27 = vadd.f32 %v2215_v26, %v2214_v25  ;;  %v2217_v28 = vpop.f32.mrb[10].mxu0  ;;  %v2236_v29 = vpop.f32.mrb[8].mxu1 }
 0x138   :  { %v2218_v30 = vpop.f32.mrb[11].mxu0  ;;  %v2237_v31 = vpop.f32.mrb[9].mxu1 }
 0x139   :  { %v1648_v32 = vadd.f32 %v2216_v27, %v1607_v22  ;;  %v2219_v33 = vadd.f32 %v2218_v30, %v2217_v28  ;;  %v2238_v34 = vadd.f32 %v2237_v31, %v2236_v29  ;;  %v2239_v35 = vpop.f32.mrb[10].mxu1 }
 0x13a   :  { %v2240_v36 = vpop.f32.mrb[11].mxu1 }
 0x13b   :  { %v1651_v37 = vadd.f32 %v2219_v33, %v1610_v24  ;;  %v1689_v38 = vadd.f32 %v2238_v34, %v1648_v32  ;;  %v2241_v39 = vadd.f32 %v2240_v36, %v2239_v35 }
 0x13d   :  { %v1692_v40 = vadd.f32 %v2241_v39, %v1651_v37 }
 0x155   :  { %v2258_v41 = vpop.f32.mrb[12].mxu0 }
 0x156   :  { %v2259_v42 = vpop.f32.mrb[13].mxu0 }
 0x157   :  { %v2260_v43 = vadd.f32 %v2259_v42, %v2258_v41  ;;  %v2261_v44 = vpop.f32.mrb[14].mxu0  ;;  %v2280_v45 = vpop.f32.mrb[12].mxu1 }
 0x158   :  { %v2262_v46 = vpop.f32.mrb[15].mxu0  ;;  %v2281_v47 = vpop.f32.mrb[13].mxu1 }
 0x159   :  { %v1730_v48 = vadd.f32 %v2260_v43, %v1689_v38  ;;  %v2263_v49 = vadd.f32 %v2262_v46, %v2261_v44  ;;  %v2282_v50 = vadd.f32 %v2281_v47, %v2280_v45  ;;  %v2283_v51 = vpop.f32.mrb[14].mxu1 }
 0x15a   :  { %v2284_v52 = vpop.f32.mrb[15].mxu1 }
 0x15b   :  { %v1733_v53 = vadd.f32 %v2263_v49, %v1692_v40  ;;  %v1771_v54 = vadd.f32 %v2282_v50, %v1730_v48  ;;  %v2285_v55 = vadd.f32 %v2284_v52, %v2283_v51 }
 0x15d   :  { %v1774_v56 = vadd.f32 %v2285_v55, %v1733_v53 }
 0x175   :  { %v2302_v57 = vpop.f32.mrb[16].mxu0 }
 0x176   :  { %v2303_v58 = vpop.f32.mrb[17].mxu0 }
 0x177   :  { %v2304_v59 = vadd.f32 %v2303_v58, %v2302_v57  ;;  %v2324_v60 = vpop.f32.mrb[16].mxu1  ;;  %v2305_v61 = vpop.f32.mrb[18].mxu0 }
 0x178   :  { %v2325_v62 = vpop.f32.mrb[17].mxu1  ;;  %v2306_v63 = vpop.f32.mrb[19].mxu0 }
 0x179   :  { %v1812_v0 = vadd.f32 %v2304_v59, %v1771_v54  ;;  %v2326_v1 = vadd.f32 %v2325_v62, %v2324_v60  ;;  %v2307_v2 = vadd.f32 %v2306_v63, %v2305_v61  ;;  %v2327_v3 = vpop.f32.mrb[18].mxu1 }
 0x17a   :  { %v2328_v4 = vpop.f32.mrb[19].mxu1 }
 0x17b   :  { %v1815_v5 = vadd.f32 %v2307_v2, %v1774_v56  ;;  %v2329_v6 = vadd.f32 %v2328_v4, %v2327_v3  ;;  %v1853_v7 = vadd.f32 %v2326_v1, %v1812_v0 }
 0x17d   :  { %v1856_v8 = vadd.f32 %v2329_v6, %v1815_v5  ;;  %v1893_v9 = vpop.f32.mrb[20].mxu0 }
 0x17e   :  { %v1894_v10 = vadd.f32 %v1893_v9, %v1853_v7  ;;  %v2339_v11 = vpop.f32.mrb[21].mxu0 }
 0x17f   :  { %v1896_v12 = vpop.f32.mrb[22].mxu0 }
 0x180   :  { %v1897_v13 = vadd.f32 %v1896_v12, %v1856_v8  ;;  %v2340_v14 = vpop.f32.mrb[23].mxu0  ;;  %v1900_v15 = vmax.f32 %v1894_v10, 0.0 }
 0x182   :  { %v1901_v16 = vmax.f32 %v1897_v13, 0.0 }
 0x184   :  { %v2108_v17 = vpack.c.bf16 %v1901_v16, %v1900_v15 }
 0x186   :  { %2109 = vst [vmem:[%s3116_s3] sm:$0xff] %v2108_v17  }

</bundles_post_ra>
